<compile_context>
chip_gen: v7x
topology: tpu7x:2x2x1
jax: 0.10.0
libtpu: 0.0.40
codegen_flags: <defaults>
</compile_context>

<pallas_src>
import functools
import math

import jax
import jax.numpy as jnp
from jax.experimental import pallas as pl
from jax.experimental.pallas import tpu as pltpu

# ----------------------------- configuration --------------------------------
D = 32            # hidden_dim == in_channels (small synthetic config)
NUM_MASKS = 5
OUT_RES = 32
NUM_BLOCKS = 6
IOU_HIDDEN = 32
_LN_EPS = 1e-6

SOBEL_X = [[-1.0, 0.0, 1.0], [-2.0, 0.0, 2.0], [-1.0, 0.0, 1.0]]
SOBEL_Y = [[-1.0, -2.0, -1.0], [0.0, 0.0, 0.0], [1.0, 2.0, 1.0]]


def _round_up(x, m):
    return (x + m - 1) // m * m


def _tpu_vmem_bytes():
    try:
        return int(pltpu.get_tpu_info().vmem_capacity_bytes)
    except Exception:
        return 64 * 1024 * 1024          # conservative default (v7x-sized)


_VMEM_CAP = _tpu_vmem_bytes()
# v5e/v6e (128 MiB): limit 56 MiB, per-step budget 26 MiB.
# v7x    (64 MiB):  limit ~29 MiB, per-step budget ~14 MiB.
_VMEM_LIMIT = min(int(_VMEM_CAP * 0.45), 56 * 1024 * 1024)
_STEP_BUDGET = min(int(_VMEM_CAP * 0.22), 26 * 1024 * 1024)
_MIN_GRID = 4                    # >= 2 steps per core on 2-TC (v7x) chips
_PALLAS_MIN_ROWS = 4096          # below this a conv runs in plain jnp
_PALLAS_MIN_WORK = 2 ** 21       # below this a matmul runs in plain jnp


def gelu(x):
    # TODO(synk): tanh-approximate GELU (nn.GELU default is erf); same form is
    # used in- and out-of-kernel so the math is self-consistent.
    c = 0.7978845608028654
    return 0.5 * x * (1.0 + jnp.tanh(c * (x + 0.044715 * x * x * x)))


def _apply_epilogue(acc, post, groups, g, b):
    """acc: f32 (M, N).  post in {none, gelu, ln, ln_gelu}.  Grouped LN splits
    the N channels into `groups` equal groups normalized independently (used
    for the phase-packed ConvTranspose)."""
    if post in ("ln", "ln_gelu"):
        n = acc.shape[-1]
        gs = n // groups
        parts = []
        for p in range(groups):
            seg = acc[:, p * gs:(p + 1) * gs]
            mu = jnp.mean(seg, axis=-1, keepdims=True)
            sc = seg - mu
            var = jnp.mean(sc * sc, axis=-1, keepdims=True)
            parts.append(sc * jax.lax.rsqrt(var + _LN_EPS) * g + b)
        acc = parts[0] if groups == 1 else jnp.concatenate(parts, axis=-1)
    if post in ("gelu", "ln_gelu"):
        acc = gelu(acc)
    return acc


# ------------------------ fused matmul Pallas kernel -------------------------
def _mm_kernel(*refs, post, groups):
    x_ref, w_ref, b_ref = refs[0], refs[1], refs[2]
    i = 3
    g = b2 = None
    if post in ("ln", "ln_gelu"):
        g, b2 = refs[i][...], refs[i + 1][...]
        i += 2
    o_ref = refs[i]
    acc = jnp.dot(x_ref[...], w_ref[...], preferred_element_type=jnp.float32)
    acc = acc + b_ref[...]
    acc = _apply_epilogue(acc, post, groups, g, b2)
    o_ref[...] = acc.astype(o_ref.dtype)


@functools.partial(jax.jit, static_argnames=("tm", "post", "groups", "out_dtype"))
def _mm_call(a, w, bias, extras, *, tm, post, groups, out_dtype):
    M, K = a.shape
    N = w.shape[1]
    in_specs = [pl.BlockSpec((tm, K), lambda i: (i, 0)),
                pl.BlockSpec((K, N), lambda i: (0, 0)),
                pl.BlockSpec((1, N), lambda i: (0, 0))]
    if post in ("ln", "ln_gelu"):
        gs = N // groups
        in_specs += [pl.BlockSpec((1, gs), lambda i: (0, 0)),
                     pl.BlockSpec((1, gs), lambda i: (0, 0))]
    return pl.pallas_call(
        functools.partial(_mm_kernel, post=post, groups=groups),
        out_shape=jax.ShapeDtypeStruct((M, N), out_dtype),
        grid_spec=pltpu.PrefetchScalarGridSpec(
            num_scalar_prefetch=0,
            grid=(M // tm,),
            in_specs=in_specs,
            out_specs=pl.BlockSpec((tm, N), lambda i: (i, 0))),
        compiler_params=pltpu.CompilerParams(
            dimension_semantics=("parallel",),
            vmem_limit_bytes=_VMEM_LIMIT),
    )(a, w, bias, *extras)


def _pick_tm(M, K, N):
    """Largest row tile under the per-step budget with >=_MIN_GRID steps."""
    Mr = _round_up(max(M, 8), 8)
    kl, nl = _round_up(K, 128), _round_up(N, 128)

    def step_bytes(tm):
        # A (bf16, 2 bufs) + out (bf16, 2 bufs) + f32 acc
        return tm * (2 * kl * 2 + 2 * nl * 2 + nl * 4)

    best = 8
    for cand in (8192, 4096, 2048, 1024, 512, 256, 128, 64, 32, 16, 8):
        if cand > Mr or Mr % cand or step_bytes(cand) > _STEP_BUDGET:
            continue
        best = max(best, cand) if best == 8 else best
        if Mr // cand >= _MIN_GRID:
            return cand
        best = cand if best == 8 else max(best, cand)
    return best


def _jnp_matmul(a, w, bias, post, post_ln, groups, out_dtype):
    y = a.astype(jnp.float32) @ w.astype(jnp.float32) + bias
    g = post_ln["g"] if post_ln is not None else None
    b = post_ln["b"] if post_ln is not None else None
    y = _apply_epilogue(y, post, groups, g, b)
    return y.astype(out_dtype)


def fused_matmul(a, w, bias, post="none", post_ln=None, ln_groups=1,
                 out_dtype=jnp.bfloat16):
    """out = epilogue(a @ w + bias); bf16 operands, f32 math, bf16 out."""
    M, K = a.shape
    N = w.shape[1]
    if M * K * N < _PALLAS_MIN_WORK or K < 16:
        return _jnp_matmul(a, w, bias, post, post_ln, ln_groups, out_dtype)
    a = a.astype(jnp.bfloat16)
    tm = _pick_tm(M, K, N)
    Mp = _round_up(M, tm)
    if Mp != M:
        a = jnp.pad(a, ((0, Mp - M), (0, 0)))
    extras = ()
    if post in ("ln", "ln_gelu"):
        extras = (post_ln["g"], post_ln["b"])
    out = _mm_call(a, w, bias, extras, tm=tm, post=post, groups=ln_groups,
                   out_dtype=out_dtype)
    return out[:M]


# ---------------------- direct (no-im2col) conv kernel -----------------------
def _dconv_kernel(*refs, kh, kw, dil, sh, W, C, post, groups):
    x_ref, w_ref, b_ref = refs[0], refs[1], refs[2]
    i = 3
    g = b2 = None
    if post in ("ln", "ln_gelu"):
        g, b2 = refs[i][...], refs[i + 1][...]
        i += 2
    o_ref = refs[i]
    # Build the im2col block in VMEM from shifted views of the resident slab.
    taps = []
    for ki in range(kh):
        for kj in range(kw):
            taps.append(x_ref[pl.ds(ki * dil, sh), pl.ds(kj * dil, W), :])
    a = taps[0] if len(taps) == 1 else jnp.concatenate(taps, axis=-1)
    a = a.reshape(sh * W, kh * kw * C)
    acc = jnp.dot(a, w_ref[...], preferred_element_type=jnp.float32)
    acc = acc + b_ref[...]
    acc = _apply_epilogue(acc, post, groups, g, b2)
    N = o_ref.shape[-1]
    o_ref[...] = acc.reshape(sh, W, N).astype(o_ref.dtype)


@functools.partial(jax.jit, static_argnames=(
    "kh", "kw", "dil", "sh", "halo", "W", "C", "N", "post", "groups", "out_dtype"))
def _dconv_call(xs, w, b, extras, *, kh, kw, dil, sh, halo, W, C, N, post,
                groups, out_dtype):
    Sh = sh + halo
    Wp = xs.shape[1]
    G = xs.shape[0] // Sh
    in_specs = [pl.BlockSpec((Sh, Wp, C), lambda i: (i, 0, 0)),
                pl.BlockSpec((kh * kw * C, N), lambda i: (0, 0)),
                pl.BlockSpec((1, N), lambda i: (0, 0))]
    if post in ("ln", "ln_gelu"):
        gs = N // groups
        in_specs += [pl.BlockSpec((1, gs), lambda i: (0, 0)),
                     pl.BlockSpec((1, gs), lambda i: (0, 0))]
    kernel = functools.partial(_dconv_kernel, kh=kh, kw=kw, dil=dil, sh=sh,
                               W=W, C=C, post=post, groups=groups)
    return pl.pallas_call(
        kernel,
        out_shape=jax.ShapeDtypeStruct((G * sh, W, N), out_dtype),
        grid_spec=pltpu.PrefetchScalarGridSpec(
            num_scalar_prefetch=0,
            grid=(G,),
            in_specs=in_specs,
            out_specs=pl.BlockSpec((sh, W, N), lambda i: (i, 0, 0))),
        compiler_params=pltpu.CompilerParams(
            dimension_semantics=("parallel",),
            vmem_limit_bytes=_VMEM_LIMIT),
    )(xs, w, b, *extras)


def _dconv_plan(B, H, W, C, kh, kw, dil):
    """Pick the output-row slab size sh (divisor of H) under the VMEM budget
    with >= _MIN_GRID grid steps.  Returns None if nothing fits (fallback)."""
    halo = dil * (kh - 1)
    Wp = W + halo
    K = kh * kw * C

    def step_bytes(sh):
        slab = (sh + halo) * _round_up(Wp, 8) * 128 * 2     # bf16, lane padded
        a = sh * W * _round_up(K, 128) * 2                  # in-kernel A (bf16)
        acc = sh * W * 128 * 4                              # f32 acc (lane pad)
        out = sh * _round_up(W, 8) * 128 * 2                # out block (bf16)
        return 2 * slab + a + acc + 2 * out

    best = None
    for sh in sorted([d for d in range(1, H + 1) if H % d == 0], reverse=True):
        if step_bytes(sh) > _STEP_BUDGET:
            continue
        if best is None:
            best = sh
        if B * (H // sh) >= _MIN_GRID:
            return sh
        best = sh
    return best


def conv2d(x, p, padding=0, dilation=1, post="none", post_ln=None, ln_groups=1,
           out_dtype=jnp.bfloat16):
    """NHWC stride-1 convolution with fused LN/GELU epilogue.
    1x1 convs -> fused Pallas matmul; k>1 'same' convs -> direct-conv Pallas
    kernel (in-kernel patch assembly, no HBM im2col); tiny convs -> jnp."""
    kh, kw = p["kh"], p["kw"]
    B, H, W, C = x.shape
    N = p["w"].shape[1]

    if kh == 1 and kw == 1 and padding == 0:
        a = x.reshape(B * H * W, C)
        out = fused_matmul(a, p["w"], p["b"], post=post, post_ln=post_ln,
                           ln_groups=ln_groups, out_dtype=out_dtype)
        return out.reshape(B, H, W, N)

    Ho = H + 2 * padding - dilation * (kh - 1)
    Wo = W + 2 * padding - dilation * (kw - 1)
    same = (Ho == H) and (Wo == W)

    if same and B * H * W >= _PALLAS_MIN_ROWS and W % 8 == 0:
        sh = _dconv_plan(B, H, W, C, kh, kw, dilation)
        if sh is not None:
            halo = dilation * (kh - 1)
            Sh = sh + halo
            xb = x.astype(jnp.bfloat16)
            xp = jnp.pad(xb, ((0, 0), (padding, padding),
                              (padding, padding), (0, 0)))
            ns = H // sh
            if ns == 1:
                xs = xp.reshape(B * Sh, W + 2 * padding, C)
            else:
                slabs = [xp[:, s * sh:s * sh + Sh] for s in range(ns)]
                xs = jnp.stack(slabs, axis=1).reshape(
                    B * ns * Sh, W + 2 * padding, C)
            extras = ()
            if post in ("ln", "ln_gelu"):
                extras = (post_ln["g"], post_ln["b"])
            out = _dconv_call(xs, p["w"], p["b"], extras, kh=kh, kw=kw,
                              dil=dilation, sh=sh, halo=halo, W=W, C=C, N=N,
                              post=post, groups=ln_groups, out_dtype=out_dtype)
            return out.reshape(B, H, W, N)

    # Fallback (tiny maps / odd shapes): im2col in HBM + jnp/Pallas matmul.
    xp = jnp.pad(x, ((0, 0), (padding, padding), (padding, padding), (0, 0))) \
        if padding else x
    cols = [xp[:, i * dilation:i * dilation + Ho, j * dilation:j * dilation + Wo, :]
            for i in range(kh) for j in range(kw)]
    a = jnp.concatenate(cols, axis=-1).reshape(B * Ho * Wo, kh * kw * C)
    out = fused_matmul(a, p["w"], p["b"], post=post, post_ln=post_ln,
                       ln_groups=ln_groups, out_dtype=out_dtype)
    return out.reshape(B, Ho, Wo, N)


def conv_transpose_k4s2p1(x, p, post="none", post_ln=None):
    """ConvTranspose2d(k=4,s=2,p=1): all 4 sub-pixel phases packed into ONE
    3x3 conv with a block-sparse (9*Cin, 4*Cout) weight and a grouped LN/GELU
    epilogue, finished by a single depth-to-space."""
    B, H, W, _ = x.shape
    cout = p["cout"]
    y = conv2d(x, p, padding=1, post=post, post_ln=post_ln, ln_groups=4)
    y = y.reshape(B, H, W, 2, 2, cout)
    y = jnp.transpose(y, (0, 1, 3, 2, 4, 5)).reshape(B, 2 * H, 2 * W, cout)
    return y


# --------------------------- standalone LayerNorm2D --------------------------
def _ln_kernel(x_ref, g_ref, b_ref, o_ref):
    x = x_ref[...].astype(jnp.float32)
    mu = jnp.mean(x, axis=-1, keepdims=True)
    xc = x - mu
    var = jnp.mean(xc * xc, axis=-1, keepdims=True)
    y = xc * jax.lax.rsqrt(var + _LN_EPS) * g_ref[...] + b_ref[...]
    o_ref[...] = y.astype(o_ref.dtype)


@functools.partial(jax.jit, static_argnames=("tm", "out_dtype"))
def _ln_call(x, g, b, *, tm, out_dtype):
    M, C = x.shape
    return pl.pallas_call(
        _ln_kernel,
        out_shape=jax.ShapeDtypeStruct((M, C), out_dtype),
        grid_spec=pltpu.PrefetchScalarGridSpec(
            num_scalar_prefetch=0,
            grid=(M // tm,),
            in_specs=[pl.BlockSpec((tm, C), lambda i: (i, 0)),
                      pl.BlockSpec((1, C), lambda i: (0, 0)),
                      pl.BlockSpec((1, C), lambda i: (0, 0))],
            out_specs=pl.BlockSpec((tm, C), lambda i: (i, 0))),
        compiler_params=pltpu.CompilerParams(
            dimension_semantics=("parallel",),
            vmem_limit_bytes=_VMEM_LIMIT),
    )(x, g, b)


def ln2d(x, p, out_dtype=jnp.bfloat16):
    """Per-pixel channel LayerNorm (SAM-style LayerNorm2D), NHWC input."""
    # TODO(synk): LayerNorm2D source not provided; assumed per-pixel channel LN, eps=1e-6.
    B, H, W, C = x.shape
    x2 = x.reshape(B * H * W, C)
    M = x2.shape[0]
    tm = _pick_tm(M, C, C)
    Mp = _round_up(M, tm)
    if Mp != M:
        x2 = jnp.pad(x2, ((0, Mp - M), (0, 0)))
    out = _ln_call(x2, p["g"], p["b"], tm=tm, out_dtype=out_dtype)
    return out[:M].reshape(B, H, W, C)


# ------------------ fused EfficientViM block-stack kernel --------------------
def _vim_stack_kernel(x_ref, lg_ref, lb_ref, w1_ref, b1_ref, w2_ref, b2_ref,
                      o_ref, *, nblocks):
    # TODO(synk): EfficientViMBlock source not provided; surrogate =
    #             LN -> 1x1 (expand 2x) -> GELU -> 1x1 -> residual add.
    x = x_ref[...].astype(jnp.float32)
    for k in range(nblocks):
        mu = jnp.mean(x, axis=-1, keepdims=True)
        xc = x - mu
        var = jnp.mean(xc * xc, axis=-1, keepdims=True)
        h = xc * jax.lax.rsqrt(var + _LN_EPS) * lg_ref[k] + lb_ref[k]
        h = jnp.dot(h.astype(jnp.bfloat16), w1_ref[k],
                    preferred_element_type=jnp.float32) + b1_ref[k]
        h = gelu(h)
        h = jnp.dot(h.astype(jnp.bfloat16), w2_ref[k],
                    preferred_element_type=jnp.float32) + b2_ref[k]
        x = x + h
    o_ref[...] = x.astype(o_ref.dtype)


@functools.partial(jax.jit, static_argnames=("tm", "nblocks", "out_dtype"))
def _vim_stack_call(x, lg, lb, w1, b1, w2, b2, *, tm, nblocks, out_dtype):
    M, C = x.shape
    H2 = w1.shape[-1]
    nb = nblocks
    return pl.pallas_call(
        functools.partial(_vim_stack_kernel, nblocks=nblocks),
        out_shape=jax.ShapeDtypeStruct((M, C), out_dtype),
        grid_spec=pltpu.PrefetchScalarGridSpec(
            num_scalar_prefetch=0,
            grid=(M // tm,),
            in_specs=[pl.BlockSpec((tm, C), lambda i: (i, 0)),
                      pl.BlockSpec((nb, 1, C), lambda i: (0, 0, 0)),
                      pl.BlockSpec((nb, 1, C), lambda i: (0, 0, 0)),
                      pl.BlockSpec((nb, C, H2), lambda i: (0, 0, 0)),
                      pl.BlockSpec((nb, 1, H2), lambda i: (0, 0, 0)),
                      pl.BlockSpec((nb, H2, C), lambda i: (0, 0, 0)),
                      pl.BlockSpec((nb, 1, C), lambda i: (0, 0, 0))],
            out_specs=pl.BlockSpec((tm, C), lambda i: (i, 0))),
        compiler_params=pltpu.CompilerParams(
            dimension_semantics=("parallel",),
            vmem_limit_bytes=_VMEM_LIMIT),
    )(x, lg, lb, w1, b1, w2, b2)


def vim_stack(x, p):
    B, H, W, C = x.shape
    a = x.reshape(B * H * W, C).astype(jnp.bfloat16)
    M = a.shape[0]
    tm = None
    for cand in (4096, 2048, 1024, 512, 256, 128, 64, 32, 16, 8):
        if cand <= M and M % cand == 0 and M // cand >= _MIN_GRID:
            tm = cand
            break
    if tm is None:
        tm = M if M % 8 == 0 else None
    if tm is None:       # safety fallback (never hit with these shapes)
        xf = a.astype(jnp.float32)
        for k in range(NUM_BLOCKS):
            mu = xf.mean(-1, keepdims=True)
            xc = xf - mu
            var = (xc * xc).mean(-1, keepdims=True)
            h = xc * jax.lax.rsqrt(var + _LN_EPS) * p["lg"][k] + p["lb"][k]
            h = gelu(h @ p["w1"][k].astype(jnp.float32) + p["b1"][k])
            xf = xf + (h @ p["w2"][k].astype(jnp.float32) + p["b2"][k])
        return xf.astype(jnp.bfloat16).reshape(B, H, W, C)
    out = _vim_stack_call(a, p["lg"], p["lb"], p["w1"], p["b1"], p["w2"],
                          p["b2"], tm=tm, nblocks=NUM_BLOCKS,
                          out_dtype=jnp.bfloat16)
    return out.reshape(B, H, W, C)


# ------------------------------ misc helpers ---------------------------------
def resize_bilinear(x, H, W, antialias=False):
    B, h, w, C = x.shape
    if (h, w) == (H, W):
        return x
    return jax.image.resize(x, (B, H, W, C), method="bilinear",
                            antialias=antialias)


def sobel_depthwise(x, kern):
    B, H, W, C = x.shape
    xf = x.astype(jnp.float32)
    xp = jnp.pad(xf, ((0, 0), (1, 1), (1, 1), (0, 0)))
    out = jnp.zeros_like(xf)
    for i in range(3):
        for j in range(3):
            kv = kern[i][j]
            if kv != 0.0:
                out = out + kv * xp[:, i:i + H, j:j + W, :]
    return out


def linear_j(x, p):
    return x @ p["w"] + p["b"]


def channel_attention(x, p):
    xf = x.astype(jnp.float32)
    avg = jnp.mean(xf, axis=(1, 2))
    mx = jnp.max(xf, axis=(1, 2))

    def mlp(v):
        return linear_j(gelu(linear_j(v, p["ca_fc1"])), p["ca_fc2"])

    att = jax.nn.sigmoid(mlp(avg) + mlp(mx))
    return x * att[:, None, None, :].astype(x.dtype)


def spatial_attention(x, p):
    B, H, W, _ = x.shape
    xf = x.astype(jnp.float32)
    avg = jnp.mean(xf, axis=-1, keepdims=True)
    mx = jnp.max(xf, axis=-1, keepdims=True)
    m2 = jnp.pad(jnp.concatenate([avg, mx], axis=-1),
                 ((0, 0), (1, 1), (1, 1), (0, 0)))
    att = jnp.zeros((B, H, W, 1), jnp.float32)
    for i in range(3):
        for j in range(3):
            att = att + m2[:, i:i + H, j:j + W, :] @ p["sa_w"][i, j]
    att = jax.nn.sigmoid(att) * (p["sa_weight"] + p["sa_small_obj_bias"])
    return x * att.astype(x.dtype)


def cbam(x, p):
    return spatial_attention(channel_attention(x, p), p)


def multi_scale_fusion(high_in, low, p):
    high = conv2d(high_in, p["conv_high"])
    low = resize_bilinear(low, high.shape[1], high.shape[2])
    fused = (high.astype(jnp.float32) + low.astype(jnp.float32)).astype(jnp.bfloat16)
    fused = conv2d(fused, p["conv_low"], padding=1)
    ctx = conv2d(fused, p["ctx_conv"], padding=4, dilation=2,
                 post="ln_gelu", post_ln=p["ctx_ln"])
    ctx = (ctx.astype(jnp.float32) * p["context_weight"]).astype(jnp.bfloat16)
    det = conv2d(fused, p["det_conv"], padding=1)
    so = conv2d(fused, p["so_conv1"])
    so = conv2d(so, p["so_conv2"], padding=1, post="ln_gelu", post_ln=p["so_ln"])
    so = (so.astype(jnp.float32) * p["small_obj_weight"]).astype(jnp.bfloat16)
    pooled = jnp.mean(fused.astype(jnp.float32), axis=(1, 2))
    g = jax.nn.sigmoid(pooled @ p["ga_w"] + p["ga_b"])
    gatt = (fused.astype(jnp.float32) * g[:, None, None, :]).astype(jnp.bfloat16)
    out = conv2d(jnp.concatenate([ctx, det, so, gatt], axis=-1), p["fusion"],
                 post="ln_gelu", post_ln=p["norm"])
    return out + high


def output_upscaling(x, p):
    u = conv_transpose_k4s2p1(x, p["ct1"], post="ln_gelu", post_ln=p["ln1"])
    u = conv2d(u, p["c1"], padding=1)
    u = conv_transpose_k4s2p1(u, p["ct2"], post="ln_gelu", post_ln=p["ln2"])
    u = conv2d(u, p["c2"], padding=1)
    u = conv_transpose_k4s2p1(u, p["ct3"], post="ln_gelu", post_ln=p["ln3"])
    u = conv2d(u, p["c3"], padding=1, post="ln_gelu", post_ln=p["ln4"])
    u = conv2d(u, p["c4"], padding=1, post="gelu")
    return u


def skip_conv(x, p):
    x = conv2d(x, p["c1"], padding=1, post="ln_gelu", post_ln=p["ln1"])
    x = conv2d(x, p["c2"], padding=1, post="ln_gelu", post_ln=p["ln2"])
    x = conv2d(x, p["c3"], post="ln", post_ln=p["ln3"])
    return x


def boundary_refine(x, p):
    ex = sobel_depthwise(x, SOBEL_X)
    ey = sobel_depthwise(x, SOBEL_Y)
    e = conv2d(jnp.concatenate([ex, ey], axis=-1).astype(jnp.bfloat16),
               p["be_fusion"], post="ln_gelu", post_ln=p["be_ln"])
    x = x + e
    x = conv2d(x, p["c1"], padding=1, post="ln_gelu", post_ln=p["ln1"])
    x = conv2d(x, p["c2"], padding=1, post="ln_gelu", post_ln=p["ln2"])
    x = conv2d(x, p["c3"])
    return jax.nn.sigmoid(x.astype(jnp.float32))


def bbox_head(x, p):
    x = conv2d(x, p["c1"], padding=1, post="ln_gelu", post_ln=p["ln1"])
    x = conv2d(x, p["c2"], padding=3, dilation=3, post="ln_gelu", post_ln=p["ln2"])
    x = cbam(x, p["cbam"])
    x = conv2d(x, p["c3"], padding=1, post="ln_gelu", post_ln=p["ln3"])
    x = resize_bilinear(x, x.shape[1] * 2, x.shape[2] * 2)
    x = conv2d(x, p["c4"], padding=1, post="ln_gelu", post_ln=p["ln4"])
    x = conv2d(x, p["c5"])
    return x


def hyper_heads(tokens, p):
    """Batched hypernetwork MLPs: tokens (B, num_masks, D) -> (B, num_masks, D/8)."""
    h = gelu(jnp.einsum("bnd,nde->bne", tokens, p["w1"]) + p["b1"][None])
    h = gelu(jnp.einsum("bnd,nde->bne", h, p["w2"]) + p["b2"][None])
    return jnp.einsum("bnd,nde->bne", h, p["w3"]) + p["b3"][None]


def iou_head(v, p):
    h = gelu(linear_j(v, p["l1"]))
    h = gelu(linear_j(h, p["l2"]))
    return jax.nn.softmax(linear_j(h, p["l3"]), axis=-1)


def obj_head(v, p):
    h = gelu(linear_j(v, p["l1"]))
    return jax.nn.softmax(linear_j(h, p["l2"]), axis=-1)


# --------------------------- bbox refine / NMS --------------------------------
def compute_iou_jax(box1, box2):
    x1, y1, x2, y2 = box1[..., 0], box1[..., 1], box1[..., 2], box1[..., 3]
    x1_, y1_, x2_, y2_ = box2[..., 0], box2[..., 1], box2[..., 2], box2[..., 3]
    iw = jnp.clip(jnp.minimum(x2, x2_) - jnp.maximum(x1, x1_), 0.0)
    ih = jnp.clip(jnp.minimum(y2, y2_) - jnp.maximum(y1, y1_), 0.0)
    inter = iw * ih
    union = (x2 - x1) * (y2 - y1) + (x2_ - x1_) * (y2_ - y1_) - inter
    return jnp.minimum(inter / jnp.maximum(union, 1e-6), 1.0)


def refine_mask_with_bbox(masks, bboxes):
    B, N, H, W = masks.shape
    bb = bboxes.astype(jnp.int32)
    x1 = jnp.maximum(bb[..., 0], 0)[..., None, None]
    y1 = jnp.maximum(bb[..., 1], 0)[..., None, None]
    x2 = jnp.minimum(bb[..., 2], W)[..., None, None]
    y2 = jnp.minimum(bb[..., 3], H)[..., None, None]
    rows = jnp.arange(H)[None, None, :, None]
    cols = jnp.arange(W)[None, None, None, :]
    inside = (rows >= y1) & (rows < y2) & (cols >= x1) & (cols < x2)
    return masks * inside.astype(masks.dtype)


def apply_nms(bboxes, masks, iou_scores, obj_scores, iou_threshold=0.3):
    # greedy NMS with fixed trip count (num_masks is small & static);
    # suppressed slots are filled with the top kept entry to keep static shapes.
    B, N = iou_scores.shape
    kb, km, ks, ko = [], [], [], []
    for b in range(B):
        boxes, scores = bboxes[b], iou_scores[b]
        order = jnp.argsort(-scores)
        bs = boxes[order]
        suppressed = jnp.zeros((N,), bool)
        for i in range(N):
            active = jnp.logical_not(suppressed[i])
            ious = compute_iou_jax(bs, bs[i])
            suppressed = suppressed | ((jnp.arange(N) > i) & (ious >= iou_threshold) & active)
        kept = jnp.logical_not(suppressed)
        pos = jnp.argsort(jnp.where(kept, jnp.arange(N), N + jnp.arange(N)))
        num_keep = jnp.sum(kept)
        pos = jnp.where(jnp.arange(N) < num_keep, pos, pos[0])
        keep_idx = order[pos]
        kb.append(boxes[keep_idx])
        km.append(masks[b][keep_idx])
        ks.append(scores[keep_idx])
        ko.append(obj_scores[b][keep_idx])
    return jnp.stack(kb), jnp.stack(km), jnp.stack(ks), jnp.stack(ko)


# ------------------------------- parameters -----------------------------------
class KeyGen:
    def __init__(self, seed):
        self.key = jax.random.PRNGKey(seed)

    def __call__(self):
        self.key, sub = jax.random.split(self.key)
        return sub


kg = KeyGen(0)


def conv_p(kh, kw, cin, cout):
    fan_in = kh * kw * cin
    w = jax.random.normal(kg(), (kh, kw, cin, cout), jnp.float32) / math.sqrt(fan_in)
    return {"w": w.reshape(kh * kw * cin, cout).astype(jnp.bfloat16),
            "b": jnp.zeros((1, cout), jnp.float32),
            "kh": kh, "kw": kw}


def convT_p(cin, cout):
    """ConvTranspose2d(k=4,s=2,p=1) packed as a single 3x3 conv with a
    block-sparse (9*cin, 4*cout) weight; phase order (ry, rx) = row-major."""
    w = jax.random.normal(kg(), (4, 4, cin, cout), jnp.float32) / math.sqrt(16 * cin)
    wp = jnp.zeros((3, 3, cin, 4 * cout), jnp.float32)
    rmap0 = {0: 3, 1: 1}     # phase offset 0: neighborhood tap -> ConvT kernel idx
    rmap1 = {1: 2, 2: 0}     # phase offset 1
    for ry in (0, 1):
        for rx in (0, 1):
            ph = ry * 2 + rx
            rmap = rmap0 if ry == 0 else rmap1
            cmap = rmap0 if rx == 0 else rmap1
            for ti, ky in rmap.items():
                for tj, kx in cmap.items():
                    wp = wp.at[ti, tj, :, ph * cout:(ph + 1) * cout].set(w[ky, kx])
    bias = jnp.zeros((1, cout), jnp.float32)
    return {"w": wp.reshape(9 * cin, 4 * cout).astype(jnp.bfloat16),
            "b": jnp.tile(bias, (1, 4)),
            "kh": 3, "kw": 3, "cout": cout}


def lin_p(cin, cout):
    return {"w": jax.random.normal(kg(), (cin, cout), jnp.float32) / math.sqrt(cin),
            "b": jnp.zeros((cout,), jnp.float32)}


def ln_p(c):
    return {"g": jnp.ones((1, c), jnp.float32), "b": jnp.zeros((1, c), jnp.float32)}


def cbam_p(c, r=4):
    return {"ca_fc1": lin_p(c, c // r), "ca_fc2": lin_p(c // r, c),
            "sa_w": jax.random.normal(kg(), (3, 3, 2, 1), jnp.float32) / math.sqrt(18.0),
            "sa_weight": jnp.asarray(1.0, jnp.float32),
            "sa_small_obj_bias": jnp.asarray(0.5, jnp.float32)}


def vim_stack_p():
    w1 = jax.random.normal(kg(), (NUM_BLOCKS, D, 2 * D), jnp.float32) / math.sqrt(D)
    w2 = jax.random.normal(kg(), (NUM_BLOCKS, 2 * D, D), jnp.float32) / math.sqrt(2 * D)
    return {"lg": jnp.ones((NUM_BLOCKS, 1, D), jnp.float32),
            "lb": jnp.zeros((NUM_BLOCKS, 1, D), jnp.float32),
            "w1": w1.astype(jnp.bfloat16),
            "b1": jnp.zeros((NUM_BLOCKS, 1, 2 * D), jnp.float32),
            "w2": w2.astype(jnp.bfloat16),
            "b2": jnp.zeros((NUM_BLOCKS, 1, D), jnp.float32)}


def hyper_p():
    def stk(cin, cout):
        w = jax.random.normal(kg(), (NUM_MASKS, cin, cout), jnp.float32) / math.sqrt(cin)
        return w, jnp.zeros((NUM_MASKS, cout), jnp.float32)
    w1, b1 = stk(D, D)
    w2, b2 = stk(D, D // 2)
    w3, b3 = stk(D // 2, D // 8)
    return {"w1": w1, "b1": b1, "w2": w2, "b2": b2, "w3": w3, "b3": b3}


def build_params():
    D2, D4, D8 = D // 2, D // 4, D // 8
    P = {}
    P["input_norm"] = ln_p(D)
    P["patch_embed"] = conv_p(3, 3, D, D)
    P["vim"] = vim_stack_p()
    P["cbam"] = cbam_p(D)
    P["norm"] = ln_p(D)
    P["msf"] = {"conv_high": conv_p(1, 1, D, D), "conv_low": conv_p(3, 3, D, D),
                "norm": ln_p(D),
                "ctx_conv": conv_p(5, 5, D, D), "ctx_ln": ln_p(D),
                "det_conv": conv_p(3, 3, D, D),
                "so_conv1": conv_p(1, 1, D, D2), "so_conv2": conv_p(3, 3, D2, D),
                "so_ln": ln_p(D),
                "ga_w": jax.random.normal(kg(), (D, D), jnp.float32) / math.sqrt(D),
                "ga_b": jnp.zeros((D,), jnp.float32),
                "fusion": conv_p(1, 1, 4 * D, D),
                "context_weight": jnp.ones((D,), jnp.float32),
                "small_obj_weight": jnp.ones((D,), jnp.float32)}
    P["iou_token"] = jax.random.normal(kg(), (1, D), jnp.float32)
    P["obj_token"] = jax.random.normal(kg(), (1, D), jnp.float32)
    P["mask_tokens"] = jax.random.normal(kg(), (NUM_MASKS, D), jnp.float32)
    P["upscale"] = {"ct1": convT_p(D, D), "ln1": ln_p(D), "c1": conv_p(3, 3, D, D),
                    "ct2": convT_p(D, D2), "ln2": ln_p(D2), "c2": conv_p(3, 3, D2, D2),
                    "ct3": convT_p(D2, D4), "ln3": ln_p(D4), "c3": conv_p(3, 3, D4, D8),
                    "ln4": ln_p(D8), "c4": conv_p(3, 3, D8, D8)}
    P["skip"] = {"c1": conv_p(3, 3, D, D2), "ln1": ln_p(D2),
                 "c2": conv_p(3, 3, D2, D4), "ln2": ln_p(D4),
                 "c3": conv_p(1, 1, D4, D8), "ln3": ln_p(D8)}
    P["hyper"] = hyper_p()
    P["iou_head"] = {"l1": lin_p(2 * D, IOU_HIDDEN), "l2": lin_p(IOU_HIDDEN, IOU_HIDDEN),
                     "l3": lin_p(IOU_HIDDEN, NUM_MASKS)}
    P["obj_head"] = {"l1": lin_p(2 * D, D), "l2": lin_p(D, NUM_MASKS)}
    P["bbox"] = {"c1": conv_p(3, 3, D, D), "ln1": ln_p(D),
                 "c2": conv_p(3, 3, D, D), "ln2": ln_p(D),
                 "cbam": cbam_p(D),
                 "c3": conv_p(3, 3, D, D2), "ln3": ln_p(D2),
                 "c4": conv_p(3, 3, D2, D4), "ln4": ln_p(D4),
                 "c5": conv_p(1, 1, D4, NUM_MASKS * 4)}
    P["brefine"] = {"be_fusion": conv_p(1, 1, 2 * D8, D8), "be_ln": ln_p(D8),
                    "c1": conv_p(3, 3, D8, D8), "ln1": ln_p(D8),
                    "c2": conv_p(3, 3, D8, D8), "ln2": ln_p(D8),
                    "c3": conv_p(1, 1, D8, NUM_MASKS)}
    return P


# ------------------------------- full forward ---------------------------------
def mask_decoder_forward(params, corr_feature_nchw, memory_feature=None):
    # memory_feature=None path (memory_fusion_layer skipped, as in the torch forward)
    x = jnp.transpose(corr_feature_nchw, (0, 2, 3, 1)).astype(jnp.float32)   # NHWC
    B = x.shape[0]
    if x.shape[1:3] != (64, 64):
        x = resize_bilinear(x, 64, 64)
    x = ln2d(x, params["input_norm"])                       # input_norm
    x = conv2d(x, params["patch_embed"], padding=1)         # patch_embed
    skip = x
    x = vim_stack(x, params["vim"])                         # fused 6-block stack
    x = cbam(x, params["cbam"])
    x = ln2d(x, params["norm"])
    fused_feature = multi_scale_fusion(x, skip, params["msf"])

    out_tokens = jnp.concatenate([params["iou_token"], params["obj_token"],
                                  params["mask_tokens"]], axis=0)            # (7, D)
    out_tokens = jnp.broadcast_to(out_tokens[None], (B,) + out_tokens.shape)
    pooled = jnp.max(x.astype(jnp.float32), axis=(1, 2))[:, None, :]         # max pool
    token_features = jnp.concatenate([out_tokens, pooled], axis=1)           # (B, 8, D)
    iou_token_out = token_features[:, 0, :]
    obj_score_out = token_features[:, 1, :]
    mask_tokens_out = token_features[:, -NUM_MASKS:, :]

    upscaled = output_upscaling(x, params["upscale"])                        # (B,512,512,D/8)
    upscaled = resize_bilinear(upscaled, OUT_RES, OUT_RES, antialias=True)
    skip_up = skip_conv(resize_bilinear(skip, OUT_RES, OUT_RES, antialias=True),
                        params["skip"])
    upscaled = upscaled + skip_up                                            # (B, R, R, D/8)

    hyper = hyper_heads(mask_tokens_out, params["hyper"])                    # (B, 5, D/8)
    up_flat = upscaled.astype(jnp.float32).reshape(B, OUT_RES * OUT_RES, D // 8)
    masks = jnp.einsum("bnc,bpc->bnp", hyper, up_flat)
    masks = masks.reshape(B, NUM_MASKS, OUT_RES, OUT_RES)
    masks = jnp.clip(jax.nn.sigmoid(masks), 1e-6, 1.0 - 1e-6)

    refined = boundary_refine(upscaled, params["brefine"])                   # (B, R, R, 5)
    masks = masks * jnp.transpose(refined, (0, 3, 1, 2))

    ctx = jnp.mean(fused_feature.astype(jnp.float32), axis=(1, 2))           # avg pool
    iou_scores = iou_head(jnp.concatenate([iou_token_out, ctx], axis=-1), params["iou_head"])
    obj_scores = obj_head(jnp.concatenate([obj_score_out, ctx], axis=-1), params["obj_head"])

    bb_feat = bbox_head(x, params["bbox"])                                   # (B,128,128,20)
    bboxes = jnp.mean(bb_feat.astype(jnp.float32), axis=(1, 2)).reshape(B, NUM_MASKS, 4)
    bboxes = jnp.clip(jax.nn.sigmoid(bboxes) * OUT_RES, 0.0, float(OUT_RES))

    masks = refine_mask_with_bbox(masks, bboxes)
    bboxes, masks, iou_scores, obj_scores = apply_nms(bboxes, masks, iou_scores, obj_scores)
    return bboxes, masks, iou_scores, obj_scores


# ----------------------------------- main --------------------------------------
if __name__ == "__main__":
    params = build_params()
    key = jax.random.PRNGKey(0)
    corr_feature = jax.random.normal(key, (2, D, 16, 16), jnp.float32)   # NCHW like PyTorch
    bboxes, masks, iou_scores, obj_scores = mask_decoder_forward(params, corr_feature)
    (bboxes, masks, iou_scores, obj_scores) = jax.block_until_ready(
        (bboxes, masks, iou_scores, obj_scores))
    assert bboxes.shape == (2, NUM_MASKS, 4)
    assert masks.shape == (2, NUM_MASKS, OUT_RES, OUT_RES)
    assert iou_scores.shape == (2, NUM_MASKS)
    assert obj_scores.shape == (2, NUM_MASKS)
    assert bool(jnp.all(jnp.isfinite(masks))) and bool(jnp.all(jnp.isfinite(bboxes)))
    assert bool(jnp.all(jnp.isfinite(iou_scores))) and bool(jnp.all(jnp.isfinite(obj_scores)))
    print("KERNEL_OK")
</pallas_src>

<mosaic_0001>
module attributes {stable_mosaic.version = 11 : i64} {
  func.func @_ln_kernel(%arg0: i32, %arg1: memref<2048x32xf32, #tpu.memory_space<vmem>>, %arg2: memref<1x32xf32, #tpu.memory_space<vmem>>, %arg3: memref<1x32xf32, #tpu.memory_space<vmem>>, %arg4: memref<2048x32xbf16, #tpu.memory_space<vmem>>) attributes {dimension_semantics = [#tpu.dimension_semantics<parallel>], iteration_bounds = array<i64: 4>, scalar_prefetch = 0 : i64, scratch_operands = 0 : i64, tpu.core_type = #tpu.core_type<tc>, window_params = [{transform_indices = @transform_0, window_bounds = array<i64: 2048, 32>}, {pipeline_mode = #tpu.pipeline_mode<synchronous>, transform_indices = @transform_1, window_bounds = array<i64: 1, 32>}, {pipeline_mode = #tpu.pipeline_mode<synchronous>, transform_indices = @transform_2, window_bounds = array<i64: 1, 32>}, {transform_indices = @transform_3, window_bounds = array<i64: 2048, 32>}]} {
    %c0 = arith.constant 0 : index
    %c0_0 = arith.constant 0 : index
    %0 = vector.load %arg1[%c0, %c0_0] : memref<2048x32xf32, #tpu.memory_space<vmem>>, vector<2048x32xf32>
    %cst = arith.constant dense<0.000000e+00> : vector<2048xf32>
    %1 = vector.multi_reduction <add>, %0, %cst [1] : vector<2048x32xf32> to vector<2048xf32>
    %2 = vector.shape_cast %1 : vector<2048xf32> to vector<2048x1xf32>
    %cst_1 = arith.constant 3.200000e+01 : f32
    %3 = vector.broadcast %cst_1 : f32 to vector<2048x1xf32>
    %4 = arith.divf %2, %3 : vector<2048x1xf32>
    %5 = vector.broadcast %4 : vector<2048x1xf32> to vector<2048x32xf32>
    %6 = arith.subf %0, %5 : vector<2048x32xf32>
    %7 = arith.mulf %6, %6 : vector<2048x32xf32>
    %cst_2 = arith.constant dense<0.000000e+00> : vector<2048xf32>
    %8 = vector.multi_reduction <add>, %7, %cst_2 [1] : vector<2048x32xf32> to vector<2048xf32>
    %9 = vector.shape_cast %8 : vector<2048xf32> to vector<2048x1xf32>
    %cst_3 = arith.constant 3.200000e+01 : f32
    %10 = vector.broadcast %cst_3 : f32 to vector<2048x1xf32>
    %11 = arith.divf %9, %10 : vector<2048x1xf32>
    %cst_4 = arith.constant 9.99999997E-7 : f32
    %12 = vector.broadcast %cst_4 : f32 to vector<2048x1xf32>
    %13 = arith.addf %11, %12 : vector<2048x1xf32>
    %14 = math.rsqrt %13 : vector<2048x1xf32>
    %15 = vector.broadcast %14 : vector<2048x1xf32> to vector<2048x32xf32>
    %16 = arith.mulf %6, %15 : vector<2048x32xf32>
    %c0_5 = arith.constant 0 : index
    %c0_6 = arith.constant 0 : index
    %17 = vector.load %arg2[%c0_5, %c0_6] : memref<1x32xf32, #tpu.memory_space<vmem>>, vector<1x32xf32>
    %18 = vector.broadcast %17 : vector<1x32xf32> to vector<2048x32xf32>
    %19 = arith.mulf %16, %18 : vector<2048x32xf32>
    %c0_7 = arith.constant 0 : index
    %c0_8 = arith.constant 0 : index
    %20 = vector.load %arg3[%c0_7, %c0_8] : memref<1x32xf32, #tpu.memory_space<vmem>>, vector<1x32xf32>
    %21 = vector.broadcast %20 : vector<1x32xf32> to vector<2048x32xf32>
    %22 = arith.addf %19, %21 : vector<2048x32xf32>
    %23 = arith.truncf %22 : vector<2048x32xf32> to vector<2048x32xbf16>
    %c0_9 = arith.constant 0 : index
    %c0_10 = arith.constant 0 : index
    %24 = vector.load %arg4[%c0_9, %c0_10] : memref<2048x32xbf16, #tpu.memory_space<vmem>>, vector<2048x32xbf16>
    tpu.vector_store %arg4[%c0_9, %c0_10], %23 {strides = array<i32>} : memref<2048x32xbf16, #tpu.memory_space<vmem>>, vector<2048x32xbf16>,
    return
  }
  func.func @transform_0(%arg0: i32) -> (i32, i32) {
    %c0_i32 = arith.constant 0 : i32
    %c0_i32_0 = arith.constant 0 : i32
    return %arg0, %c0_i32 : i32, i32
  }
  func.func @transform_1(%arg0: i32) -> (i32, i32) {
    %c0_i32 = arith.constant 0 : i32
    %c0_i32_0 = arith.constant 0 : i32
    %c0_i32_1 = arith.constant 0 : i32
    return %c0_i32, %c0_i32_0 : i32, i32
  }
  func.func @transform_2(%arg0: i32) -> (i32, i32) {
    %c0_i32 = arith.constant 0 : i32
    %c0_i32_0 = arith.constant 0 : i32
    %c0_i32_1 = arith.constant 0 : i32
    return %c0_i32, %c0_i32_0 : i32, i32
  }
  func.func @transform_3(%arg0: i32) -> (i32, i32) {
    %c0_i32 = arith.constant 0 : i32
    %c0_i32_0 = arith.constant 0 : i32
    return %arg0, %c0_i32 : i32, i32
  }
}

</mosaic_0001>

<bundles_post_ra>
// kernel: _ln_call.1
= control target key start
LH: loop header
LB: loop body
LE: loop exit
PB: predicated region body
PF: predicated region fallthrough
CT: control target
= control target key end

     0   :  { %s6962_s12 = smov 0   ;;  %s11899_s0 = inlined_call_operand.vmem [shape: f32[8192,32], index: 0, kind: input, shape index: {}]   ;;  %s11900_s1 = inlined_call_operand.vmem [shape: f32[1,32], index: 1, kind: input, shape index: {}]   ;;  %s11901_s2 = inlined_call_operand.vmem [shape: f32[1,32], index: 2, kind: input, shape index: {}]   ;;  %s11902_s3 = inlined_call_operand.vmem [shape: bf16[8192,32], index: 3, kind: output, shape index: {}]  }
   0x1 LB: > { %s5623_s13 = sadd.s32 4294967295, %s6940_s12   ;;  %p5627_p0 = scmp.ge.s32.totalorder %s6940_s12, 1  ;;  %s6940_s12 = sphi %s6962_s12, %s13_s12  }
   0x2   : > { %p138_p1 = scmp.lt.s32.totalorder %s6940_s12, 5 }
   0x4   : > { %p139_p2 = pnand %p5627_p0, %p138_p1 }
   0x6   : > { %142 = sbr.rel (%p139_p2) target bundleno = 1232 (0x4d0), region = 32 }
   0xd   : > { %s5628_s14 = sshll.u32 %s5623_s13, 8  ;;  %vm430_vm0 = vcmask 261120   ;;  %vm5310_vm1 = vcmask 257024  }
   0xe   : > { %p163_p3 = scmp.lt.s32.totalorder %s5628_s14, 1023 }
  0x10   : > { %s13258_s14 = smov (!%p163_p3, %s5628_s14), 1023 }
  0x11   : > { %s5629_s15 = sshll.u32 %s13258_s14, 3  ;;  %s5631_s23 = sshll.u32 %s13258_s14, 2 }
  0x12   : > { %s6976_s18 = scalar_lea.vmem %s11899_s0, %s5629_s15  ;;  %s10020_s26 = scalar_lea.vmem %s11902_s3, %s5631_s23 }
  0x13   : > { %v176_v0 = vld [vmem:[%s6976_s18 + $0x10] sm:$0xff]  ;;  %v174_v1 = vld [vmem:[%s6976_s18] sm:$0xff]  ;;  %v177_v2 = vld [vmem:[%s6976_s18 + $0x18] sm:$0xff] }
  0x14   : > { %v437_v3 = vsel %vm430_vm0, %v176_v0, 0.0  ;;  %v431_v4 = vsel %vm430_vm0, %v174_v1, 0.0  ;;  %v175_v5 = vld [vmem:[%s6976_s18 + $0x8] sm:$0xff]  ;;  %v440_v6 = vsel %vm430_vm0, %v177_v2, 0.0  ;;  %v178_v9 = vld [vmem:[%s6976_s18 + $0x20] sm:$0xff]  ;;  %v181_v12 = vld [vmem:[%s6976_s18 + $0x38] sm:$0xff] }
  0x15   : > { %438 = vadd.xlane.f32.xlu1 %v437_v3  ;;  %432 = vadd.xlane.f32.xlu0 %v431_v4  ;;  %v434_v7 = vsel %vm430_vm0, %v175_v5, 0.0  ;;  %v179_v8 = vld [vmem:[%s6976_s18 + $0x28] sm:$0xff]  ;;  %v443_v11 = vsel %vm430_vm0, %v178_v9, 0.0  ;;  %v180_v13 = vld [vmem:[%s6976_s18 + $0x30] sm:$0xff]  ;;  %v452_v14 = vsel %vm430_vm0, %v181_v12, 0.0  ;;  %v182_v17 = vld [vmem:[%s6976_s18 + $0x40] sm:$0xff] }
  0x16   : > { %v446_v10 = vsel %vm430_vm0, %v179_v8, 0.0  ;;  %v449_v15 = vsel %vm430_vm0, %v180_v13, 0.0  ;;  %v183_v16 = vld [vmem:[%s6976_s18 + $0x48] sm:$0xff]  ;;  %v455_v19 = vsel %vm430_vm0, %v182_v17, 0.0  ;;  %v185_v20 = vld [vmem:[%s6976_s18 + $0x58] sm:$0xff]  ;;  %v184_v21 = vld [vmem:[%s6976_s18 + $0x50] sm:$0xff] }
  0x17   : > { %v458_v18 = vsel %vm430_vm0, %v183_v16, 0.0  ;;  %v464_v22 = vsel %vm430_vm0, %v185_v20, 0.0  ;;  %v461_v23 = vsel %vm430_vm0, %v184_v21, 0.0  ;;  %v187_v24 = vld [vmem:[%s6976_s18 + $0x68] sm:$0xff]  ;;  %v186_v25 = vld [vmem:[%s6976_s18 + $0x60] sm:$0xff]  ;;  %v189_v28 = vld [vmem:[%s6976_s18 + $0x78] sm:$0xff] }
  0x18   : > { %v470_v26 = vsel %vm430_vm0, %v187_v24, 0.0  ;;  %v467_v27 = vsel %vm430_vm0, %v186_v25, 0.0  ;;  %v188_v29 = vld [vmem:[%s6976_s18 + $0x70] sm:$0xff]  ;;  %v476_v30 = vsel %vm430_vm0, %v189_v28, 0.0  ;;  %v191_v32 = vld [vmem:[%s6976_s18 + $0x88] sm:$0xff]  ;;  %v190_v33 = vld [vmem:[%s6976_s18 + $0x80] sm:$0xff] }
  0x19   : > { %441 = vadd.xlane.f32.xlu1 %v440_v6  ;;  %435 = vadd.xlane.f32.xlu0 %v434_v7  ;;  %v473_v31 = vsel %vm430_vm0, %v188_v29, 0.0  ;;  %v482_v34 = vsel %vm430_vm0, %v191_v32, 0.0  ;;  %v479_v35 = vsel %vm430_vm0, %v190_v33, 0.0  ;;  %v193_v36 = vld [vmem:[%s6976_s18 + $0x98] sm:$0xff]  ;;  %v192_v37 = vld [vmem:[%s6976_s18 + $0x90] sm:$0xff]  ;;  %v195_v40 = vld [vmem:[%s6976_s18 + $0xa8] sm:$0xff] }
  0x1a   : > { %v488_v38 = vsel %vm430_vm0, %v193_v36, 0.0  ;;  %v485_v39 = vsel %vm430_vm0, %v192_v37, 0.0  ;;  %v194_v41 = vld [vmem:[%s6976_s18 + $0xa0] sm:$0xff]  ;;  %v494_v42 = vsel %vm430_vm0, %v195_v40, 0.0  ;;  %v197_v44 = vld [vmem:[%s6976_s18 + $0xb8] sm:$0xff]  ;;  %v196_v45 = vld [vmem:[%s6976_s18 + $0xb0] sm:$0xff] }
  0x1b   : > { %v491_v43 = vsel %vm430_vm0, %v194_v41, 0.0  ;;  %v500_v46 = vsel %vm430_vm0, %v197_v44, 0.0  ;;  %v497_v47 = vsel %vm430_vm0, %v196_v45, 0.0  ;;  %v199_v48 = vld [vmem:[%s6976_s18 + $0xc8] sm:$0xff]  ;;  %v198_v49 = vld [vmem:[%s6976_s18 + $0xc0] sm:$0xff]  ;;  %v201_v52 = vld [vmem:[%s6976_s18 + $0xd8] sm:$0xff] }
  0x1c   : > { %v506_v50 = vsel %vm430_vm0, %v199_v48, 0.0  ;;  %v503_v51 = vsel %vm430_vm0, %v198_v49, 0.0  ;;  %v200_v53 = vld [vmem:[%s6976_s18 + $0xd0] sm:$0xff]  ;;  %v512_v54 = vsel %vm430_vm0, %v201_v52, 0.0  ;;  %v203_v56 = vld [vmem:[%s6976_s18 + $0xe8] sm:$0xff]  ;;  %v202_v57 = vld [vmem:[%s6976_s18 + $0xe0] sm:$0xff] }
  0x1d   : > { %447 = vadd.xlane.f32.xlu1 %v446_v10  ;;  %444 = vadd.xlane.f32.xlu0 %v443_v11  ;;  %v509_v55 = vsel %vm430_vm0, %v200_v53, 0.0  ;;  %v518_v58 = vsel %vm430_vm0, %v203_v56, 0.0  ;;  %v515_v59 = vsel %vm430_vm0, %v202_v57, 0.0  ;;  %v205_v60 = vld [vmem:[%s6976_s18 + $0xf8] sm:$0xff]  ;;  %v204_v61 = vld [vmem:[%s6976_s18 + $0xf0] sm:$0xff]  ;;  %v207_v0 = vld [vmem:[%s6976_s18 + $0x108] sm:$0xff] }
  0x1e   : > { %v524_v62 = vsel %vm430_vm0, %v205_v60, 0.0  ;;  %v521_v63 = vsel %vm430_vm0, %v204_v61, 0.0  ;;  %v206_v1 = vld [vmem:[%s6976_s18 + $0x100] sm:$0xff]  ;;  %v530_v2 = vsel %vm430_vm0, %v207_v0, 0.0  ;;  %v209_v4 = vld [vmem:[%s6976_s18 + $0x118] sm:$0xff]  ;;  %v208_v5 = vld [vmem:[%s6976_s18 + $0x110] sm:$0xff] }
  0x1f   : > { %v527_v3 = vsel %vm430_vm0, %v206_v1, 0.0  ;;  %v536_v6 = vsel %vm430_vm0, %v209_v4, 0.0  ;;  %v533_v7 = vsel %vm430_vm0, %v208_v5, 0.0  ;;  %v211_v8 = vld [vmem:[%s6976_s18 + $0x128] sm:$0xff]  ;;  %v210_v9 = vld [vmem:[%s6976_s18 + $0x120] sm:$0xff]  ;;  %v213_v12 = vld [vmem:[%s6976_s18 + $0x138] sm:$0xff] }
  0x20   : > { %v542_v10 = vsel %vm430_vm0, %v211_v8, 0.0  ;;  %v539_v11 = vsel %vm430_vm0, %v210_v9, 0.0  ;;  %v212_v13 = vld [vmem:[%s6976_s18 + $0x130] sm:$0xff]  ;;  %v215_v16 = vld [vmem:[%s6976_s18 + $0x148] sm:$0xff]  ;;  %v214_v17 = vld [vmem:[%s6976_s18 + $0x140] sm:$0xff] }
  0x21   : > { %453 = vadd.xlane.f32.xlu1 %v452_v14  ;;  %450 = vadd.xlane.f32.xlu0 %v449_v15  ;;  %v548_v14 = vsel %vm430_vm0, %v213_v12, 0.0  ;;  %v545_v15 = vsel %vm430_vm0, %v212_v13, 0.0  ;;  %v217_v20 = vld [vmem:[%s6976_s18 + $0x158] sm:$0xff]  ;;  %v216_v21 = vld [vmem:[%s6976_s18 + $0x150] sm:$0xff]  ;;  %v219_v24 = vld [vmem:[%s6976_s18 + $0x168] sm:$0xff] }
  0x22   : > { %v218_v25 = vld [vmem:[%s6976_s18 + $0x160] sm:$0xff]  ;;  %v221_v28 = vld [vmem:[%s6976_s18 + $0x178] sm:$0xff]  ;;  %v220_v29 = vld [vmem:[%s6976_s18 + $0x170] sm:$0xff] }
  0x23   : > { %v223_v32 = vld [vmem:[%s6976_s18 + $0x188] sm:$0xff]  ;;  %v222_v33 = vld [vmem:[%s6976_s18 + $0x180] sm:$0xff]  ;;  %v225_v36 = vld [vmem:[%s6976_s18 + $0x198] sm:$0xff] }
  0x24   : > { %v224_v37 = vld [vmem:[%s6976_s18 + $0x190] sm:$0xff]  ;;  %v227_v40 = vld [vmem:[%s6976_s18 + $0x1a8] sm:$0xff]  ;;  %v226_v41 = vld [vmem:[%s6976_s18 + $0x1a0] sm:$0xff] }
  0x25   : > { %459 = vadd.xlane.f32.xlu1 %v458_v18  ;;  %456 = vadd.xlane.f32.xlu0 %v455_v19  ;;  %v554_v18 = vsel %vm430_vm0, %v215_v16, 0.0  ;;  %v551_v19 = vsel %vm430_vm0, %v214_v17, 0.0  ;;  %v229_v44 = vld [vmem:[%s6976_s18 + $0x1b8] sm:$0xff]  ;;  %v228_v45 = vld [vmem:[%s6976_s18 + $0x1b0] sm:$0xff]  ;;  %v231_v48 = vld [vmem:[%s6976_s18 + $0x1c8] sm:$0xff] }
  0x26   : > { %v230_v49 = vld [vmem:[%s6976_s18 + $0x1c0] sm:$0xff]  ;;  %v233_v52 = vld [vmem:[%s6976_s18 + $0x1d8] sm:$0xff]  ;;  %v232_v53 = vld [vmem:[%s6976_s18 + $0x1d0] sm:$0xff] }
  0x27   : > { %v235_v56 = vld [vmem:[%s6976_s18 + $0x1e8] sm:$0xff]  ;;  %v234_v57 = vld [vmem:[%s6976_s18 + $0x1e0] sm:$0xff]  ;;  %v237_v60 = vld [vmem:[%s6976_s18 + $0x1f8] sm:$0xff] }
  0x28   : > { %v236_v61 = vld [vmem:[%s6976_s18 + $0x1f0] sm:$0xff]  ;;  %v239_v0 = vld [vmem:[%s6976_s18 + $0x208] sm:$0xff]  ;;  %v238_v1 = vld [vmem:[%s6976_s18 + $0x200] sm:$0xff] }
  0x29   : > { %465 = vadd.xlane.f32.xlu1 %v464_v22  ;;  %462 = vadd.xlane.f32.xlu0 %v461_v23  ;;  %v560_v22 = vsel %vm430_vm0, %v217_v20, 0.0  ;;  %v557_v23 = vsel %vm430_vm0, %v216_v21, 0.0  ;;  %v241_v4 = vld [vmem:[%s6976_s18 + $0x218] sm:$0xff]  ;;  %v240_v5 = vld [vmem:[%s6976_s18 + $0x210] sm:$0xff]  ;;  %v243_v8 = vld [vmem:[%s6976_s18 + $0x228] sm:$0xff] }
  0x2a   : > { %v242_v9 = vld [vmem:[%s6976_s18 + $0x220] sm:$0xff]  ;;  %v245_v12 = vld [vmem:[%s6976_s18 + $0x238] sm:$0xff]  ;;  %v244_v13 = vld [vmem:[%s6976_s18 + $0x230] sm:$0xff] }
  0x2b   : > { %v247_v16 = vld [vmem:[%s6976_s18 + $0x248] sm:$0xff]  ;;  %v246_v17 = vld [vmem:[%s6976_s18 + $0x240] sm:$0xff] }
  0x2c   : > { %v650_v20 = vsel %vm430_vm0, %v247_v16, 0.0  ;;  %v647_v21 = vsel %vm430_vm0, %v246_v17, 0.0 }
  0x2d   : > { %471 = vadd.xlane.f32.xlu1 %v470_v26  ;;  %468 = vadd.xlane.f32.xlu0 %v467_v27  ;;  %v566_v26 = vsel %vm430_vm0, %v219_v24, 0.0  ;;  %v563_v27 = vsel %vm430_vm0, %v218_v25, 0.0 }
  0x31   : > { %477 = vadd.xlane.f32.xlu1 %v476_v30  ;;  %474 = vadd.xlane.f32.xlu0 %v473_v31  ;;  %v572_v30 = vsel %vm430_vm0, %v221_v28, 0.0  ;;  %v569_v31 = vsel %vm430_vm0, %v220_v29, 0.0  ;;  %v251_v28 = vld [vmem:[%s6976_s18 + $0x268] sm:$0xff]  ;;  %v250_v29 = vld [vmem:[%s6976_s18 + $0x260] sm:$0xff] }
  0x35   : > { %483 = vadd.xlane.f32.xlu1 %v482_v34  ;;  %480 = vadd.xlane.f32.xlu0 %v479_v35  ;;  %v578_v34 = vsel %vm430_vm0, %v223_v32, 0.0  ;;  %v575_v35 = vsel %vm430_vm0, %v222_v33, 0.0  ;;  %v662_v32 = vsel %vm430_vm0, %v251_v28, 0.0  ;;  %v659_v33 = vsel %vm430_vm0, %v250_v29, 0.0  ;;  %v271_v28 = vld [vmem:[%s6976_s18 + $0x308] sm:$0xff]  ;;  %v270_v29 = vld [vmem:[%s6976_s18 + $0x300] sm:$0xff] }
  0x39   : > { %489 = vadd.xlane.f32.xlu1 %v488_v38  ;;  %486 = vadd.xlane.f32.xlu0 %v485_v39  ;;  %v584_v38 = vsel %vm430_vm0, %v225_v36, 0.0  ;;  %v581_v39 = vsel %vm430_vm0, %v224_v37, 0.0 }
  0x3d   : > { %495 = vadd.xlane.f32.xlu1 %v494_v42  ;;  %492 = vadd.xlane.f32.xlu0 %v491_v43  ;;  %v590_v42 = vsel %vm430_vm0, %v227_v40, 0.0  ;;  %v587_v43 = vsel %vm430_vm0, %v226_v41, 0.0  ;;  %v255_v40 = vld [vmem:[%s6976_s18 + $0x288] sm:$0xff]  ;;  %v254_v41 = vld [vmem:[%s6976_s18 + $0x280] sm:$0xff] }
  0x41   : > { %501 = vadd.xlane.f32.xlu1 %v500_v46  ;;  %498 = vadd.xlane.f32.xlu0 %v497_v47  ;;  %v596_v46 = vsel %vm430_vm0, %v229_v44, 0.0  ;;  %v593_v47 = vsel %vm430_vm0, %v228_v45, 0.0  ;;  %v674_v44 = vsel %vm430_vm0, %v255_v40, 0.0  ;;  %v671_v45 = vsel %vm430_vm0, %v254_v41, 0.0 }
  0x45   : > { %507 = vadd.xlane.f32.xlu1 %v506_v50  ;;  %504 = vadd.xlane.f32.xlu0 %v503_v51  ;;  %v602_v50 = vsel %vm430_vm0, %v231_v48, 0.0  ;;  %v599_v51 = vsel %vm430_vm0, %v230_v49, 0.0 }
  0x49   : > { %513 = vadd.xlane.f32.xlu1 %v512_v54  ;;  %510 = vadd.xlane.f32.xlu0 %v509_v55  ;;  %v608_v54 = vsel %vm430_vm0, %v233_v52, 0.0  ;;  %v605_v55 = vsel %vm430_vm0, %v232_v53, 0.0  ;;  %v259_v52 = vld [vmem:[%s6976_s18 + $0x2a8] sm:$0xff]  ;;  %v258_v53 = vld [vmem:[%s6976_s18 + $0x2a0] sm:$0xff] }
  0x4d   : > { %519 = vadd.xlane.f32.xlu1 %v518_v58  ;;  %516 = vadd.xlane.f32.xlu0 %v515_v59  ;;  %v614_v58 = vsel %vm430_vm0, %v235_v56, 0.0  ;;  %v611_v59 = vsel %vm430_vm0, %v234_v57, 0.0  ;;  %v686_v56 = vsel %vm430_vm0, %v259_v52, 0.0  ;;  %v683_v57 = vsel %vm430_vm0, %v258_v53, 0.0 }
  0x51   : > { %525 = vadd.xlane.f32.xlu1 %v524_v62  ;;  %522 = vadd.xlane.f32.xlu0 %v521_v63  ;;  %v620_v62 = vsel %vm430_vm0, %v237_v60, 0.0  ;;  %v617_v63 = vsel %vm430_vm0, %v236_v61, 0.0 }
  0x55   : > { %531 = vadd.xlane.f32.xlu1 %v530_v2  ;;  %528 = vadd.xlane.f32.xlu0 %v527_v3  ;;  %v626_v2 = vsel %vm430_vm0, %v239_v0, 0.0  ;;  %v623_v3 = vsel %vm430_vm0, %v238_v1, 0.0  ;;  %v263_v0 = vld [vmem:[%s6976_s18 + $0x2c8] sm:$0xff]  ;;  %v262_v1 = vld [vmem:[%s6976_s18 + $0x2c0] sm:$0xff] }
  0x59   : > { %537 = vadd.xlane.f32.xlu1 %v536_v6  ;;  %534 = vadd.xlane.f32.xlu0 %v533_v7  ;;  %v632_v6 = vsel %vm430_vm0, %v241_v4, 0.0  ;;  %v629_v7 = vsel %vm430_vm0, %v240_v5, 0.0  ;;  %v698_v4 = vsel %vm430_vm0, %v263_v0, 0.0  ;;  %v695_v5 = vsel %vm430_vm0, %v262_v1, 0.0  ;;  %v279_v0 = vld [vmem:[%s6976_s18 + $0x348] sm:$0xff]  ;;  %v278_v1 = vld [vmem:[%s6976_s18 + $0x340] sm:$0xff] }
  0x5d   : > { %543 = vadd.xlane.f32.xlu1 %v542_v10  ;;  %540 = vadd.xlane.f32.xlu0 %v539_v11  ;;  %v638_v10 = vsel %vm430_vm0, %v243_v8, 0.0  ;;  %v635_v11 = vsel %vm430_vm0, %v242_v9, 0.0 }
  0x61   : > { %549 = vadd.xlane.f32.xlu1 %v548_v14  ;;  %546 = vadd.xlane.f32.xlu0 %v545_v15  ;;  %v644_v14 = vsel %vm430_vm0, %v245_v12, 0.0  ;;  %v641_v15 = vsel %vm430_vm0, %v244_v13, 0.0  ;;  %v267_v12 = vld [vmem:[%s6976_s18 + $0x2e8] sm:$0xff]  ;;  %v266_v13 = vld [vmem:[%s6976_s18 + $0x2e0] sm:$0xff] }
  0x62   : > { %v710_v16 = vsel %vm430_vm0, %v267_v12, 0.0  ;;  %v707_v17 = vsel %vm430_vm0, %v266_v13, 0.0 }
  0x65   : > { %555 = vadd.xlane.f32.xlu1 %v554_v18  ;;  %552 = vadd.xlane.f32.xlu0 %v551_v19 }
  0x69   : > { %561 = vadd.xlane.f32.xlu1 %v560_v22  ;;  %558 = vadd.xlane.f32.xlu0 %v557_v23  ;;  %v249_v22 = vld [vmem:[%s6976_s18 + $0x258] sm:$0xff]  ;;  %v248_v23 = vld [vmem:[%s6976_s18 + $0x250] sm:$0xff] }
  0x6d   : > { %567 = vadd.xlane.f32.xlu1 %v566_v26  ;;  %564 = vadd.xlane.f32.xlu0 %v563_v27  ;;  %v656_v26 = vsel %vm430_vm0, %v249_v22, 0.0  ;;  %v653_v27 = vsel %vm430_vm0, %v248_v23, 0.0 }
  0x71   : > { %573 = vadd.xlane.f32.xlu1 %v572_v30  ;;  %570 = vadd.xlane.f32.xlu0 %v569_v31 }
  0x75   : > { %579 = vadd.xlane.f32.xlu1 %v578_v34  ;;  %576 = vadd.xlane.f32.xlu0 %v575_v35  ;;  %v253_v34 = vld [vmem:[%s6976_s18 + $0x278] sm:$0xff]  ;;  %v252_v35 = vld [vmem:[%s6976_s18 + $0x270] sm:$0xff] }
  0x79   : > { %585 = vadd.xlane.f32.xlu1 %v584_v38  ;;  %582 = vadd.xlane.f32.xlu0 %v581_v39  ;;  %v668_v38 = vsel %vm430_vm0, %v253_v34, 0.0  ;;  %v665_v39 = vsel %vm430_vm0, %v252_v35, 0.0  ;;  %v722_v34 = vsel %vm430_vm0, %v271_v28, 0.0  ;;  %v719_v35 = vsel %vm430_vm0, %v270_v29, 0.0 }
  0x7d   : > { %591 = vadd.xlane.f32.xlu1 %v590_v42  ;;  %588 = vadd.xlane.f32.xlu0 %v587_v43 }
  0x81   : > { %597 = vadd.xlane.f32.xlu1 %v596_v46  ;;  %594 = vadd.xlane.f32.xlu0 %v593_v47  ;;  %v257_v46 = vld [vmem:[%s6976_s18 + $0x298] sm:$0xff]  ;;  %v256_v47 = vld [vmem:[%s6976_s18 + $0x290] sm:$0xff] }
  0x85   : > { %603 = vadd.xlane.f32.xlu1 %v602_v50  ;;  %600 = vadd.xlane.f32.xlu0 %v599_v51  ;;  %v680_v50 = vsel %vm430_vm0, %v257_v46, 0.0  ;;  %v677_v51 = vsel %vm430_vm0, %v256_v47, 0.0  ;;  %v275_v46 = vld [vmem:[%s6976_s18 + $0x328] sm:$0xff]  ;;  %v274_v47 = vld [vmem:[%s6976_s18 + $0x320] sm:$0xff] }
  0x86   : > { %v734_v52 = vsel %vm430_vm0, %v275_v46, 0.0  ;;  %v731_v53 = vsel %vm430_vm0, %v274_v47, 0.0  ;;  %v287_v46 = vld [vmem:[%s6976_s18 + $0x388] sm:$0xff]  ;;  %v286_v47 = vld [vmem:[%s6976_s18 + $0x380] sm:$0xff] }
  0x89   : > { %609 = vadd.xlane.f32.xlu1 %v608_v54  ;;  %606 = vadd.xlane.f32.xlu0 %v605_v55 }
  0x8d   : > { %615 = vadd.xlane.f32.xlu1 %v614_v58  ;;  %612 = vadd.xlane.f32.xlu0 %v611_v59  ;;  %v261_v58 = vld [vmem:[%s6976_s18 + $0x2b8] sm:$0xff]  ;;  %v260_v59 = vld [vmem:[%s6976_s18 + $0x2b0] sm:$0xff] }
  0x91   : > { %621 = vadd.xlane.f32.xlu1 %v620_v62  ;;  %618 = vadd.xlane.f32.xlu0 %v617_v63  ;;  %v692_v62 = vsel %vm430_vm0, %v261_v58, 0.0  ;;  %v689_v63 = vsel %vm430_vm0, %v260_v59, 0.0 }
  0x95   : > { %627 = vadd.xlane.f32.xlu1 %v626_v2  ;;  %624 = vadd.xlane.f32.xlu0 %v623_v3 }
  0x99   : > { %633 = vadd.xlane.f32.xlu1 %v632_v6  ;;  %630 = vadd.xlane.f32.xlu0 %v629_v7  ;;  %v265_v6 = vld [vmem:[%s6976_s18 + $0x2d8] sm:$0xff]  ;;  %v264_v7 = vld [vmem:[%s6976_s18 + $0x2d0] sm:$0xff] }
  0x9d   : > { %639 = vadd.xlane.f32.xlu1 %v638_v10  ;;  %636 = vadd.xlane.f32.xlu0 %v635_v11  ;;  %v704_v10 = vsel %vm430_vm0, %v265_v6, 0.0  ;;  %v701_v11 = vsel %vm430_vm0, %v264_v7, 0.0  ;;  %v746_v6 = vsel %vm430_vm0, %v279_v0, 0.0  ;;  %v743_v7 = vsel %vm430_vm0, %v278_v1, 0.0 }
  0xa1   : > { %645 = vadd.xlane.f32.xlu1 %v644_v14  ;;  %642 = vadd.xlane.f32.xlu0 %v641_v15 }
  0xa2   : > { %v7124_v18 = vpop.xlane.xlu1 %438  ;;  %v7126_v19 = vpop.xlane.xlu0 %432 }
  0xa5   : > { %651 = vadd.xlane.f32.xlu1 %v650_v20  ;;  %648 = vadd.xlane.f32.xlu0 %v647_v21  ;;  %v269_v20 = vld [vmem:[%s6976_s18 + $0x2f8] sm:$0xff]  ;;  %v268_v21 = vld [vmem:[%s6976_s18 + $0x2f0] sm:$0xff] }
  0xa6   : > { %v7132_v24 = vpop.xlane.xlu1 %441  ;;  %v7134_v25 = vpop.xlane.xlu0 %435 }
  0xa9   : > { %657 = vadd.xlane.f32.xlu1 %v656_v26  ;;  %654 = vadd.xlane.f32.xlu0 %v653_v27  ;;  %v716_v26 = vsel %vm430_vm0, %v269_v20, 0.0  ;;  %v713_v27 = vsel %vm430_vm0, %v268_v21, 0.0  ;;  %v283_v20 = vld [vmem:[%s6976_s18 + $0x368] sm:$0xff]  ;;  %v282_v21 = vld [vmem:[%s6976_s18 + $0x360] sm:$0xff] }
  0xaa   : > { %v7140_v30 = vpop.xlane.xlu1 %447  ;;  %v7142_v31 = vpop.xlane.xlu0 %444  ;;  %v758_v28 = vsel %vm430_vm0, %v283_v20, 0.0  ;;  %v755_v29 = vsel %vm430_vm0, %v282_v21, 0.0 }
  0xad   : > { %663 = vadd.xlane.f32.xlu1 %v662_v32  ;;  %660 = vadd.xlane.f32.xlu0 %v659_v33 }
  0xae   : > { %v7148_v36 = vpop.xlane.xlu1 %453  ;;  %v7150_v37 = vpop.xlane.xlu0 %450 }
  0xb1   : > { %669 = vadd.xlane.f32.xlu1 %v668_v38  ;;  %666 = vadd.xlane.f32.xlu0 %v665_v39  ;;  %v273_v38 = vld [vmem:[%s6976_s18 + $0x318] sm:$0xff]  ;;  %v272_v39 = vld [vmem:[%s6976_s18 + $0x310] sm:$0xff] }
  0xb2   : > { %v7156_v42 = vpop.xlane.xlu1 %459  ;;  %v7158_v43 = vpop.xlane.xlu0 %456 }
  0xb5   : > { %675 = vadd.xlane.f32.xlu1 %v674_v44  ;;  %672 = vadd.xlane.f32.xlu0 %v671_v45  ;;  %v728_v44 = vsel %vm430_vm0, %v273_v38, 0.0  ;;  %v725_v45 = vsel %vm430_vm0, %v272_v39, 0.0 }
  0xb6   : > { %v7164_v48 = vpop.xlane.xlu1 %465  ;;  %v7166_v49 = vpop.xlane.xlu0 %462 }
  0xb9   : > { %681 = vadd.xlane.f32.xlu1 %v680_v50  ;;  %678 = vadd.xlane.f32.xlu0 %v677_v51 }
  0xba   : > { %v7172_v54 = vpop.xlane.xlu1 %471  ;;  %v7174_v55 = vpop.xlane.xlu0 %468 }
  0xbd   : > { %687 = vadd.xlane.f32.xlu1 %v686_v56  ;;  %684 = vadd.xlane.f32.xlu0 %v683_v57  ;;  %v277_v56 = vld [vmem:[%s6976_s18 + $0x338] sm:$0xff]  ;;  %v276_v57 = vld [vmem:[%s6976_s18 + $0x330] sm:$0xff] }
  0xbe   : > { %v7180_v60 = vpop.xlane.xlu1 %477  ;;  %v7182_v61 = vpop.xlane.xlu0 %474 }
  0xc1   : > { %693 = vadd.xlane.f32.xlu1 %v692_v62  ;;  %690 = vadd.xlane.f32.xlu0 %v689_v63  ;;  %v740_v62 = vsel %vm430_vm0, %v277_v56, 0.0  ;;  %v737_v63 = vsel %vm430_vm0, %v276_v57, 0.0  ;;  %v770_v56 = vsel %vm430_vm0, %v287_v46, 0.0  ;;  %v767_v57 = vsel %vm430_vm0, %v286_v47, 0.0  ;;  %v295_v46 = vld [vmem:[%s6976_s18 + $0x3c8] sm:$0xff]  ;;  %v294_v47 = vld [vmem:[%s6976_s18 + $0x3c0] sm:$0xff] }
  0xc2   : > { %v7188_v2 = vpop.xlane.xlu1 %483  ;;  %v7190_v3 = vpop.xlane.xlu0 %480 }
  0xc5   : > { %699 = vadd.xlane.f32.xlu1 %v698_v4  ;;  %696 = vadd.xlane.f32.xlu0 %v695_v5 }
  0xc6   : > { %v7196_v8 = vpop.xlane.xlu1 %489  ;;  %v7198_v9 = vpop.xlane.xlu0 %486 }
  0xc9   : > { %705 = vadd.xlane.f32.xlu1 %v704_v10  ;;  %702 = vadd.xlane.f32.xlu0 %v701_v11  ;;  %v281_v10 = vld [vmem:[%s6976_s18 + $0x358] sm:$0xff]  ;;  %v280_v11 = vld [vmem:[%s6976_s18 + $0x350] sm:$0xff] }
  0xca   : > { %v7204_v14 = vpop.xlane.xlu1 %495  ;;  %v7206_v15 = vpop.xlane.xlu0 %492 }
  0xcd   : > { %711 = vadd.xlane.f32.xlu1 %v710_v16  ;;  %708 = vadd.xlane.f32.xlu0 %v707_v17  ;;  %v752_v16 = vsel %vm430_vm0, %v281_v10, 0.0  ;;  %v749_v17 = vsel %vm430_vm0, %v280_v11, 0.0  ;;  %v291_v10 = vld [vmem:[%s6976_s18 + $0x3a8] sm:$0xff]  ;;  %v290_v11 = vld [vmem:[%s6976_s18 + $0x3a0] sm:$0xff] }
  0xce   : > { %v7212_v22 = vpop.xlane.xlu1 %501  ;;  %v7214_v23 = vpop.xlane.xlu0 %498  ;;  %v782_v20 = vsel %vm430_vm0, %v291_v10, 0.0  ;;  %v779_v21 = vsel %vm430_vm0, %v290_v11, 0.0 }
  0xd1   : > { %717 = vadd.xlane.f32.xlu1 %v716_v26  ;;  %714 = vadd.xlane.f32.xlu0 %v713_v27 }
  0xd2   : > { %v7220_v32 = vpop.xlane.xlu1 %507  ;;  %v7222_v33 = vpop.xlane.xlu0 %504 }
  0xd5   : > { %723 = vadd.xlane.f32.xlu1 %v722_v34  ;;  %720 = vadd.xlane.f32.xlu0 %v719_v35  ;;  %v285_v34 = vld [vmem:[%s6976_s18 + $0x378] sm:$0xff]  ;;  %v284_v35 = vld [vmem:[%s6976_s18 + $0x370] sm:$0xff] }
  0xd6   : > { %v7228_v40 = vpop.xlane.xlu1 %513  ;;  %v7230_v41 = vpop.xlane.xlu0 %510 }
  0xd9   : > { %729 = vadd.xlane.f32.xlu1 %v728_v44  ;;  %726 = vadd.xlane.f32.xlu0 %v725_v45  ;;  %v764_v44 = vsel %vm430_vm0, %v285_v34, 0.0  ;;  %v761_v45 = vsel %vm430_vm0, %v284_v35, 0.0 }
  0xda   : > { %v7236_v50 = vpop.xlane.xlu1 %519  ;;  %v7238_v51 = vpop.xlane.xlu0 %516 }
  0xdd   : > { %735 = vadd.xlane.f32.xlu1 %v734_v52  ;;  %732 = vadd.xlane.f32.xlu0 %v731_v53 }
  0xde   : > { %v7244_v58 = vpop.xlane.xlu1 %525  ;;  %v7246_v59 = vpop.xlane.xlu0 %522 }
  0xe1   : > { %741 = vadd.xlane.f32.xlu1 %v740_v62  ;;  %738 = vadd.xlane.f32.xlu0 %v737_v63  ;;  %v289_v62 = vld [vmem:[%s6976_s18 + $0x398] sm:$0xff]  ;;  %v288_v63 = vld [vmem:[%s6976_s18 + $0x390] sm:$0xff] }
  0xe2   : > { %v7252_v4 = vpop.xlane.xlu1 %531  ;;  %v7254_v5 = vpop.xlane.xlu0 %528 }
  0xe5   : > { %747 = vadd.xlane.f32.xlu1 %v746_v6  ;;  %744 = vadd.xlane.f32.xlu0 %v743_v7  ;;  %v776_v6 = vsel %vm430_vm0, %v289_v62, 0.0  ;;  %v773_v7 = vsel %vm430_vm0, %v288_v63, 0.0  ;;  %v794_v62 = vsel %vm430_vm0, %v295_v46, 0.0  ;;  %v791_v63 = vsel %vm430_vm0, %v294_v47, 0.0 }
  0xe6   : > { %v7260_v12 = vpop.xlane.xlu1 %537  ;;  %v7262_v13 = vpop.xlane.xlu0 %534 }
  0xe9   : > { %753 = vadd.xlane.f32.xlu1 %v752_v16  ;;  %750 = vadd.xlane.f32.xlu0 %v749_v17 }
  0xea   : > { %v7268_v26 = vpop.xlane.xlu1 %543  ;;  %v7270_v27 = vpop.xlane.xlu0 %540 }
  0xed   : > { %759 = vadd.xlane.f32.xlu1 %v758_v28  ;;  %756 = vadd.xlane.f32.xlu0 %v755_v29  ;;  %v293_v28 = vld [vmem:[%s6976_s18 + $0x3b8] sm:$0xff]  ;;  %v292_v29 = vld [vmem:[%s6976_s18 + $0x3b0] sm:$0xff] }
  0xee   : > { %v7276_v38 = vpop.xlane.xlu1 %549  ;;  %v7278_v39 = vpop.xlane.xlu0 %546 }
  0xf1   : > { %765 = vadd.xlane.f32.xlu1 %v764_v44  ;;  %762 = vadd.xlane.f32.xlu0 %v761_v45  ;;  %v788_v44 = vsel %vm430_vm0, %v293_v28, 0.0  ;;  %v785_v45 = vsel %vm430_vm0, %v292_v29, 0.0  ;;  %v299_v28 = vld [vmem:[%s6976_s18 + $0x3e8] sm:$0xff]  ;;  %v298_v29 = vld [vmem:[%s6976_s18 + $0x3e0] sm:$0xff] }
  0xf2   : > { %v7284_v52 = vpop.xlane.xlu1 %555  ;;  %v7286_v53 = vpop.xlane.xlu0 %552  ;;  %v806_v46 = vsel %vm430_vm0, %v299_v28, 0.0  ;;  %v803_v47 = vsel %vm430_vm0, %v298_v29, 0.0 }
  0xf5   : > { %771 = vadd.xlane.f32.xlu1 %v770_v56  ;;  %768 = vadd.xlane.f32.xlu0 %v767_v57 }
  0xf6   : > { %v7292_v0 = vpop.xlane.xlu1 %561  ;;  %v7294_v1 = vpop.xlane.xlu0 %558 }
  0xf9   : > { %777 = vadd.xlane.f32.xlu1 %v776_v6  ;;  %774 = vadd.xlane.f32.xlu0 %v773_v7  ;;  %v297_v6 = vld [vmem:[%s6976_s18 + $0x3d8] sm:$0xff]  ;;  %v296_v7 = vld [vmem:[%s6976_s18 + $0x3d0] sm:$0xff] }
  0xfa   : > { %v7300_v16 = vpop.xlane.xlu1 %567  ;;  %v7302_v17 = vpop.xlane.xlu0 %564 }
  0xfd   : > { %783 = vadd.xlane.f32.xlu1 %v782_v20  ;;  %780 = vadd.xlane.f32.xlu0 %v779_v21  ;;  %v800_v20 = vsel %vm430_vm0, %v297_v6, 0.0  ;;  %v797_v21 = vsel %vm430_vm0, %v296_v7, 0.0 }
  0xfe   : > { %v7308_v34 = vpop.xlane.xlu1 %573  ;;  %v7310_v35 = vpop.xlane.xlu0 %570 }
 0x101   : > { %789 = vadd.xlane.f32.xlu1 %v788_v44  ;;  %786 = vadd.xlane.f32.xlu0 %v785_v45 }
 0x102   : > { %v7316_v56 = vpop.xlane.xlu1 %579  ;;  %v7318_v57 = vpop.xlane.xlu0 %576 }
 0x103   : > { %12137 = vst [vmem:[#allocation2_spill] sm:$0xff] %v7318_v57 }
 0x105   : > { %795 = vadd.xlane.f32.xlu1 %v794_v62  ;;  %792 = vadd.xlane.f32.xlu0 %v791_v63  ;;  %v301_v62 = vld [vmem:[%s6976_s18 + $0x3f8] sm:$0xff]  ;;  %v300_v63 = vld [vmem:[%s6976_s18 + $0x3f0] sm:$0xff] }
 0x106   : > { %v7324_v10 = vpop.xlane.xlu1 %585  ;;  %v7326_v11 = vpop.xlane.xlu0 %582 }
 0x107   : > { %12138 = vst [vmem:[#allocation3_spill] sm:$0xff] %v7324_v10  ;;  %12139 = vst [vmem:[#allocation4_spill] sm:$0xff] %v7326_v11  ;;  %v399_v11 = vld [vmem:[%s6976_s18 + $0x708] sm:$0xff]  ;;  %v398_v10 = vld [vmem:[%s6976_s18 + $0x700] sm:$0xff] }
 0x109   : > { %801 = vadd.xlane.f32.xlu1 %v800_v20  ;;  %798 = vadd.xlane.f32.xlu0 %v797_v21  ;;  %v812_v20 = vsel %vm430_vm0, %v301_v62, 0.0  ;;  %v809_v21 = vsel %vm430_vm0, %v300_v63, 0.0 }
 0x10a   : > { %v7332_v44 = vpop.xlane.xlu1 %591  ;;  %v7334_v45 = vpop.xlane.xlu0 %588 }
 0x10b   : > { %12140 = vst [vmem:[#allocation5_spill] sm:$0xff] %v7332_v44  ;;  %12141 = vst [vmem:[#allocation6_spill] sm:$0xff] %v7334_v45  ;;  %v303_v44 = vld [vmem:[%s6976_s18 + $0x408] sm:$0xff]  ;;  %v302_v45 = vld [vmem:[%s6976_s18 + $0x400] sm:$0xff] }
 0x10d   : > { %807 = vadd.xlane.f32.xlu1 %v806_v46  ;;  %804 = vadd.xlane.f32.xlu0 %v803_v47  ;;  %v818_v46 = vsel %vm430_vm0, %v303_v44, 0.0  ;;  %v815_v47 = vsel %vm430_vm0, %v302_v45, 0.0 }
 0x10e   : > { %v7340_v6 = vpop.xlane.xlu1 %597  ;;  %v7342_v7 = vpop.xlane.xlu0 %594 }
 0x10f   : > { %12142 = vst [vmem:[#allocation7_spill] sm:$0xff] %v7340_v6  ;;  %12143 = vst [vmem:[#allocation8_spill] sm:$0xff] %v7342_v7  ;;  %v305_v6 = vld [vmem:[%s6976_s18 + $0x418] sm:$0xff]  ;;  %v304_v7 = vld [vmem:[%s6976_s18 + $0x410] sm:$0xff] }
 0x111   : > { %813 = vadd.xlane.f32.xlu1 %v812_v20  ;;  %810 = vadd.xlane.f32.xlu0 %v809_v21  ;;  %v824_v20 = vsel %vm430_vm0, %v305_v6, 0.0  ;;  %v821_v21 = vsel %vm430_vm0, %v304_v7, 0.0 }
 0x112   : > { %v7348_v28 = vpop.xlane.xlu1 %603  ;;  %v7350_v29 = vpop.xlane.xlu0 %600 }
 0x113   : > { %12144 = vst [vmem:[#allocation9_spill] sm:$0xff] %v7348_v28  ;;  %12145 = vst [vmem:[#allocation10_spill] sm:$0xff] %v7350_v29  ;;  %v307_v28 = vld [vmem:[%s6976_s18 + $0x428] sm:$0xff]  ;;  %v306_v29 = vld [vmem:[%s6976_s18 + $0x420] sm:$0xff] }
 0x115   : > { %819 = vadd.xlane.f32.xlu1 %v818_v46  ;;  %816 = vadd.xlane.f32.xlu0 %v815_v47  ;;  %v830_v46 = vsel %vm430_vm0, %v307_v28, 0.0  ;;  %v827_v47 = vsel %vm430_vm0, %v306_v29, 0.0 }
 0x116   : > { %v7356_v62 = vpop.xlane.xlu1 %609  ;;  %v7358_v63 = vpop.xlane.xlu0 %606 }
 0x117   : > { %12146 = vst [vmem:[#allocation11_spill] sm:$0xff] %v7356_v62  ;;  %12147 = vst [vmem:[#allocation12_spill] sm:$0xff] %v7358_v63  ;;  %v309_v62 = vld [vmem:[%s6976_s18 + $0x438] sm:$0xff]  ;;  %v308_v63 = vld [vmem:[%s6976_s18 + $0x430] sm:$0xff] }
 0x119   : > { %825 = vadd.xlane.f32.xlu1 %v824_v20  ;;  %822 = vadd.xlane.f32.xlu0 %v821_v21  ;;  %v836_v20 = vsel %vm430_vm0, %v309_v62, 0.0  ;;  %v833_v21 = vsel %vm430_vm0, %v308_v63, 0.0 }
 0x11a   : > { %v7364_v44 = vpop.xlane.xlu1 %615  ;;  %v7366_v45 = vpop.xlane.xlu0 %612 }
 0x11b   : > { %12148 = vst [vmem:[#allocation13_spill] sm:$0xff] %v7364_v44  ;;  %12149 = vst [vmem:[#allocation14_spill] sm:$0xff] %v7366_v45  ;;  %v311_v44 = vld [vmem:[%s6976_s18 + $0x448] sm:$0xff]  ;;  %v310_v45 = vld [vmem:[%s6976_s18 + $0x440] sm:$0xff] }
 0x11d   : > { %831 = vadd.xlane.f32.xlu1 %v830_v46  ;;  %828 = vadd.xlane.f32.xlu0 %v827_v47  ;;  %v842_v46 = vsel %vm430_vm0, %v311_v44, 0.0  ;;  %v839_v47 = vsel %vm430_vm0, %v310_v45, 0.0 }
 0x11e   : > { %v7372_v6 = vpop.xlane.xlu1 %621  ;;  %v7374_v7 = vpop.xlane.xlu0 %618 }
 0x11f   : > { %12150 = vst [vmem:[#allocation15_spill] sm:$0xff] %v7372_v6  ;;  %12151 = vst [vmem:[#allocation16_spill] sm:$0xff] %v7374_v7  ;;  %v313_v6 = vld [vmem:[%s6976_s18 + $0x458] sm:$0xff]  ;;  %v312_v7 = vld [vmem:[%s6976_s18 + $0x450] sm:$0xff] }
 0x121   : > { %837 = vadd.xlane.f32.xlu1 %v836_v20  ;;  %834 = vadd.xlane.f32.xlu0 %v833_v21  ;;  %v848_v20 = vsel %vm430_vm0, %v313_v6, 0.0  ;;  %v845_v21 = vsel %vm430_vm0, %v312_v7, 0.0 }
 0x122   : > { %v7380_v28 = vpop.xlane.xlu1 %627  ;;  %v7382_v29 = vpop.xlane.xlu0 %624 }
 0x123   : > { %12152 = vst [vmem:[#allocation17_spill] sm:$0xff] %v7380_v28  ;;  %12153 = vst [vmem:[#allocation18_spill] sm:$0xff] %v7382_v29  ;;  %v315_v28 = vld [vmem:[%s6976_s18 + $0x468] sm:$0xff]  ;;  %v314_v29 = vld [vmem:[%s6976_s18 + $0x460] sm:$0xff] }
 0x125   : > { %843 = vadd.xlane.f32.xlu1 %v842_v46  ;;  %840 = vadd.xlane.f32.xlu0 %v839_v47  ;;  %v854_v46 = vsel %vm430_vm0, %v315_v28, 0.0  ;;  %v851_v47 = vsel %vm430_vm0, %v314_v29, 0.0 }
 0x126   : > { %v7388_v62 = vpop.xlane.xlu1 %633  ;;  %v7390_v63 = vpop.xlane.xlu0 %630 }
 0x127   : > { %12154 = vst [vmem:[#allocation19_spill] sm:$0xff] %v7388_v62  ;;  %12155 = vst [vmem:[#allocation20_spill] sm:$0xff] %v7390_v63  ;;  %v317_v62 = vld [vmem:[%s6976_s18 + $0x478] sm:$0xff]  ;;  %v316_v63 = vld [vmem:[%s6976_s18 + $0x470] sm:$0xff] }
 0x129   : > { %849 = vadd.xlane.f32.xlu1 %v848_v20  ;;  %846 = vadd.xlane.f32.xlu0 %v845_v21  ;;  %v860_v20 = vsel %vm430_vm0, %v317_v62, 0.0  ;;  %v857_v21 = vsel %vm430_vm0, %v316_v63, 0.0 }
 0x12a   : > { %v7396_v44 = vpop.xlane.xlu1 %639  ;;  %v7398_v45 = vpop.xlane.xlu0 %636 }
 0x12b   : > { %12156 = vst [vmem:[#allocation21_spill] sm:$0xff] %v7396_v44  ;;  %12157 = vst [vmem:[#allocation22_spill] sm:$0xff] %v7398_v45  ;;  %v319_v44 = vld [vmem:[%s6976_s18 + $0x488] sm:$0xff]  ;;  %v318_v45 = vld [vmem:[%s6976_s18 + $0x480] sm:$0xff] }
 0x12d   : > { %855 = vadd.xlane.f32.xlu1 %v854_v46  ;;  %852 = vadd.xlane.f32.xlu0 %v851_v47  ;;  %v866_v46 = vsel %vm430_vm0, %v319_v44, 0.0  ;;  %v863_v47 = vsel %vm430_vm0, %v318_v45, 0.0 }
 0x12e   : > { %v7404_v6 = vpop.xlane.xlu1 %645  ;;  %v7406_v7 = vpop.xlane.xlu0 %642 }
 0x12f   : > { %12158 = vst [vmem:[#allocation23_spill] sm:$0xff] %v7404_v6  ;;  %12159 = vst [vmem:[#allocation24_spill] sm:$0xff] %v7406_v7  ;;  %v321_v6 = vld [vmem:[%s6976_s18 + $0x498] sm:$0xff]  ;;  %v320_v7 = vld [vmem:[%s6976_s18 + $0x490] sm:$0xff] }
 0x131   : > { %861 = vadd.xlane.f32.xlu1 %v860_v20  ;;  %858 = vadd.xlane.f32.xlu0 %v857_v21  ;;  %v872_v20 = vsel %vm430_vm0, %v321_v6, 0.0  ;;  %v869_v21 = vsel %vm430_vm0, %v320_v7, 0.0 }
 0x132   : > { %v7412_v28 = vpop.xlane.xlu1 %651  ;;  %v7414_v29 = vpop.xlane.xlu0 %648 }
 0x133   : > { %12160 = vst [vmem:[#allocation25_spill] sm:$0xff] %v7412_v28  ;;  %12161 = vst [vmem:[#allocation26_spill] sm:$0xff] %v7414_v29  ;;  %v323_v28 = vld [vmem:[%s6976_s18 + $0x4a8] sm:$0xff]  ;;  %v322_v29 = vld [vmem:[%s6976_s18 + $0x4a0] sm:$0xff] }
 0x135   : > { %867 = vadd.xlane.f32.xlu1 %v866_v46  ;;  %864 = vadd.xlane.f32.xlu0 %v863_v47  ;;  %v878_v46 = vsel %vm430_vm0, %v323_v28, 0.0  ;;  %v875_v47 = vsel %vm430_vm0, %v322_v29, 0.0 }
 0x136   : > { %v7420_v62 = vpop.xlane.xlu1 %657  ;;  %v7422_v63 = vpop.xlane.xlu0 %654 }
 0x137   : > { %12162 = vst [vmem:[#allocation27_spill] sm:$0xff] %v7420_v62  ;;  %12163 = vst [vmem:[#allocation28_spill] sm:$0xff] %v7422_v63  ;;  %v325_v62 = vld [vmem:[%s6976_s18 + $0x4b8] sm:$0xff]  ;;  %v324_v63 = vld [vmem:[%s6976_s18 + $0x4b0] sm:$0xff] }
 0x139   : > { %873 = vadd.xlane.f32.xlu1 %v872_v20  ;;  %870 = vadd.xlane.f32.xlu0 %v869_v21  ;;  %v884_v20 = vsel %vm430_vm0, %v325_v62, 0.0  ;;  %v881_v21 = vsel %vm430_vm0, %v324_v63, 0.0 }
 0x13a   : > { %v7428_v44 = vpop.xlane.xlu1 %663  ;;  %v7430_v45 = vpop.xlane.xlu0 %660 }
 0x13b   : > { %12164 = vst [vmem:[#allocation29_spill] sm:$0xff] %v7428_v44  ;;  %12165 = vst [vmem:[#allocation30_spill] sm:$0xff] %v7430_v45  ;;  %v327_v44 = vld [vmem:[%s6976_s18 + $0x4c8] sm:$0xff]  ;;  %v326_v45 = vld [vmem:[%s6976_s18 + $0x4c0] sm:$0xff] }
 0x13d   : > { %879 = vadd.xlane.f32.xlu1 %v878_v46  ;;  %876 = vadd.xlane.f32.xlu0 %v875_v47  ;;  %v890_v46 = vsel %vm430_vm0, %v327_v44, 0.0  ;;  %v887_v47 = vsel %vm430_vm0, %v326_v45, 0.0 }
 0x13e   : > { %v7436_v6 = vpop.xlane.xlu1 %669  ;;  %v7438_v7 = vpop.xlane.xlu0 %666 }
 0x13f   : > { %12166 = vst [vmem:[#allocation31_spill] sm:$0xff] %v7436_v6  ;;  %12167 = vst [vmem:[#allocation32_spill] sm:$0xff] %v7438_v7  ;;  %v329_v6 = vld [vmem:[%s6976_s18 + $0x4d8] sm:$0xff]  ;;  %v328_v7 = vld [vmem:[%s6976_s18 + $0x4d0] sm:$0xff] }
 0x141   : > { %885 = vadd.xlane.f32.xlu1 %v884_v20  ;;  %882 = vadd.xlane.f32.xlu0 %v881_v21  ;;  %v896_v20 = vsel %vm430_vm0, %v329_v6, 0.0  ;;  %v893_v21 = vsel %vm430_vm0, %v328_v7, 0.0 }
 0x142   : > { %v7444_v28 = vpop.xlane.xlu1 %675  ;;  %v7446_v29 = vpop.xlane.xlu0 %672 }
 0x143   : > { %12168 = vst [vmem:[#allocation33_spill] sm:$0xff] %v7444_v28  ;;  %12169 = vst [vmem:[#allocation34_spill] sm:$0xff] %v7446_v29  ;;  %v331_v28 = vld [vmem:[%s6976_s18 + $0x4e8] sm:$0xff]  ;;  %v330_v29 = vld [vmem:[%s6976_s18 + $0x4e0] sm:$0xff] }
 0x145   : > { %891 = vadd.xlane.f32.xlu1 %v890_v46  ;;  %888 = vadd.xlane.f32.xlu0 %v887_v47  ;;  %v902_v46 = vsel %vm430_vm0, %v331_v28, 0.0  ;;  %v899_v47 = vsel %vm430_vm0, %v330_v29, 0.0 }
 0x146   : > { %v7452_v62 = vpop.xlane.xlu1 %681  ;;  %v7454_v63 = vpop.xlane.xlu0 %678 }
 0x147   : > { %12170 = vst [vmem:[#allocation35_spill] sm:$0xff] %v7452_v62  ;;  %12171 = vst [vmem:[#allocation36_spill] sm:$0xff] %v7454_v63  ;;  %v333_v62 = vld [vmem:[%s6976_s18 + $0x4f8] sm:$0xff]  ;;  %v332_v63 = vld [vmem:[%s6976_s18 + $0x4f0] sm:$0xff] }
 0x149   : > { %897 = vadd.xlane.f32.xlu1 %v896_v20  ;;  %894 = vadd.xlane.f32.xlu0 %v893_v21  ;;  %v908_v20 = vsel %vm430_vm0, %v333_v62, 0.0  ;;  %v905_v21 = vsel %vm430_vm0, %v332_v63, 0.0 }
 0x14a   : > { %v7460_v44 = vpop.xlane.xlu1 %687  ;;  %v7462_v45 = vpop.xlane.xlu0 %684 }
 0x14b   : > { %12172 = vst [vmem:[#allocation37_spill] sm:$0xff] %v7460_v44  ;;  %12173 = vst [vmem:[#allocation38_spill] sm:$0xff] %v7462_v45  ;;  %v335_v44 = vld [vmem:[%s6976_s18 + $0x508] sm:$0xff]  ;;  %v334_v45 = vld [vmem:[%s6976_s18 + $0x500] sm:$0xff] }
 0x14d   : > { %903 = vadd.xlane.f32.xlu1 %v902_v46  ;;  %900 = vadd.xlane.f32.xlu0 %v899_v47  ;;  %v914_v46 = vsel %vm430_vm0, %v335_v44, 0.0  ;;  %v911_v47 = vsel %vm430_vm0, %v334_v45, 0.0 }
 0x14e   : > { %v7468_v6 = vpop.xlane.xlu1 %693  ;;  %v7470_v7 = vpop.xlane.xlu0 %690 }
 0x14f   : > { %12174 = vst [vmem:[#allocation39_spill] sm:$0xff] %v7468_v6  ;;  %12175 = vst [vmem:[#allocation40_spill] sm:$0xff] %v7470_v7  ;;  %v337_v6 = vld [vmem:[%s6976_s18 + $0x518] sm:$0xff]  ;;  %v336_v7 = vld [vmem:[%s6976_s18 + $0x510] sm:$0xff] }
 0x151   : > { %909 = vadd.xlane.f32.xlu1 %v908_v20  ;;  %906 = vadd.xlane.f32.xlu0 %v905_v21  ;;  %v920_v20 = vsel %vm430_vm0, %v337_v6, 0.0  ;;  %v917_v21 = vsel %vm430_vm0, %v336_v7, 0.0 }
 0x152   : > { %v7476_v28 = vpop.xlane.xlu1 %699  ;;  %v7478_v29 = vpop.xlane.xlu0 %696 }
 0x153   : > { %12176 = vst [vmem:[#allocation41_spill] sm:$0xff] %v7476_v28  ;;  %12177 = vst [vmem:[#allocation42_spill] sm:$0xff] %v7478_v29  ;;  %v339_v28 = vld [vmem:[%s6976_s18 + $0x528] sm:$0xff]  ;;  %v338_v29 = vld [vmem:[%s6976_s18 + $0x520] sm:$0xff] }
 0x155   : > { %915 = vadd.xlane.f32.xlu1 %v914_v46  ;;  %912 = vadd.xlane.f32.xlu0 %v911_v47  ;;  %v926_v46 = vsel %vm430_vm0, %v339_v28, 0.0  ;;  %v923_v47 = vsel %vm430_vm0, %v338_v29, 0.0 }
 0x156   : > { %v7484_v62 = vpop.xlane.xlu1 %705  ;;  %v7486_v63 = vpop.xlane.xlu0 %702 }
 0x157   : > { %12178 = vst [vmem:[#allocation43_spill] sm:$0xff] %v7484_v62  ;;  %12179 = vst [vmem:[#allocation44_spill] sm:$0xff] %v7486_v63  ;;  %v341_v62 = vld [vmem:[%s6976_s18 + $0x538] sm:$0xff]  ;;  %v340_v63 = vld [vmem:[%s6976_s18 + $0x530] sm:$0xff] }
 0x159   : > { %921 = vadd.xlane.f32.xlu1 %v920_v20  ;;  %918 = vadd.xlane.f32.xlu0 %v917_v21  ;;  %v932_v20 = vsel %vm430_vm0, %v341_v62, 0.0  ;;  %v929_v21 = vsel %vm430_vm0, %v340_v63, 0.0 }
 0x15a   : > { %v7492_v44 = vpop.xlane.xlu1 %711  ;;  %v7494_v45 = vpop.xlane.xlu0 %708 }
 0x15b   : > { %12180 = vst [vmem:[#allocation45_spill] sm:$0xff] %v7492_v44  ;;  %12181 = vst [vmem:[#allocation46_spill] sm:$0xff] %v7494_v45  ;;  %v343_v44 = vld [vmem:[%s6976_s18 + $0x548] sm:$0xff]  ;;  %v342_v45 = vld [vmem:[%s6976_s18 + $0x540] sm:$0xff] }
 0x15d   : > { %927 = vadd.xlane.f32.xlu1 %v926_v46  ;;  %924 = vadd.xlane.f32.xlu0 %v923_v47  ;;  %v938_v46 = vsel %vm430_vm0, %v343_v44, 0.0  ;;  %v935_v47 = vsel %vm430_vm0, %v342_v45, 0.0 }
 0x15e   : > { %v7500_v6 = vpop.xlane.xlu1 %717  ;;  %v7502_v7 = vpop.xlane.xlu0 %714 }
 0x15f   : > { %12182 = vst [vmem:[#allocation47_spill] sm:$0xff] %v7500_v6  ;;  %12183 = vst [vmem:[#allocation48_spill] sm:$0xff] %v7502_v7  ;;  %v345_v6 = vld [vmem:[%s6976_s18 + $0x558] sm:$0xff]  ;;  %v344_v7 = vld [vmem:[%s6976_s18 + $0x550] sm:$0xff] }
 0x161   : > { %933 = vadd.xlane.f32.xlu1 %v932_v20  ;;  %930 = vadd.xlane.f32.xlu0 %v929_v21  ;;  %v944_v20 = vsel %vm430_vm0, %v345_v6, 0.0  ;;  %v941_v21 = vsel %vm430_vm0, %v344_v7, 0.0 }
 0x162   : > { %v7508_v28 = vpop.xlane.xlu1 %723  ;;  %v7510_v29 = vpop.xlane.xlu0 %720 }
 0x163   : > { %12184 = vst [vmem:[#allocation49_spill] sm:$0xff] %v7508_v28  ;;  %12185 = vst [vmem:[#allocation50_spill] sm:$0xff] %v7510_v29  ;;  %v347_v28 = vld [vmem:[%s6976_s18 + $0x568] sm:$0xff]  ;;  %v346_v29 = vld [vmem:[%s6976_s18 + $0x560] sm:$0xff] }
 0x165   : > { %939 = vadd.xlane.f32.xlu1 %v938_v46  ;;  %936 = vadd.xlane.f32.xlu0 %v935_v47  ;;  %v950_v46 = vsel %vm430_vm0, %v347_v28, 0.0  ;;  %v947_v47 = vsel %vm430_vm0, %v346_v29, 0.0 }
 0x166   : > { %v7516_v62 = vpop.xlane.xlu1 %729  ;;  %v7518_v63 = vpop.xlane.xlu0 %726 }
 0x167   : > { %12186 = vst [vmem:[#allocation51_spill] sm:$0xff] %v7516_v62  ;;  %12187 = vst [vmem:[#allocation52_spill] sm:$0xff] %v7518_v63  ;;  %v349_v62 = vld [vmem:[%s6976_s18 + $0x578] sm:$0xff]  ;;  %v348_v63 = vld [vmem:[%s6976_s18 + $0x570] sm:$0xff] }
 0x169   : > { %945 = vadd.xlane.f32.xlu1 %v944_v20  ;;  %942 = vadd.xlane.f32.xlu0 %v941_v21  ;;  %v956_v20 = vsel %vm430_vm0, %v349_v62, 0.0  ;;  %v953_v21 = vsel %vm430_vm0, %v348_v63, 0.0 }
 0x16a   : > { %v7524_v44 = vpop.xlane.xlu1 %735  ;;  %v7526_v45 = vpop.xlane.xlu0 %732 }
 0x16b   : > { %12188 = vst [vmem:[#allocation53_spill] sm:$0xff] %v7524_v44  ;;  %12189 = vst [vmem:[#allocation54_spill] sm:$0xff] %v7526_v45  ;;  %v351_v44 = vld [vmem:[%s6976_s18 + $0x588] sm:$0xff]  ;;  %v350_v45 = vld [vmem:[%s6976_s18 + $0x580] sm:$0xff] }
 0x16d   : > { %951 = vadd.xlane.f32.xlu1 %v950_v46  ;;  %948 = vadd.xlane.f32.xlu0 %v947_v47  ;;  %v962_v46 = vsel %vm430_vm0, %v351_v44, 0.0  ;;  %v959_v47 = vsel %vm430_vm0, %v350_v45, 0.0 }
 0x16e   : > { %v7532_v6 = vpop.xlane.xlu1 %741  ;;  %v7534_v7 = vpop.xlane.xlu0 %738 }
 0x16f   : > { %12190 = vst [vmem:[#allocation55_spill] sm:$0xff] %v7532_v6  ;;  %12191 = vst [vmem:[#allocation56_spill] sm:$0xff] %v7534_v7  ;;  %v353_v6 = vld [vmem:[%s6976_s18 + $0x598] sm:$0xff]  ;;  %v352_v7 = vld [vmem:[%s6976_s18 + $0x590] sm:$0xff] }
 0x171   : > { %957 = vadd.xlane.f32.xlu1 %v956_v20  ;;  %954 = vadd.xlane.f32.xlu0 %v953_v21  ;;  %v968_v20 = vsel %vm430_vm0, %v353_v6, 0.0  ;;  %v965_v21 = vsel %vm430_vm0, %v352_v7, 0.0 }
 0x172   : > { %v7540_v28 = vpop.xlane.xlu1 %747  ;;  %v7542_v29 = vpop.xlane.xlu0 %744 }
 0x173   : > { %12192 = vst [vmem:[#allocation57_spill] sm:$0xff] %v7540_v28  ;;  %12193 = vst [vmem:[#allocation58_spill] sm:$0xff] %v7542_v29  ;;  %v355_v28 = vld [vmem:[%s6976_s18 + $0x5a8] sm:$0xff]  ;;  %v354_v29 = vld [vmem:[%s6976_s18 + $0x5a0] sm:$0xff] }
 0x175   : > { %963 = vadd.xlane.f32.xlu1 %v962_v46  ;;  %960 = vadd.xlane.f32.xlu0 %v959_v47  ;;  %v974_v46 = vsel %vm430_vm0, %v355_v28, 0.0  ;;  %v971_v47 = vsel %vm430_vm0, %v354_v29, 0.0 }
 0x176   : > { %v7548_v62 = vpop.xlane.xlu1 %753  ;;  %v7550_v63 = vpop.xlane.xlu0 %750 }
 0x177   : > { %12194 = vst [vmem:[#allocation59_spill] sm:$0xff] %v7548_v62  ;;  %12195 = vst [vmem:[#allocation60_spill] sm:$0xff] %v7550_v63  ;;  %v357_v62 = vld [vmem:[%s6976_s18 + $0x5b8] sm:$0xff]  ;;  %v356_v63 = vld [vmem:[%s6976_s18 + $0x5b0] sm:$0xff] }
 0x179   : > { %969 = vadd.xlane.f32.xlu1 %v968_v20  ;;  %966 = vadd.xlane.f32.xlu0 %v965_v21  ;;  %v980_v20 = vsel %vm430_vm0, %v357_v62, 0.0  ;;  %v977_v21 = vsel %vm430_vm0, %v356_v63, 0.0 }
 0x17a   : > { %v7556_v44 = vpop.xlane.xlu1 %759  ;;  %v7558_v45 = vpop.xlane.xlu0 %756 }
 0x17b   : > { %12196 = vst [vmem:[#allocation61_spill] sm:$0xff] %v7556_v44  ;;  %12197 = vst [vmem:[#allocation62_spill] sm:$0xff] %v7558_v45  ;;  %v359_v44 = vld [vmem:[%s6976_s18 + $0x5c8] sm:$0xff]  ;;  %v358_v45 = vld [vmem:[%s6976_s18 + $0x5c0] sm:$0xff] }
 0x17d   : > { %975 = vadd.xlane.f32.xlu1 %v974_v46  ;;  %972 = vadd.xlane.f32.xlu0 %v971_v47  ;;  %v986_v46 = vsel %vm430_vm0, %v359_v44, 0.0  ;;  %v983_v47 = vsel %vm430_vm0, %v358_v45, 0.0 }
 0x17e   : > { %v7564_v6 = vpop.xlane.xlu1 %765  ;;  %v7566_v7 = vpop.xlane.xlu0 %762 }
 0x17f   : > { %12198 = vst [vmem:[#allocation63_spill] sm:$0xff] %v7564_v6  ;;  %12199 = vst [vmem:[#allocation64_spill] sm:$0xff] %v7566_v7  ;;  %v361_v6 = vld [vmem:[%s6976_s18 + $0x5d8] sm:$0xff]  ;;  %v360_v7 = vld [vmem:[%s6976_s18 + $0x5d0] sm:$0xff] }
 0x181   : > { %981 = vadd.xlane.f32.xlu1 %v980_v20  ;;  %978 = vadd.xlane.f32.xlu0 %v977_v21  ;;  %v992_v20 = vsel %vm430_vm0, %v361_v6, 0.0  ;;  %v989_v21 = vsel %vm430_vm0, %v360_v7, 0.0 }
 0x182   : > { %v7572_v28 = vpop.xlane.xlu1 %771  ;;  %v7574_v29 = vpop.xlane.xlu0 %768 }
 0x183   : > { %12200 = vst [vmem:[#allocation65_spill] sm:$0xff] %v7572_v28  ;;  %12201 = vst [vmem:[#allocation66_spill] sm:$0xff] %v7574_v29  ;;  %v363_v28 = vld [vmem:[%s6976_s18 + $0x5e8] sm:$0xff]  ;;  %v362_v29 = vld [vmem:[%s6976_s18 + $0x5e0] sm:$0xff] }
 0x185   : > { %987 = vadd.xlane.f32.xlu1 %v986_v46  ;;  %984 = vadd.xlane.f32.xlu0 %v983_v47  ;;  %v998_v46 = vsel %vm430_vm0, %v363_v28, 0.0  ;;  %v995_v47 = vsel %vm430_vm0, %v362_v29, 0.0 }
 0x186   : > { %v7580_v62 = vpop.xlane.xlu1 %777  ;;  %v7582_v63 = vpop.xlane.xlu0 %774 }
 0x187   : > { %12202 = vst [vmem:[#allocation67_spill] sm:$0xff] %v7580_v62  ;;  %12203 = vst [vmem:[#allocation68_spill] sm:$0xff] %v7582_v63  ;;  %v365_v62 = vld [vmem:[%s6976_s18 + $0x5f8] sm:$0xff]  ;;  %v364_v63 = vld [vmem:[%s6976_s18 + $0x5f0] sm:$0xff] }
 0x189   : > { %993 = vadd.xlane.f32.xlu1 %v992_v20  ;;  %990 = vadd.xlane.f32.xlu0 %v989_v21  ;;  %v1004_v20 = vsel %vm430_vm0, %v365_v62, 0.0  ;;  %v1001_v21 = vsel %vm430_vm0, %v364_v63, 0.0 }
 0x18a   : > { %v7588_v44 = vpop.xlane.xlu1 %783  ;;  %v7590_v45 = vpop.xlane.xlu0 %780 }
 0x18b   : > { %12204 = vst [vmem:[#allocation69_spill] sm:$0xff] %v7588_v44  ;;  %12205 = vst [vmem:[#allocation70_spill] sm:$0xff] %v7590_v45  ;;  %v367_v44 = vld [vmem:[%s6976_s18 + $0x608] sm:$0xff]  ;;  %v366_v45 = vld [vmem:[%s6976_s18 + $0x600] sm:$0xff] }
 0x18d   : > { %999 = vadd.xlane.f32.xlu1 %v998_v46  ;;  %996 = vadd.xlane.f32.xlu0 %v995_v47  ;;  %v1010_v46 = vsel %vm430_vm0, %v367_v44, 0.0  ;;  %v1007_v47 = vsel %vm430_vm0, %v366_v45, 0.0 }
 0x18e   : > { %v7596_v6 = vpop.xlane.xlu1 %789  ;;  %v7598_v7 = vpop.xlane.xlu0 %786 }
 0x18f   : > { %12206 = vst [vmem:[#allocation71_spill] sm:$0xff] %v7596_v6  ;;  %12207 = vst [vmem:[#allocation72_spill] sm:$0xff] %v7598_v7  ;;  %v369_v6 = vld [vmem:[%s6976_s18 + $0x618] sm:$0xff]  ;;  %v368_v7 = vld [vmem:[%s6976_s18 + $0x610] sm:$0xff] }
 0x191   : > { %1005 = vadd.xlane.f32.xlu1 %v1004_v20  ;;  %1002 = vadd.xlane.f32.xlu0 %v1001_v21  ;;  %v1016_v20 = vsel %vm430_vm0, %v369_v6, 0.0  ;;  %v1013_v21 = vsel %vm430_vm0, %v368_v7, 0.0 }
 0x192   : > { %v7604_v28 = vpop.xlane.xlu1 %795  ;;  %v7606_v29 = vpop.xlane.xlu0 %792 }
 0x193   : > { %12208 = vst [vmem:[#allocation73_spill] sm:$0xff] %v7604_v28  ;;  %12209 = vst [vmem:[#allocation74_spill] sm:$0xff] %v7606_v29  ;;  %v371_v28 = vld [vmem:[%s6976_s18 + $0x628] sm:$0xff]  ;;  %v370_v29 = vld [vmem:[%s6976_s18 + $0x620] sm:$0xff] }
 0x195   : > { %1011 = vadd.xlane.f32.xlu1 %v1010_v46  ;;  %1008 = vadd.xlane.f32.xlu0 %v1007_v47  ;;  %v1022_v46 = vsel %vm430_vm0, %v371_v28, 0.0  ;;  %v1019_v47 = vsel %vm430_vm0, %v370_v29, 0.0 }
 0x196   : > { %v7612_v62 = vpop.xlane.xlu1 %801  ;;  %v7614_v63 = vpop.xlane.xlu0 %798 }
 0x197   : > { %12210 = vst [vmem:[#allocation75_spill] sm:$0xff] %v7612_v62  ;;  %12211 = vst [vmem:[#allocation76_spill] sm:$0xff] %v7614_v63  ;;  %v373_v62 = vld [vmem:[%s6976_s18 + $0x638] sm:$0xff]  ;;  %v372_v63 = vld [vmem:[%s6976_s18 + $0x630] sm:$0xff] }
 0x199   : > { %1017 = vadd.xlane.f32.xlu1 %v1016_v20  ;;  %1014 = vadd.xlane.f32.xlu0 %v1013_v21  ;;  %v1028_v20 = vsel %vm430_vm0, %v373_v62, 0.0  ;;  %v1025_v21 = vsel %vm430_vm0, %v372_v63, 0.0 }
 0x19a   : > { %v7620_v44 = vpop.xlane.xlu1 %807  ;;  %v7622_v45 = vpop.xlane.xlu0 %804 }
 0x19b   : > { %12212 = vst [vmem:[#allocation77_spill] sm:$0xff] %v7620_v44  ;;  %12213 = vst [vmem:[#allocation78_spill] sm:$0xff] %v7622_v45  ;;  %v375_v44 = vld [vmem:[%s6976_s18 + $0x648] sm:$0xff]  ;;  %v374_v45 = vld [vmem:[%s6976_s18 + $0x640] sm:$0xff] }
 0x19d   : > { %1023 = vadd.xlane.f32.xlu1 %v1022_v46  ;;  %1020 = vadd.xlane.f32.xlu0 %v1019_v47  ;;  %v1034_v46 = vsel %vm430_vm0, %v375_v44, 0.0  ;;  %v1031_v47 = vsel %vm430_vm0, %v374_v45, 0.0 }
 0x19e   : > { %v7628_v6 = vpop.xlane.xlu1 %813  ;;  %v7630_v7 = vpop.xlane.xlu0 %810 }
 0x19f   : > { %12214 = vst [vmem:[#allocation79_spill] sm:$0xff] %v7628_v6  ;;  %12215 = vst [vmem:[#allocation80_spill] sm:$0xff] %v7630_v7  ;;  %v377_v6 = vld [vmem:[%s6976_s18 + $0x658] sm:$0xff]  ;;  %v376_v7 = vld [vmem:[%s6976_s18 + $0x650] sm:$0xff] }
 0x1a1   : > { %1029 = vadd.xlane.f32.xlu1 %v1028_v20  ;;  %1026 = vadd.xlane.f32.xlu0 %v1025_v21  ;;  %v1040_v20 = vsel %vm430_vm0, %v377_v6, 0.0  ;;  %v1037_v21 = vsel %vm430_vm0, %v376_v7, 0.0 }
 0x1a2   : > { %v7636_v28 = vpop.xlane.xlu1 %819  ;;  %v7638_v29 = vpop.xlane.xlu0 %816 }
 0x1a3   : > { %12216 = vst [vmem:[#allocation81_spill] sm:$0xff] %v7636_v28  ;;  %12217 = vst [vmem:[#allocation82_spill] sm:$0xff] %v7638_v29  ;;  %v379_v28 = vld [vmem:[%s6976_s18 + $0x668] sm:$0xff]  ;;  %v378_v29 = vld [vmem:[%s6976_s18 + $0x660] sm:$0xff] }
 0x1a5   : > { %1035 = vadd.xlane.f32.xlu1 %v1034_v46  ;;  %1032 = vadd.xlane.f32.xlu0 %v1031_v47  ;;  %v1046_v46 = vsel %vm430_vm0, %v379_v28, 0.0  ;;  %v1043_v47 = vsel %vm430_vm0, %v378_v29, 0.0 }
 0x1a6   : > { %v7644_v62 = vpop.xlane.xlu1 %825  ;;  %v7646_v63 = vpop.xlane.xlu0 %822 }
 0x1a7   : > { %12218 = vst [vmem:[#allocation83_spill] sm:$0xff] %v7644_v62  ;;  %12219 = vst [vmem:[#allocation84_spill] sm:$0xff] %v7646_v63  ;;  %v381_v62 = vld [vmem:[%s6976_s18 + $0x678] sm:$0xff]  ;;  %v380_v63 = vld [vmem:[%s6976_s18 + $0x670] sm:$0xff] }
 0x1a9   : > { %1041 = vadd.xlane.f32.xlu1 %v1040_v20  ;;  %1038 = vadd.xlane.f32.xlu0 %v1037_v21  ;;  %v1052_v20 = vsel %vm430_vm0, %v381_v62, 0.0  ;;  %v1049_v21 = vsel %vm430_vm0, %v380_v63, 0.0 }
 0x1aa   : > { %v7652_v44 = vpop.xlane.xlu1 %831  ;;  %v7654_v45 = vpop.xlane.xlu0 %828 }
 0x1ab   : > { %12220 = vst [vmem:[#allocation85_spill] sm:$0xff] %v7652_v44  ;;  %12221 = vst [vmem:[#allocation86_spill] sm:$0xff] %v7654_v45  ;;  %v383_v44 = vld [vmem:[%s6976_s18 + $0x688] sm:$0xff]  ;;  %v382_v45 = vld [vmem:[%s6976_s18 + $0x680] sm:$0xff] }
 0x1ad   : > { %1047 = vadd.xlane.f32.xlu1 %v1046_v46  ;;  %1044 = vadd.xlane.f32.xlu0 %v1043_v47  ;;  %v1058_v46 = vsel %vm430_vm0, %v383_v44, 0.0  ;;  %v1055_v47 = vsel %vm430_vm0, %v382_v45, 0.0 }
 0x1ae   : > { %v7660_v6 = vpop.xlane.xlu1 %837  ;;  %v7662_v7 = vpop.xlane.xlu0 %834 }
 0x1af   : > { %12222 = vst [vmem:[#allocation87_spill] sm:$0xff] %v7660_v6  ;;  %12223 = vst [vmem:[#allocation88_spill] sm:$0xff] %v7662_v7  ;;  %v385_v6 = vld [vmem:[%s6976_s18 + $0x698] sm:$0xff]  ;;  %v384_v7 = vld [vmem:[%s6976_s18 + $0x690] sm:$0xff] }
 0x1b1   : > { %1053 = vadd.xlane.f32.xlu1 %v1052_v20  ;;  %1050 = vadd.xlane.f32.xlu0 %v1049_v21  ;;  %v1064_v20 = vsel %vm430_vm0, %v385_v6, 0.0  ;;  %v1061_v21 = vsel %vm430_vm0, %v384_v7, 0.0 }
 0x1b2   : > { %v7668_v28 = vpop.xlane.xlu1 %843  ;;  %v7670_v29 = vpop.xlane.xlu0 %840 }
 0x1b3   : > { %12224 = vst [vmem:[#allocation89_spill] sm:$0xff] %v7668_v28  ;;  %12225 = vst [vmem:[#allocation90_spill] sm:$0xff] %v7670_v29  ;;  %v387_v28 = vld [vmem:[%s6976_s18 + $0x6a8] sm:$0xff]  ;;  %v386_v29 = vld [vmem:[%s6976_s18 + $0x6a0] sm:$0xff] }
 0x1b5   : > { %1059 = vadd.xlane.f32.xlu1 %v1058_v46  ;;  %1056 = vadd.xlane.f32.xlu0 %v1055_v47  ;;  %v1070_v46 = vsel %vm430_vm0, %v387_v28, 0.0  ;;  %v1067_v47 = vsel %vm430_vm0, %v386_v29, 0.0 }
 0x1b6   : > { %v7676_v62 = vpop.xlane.xlu1 %849  ;;  %v7678_v63 = vpop.xlane.xlu0 %846 }
 0x1b7   : > { %12226 = vst [vmem:[#allocation91_spill] sm:$0xff] %v7676_v62  ;;  %12227 = vst [vmem:[#allocation92_spill] sm:$0xff] %v7678_v63  ;;  %v389_v62 = vld [vmem:[%s6976_s18 + $0x6b8] sm:$0xff]  ;;  %v388_v63 = vld [vmem:[%s6976_s18 + $0x6b0] sm:$0xff] }
 0x1b9   : > { %1065 = vadd.xlane.f32.xlu1 %v1064_v20  ;;  %1062 = vadd.xlane.f32.xlu0 %v1061_v21  ;;  %v1076_v20 = vsel %vm430_vm0, %v389_v62, 0.0  ;;  %v1073_v21 = vsel %vm430_vm0, %v388_v63, 0.0 }
 0x1ba   : > { %v7684_v44 = vpop.xlane.xlu1 %855  ;;  %v7686_v45 = vpop.xlane.xlu0 %852 }
 0x1bb   : > { %12228 = vst [vmem:[#allocation93_spill] sm:$0xff] %v7684_v44  ;;  %12229 = vst [vmem:[#allocation94_spill] sm:$0xff] %v7686_v45  ;;  %v391_v44 = vld [vmem:[%s6976_s18 + $0x6c8] sm:$0xff]  ;;  %v390_v45 = vld [vmem:[%s6976_s18 + $0x6c0] sm:$0xff] }
 0x1bd   : > { %1071 = vadd.xlane.f32.xlu1 %v1070_v46  ;;  %1068 = vadd.xlane.f32.xlu0 %v1067_v47  ;;  %v1082_v46 = vsel %vm430_vm0, %v391_v44, 0.0  ;;  %v1079_v47 = vsel %vm430_vm0, %v390_v45, 0.0  ;;  %v1200_v44 = vmul.f32 0.03125, %v7126_v19 }
 0x1be   : > { %v7692_v6 = vpop.xlane.xlu1 %861  ;;  %v7694_v7 = vpop.xlane.xlu0 %858 }
 0x1bf   : > { %12230 = vst [vmem:[#allocation95_spill] sm:$0xff] %v7692_v6  ;;  %12231 = vst [vmem:[#allocation96_spill] sm:$0xff] %v7694_v7  ;;  %v393_v6 = vld [vmem:[%s6976_s18 + $0x6d8] sm:$0xff]  ;;  %v392_v7 = vld [vmem:[%s6976_s18 + $0x6d0] sm:$0xff] }
 0x1c1   : > { %1077 = vadd.xlane.f32.xlu1 %v1076_v20  ;;  %1074 = vadd.xlane.f32.xlu0 %v1073_v21  ;;  %v1088_v20 = vsel %vm430_vm0, %v393_v6, 0.0  ;;  %v1085_v21 = vsel %vm430_vm0, %v392_v7, 0.0  ;;  %v1202_v7 = vmul.f32 0.03125, %v7124_v18  ;;  %v6669_v18 = vld [vmem:[%s6976_s18 + $0x10] sm:$0xff] }
 0x1c2   : > { %v7700_v28 = vpop.xlane.xlu1 %867  ;;  %v7702_v29 = vpop.xlane.xlu0 %864 }
 0x1c3   : > { %12232 = vst [vmem:[#allocation97_spill] sm:$0xff] %v7700_v28  ;;  %12233 = vst [vmem:[#allocation98_spill] sm:$0xff] %v7702_v29  ;;  %v395_v29 = vld [vmem:[%s6976_s18 + $0x6e8] sm:$0xff]  ;;  %v394_v28 = vld [vmem:[%s6976_s18 + $0x6e0] sm:$0xff] }
 0x1c4   : > { %v1091_v6 = vsel %vm430_vm0, %v394_v28, 0.0  ;;  %v1201_v28 = vmul.f32 0.03125, %v7134_v25 }
 0x1c5   : > { %1083 = vadd.xlane.f32.xlu1 %v1082_v46  ;;  %1080 = vadd.xlane.f32.xlu0 %v1079_v47  ;;  %v1094_v47 = vsel %vm430_vm0, %v395_v29, 0.0 }
 0x1c6   : > { %v7708_v62 = vpop.xlane.xlu1 %873  ;;  %v7710_v63 = vpop.xlane.xlu0 %870 }
 0x1c7   : > { %12234 = vst [vmem:[#allocation99_spill] sm:$0xff] %v7708_v62  ;;  %12235 = vst [vmem:[#allocation100_spill] sm:$0xff] %v7710_v63  ;;  %v397_v63 = vld [vmem:[%s6976_s18 + $0x6f8] sm:$0xff]  ;;  %v396_v62 = vld [vmem:[%s6976_s18 + $0x6f0] sm:$0xff] }
 0x1c8   : > { %v1097_v29 = vsel %vm430_vm0, %v396_v62, 0.0  ;;  %v1103_v62 = vsel %vm430_vm0, %v398_v10, 0.0  ;;  %v1209_v10 = vmul.f32 0.03125, %v7156_v42 }
 0x1c9   : > { %1089 = vadd.xlane.f32.xlu1 %v1088_v20  ;;  %1086 = vadd.xlane.f32.xlu0 %v1085_v21  ;;  %v6668_v20 = vld [vmem:[%s6976_s18] sm:$0xff] }
 0x1ca   : > { %v7717_v45 = vpop.xlane.xlu1 %879  ;;  %v7719_v46 = vpop.xlane.xlu0 %876  ;;  %v7727_v21 = vsub.f32 %v6668_v20, %v1200_v44  ;;  %v1203_v44 = vmul.f32 0.03125, %v7132_v24  ;;  %v401_v24 = vld [vmem:[%s6976_s18 + $0x718] sm:$0xff] }
 0x1cb   : > { %12236 = vst [vmem:[#allocation101_spill] sm:$0xff] %v7717_v45  ;;  %12237 = vst [vmem:[#allocation102_spill] sm:$0xff] %v7719_v46  ;;  %v1100_v46 = vsel %vm430_vm0, %v397_v63, 0.0  ;;  %v1106_v63 = vsel %vm430_vm0, %v399_v11, 0.0  ;;  %v1206_v11 = vmul.f32 0.03125, %v7150_v37  ;;  %v1112_v42 = vsel %vm430_vm0, %v401_v24, 0.0 }
 0x1cc   : > { %12238 = vst [vmem:[#allocation103_spill] sm:$0xff] %v7727_v21  ;;  %v1712_v25 = vmul.f32 %v7727_v21, %v7727_v21  ;;  %v1211_v21 = vmul.f32 0.03125, %v7164_v48 }
 0x1cd   : > { %1095 = vadd.xlane.f32.xlu1 %v1094_v47  ;;  %1092 = vadd.xlane.f32.xlu0 %v1091_v6  ;;  %v7739_v47 = vsub.f32 %v6669_v18, %v1202_v7  ;;  %v1204_v7 = vmul.f32 0.03125, %v7142_v31  ;;  %v1207_v18 = vmul.f32 0.03125, %v7148_v36  ;;  %v6671_v31 = vld [vmem:[%s6976_s18 + $0x18] sm:$0xff] }
 0x1ce   : > { %v7729_v19 = vpop.xlane.xlu1 %885  ;;  %v7731_v45 = vpop.xlane.xlu0 %882  ;;  %v7774_v48 = vsel %vm430_vm0, %v1712_v25, 0.0  ;;  %v6675_v25 = vld [vmem:[%s6976_s18 + $0x30] sm:$0xff] }
 0x1cf   : > { %12239 = vst [vmem:[#allocation104_spill] sm:$0xff] %v7729_v19  ;;  %12240 = vst [vmem:[#allocation105_spill] sm:$0xff] %v7731_v45  ;;  %v6670_v45 = vld [vmem:[%s6976_s18 + $0x8] sm:$0xff] }
 0x1d0   : > { %12241 = vst [vmem:[#allocation106_spill] sm:$0xff] %v7739_v47  ;;  %v7751_v19 = vsub.f32 %v6670_v45, %v1201_v28  ;;  %v7765_v45 = vsub.f32 %v6671_v31, %v1203_v44  ;;  %12248 = vst [vmem:[#allocation113_spill] sm:$0xff] %v7774_v48  ;;  %v6672_v28 = vld [vmem:[%s6976_s18 + $0x28] sm:$0xff]  ;;  %v1210_v31 = vmul.f32 0.03125, %v7166_v49  ;;  %v6677_v49 = vld [vmem:[%s6976_s18 + $0x40] sm:$0xff] }
 0x1d1   : > { %1101 = vadd.xlane.f32.xlu1 %v1100_v46  ;;  %1098 = vadd.xlane.f32.xlu0 %v1097_v29  ;;  %v1205_v46 = vmul.f32 0.03125, %v7140_v30  ;;  %v400_v29 = vld [vmem:[%s6976_s18 + $0x710] sm:$0xff]  ;;  %v1714_v30 = vmul.f32 %v7739_v47, %v7739_v47  ;;  %v403_v47 = vld [vmem:[%s6976_s18 + $0x728] sm:$0xff] }
 0x1d2   : > { %v7742_v6 = vpop.xlane.xlu1 %891  ;;  %v7744_v20 = vpop.xlane.xlu0 %888  ;;  %12244 = vst [vmem:[#allocation109_spill] sm:$0xff] %v7751_v19  ;;  %12245 = vst [vmem:[#allocation110_spill] sm:$0xff] %v7765_v45  ;;  %v1713_v24 = vmul.f32 %v7751_v19, %v7751_v19  ;;  %v6678_v19 = vld [vmem:[%s6976_s18 + $0x58] sm:$0xff] }
 0x1d3   : > { %12242 = vst [vmem:[#allocation107_spill] sm:$0xff] %v7742_v6  ;;  %12243 = vst [vmem:[#allocation108_spill] sm:$0xff] %v7744_v20  ;;  %v1208_v20 = vmul.f32 0.03125, %v7158_v43  ;;  %v1109_v43 = vsel %vm430_vm0, %v400_v29, 0.0  ;;  %v6674_v29 = vld [vmem:[%s6976_s18 + $0x38] sm:$0xff]  ;;  %v7791_v6 = vsub.f32 %v6675_v25, %v1206_v11  ;;  %v7802_v57 = vsub.f32 %v6678_v19, %v1211_v21  ;;  %v6679_v19 = vld [vmem:[%s6976_s18 + $0x50] sm:$0xff] }
 0x1d4   : > { %v1715_v21 = vmul.f32 %v7765_v45, %v7765_v45  ;;  %v6680_v25 = vld [vmem:[%s6976_s18 + $0x68] sm:$0xff] }
 0x1d5   : > { %1107 = vadd.xlane.f32.xlu1 %v1106_v63  ;;  %1104 = vadd.xlane.f32.xlu0 %v1103_v62  ;;  %v7777_v63 = vsub.f32 %v6672_v28, %v1205_v46  ;;  %v6673_v62 = vld [vmem:[%s6976_s18 + $0x20] sm:$0xff]  ;;  %12252 = vst [vmem:[#allocation117_spill] sm:$0xff] %v7791_v6  ;;  %v1213_v46 = vmul.f32 0.03125, %v7172_v54  ;;  %v1212_v28 = vmul.f32 0.03125, %v7174_v55  ;;  %v7799_v48 = vsub.f32 %v6677_v49, %v1208_v20 }
 0x1d6   : > { %v7767_v36 = vpop.xlane.xlu1 %897  ;;  %v7769_v37 = vpop.xlane.xlu0 %894  ;;  %v7780_v44 = vsub.f32 %v6673_v62, %v1204_v7  ;;  %v6676_v7 = vld [vmem:[%s6976_s18 + $0x48] sm:$0xff]  ;;  %12255 = vst [vmem:[#allocation120_spill] sm:$0xff] %v7802_v57  ;;  %v1215_v54 = vmul.f32 0.03125, %v7180_v60 }
 0x1d7   : > { %12246 = vst [vmem:[#allocation111_spill] sm:$0xff] %v7767_v36  ;;  %12247 = vst [vmem:[#allocation112_spill] sm:$0xff] %v7769_v37  ;;  %v402_v37 = vld [vmem:[%s6976_s18 + $0x720] sm:$0xff]  ;;  %v7788_v36 = vsub.f32 %v6674_v29, %v1207_v18  ;;  %v7796_v62 = vsub.f32 %v6676_v7, %v1209_v10  ;;  %v7805_v18 = vsel %vm430_vm0, %v1714_v30, 0.0  ;;  %v1118_v10 = vsel %vm430_vm0, %v403_v47, 0.0  ;;  %v404_v30 = vld [vmem:[%s6976_s18 + $0x730] sm:$0xff] }
 0x1d8   : > { %12249 = vst [vmem:[#allocation114_spill] sm:$0xff] %v7777_v63  ;;  %12250 = vst [vmem:[#allocation115_spill] sm:$0xff] %v7780_v44  ;;  %v1115_v20 = vsel %vm430_vm0, %v402_v37, 0.0  ;;  %v7822_v29 = vsel %vm430_vm0, %v1713_v24, 0.0  ;;  %v1717_v60 = vmul.f32 %v7777_v63, %v7777_v63  ;;  %v1716_v47 = vmul.f32 %v7780_v44, %v7780_v44  ;;  %v6681_v7 = vld [vmem:[%s6976_s18 + $0x60] sm:$0xff] }
 0x1d9   : > { %12251 = vst [vmem:[#allocation116_spill] sm:$0xff] %v7788_v36  ;;  %12253 = vst [vmem:[#allocation118_spill] sm:$0xff] %v7796_v62  ;;  %1113 = vadd.xlane.f32.xlu1 %v1112_v42  ;;  %1110 = vadd.xlane.f32.xlu0 %v1109_v43  ;;  %v7817_v42 = vsub.f32 %v6679_v19, %v1210_v31  ;;  %v405_v43 = vld [vmem:[%s6976_s18 + $0x738] sm:$0xff]  ;;  %v7829_v37 = vsub.f32 %v6680_v25, %v1213_v46  ;;  %v1214_v19 = vmul.f32 0.03125, %v7182_v61  ;;  %v406_v63 = vld [vmem:[%s6976_s18 + $0x740] sm:$0xff] }
 0x1da   : > { %12254 = vst [vmem:[#allocation119_spill] sm:$0xff] %v7799_v48  ;;  %v7808_v55 = vpop.xlane.xlu1 %903  ;;  %v7810_v11 = vpop.xlane.xlu0 %900  ;;  %v7832_v49 = vsub.f32 %v6681_v7, %v1212_v28  ;;  %v1719_v31 = vmul.f32 %v7788_v36, %v7788_v36  ;;  %v1718_v24 = vmul.f32 %v7791_v6, %v7791_v6  ;;  %v1721_v44 = vmul.f32 %v7796_v62, %v7796_v62  ;;  %v6682_v25 = vld [vmem:[%s6976_s18 + $0x78] sm:$0xff]  ;;  %v407_v62 = vld [vmem:[%s6976_s18 + $0x748] sm:$0xff] }
 0x1db   : > { %12256 = vst [vmem:[#allocation121_spill] sm:$0xff] %v7808_v55  ;;  %12257 = vst [vmem:[#allocation122_spill] sm:$0xff] %v7810_v11  ;;  %v1720_v46 = vmul.f32 %v7799_v48, %v7799_v48  ;;  %v1723_v28 = vmul.f32 %v7802_v57, %v7802_v57  ;;  %v7846_v7 = vsub.f32 %v6682_v25, %v1215_v54  ;;  %v1124_v61 = vsel %vm430_vm0, %v405_v43, 0.0 }
 0x1dc   : > { %12258 = vst [vmem:[#allocation123_spill] sm:$0xff] %v7817_v42  ;;  %12259 = vst [vmem:[#allocation124_spill] sm:$0xff] %v7829_v37  ;;  %v1217_v48 = vmul.f32 0.03125, %v7188_v2  ;;  %v7861_v57 = vsel %vm430_vm0, %v1717_v60, 0.0  ;;  %v7864_v54 = vsel %vm430_vm0, %v1716_v47, 0.0  ;;  %v1722_v25 = vmul.f32 %v7817_v42, %v7817_v42  ;;  %v6683_v60 = vld [vmem:[%s6976_s18 + $0x70] sm:$0xff] }
 0x1dd   : > { %12260 = vst [vmem:[#allocation125_spill] sm:$0xff] %v7832_v49  ;;  %1119 = vadd.xlane.f32.xlu1 %v1118_v10  ;;  %1116 = vadd.xlane.f32.xlu0 %v1115_v20  ;;  %12261 = vst [vmem:[#allocation126_spill] sm:$0xff] %v7846_v7  ;;  %v1121_v10 = vsel %vm430_vm0, %v404_v30, 0.0  ;;  %v7855_v20 = vsel %vm430_vm0, %v1715_v21, 0.0  ;;  %v7869_v43 = vsel %vm430_vm0, %v1719_v31, 0.0  ;;  %v7872_v30 = vsel %vm430_vm0, %v1718_v24, 0.0 }
 0x1de   : > { %v7848_v36 = vpop.xlane.xlu1 %909  ;;  %v7850_v6 = vpop.xlane.xlu0 %906  ;;  %v1725_v2 = vmul.f32 %v7829_v37, %v7829_v37  ;;  %v1724_v21 = vmul.f32 %v7832_v49, %v7832_v49  ;;  %v7879_v45 = vsub.f32 %v6683_v60, %v1214_v19  ;;  %v7882_v47 = vsel %vm430_vm0, %v1721_v44, 0.0 }
 0x1df   : > { %12262 = vst [vmem:[#allocation127_spill] sm:$0xff] %v7848_v36  ;;  %12263 = vst [vmem:[#allocation128_spill] sm:$0xff] %v7850_v6  ;;  %v7885_v31 = vsel %vm430_vm0, %v1720_v46, 0.0  ;;  %v7888_v24 = vsel %vm430_vm0, %v1723_v28, 0.0  ;;  %v1216_v37 = vmul.f32 0.03125, %v7190_v3  ;;  %v1130_v19 = vsel %vm430_vm0, %v407_v62, 0.0 }
 0x1e0   : > { %12264 = vst [vmem:[#allocation129_spill] sm:$0xff] %v7879_v45  ;;  %v1727_v44 = vmul.f32 %v7846_v7, %v7846_v7  ;;  %v1219_v46 = vmul.f32 0.03125, %v7196_v8  ;;  %v1218_v28 = vmul.f32 0.03125, %v7198_v9  ;;  %v409_v3 = vld [vmem:[%s6976_s18 + $0x758] sm:$0xff]  ;;  %v408_v6 = vld [vmem:[%s6976_s18 + $0x750] sm:$0xff]  ;;  %v1221_v62 = vmul.f32 0.03125, %v7204_v14 }
 0x1e1   : > { %1125 = vadd.xlane.f32.xlu1 %v1124_v61  ;;  %1122 = vadd.xlane.f32.xlu0 %v1121_v10  ;;  %v1127_v61 = vsel %vm430_vm0, %v406_v63, 0.0  ;;  %v6684_v10 = vld [vmem:[%s6976_s18 + $0x88] sm:$0xff]  ;;  %v1220_v63 = vmul.f32 0.03125, %v7206_v15  ;;  %v7912_v7 = vsel %vm430_vm0, %v1725_v2, 0.0  ;;  %v1223_v8 = vmul.f32 0.03125, %v7212_v22  ;;  %v6685_v15 = vld [vmem:[%s6976_s18 + $0x80] sm:$0xff] }
 0x1e2   : > { %v7891_v42 = vpop.xlane.xlu1 %915  ;;  %v7893_v49 = vpop.xlane.xlu0 %912  ;;  %v7900_v60 = vsub.f32 %v6684_v10, %v1217_v48  ;;  %v7915_v48 = vsel %vm430_vm0, %v1724_v21, 0.0  ;;  %v1222_v9 = vmul.f32 0.03125, %v7214_v23  ;;  %v1225_v10 = vmul.f32 0.03125, %v7220_v32 }
 0x1e3   : > { %12265 = vst [vmem:[#allocation130_spill] sm:$0xff] %v7891_v42  ;;  %12266 = vst [vmem:[#allocation131_spill] sm:$0xff] %v7893_v49  ;;  %v7907_v42 = vsel %vm430_vm0, %v1722_v25, 0.0  ;;  %v1726_v14 = vmul.f32 %v7879_v45, %v7879_v45  ;;  %v7923_v25 = vsub.f32 %v6685_v15, %v1216_v37  ;;  %v1136_v22 = vsel %vm430_vm0, %v409_v3, 0.0  ;;  %v6687_v45 = vld [vmem:[%s6976_s18 + $0x90] sm:$0xff] }
 0x1e4   : > { %12267 = vst [vmem:[#allocation132_spill] sm:$0xff] %v7900_v60  ;;  %v1133_v23 = vsel %vm430_vm0, %v408_v6, 0.0  ;;  %v7932_v32 = vsel %vm430_vm0, %v1727_v44, 0.0  ;;  %v7938_v37 = vsub.f32 %v6687_v45, %v1218_v28  ;;  %v1224_v15 = vmul.f32 0.03125, %v7222_v33  ;;  %v6688_v6 = vld [vmem:[%s6976_s18 + $0xa8] sm:$0xff]  ;;  %v6689_v44 = vld [vmem:[%s6976_s18 + $0xa0] sm:$0xff] }
 0x1e5   : > { %1131 = vadd.xlane.f32.xlu1 %v1130_v19  ;;  %1128 = vadd.xlane.f32.xlu0 %v1127_v61  ;;  %12268 = vst [vmem:[#allocation133_spill] sm:$0xff] %v7923_v25  ;;  %v6686_v19 = vld [vmem:[%s6976_s18 + $0x98] sm:$0xff]  ;;  %v1729_v3 = vmul.f32 %v7900_v60, %v7900_v60  ;;  %v7946_v49 = vsub.f32 %v6688_v6, %v1221_v62  ;;  %v6691_v33 = vld [vmem:[%s6976_s18 + $0xb0] sm:$0xff]  ;;  %v6692_v60 = vld [vmem:[%s6976_s18 + $0xc8] sm:$0xff]  ;;  %v7963_v62 = vsel %vm430_vm0, %v1726_v14, 0.0 }
 0x1e6   : > { %v7925_v2 = vpop.xlane.xlu1 %921  ;;  %v7927_v21 = vpop.xlane.xlu0 %918  ;;  %v7935_v61 = vsub.f32 %v6686_v19, %v1219_v46  ;;  %12272 = vst [vmem:[#allocation137_spill] sm:$0xff] %v7938_v37  ;;  %v7949_v36 = vsub.f32 %v6689_v44, %v1220_v63  ;;  %v1227_v46 = vmul.f32 0.03125, %v7228_v40  ;;  %v1226_v19 = vmul.f32 0.03125, %v7230_v41  ;;  %v6690_v45 = vld [vmem:[%s6976_s18 + $0xb8] sm:$0xff]  ;;  %v412_v14 = vld [vmem:[%s6976_s18 + $0x770] sm:$0xff] }
 0x1e7   : > { %12269 = vst [vmem:[#allocation134_spill] sm:$0xff] %v7925_v2  ;;  %12270 = vst [vmem:[#allocation135_spill] sm:$0xff] %v7927_v21  ;;  %v411_v2 = vld [vmem:[%s6976_s18 + $0x768] sm:$0xff]  ;;  %v410_v21 = vld [vmem:[%s6976_s18 + $0x760] sm:$0xff]  ;;  %v7954_v28 = vsub.f32 %v6690_v45, %v1223_v8  ;;  %v7957_v11 = vsub.f32 %v6691_v33, %v1222_v9  ;;  %v7960_v55 = vsub.f32 %v6692_v60, %v1225_v10  ;;  %v1229_v40 = vmul.f32 0.03125, %v7236_v50 }
 0x1e8   : > { %12271 = vst [vmem:[#allocation136_spill] sm:$0xff] %v7935_v61  ;;  %12273 = vst [vmem:[#allocation138_spill] sm:$0xff] %v7946_v49  ;;  %v1142_v8 = vsel %vm430_vm0, %v411_v2, 0.0  ;;  %v1139_v9 = vsel %vm430_vm0, %v410_v21, 0.0  ;;  %v1728_v60 = vmul.f32 %v7923_v25, %v7923_v25  ;;  %v6693_v10 = vld [vmem:[%s6976_s18 + $0xc0] sm:$0xff]  ;;  %v7980_v6 = vsel %vm430_vm0, %v1729_v3, 0.0 }
 0x1e9   : > { %12274 = vst [vmem:[#allocation139_spill] sm:$0xff] %v7949_v36  ;;  %12275 = vst [vmem:[#allocation140_spill] sm:$0xff] %v7954_v28  ;;  %1137 = vadd.xlane.f32.xlu1 %v1136_v22  ;;  %1134 = vadd.xlane.f32.xlu0 %v1133_v23  ;;  %v7975_v22 = vsub.f32 %v6693_v10, %v1224_v15  ;;  %v413_v23 = vld [vmem:[%s6976_s18 + $0x778] sm:$0xff]  ;;  %v1731_v50 = vmul.f32 %v7935_v61, %v7935_v61  ;;  %v6695_v45 = vld [vmem:[%s6976_s18 + $0xd0] sm:$0xff]  ;;  %v1228_v10 = vmul.f32 0.03125, %v7238_v51 }
 0x1ea   : > { %12276 = vst [vmem:[#allocation141_spill] sm:$0xff] %v7957_v11  ;;  %12277 = vst [vmem:[#allocation142_spill] sm:$0xff] %v7960_v55  ;;  %v7966_v41 = vpop.xlane.xlu1 %927  ;;  %v7968_v63 = vpop.xlane.xlu0 %924  ;;  %v1730_v2 = vmul.f32 %v7938_v37, %v7938_v37  ;;  %v6694_v44 = vld [vmem:[%s6976_s18 + $0xd8] sm:$0xff]  ;;  %v7990_v33 = vsub.f32 %v6695_v45, %v1226_v19  ;;  %v1733_v15 = vmul.f32 %v7946_v49, %v7946_v49  ;;  %v1148_v51 = vsel %vm430_vm0, %v413_v23, 0.0  ;;  %v414_v61 = vld [vmem:[%s6976_s18 + $0x780] sm:$0xff] }
 0x1eb   : > { %12278 = vst [vmem:[#allocation143_spill] sm:$0xff] %v7966_v41  ;;  %12279 = vst [vmem:[#allocation144_spill] sm:$0xff] %v7968_v63  ;;  %v7987_v21 = vsub.f32 %v6694_v44, %v1227_v46  ;;  %v1732_v3 = vmul.f32 %v7949_v36, %v7949_v36  ;;  %v1735_v37 = vmul.f32 %v7954_v28, %v7954_v28  ;;  %v6696_v44 = vld [vmem:[%s6976_s18 + $0xe8] sm:$0xff] }
 0x1ec   : > { %12280 = vst [vmem:[#allocation145_spill] sm:$0xff] %v7975_v22  ;;  %12282 = vst [vmem:[#allocation147_spill] sm:$0xff] %v7990_v33  ;;  %v1734_v46 = vmul.f32 %v7957_v11, %v7957_v11  ;;  %v1737_v19 = vmul.f32 %v7960_v55, %v7960_v55  ;;  %v8004_v45 = vsub.f32 %v6696_v44, %v1229_v40  ;;  %v1231_v11 = vmul.f32 0.03125, %v7244_v58  ;;  %v415_v28 = vld [vmem:[%s6976_s18 + $0x788] sm:$0xff] }
 0x1ed   : > { %12281 = vst [vmem:[#allocation146_spill] sm:$0xff] %v7987_v21  ;;  %1143 = vadd.xlane.f32.xlu1 %v1142_v8  ;;  %1140 = vadd.xlane.f32.xlu0 %v1139_v9  ;;  %v1145_v8 = vsel %vm430_vm0, %v412_v14, 0.0  ;;  %v8013_v9 = vsel %vm430_vm0, %v1728_v60, 0.0  ;;  %v8019_v55 = vsel %vm430_vm0, %v1731_v50, 0.0  ;;  %v8022_v40 = vsel %vm430_vm0, %v1730_v2, 0.0  ;;  %v6697_v50 = vld [vmem:[%s6976_s18 + $0xe0] sm:$0xff] }
 0x1ee   : > { %12283 = vst [vmem:[#allocation148_spill] sm:$0xff] %v8004_v45  ;;  %v8006_v49 = vpop.xlane.xlu1 %933  ;;  %v8008_v36 = vpop.xlane.xlu0 %930  ;;  %v1736_v44 = vmul.f32 %v7975_v22, %v7975_v22  ;;  %v8027_v23 = vsel %vm430_vm0, %v1733_v15, 0.0  ;;  %v8030_v14 = vsel %vm430_vm0, %v1732_v3, 0.0  ;;  %v1739_v58 = vmul.f32 %v7987_v21, %v7987_v21 }
 0x1ef   : > { %12284 = vst [vmem:[#allocation149_spill] sm:$0xff] %v8006_v49  ;;  %12285 = vst [vmem:[#allocation150_spill] sm:$0xff] %v8008_v36  ;;  %v1738_v60 = vmul.f32 %v7990_v33, %v7990_v33  ;;  %v8037_v25 = vsub.f32 %v6697_v50, %v1228_v10  ;;  %v8040_v2 = vsel %vm430_vm0, %v1735_v37, 0.0  ;;  %v8043_v15 = vsel %vm430_vm0, %v1734_v46, 0.0  ;;  %v416_v36 = vld [vmem:[%s6976_s18 + $0x790] sm:$0xff] }
 0x1f0   : > { %v8046_v3 = vsel %vm430_vm0, %v1737_v19, 0.0  ;;  %v1230_v21 = vmul.f32 0.03125, %v7246_v59  ;;  %v1154_v10 = vsel %vm430_vm0, %v415_v28, 0.0  ;;  %v1741_v37 = vmul.f32 %v8004_v45, %v8004_v45  ;;  %v417_v59 = vld [vmem:[%s6976_s18 + $0x798] sm:$0xff] }
 0x1f1   : > { %12286 = vst [vmem:[#allocation151_spill] sm:$0xff] %v8037_v25  ;;  %1149 = vadd.xlane.f32.xlu1 %v1148_v51  ;;  %1146 = vadd.xlane.f32.xlu0 %v1145_v8  ;;  %v1151_v51 = vsel %vm430_vm0, %v414_v61, 0.0  ;;  %v6698_v8 = vld [vmem:[%s6976_s18 + $0xf8] sm:$0xff]  ;;  %v1233_v46 = vmul.f32 0.03125, %v7252_v4  ;;  %v1232_v19 = vmul.f32 0.03125, %v7254_v5  ;;  %v1235_v28 = vmul.f32 0.03125, %v7260_v12 }
 0x1f2   : > { %v8049_v22 = vpop.xlane.xlu1 %939  ;;  %v8051_v33 = vpop.xlane.xlu0 %936  ;;  %v8058_v50 = vsub.f32 %v6698_v8, %v1231_v11  ;;  %v1234_v61 = vmul.f32 0.03125, %v7262_v13  ;;  %v8070_v45 = vsel %vm430_vm0, %v1739_v58, 0.0  ;;  %v8073_v11 = vsel %vm430_vm0, %v1738_v60, 0.0  ;;  %v6699_v13 = vld [vmem:[%s6976_s18 + $0xf0] sm:$0xff] }
 0x1f3   : > { %12287 = vst [vmem:[#allocation152_spill] sm:$0xff] %v8049_v22  ;;  %12288 = vst [vmem:[#allocation153_spill] sm:$0xff] %v8051_v33  ;;  %v8065_v22 = vsel %vm430_vm0, %v1736_v44, 0.0  ;;  %v1237_v4 = vmul.f32 0.03125, %v7268_v26  ;;  %v1236_v5 = vmul.f32 0.03125, %v7270_v27  ;;  %v1239_v8 = vmul.f32 0.03125, %v7276_v38 }
 0x1f4   : > { %12289 = vst [vmem:[#allocation154_spill] sm:$0xff] %v8058_v50  ;;  %v1740_v12 = vmul.f32 %v8037_v25, %v8037_v25  ;;  %v8081_v44 = vsub.f32 %v6699_v13, %v1230_v21  ;;  %v1160_v26 = vsel %vm430_vm0, %v417_v59, 0.0  ;;  %v1157_v27 = vsel %vm430_vm0, %v416_v36, 0.0  ;;  %v6701_v25 = vld [vmem:[%s6976_s18 + $0x100] sm:$0xff]  ;;  %v6702_v36 = vld [vmem:[%s6976_s18 + $0x118] sm:$0xff] }
 0x1f5   : > { %1155 = vadd.xlane.f32.xlu1 %v1154_v10  ;;  %1152 = vadd.xlane.f32.xlu0 %v1151_v51  ;;  %v8090_v38 = vsel %vm430_vm0, %v1741_v37, 0.0  ;;  %v6700_v10 = vld [vmem:[%s6976_s18 + $0x108] sm:$0xff]  ;;  %v8096_v21 = vsub.f32 %v6701_v25, %v1232_v19  ;;  %v1238_v13 = vmul.f32 0.03125, %v7278_v39  ;;  %v1743_v59 = vmul.f32 %v8058_v50, %v8058_v50  ;;  %v6703_v37 = vld [vmem:[%s6976_s18 + $0x110] sm:$0xff]  ;;  %v6705_v39 = vld [vmem:[%s6976_s18 + $0x120] sm:$0xff] }
 0x1f6   : > { %12290 = vst [vmem:[#allocation155_spill] sm:$0xff] %v8081_v44  ;;  %v8083_v58 = vpop.xlane.xlu1 %945  ;;  %v8085_v60 = vpop.xlane.xlu0 %942  ;;  %v8093_v51 = vsub.f32 %v6700_v10, %v1233_v46  ;;  %v8104_v33 = vsub.f32 %v6702_v36, %v1235_v28  ;;  %v8107_v49 = vsub.f32 %v6703_v37, %v1234_v61  ;;  %v1241_v46 = vmul.f32 0.03125, %v7284_v52  ;;  %v6704_v25 = vld [vmem:[%s6976_s18 + $0x128] sm:$0xff]  ;;  %v6706_v50 = vld [vmem:[%s6976_s18 + $0x138] sm:$0xff] }
 0x1f7   : > { %12291 = vst [vmem:[#allocation156_spill] sm:$0xff] %v8083_v58  ;;  %12292 = vst [vmem:[#allocation157_spill] sm:$0xff] %v8085_v60  ;;  %v419_v58 = vld [vmem:[%s6976_s18 + $0x7a8] sm:$0xff]  ;;  %v418_v60 = vld [vmem:[%s6976_s18 + $0x7a0] sm:$0xff]  ;;  %v1240_v10 = vmul.f32 0.03125, %v7286_v53  ;;  %v8112_v19 = vsub.f32 %v6704_v25, %v1237_v4  ;;  %v8115_v63 = vsub.f32 %v6705_v39, %v1236_v5  ;;  %v8118_v41 = vsub.f32 %v6706_v50, %v1239_v8 }
 0x1f8   : > { %12293 = vst [vmem:[#allocation158_spill] sm:$0xff] %v8093_v51  ;;  %12294 = vst [vmem:[#allocation159_spill] sm:$0xff] %v8096_v21  ;;  %v8121_v28 = vsel %vm430_vm0, %v1740_v12, 0.0  ;;  %v1243_v52 = vmul.f32 0.03125, %v7292_v0  ;;  %v1166_v4 = vsel %vm430_vm0, %v419_v58, 0.0  ;;  %v1163_v5 = vsel %vm430_vm0, %v418_v60, 0.0 }
 0x1f9   : > { %12295 = vst [vmem:[#allocation160_spill] sm:$0xff] %v8104_v33  ;;  %12296 = vst [vmem:[#allocation161_spill] sm:$0xff] %v8107_v49  ;;  %1161 = vadd.xlane.f32.xlu1 %v1160_v26  ;;  %1158 = vadd.xlane.f32.xlu0 %v1157_v27  ;;  %v1742_v50 = vmul.f32 %v8081_v44, %v8081_v44  ;;  %v6707_v8 = vld [vmem:[%s6976_s18 + $0x130] sm:$0xff]  ;;  %v421_v27 = vld [vmem:[%s6976_s18 + $0x7b8] sm:$0xff]  ;;  %v8138_v36 = vsel %vm430_vm0, %v1743_v59, 0.0  ;;  %v1745_v0 = vmul.f32 %v8093_v51, %v8093_v51 }
 0x1fa   : > { %12297 = vst [vmem:[#allocation162_spill] sm:$0xff] %v8112_v19  ;;  %12298 = vst [vmem:[#allocation163_spill] sm:$0xff] %v8115_v63  ;;  %v8124_v53 = vpop.xlane.xlu1 %951  ;;  %v8126_v61 = vpop.xlane.xlu0 %948  ;;  %v8133_v26 = vsub.f32 %v6707_v8, %v1238_v13  ;;  %v420_v12 = vld [vmem:[%s6976_s18 + $0x7b0] sm:$0xff]  ;;  %v1744_v58 = vmul.f32 %v8096_v21, %v8096_v21  ;;  %v6708_v37 = vld [vmem:[%s6976_s18 + $0x148] sm:$0xff]  ;;  %v1747_v13 = vmul.f32 %v8104_v33, %v8104_v33  ;;  %v1242_v8 = vmul.f32 0.03125, %v7294_v1 }
 0x1fb   : > { %12299 = vst [vmem:[#allocation164_spill] sm:$0xff] %v8118_v41  ;;  %12300 = vst [vmem:[#allocation165_spill] sm:$0xff] %v8124_v53  ;;  %v8145_v60 = vsub.f32 %v6708_v37, %v1241_v46  ;;  %v6709_v25 = vld [vmem:[%s6976_s18 + $0x140] sm:$0xff]  ;;  %v1746_v59 = vmul.f32 %v8107_v49, %v8107_v49  ;;  %v1749_v21 = vmul.f32 %v8112_v19, %v8112_v19  ;;  %v6710_v37 = vld [vmem:[%s6976_s18 + $0x158] sm:$0xff]  ;;  %v1172_v1 = vsel %vm430_vm0, %v421_v27, 0.0 }
 0x1fc   : > { %12301 = vst [vmem:[#allocation166_spill] sm:$0xff] %v8126_v61  ;;  %12302 = vst [vmem:[#allocation167_spill] sm:$0xff] %v8133_v26  ;;  %v8148_v39 = vsub.f32 %v6709_v25, %v1240_v10  ;;  %v1748_v46 = vmul.f32 %v8115_v63, %v8115_v63  ;;  %v1751_v10 = vmul.f32 %v8118_v41, %v8118_v41  ;;  %v1245_v63 = vmul.f32 0.03125, %v7300_v16  ;;  %v423_v19 = vld [vmem:[%s6976_s18 + $0x7c8] sm:$0xff]  ;;  %v422_v51 = vld [vmem:[%s6976_s18 + $0x7c0] sm:$0xff] }
 0x1fd   : > { %12303 = vst [vmem:[#allocation168_spill] sm:$0xff] %v8145_v60  ;;  %1167 = vadd.xlane.f32.xlu1 %v1166_v4  ;;  %1164 = vadd.xlane.f32.xlu0 %v1163_v5  ;;  %v8162_v25 = vsub.f32 %v6710_v37, %v1243_v52  ;;  %v1169_v4 = vsel %vm430_vm0, %v420_v12, 0.0  ;;  %v8171_v5 = vsel %vm430_vm0, %v1742_v50, 0.0  ;;  %v8177_v41 = vsel %vm430_vm0, %v1745_v0, 0.0  ;;  %v6711_v0 = vld [vmem:[%s6976_s18 + $0x150] sm:$0xff]  ;;  %v12321_v61 = vld [vmem:[#allocation5_spill] sm:$0xff] }
 0x1fe   : > { %12304 = vst [vmem:[#allocation169_spill] sm:$0xff] %v8148_v39  ;;  %v8164_v33 = vpop.xlane.xlu1 %957  ;;  %v8166_v49 = vpop.xlane.xlu0 %954  ;;  %v8180_v52 = vsel %vm430_vm0, %v1744_v58, 0.0  ;;  %v1750_v37 = vmul.f32 %v8133_v26, %v8133_v26  ;;  %v8185_v27 = vsel %vm430_vm0, %v1747_v13, 0.0  ;;  %v8188_v12 = vsel %vm430_vm0, %v1746_v59, 0.0 }
 0x1ff   : > { %12305 = vst [vmem:[#allocation170_spill] sm:$0xff] %v8162_v25  ;;  %12306 = vst [vmem:[#allocation171_spill] sm:$0xff] %v8164_v33  ;;  %v1753_v16 = vmul.f32 %v8145_v60, %v8145_v60  ;;  %v1752_v50 = vmul.f32 %v8148_v39, %v8148_v39  ;;  %v8195_v44 = vsub.f32 %v6711_v0, %v1242_v8  ;;  %v8198_v58 = vsel %vm430_vm0, %v1749_v21, 0.0 }
 0x200   : > { %12307 = vst [vmem:[#allocation172_spill] sm:$0xff] %v8166_v49  ;;  %12309 = vst [vmem:[#allocation174_spill] sm:$0xff] %v8198_v58  ;;  %v8201_v13 = vsel %vm430_vm0, %v1748_v46, 0.0  ;;  %v8204_v59 = vsel %vm430_vm0, %v1751_v10, 0.0  ;;  %v1244_v60 = vmul.f32 0.03125, %v7302_v17  ;;  %v1178_v8 = vsel %vm430_vm0, %v423_v19, 0.0 }
 0x201   : > { %12308 = vst [vmem:[#allocation173_spill] sm:$0xff] %v8195_v44  ;;  %1173 = vadd.xlane.f32.xlu1 %v1172_v1  ;;  %1170 = vadd.xlane.f32.xlu0 %v1169_v4  ;;  %12310 = vst [vmem:[#allocation175_spill] sm:$0xff] %v8201_v13  ;;  %v1175_v1 = vsel %vm430_vm0, %v422_v51, 0.0  ;;  %v1755_v21 = vmul.f32 %v8162_v25, %v8162_v25  ;;  %v6712_v4 = vld [vmem:[%s6976_s18 + $0x168] sm:$0xff]  ;;  %v1247_v46 = vmul.f32 0.03125, %v7308_v34  ;;  %v1246_v10 = vmul.f32 0.03125, %v7310_v35 }
 0x202   : > { %12311 = vst [vmem:[#allocation176_spill] sm:$0xff] %v8204_v59  ;;  %v8207_v26 = vpop.xlane.xlu1 %963  ;;  %v8209_v39 = vpop.xlane.xlu0 %960  ;;  %v8216_v0 = vsub.f32 %v6712_v4, %v1245_v63  ;;  %v425_v17 = vld [vmem:[%s6976_s18 + $0x7d8] sm:$0xff]  ;;  %v424_v49 = vld [vmem:[%s6976_s18 + $0x7d0] sm:$0xff]  ;;  %v1249_v19 = vmul.f32 0.03125, %v7316_v56  ;;  %v8228_v25 = vsel %vm430_vm0, %v1753_v16, 0.0  ;;  %v8231_v63 = vsel %vm430_vm0, %v1752_v50, 0.0 }
 0x203   : > { %12312 = vst [vmem:[#allocation177_spill] sm:$0xff] %v8207_v26  ;;  %12313 = vst [vmem:[#allocation178_spill] sm:$0xff] %v8209_v39  ;;  %v8223_v26 = vsel %vm430_vm0, %v1750_v37, 0.0  ;;  %v12316_v39 = vld [vmem:[#allocation2_spill] sm:$0xff]  ;;  %v12319_v4 = vld [vmem:[#allocation3_spill] sm:$0xff]  ;;  %v1253_v53 = vmul.f32 0.03125, %v12321_v61  ;;  %v1754_v56 = vmul.f32 %v8195_v44, %v8195_v44 }
 0x204   : > { %12314 = vst [vmem:[#allocation179_spill] sm:$0xff] %v8216_v0  ;;  %12315 = vst [vmem:[#allocation180_spill] sm:$0xff] %v8223_v26  ;;  %v1248_v51 = vmul.f32 0.03125, %v12316_v39  ;;  %v1251_v34 = vmul.f32 0.03125, %v12319_v4  ;;  %v12320_v35 = vld [vmem:[#allocation4_spill] sm:$0xff]  ;;  %v6713_v39 = vld [vmem:[%s6976_s18 + $0x160] sm:$0xff] }
 0x205   : > { %12317 = vst [vmem:[#allocation2_spill] sm:$0xff] %v8228_v25  ;;  %12318 = vst [vmem:[#allocation181_spill] sm:$0xff] %v8231_v63  ;;  %v1250_v33 = vmul.f32 0.03125, %v12320_v35  ;;  %1179 = vadd.xlane.f32.xlu1 %v1178_v8  ;;  %1176 = vadd.xlane.f32.xlu0 %v1175_v1  ;;  %v8239_v37 = vsub.f32 %v6713_v39, %v1244_v60  ;;  %v1184_v4 = vsel %vm430_vm0, %v425_v17, 0.0  ;;  %v1181_v61 = vsel %vm430_vm0, %v424_v49, 0.0  ;;  %v6714_v1 = vld [vmem:[%s6976_s18 + $0x178] sm:$0xff] }
 0x206   : > { %v8241_v16 = vpop.xlane.xlu1 %969  ;;  %v8243_v50 = vpop.xlane.xlu0 %966  ;;  %v8248_v8 = vsel %vm430_vm0, %v1755_v21, 0.0  ;;  %v8251_v35 = vsub.f32 %v6714_v1, %v1247_v46  ;;  %v6715_v44 = vld [vmem:[%s6976_s18 + $0x170] sm:$0xff]  ;;  %v12328_v39 = vld [vmem:[#allocation6_spill] sm:$0xff]  ;;  %v427_v63 = vld [vmem:[%s6976_s18 + $0x7e8] sm:$0xff]  ;;  %v1757_v17 = vmul.f32 %v8216_v0, %v8216_v0 }
 0x207   : > { %12322 = vst [vmem:[#allocation3_spill] sm:$0xff] %v8239_v37  ;;  %12323 = vst [vmem:[#allocation4_spill] sm:$0xff] %v8241_v16  ;;  %v8254_v60 = vsub.f32 %v6715_v44, %v1246_v10  ;;  %v1252_v16 = vmul.f32 0.03125, %v12328_v39  ;;  %v6716_v49 = vld [vmem:[%s6976_s18 + $0x188] sm:$0xff]  ;;  %v6717_v21 = vld [vmem:[%s6976_s18 + $0x180] sm:$0xff] }
 0x208   : > { %12324 = vst [vmem:[#allocation5_spill] sm:$0xff] %v8243_v50  ;;  %12325 = vst [vmem:[#allocation182_spill] sm:$0xff] %v8248_v8  ;;  %v426_v50 = vld [vmem:[%s6976_s18 + $0x7e0] sm:$0xff]  ;;  %v8262_v25 = vsub.f32 %v6716_v49, %v1249_v19  ;;  %v8265_v8 = vsub.f32 %v6717_v21, %v1248_v51  ;;  %v12331_v26 = vld [vmem:[#allocation7_spill] sm:$0xff]  ;;  %v8279_v19 = vsel %vm430_vm0, %v1754_v56, 0.0  ;;  %v1190_v21 = vsel %vm430_vm0, %v427_v63, 0.0 }
 0x209   : > { %12326 = vst [vmem:[#allocation183_spill] sm:$0xff] %v8251_v35  ;;  %12327 = vst [vmem:[#allocation184_spill] sm:$0xff] %v8254_v60  ;;  %v1255_v46 = vmul.f32 0.03125, %v12331_v26  ;;  %v12332_v1 = vld [vmem:[#allocation8_spill] sm:$0xff]  ;;  %v6718_v44 = vld [vmem:[%s6976_s18 + $0x198] sm:$0xff]  ;;  %1185 = vadd.xlane.f32.xlu1 %v1184_v4  ;;  %1182 = vadd.xlane.f32.xlu0 %v1181_v61  ;;  %v1758_v63 = vmul.f32 %v8254_v60, %v8254_v60 }
 0x20a   : > { %12329 = vst [vmem:[#allocation6_spill] sm:$0xff] %v8262_v25  ;;  %12330 = vst [vmem:[#allocation185_spill] sm:$0xff] %v8265_v8  ;;  %v1254_v59 = vmul.f32 0.03125, %v12332_v1  ;;  %v8270_v10 = vsub.f32 %v6718_v44, %v1251_v34  ;;  %v6719_v39 = vld [vmem:[%s6976_s18 + $0x190] sm:$0xff]  ;;  %v6720_v0 = vld [vmem:[%s6976_s18 + $0x1a8] sm:$0xff]  ;;  %v8282_v49 = vpop.xlane.xlu1 %975  ;;  %v8284_v34 = vpop.xlane.xlu0 %972  ;;  %v8296_v1 = vsel %vm430_vm0, %v1757_v17, 0.0  ;;  %v1759_v44 = vmul.f32 %v8251_v35, %v8251_v35 }
 0x20b   : > { %v8273_v13 = vsub.f32 %v6719_v39, %v1250_v33  ;;  %v8276_v58 = vsub.f32 %v6720_v0, %v1253_v53  ;;  %v12336_v26 = vld [vmem:[#allocation9_spill] sm:$0xff]  ;;  %12338 = vst [vmem:[#allocation187_spill] sm:$0xff] %v8284_v34  ;;  %v1187_v33 = vsel %vm430_vm0, %v426_v50, 0.0  ;;  %v1756_v53 = vmul.f32 %v8239_v37, %v8239_v37  ;;  %v6721_v0 = vld [vmem:[%s6976_s18 + $0x1a0] sm:$0xff]  ;;  %v428_v56 = vld [vmem:[%s6976_s18 + $0x7f0] sm:$0xff] }
 0x20c   : > { %12333 = vst [vmem:[#allocation7_spill] sm:$0xff] %v8270_v10  ;;  %v1257_v51 = vmul.f32 0.03125, %v12336_v26  ;;  %12337 = vst [vmem:[#allocation9_spill] sm:$0xff] %v8282_v49  ;;  %v8291_v4 = vsub.f32 %v6721_v0, %v1252_v16  ;;  %v429_v61 = vld [vmem:[%s6976_s18 + $0x7f8] sm:$0xff]  ;;  %v6723_v26 = vld [vmem:[%s6976_s18 + $0x1b0] sm:$0xff]  ;;  %v1761_v16 = vmul.f32 %v8262_v25, %v8262_v25  ;;  %v1760_v0 = vmul.f32 %v8265_v8, %v8265_v8 }
 0x20d   : > { %12334 = vst [vmem:[#allocation8_spill] sm:$0xff] %v8273_v13  ;;  %12335 = vst [vmem:[#allocation186_spill] sm:$0xff] %v8276_v58  ;;  %v6722_v39 = vld [vmem:[%s6976_s18 + $0x1b8] sm:$0xff]  ;;  %v8306_v37 = vsub.f32 %v6723_v26, %v1254_v59  ;;  %v12342_v17 = vld [vmem:[#allocation10_spill] sm:$0xff]  ;;  %1191 = vadd.xlane.f32.xlu1 %v1190_v21  ;;  %1188 = vadd.xlane.f32.xlu0 %v1187_v33  ;;  %v1763_v35 = vmul.f32 %v8270_v10, %v8270_v10  ;;  %v1196_v21 = vsel %vm430_vm0, %v429_v61, 0.0 }
 0x20e   : > { %12339 = vst [vmem:[#allocation188_spill] sm:$0xff] %v8291_v4  ;;  %v8303_v50 = vsub.f32 %v6722_v39, %v1255_v46  ;;  %v1256_v34 = vmul.f32 0.03125, %v12342_v17  ;;  %v1762_v46 = vmul.f32 %v8273_v13, %v8273_v13  ;;  %v1765_v59 = vmul.f32 %v8276_v58, %v8276_v58  ;;  %v6724_v39 = vld [vmem:[%s6976_s18 + $0x1c8] sm:$0xff]  ;;  %v8323_v8 = vpop.xlane.xlu1 %981  ;;  %v8325_v17 = vpop.xlane.xlu0 %978 }
 0x20f   : > { %12341 = vst [vmem:[#allocation190_spill] sm:$0xff] %v8306_v37  ;;  %v8320_v26 = vsub.f32 %v6724_v39, %v1257_v51  ;;  %v12344_v25 = vld [vmem:[#allocation11_spill] sm:$0xff]  ;;  %12346 = vst [vmem:[#allocation191_spill] sm:$0xff] %v8325_v17  ;;  %v1193_v33 = vsel %vm430_vm0, %v428_v56, 0.0  ;;  %v8330_v13 = vsel %vm430_vm0, %v1756_v53, 0.0  ;;  %v8333_v58 = vsel %vm430_vm0, %v1759_v44, 0.0 }
 0x210   : > { %12340 = vst [vmem:[#allocation189_spill] sm:$0xff] %v8303_v50  ;;  %v1259_v60 = vmul.f32 0.03125, %v12344_v25  ;;  %12345 = vst [vmem:[#allocation11_spill] sm:$0xff] %v8323_v8  ;;  %v8336_v51 = vsel %vm430_vm0, %v1758_v63, 0.0  ;;  %v1764_v25 = vmul.f32 %v8291_v4, %v8291_v4  ;;  %v12349_v39 = vld [vmem:[#allocation12_spill] sm:$0xff]  ;;  %v8342_v17 = vsel %vm430_vm0, %v1761_v16, 0.0 }
 0x211   : > { %12343 = vst [vmem:[#allocation10_spill] sm:$0xff] %v8320_v26  ;;  %12347 = vst [vmem:[#allocation192_spill] sm:$0xff] %v8333_v58  ;;  %v1258_v10 = vmul.f32 0.03125, %v12349_v39  ;;  %v1767_v61 = vmul.f32 %v8303_v50, %v8303_v50  ;;  %v1766_v53 = vmul.f32 %v8306_v37, %v8306_v37  ;;  %v6725_v56 = vld [vmem:[%s6976_s18 + $0x1c0] sm:$0xff]  ;;  %1197 = vadd.xlane.f32.xlu1 %v1196_v21  ;;  %1194 = vadd.xlane.f32.xlu0 %v1193_v33  ;;  %v6726_v4 = vld [vmem:[%s6976_s18 + $0x1d8] sm:$0xff] }
 0x212   : > { %12348 = vst [vmem:[#allocation193_spill] sm:$0xff] %v8336_v51  ;;  %12350 = vst [vmem:[#allocation12_spill] sm:$0xff] %v8342_v17  ;;  %v8349_v44 = vsub.f32 %v6725_v56, %v1256_v34  ;;  %v8352_v63 = vsel %vm430_vm0, %v1760_v0, 0.0  ;;  %v8355_v39 = vsel %vm430_vm0, %v1763_v35, 0.0  ;;  %v8358_v16 = vsel %vm430_vm0, %v1762_v46, 0.0  ;;  %v12356_v8 = vld [vmem:[#allocation13_spill] sm:$0xff]  ;;  %v8364_v49 = vpop.xlane.xlu1 %987  ;;  %v8366_v34 = vpop.xlane.xlu0 %984 }
 0x213   : > { %12352 = vst [vmem:[#allocation195_spill] sm:$0xff] %v8352_v63  ;;  %12353 = vst [vmem:[#allocation196_spill] sm:$0xff] %v8355_v39  ;;  %v8361_v50 = vsub.f32 %v6726_v4, %v1259_v60  ;;  %v1261_v37 = vmul.f32 0.03125, %v12356_v8  ;;  %v8369_v21 = vsel %vm430_vm0, %v1765_v59, 0.0  ;;  %v1769_v0 = vmul.f32 %v8320_v26, %v8320_v26  ;;  %v12360_v35 = vld [vmem:[#allocation14_spill] sm:$0xff]  ;;  %v12361_v46 = vld [vmem:[#allocation15_spill] sm:$0xff] }
 0x214   : > { %12351 = vst [vmem:[#allocation194_spill] sm:$0xff] %v8349_v44  ;;  %12354 = vst [vmem:[#allocation197_spill] sm:$0xff] %v8358_v16  ;;  %v1260_v33 = vmul.f32 0.03125, %v12360_v35  ;;  %v1263_v56 = vmul.f32 0.03125, %v12361_v46  ;;  %v12362_v16 = vld [vmem:[#allocation16_spill] sm:$0xff]  ;;  %v8377_v4 = vsel %vm430_vm0, %v1764_v25, 0.0 }
 0x215   : > { %12355 = vst [vmem:[#allocation198_spill] sm:$0xff] %v8361_v50  ;;  %12357 = vst [vmem:[#allocation13_spill] sm:$0xff] %v8364_v49  ;;  %v1262_v60 = vmul.f32 0.03125, %v12362_v16  ;;  %v6727_v8 = vld [vmem:[%s6976_s18 + $0x1d0] sm:$0xff]  ;;  %v8384_v59 = vsel %vm430_vm0, %v1767_v61, 0.0  ;;  %v8387_v26 = vsel %vm430_vm0, %v1766_v53, 0.0  ;;  %1972 = vadd.xlane.f32.xlu1 %v7822_v29  ;;  %v1768_v61 = vmul.f32 %v8349_v44, %v8349_v44 }
 0x216   : > { %12358 = vst [vmem:[#allocation199_spill] sm:$0xff] %v8366_v34  ;;  %12359 = vst [vmem:[#allocation200_spill] sm:$0xff] %v8369_v21  ;;  %v8380_v49 = vsub.f32 %v6727_v8, %v1258_v10  ;;  %v12365_v34 = vld [vmem:[#allocation17_spill] sm:$0xff]  ;;  %v12368_v35 = vld [vmem:[#allocation18_spill] sm:$0xff]  ;;  %v1771_v29 = vmul.f32 %v8361_v50, %v8361_v50 }
 0x217   : > { %12363 = vst [vmem:[#allocation14_spill] sm:$0xff] %v8377_v4  ;;  %v1265_v39 = vmul.f32 0.03125, %v12365_v34  ;;  %12366 = vst [vmem:[#allocation16_spill] sm:$0xff] %v8384_v59  ;;  %v1264_v46 = vmul.f32 0.03125, %v12368_v35  ;;  %v12369_v21 = vld [vmem:[#allocation19_spill] sm:$0xff]  ;;  %v12370_v63 = vld [vmem:[#allocation20_spill] sm:$0xff]  ;;  %v8400_v59 = vpop.xlane.xlu1 %993 }
 0x218   : > { %12364 = vst [vmem:[#allocation15_spill] sm:$0xff] %v8380_v49  ;;  %12367 = vst [vmem:[#allocation17_spill] sm:$0xff] %v8387_v26  ;;  %v1267_v16 = vmul.f32 0.03125, %v12369_v21  ;;  %v1266_v25 = vmul.f32 0.03125, %v12370_v63  ;;  %v12371_v10 = vld [vmem:[#allocation113_spill] sm:$0xff]  ;;  %v6728_v34 = vld [vmem:[%s6976_s18 + $0x1e8] sm:$0xff]  ;;  %v8402_v21 = vpop.xlane.xlu0 %990 }
 0x219   : > { %1969 = vadd.xlane.f32.xlu0 %v12371_v10  ;;  %v8397_v8 = vsub.f32 %v6728_v34, %v1261_v37  ;;  %v12373_v53 = vld [vmem:[#allocation21_spill] sm:$0xff]  ;;  %12374 = vst [vmem:[#allocation19_spill] sm:$0xff] %v8400_v59  ;;  %12375 = vst [vmem:[#allocation20_spill] sm:$0xff] %v8402_v21  ;;  %v8405_v63 = vsel %vm430_vm0, %v1769_v0, 0.0  ;;  %v6729_v35 = vld [vmem:[%s6976_s18 + $0x1e0] sm:$0xff]  ;;  %1978 = vadd.xlane.f32.xlu1 %v7855_v20 }
 0x21a   : > { %v1269_v26 = vmul.f32 0.03125, %v12373_v53  ;;  %12376 = vst [vmem:[#allocation113_spill] sm:$0xff] %v8405_v63  ;;  %v8410_v10 = vsub.f32 %v6729_v35, %v1260_v33  ;;  %v6730_v37 = vld [vmem:[%s6976_s18 + $0x1f8] sm:$0xff]  ;;  %v6731_v53 = vld [vmem:[%s6976_s18 + $0x1f0] sm:$0xff]  ;;  %v12380_v59 = vld [vmem:[#allocation22_spill] sm:$0xff]  ;;  %v1770_v33 = vmul.f32 %v8380_v49, %v8380_v49 }
 0x21b   : > { %12372 = vst [vmem:[#allocation18_spill] sm:$0xff] %v8397_v8  ;;  %v8413_v34 = vsub.f32 %v6730_v37, %v1263_v56  ;;  %v8416_v44 = vsub.f32 %v6731_v53, %v1262_v60  ;;  %v1268_v21 = vmul.f32 0.03125, %v12380_v59  ;;  %v6732_v4 = vld [vmem:[%s6976_s18 + $0x208] sm:$0xff]  ;;  %v12383_v51 = vld [vmem:[#allocation24_spill] sm:$0xff]  ;;  %v6733_v35 = vld [vmem:[%s6976_s18 + $0x200] sm:$0xff]  ;;  %v1773_v20 = vmul.f32 %v8397_v8, %v8397_v8 }
 0x21c   : > { %12377 = vst [vmem:[#allocation21_spill] sm:$0xff] %v8410_v10  ;;  %v8420_v0 = vsub.f32 %v6732_v4, %v1265_v39  ;;  %v12382_v63 = vld [vmem:[#allocation23_spill] sm:$0xff]  ;;  %v1270_v50 = vmul.f32 0.03125, %v12383_v51  ;;  %v8427_v56 = vsub.f32 %v6733_v35, %v1264_v46  ;;  %v6734_v37 = vld [vmem:[%s6976_s18 + $0x218] sm:$0xff]  ;;  %v6735_v53 = vld [vmem:[%s6976_s18 + $0x210] sm:$0xff]  ;;  %v8438_v51 = vsel %vm430_vm0, %v1768_v61, 0.0 }
 0x21d   : > { %12378 = vst [vmem:[#allocation201_spill] sm:$0xff] %v8413_v34  ;;  %12379 = vst [vmem:[#allocation202_spill] sm:$0xff] %v8416_v44  ;;  %v1271_v17 = vmul.f32 0.03125, %v12382_v63  ;;  %v8430_v60 = vsub.f32 %v6734_v37, %v1267_v16  ;;  %v8433_v58 = vsub.f32 %v6735_v53, %v1266_v25  ;;  %1975 = vadd.xlane.f32.xlu0 %v7805_v18  ;;  %v6736_v39 = vld [vmem:[%s6976_s18 + $0x228] sm:$0xff]  ;;  %v12388_v59 = vld [vmem:[#allocation25_spill] sm:$0xff]  ;;  %v8444_v63 = vpop.xlane.xlu1 %999  ;;  %v8446_v16 = vpop.xlane.xlu0 %996  ;;  %v8449_v25 = vsel %vm430_vm0, %v1771_v29, 0.0 }
 0x21e   : > { %12381 = vst [vmem:[#allocation22_spill] sm:$0xff] %v8420_v0  ;;  %12384 = vst [vmem:[#allocation23_spill] sm:$0xff] %v8427_v56  ;;  %v8441_v4 = vsub.f32 %v6736_v39, %v1269_v26  ;;  %v1273_v46 = vmul.f32 0.03125, %v12388_v59  ;;  %v6737_v18 = vld [vmem:[%s6976_s18 + $0x220] sm:$0xff]  ;;  %v1772_v26 = vmul.f32 %v8410_v10, %v8410_v10  ;;  %v1775_v61 = vmul.f32 %v8413_v34, %v8413_v34  ;;  %v6738_v53 = vld [vmem:[%s6976_s18 + $0x238] sm:$0xff] }
 0x21f   : > { %12385 = vst [vmem:[#allocation24_spill] sm:$0xff] %v8430_v60  ;;  %12386 = vst [vmem:[#allocation203_spill] sm:$0xff] %v8433_v58  ;;  %v8454_v35 = vsub.f32 %v6737_v18, %v1268_v21  ;;  %v1774_v37 = vmul.f32 %v8416_v44, %v8416_v44  ;;  %v8463_v39 = vsub.f32 %v6738_v53, %v1271_v17  ;;  %v6739_v29 = vld [vmem:[%s6976_s18 + $0x230] sm:$0xff]  ;;  %v8469_v8 = vsel %vm430_vm0, %v1770_v33, 0.0  ;;  %v12393_v18 = vld [vmem:[#allocation26_spill] sm:$0xff] }
 0x220   : > { %12387 = vst [vmem:[#allocation204_spill] sm:$0xff] %v8441_v4  ;;  %12389 = vst [vmem:[#allocation25_spill] sm:$0xff] %v8446_v16  ;;  %v8466_v59 = vsub.f32 %v6739_v29, %v1270_v50  ;;  %v1777_v21 = vmul.f32 %v8420_v0, %v8420_v0  ;;  %v1272_v10 = vmul.f32 0.03125, %v12393_v18  ;;  %1984 = vadd.xlane.f32.xlu1 %v7861_v57  ;;  %v6740_v33 = vld [vmem:[%s6976_s18 + $0x248] sm:$0xff]  ;;  %v6741_v49 = vld [vmem:[%s6976_s18 + $0x240] sm:$0xff] }
 0x221   : > { %12390 = vst [vmem:[#allocation205_spill] sm:$0xff] %v8454_v35  ;;  %12391 = vst [vmem:[#allocation206_spill] sm:$0xff] %v8463_v39  ;;  %1981 = vadd.xlane.f32.xlu0 %v7864_v54  ;;  %v1776_v44 = vmul.f32 %v8427_v56, %v8427_v56  ;;  %v1779_v17 = vmul.f32 %v8430_v60, %v8430_v60  ;;  %v1778_v50 = vmul.f32 %v8433_v58, %v8433_v58  ;;  %v12395_v29 = vld [vmem:[#allocation27_spill] sm:$0xff]  ;;  %v8486_v18 = vpop.xlane.xlu1 %1005  ;;  %v8488_v57 = vpop.xlane.xlu0 %1002 }
 0x222   : > { %12392 = vst [vmem:[#allocation207_spill] sm:$0xff] %v8466_v59  ;;  %v8483_v53 = vsub.f32 %v6740_v33, %v1273_v46  ;;  %v1275_v0 = vmul.f32 0.03125, %v12395_v29  ;;  %12396 = vst [vmem:[#allocation27_spill] sm:$0xff] %v8486_v18  ;;  %v8491_v54 = vsel %vm430_vm0, %v1773_v20, 0.0  ;;  %v1781_v56 = vmul.f32 %v8441_v4, %v8441_v4  ;;  %v12398_v29 = vld [vmem:[#allocation28_spill] sm:$0xff] }
 0x223   : > { %12397 = vst [vmem:[#allocation208_spill] sm:$0xff] %v8488_v57  ;;  %v8496_v60 = vsel %vm430_vm0, %v1772_v26, 0.0  ;;  %v8499_v58 = vsel %vm430_vm0, %v1775_v61, 0.0  ;;  %v8502_v46 = vsel %vm430_vm0, %v1774_v37, 0.0  ;;  %v1780_v33 = vmul.f32 %v8454_v35, %v8454_v35  ;;  %v12419_v57 = vld [vmem:[#allocation36_spill] sm:$0xff] }
 0x224   : > { %12394 = vst [vmem:[#allocation26_spill] sm:$0xff] %v8483_v53  ;;  %v1274_v34 = vmul.f32 0.03125, %v12398_v29  ;;  %v8508_v20 = vsel %vm430_vm0, %v1777_v21, 0.0  ;;  %v1783_v4 = vmul.f32 %v8463_v39, %v8463_v39  ;;  %v1782_v26 = vmul.f32 %v8466_v59, %v8466_v59  ;;  %1990 = vadd.xlane.f32.xlu1 %v7869_v43  ;;  %v6742_v39 = vld [vmem:[%s6976_s18 + $0x258] sm:$0xff]  ;;  %v12431_v18 = vld [vmem:[#allocation40_spill] sm:$0xff] }
 0x225   : > { %12399 = vst [vmem:[#allocation28_spill] sm:$0xff] %v8508_v20  ;;  %v8515_v61 = vsub.f32 %v6741_v49, %v1272_v10  ;;  %1987 = vadd.xlane.f32.xlu0 %v7872_v30  ;;  %v8520_v37 = vsel %vm430_vm0, %v1776_v44, 0.0  ;;  %v8523_v21 = vsel %vm430_vm0, %v1779_v17, 0.0  ;;  %v8526_v29 = vsel %vm430_vm0, %v1778_v50, 0.0  ;;  %v12405_v59 = vld [vmem:[#allocation29_spill] sm:$0xff]  ;;  %v8532_v10 = vpop.xlane.xlu1 %1011  ;;  %v8534_v43 = vpop.xlane.xlu0 %1008  ;;  %v12409_v17 = vld [vmem:[#allocation30_spill] sm:$0xff] }
 0x226   : > { %12401 = vst [vmem:[#allocation210_spill] sm:$0xff] %v8520_v37  ;;  %12402 = vst [vmem:[#allocation211_spill] sm:$0xff] %v8523_v21  ;;  %v8529_v35 = vsub.f32 %v6742_v39, %v1275_v0  ;;  %v1277_v49 = vmul.f32 0.03125, %v12405_v59  ;;  %v8537_v30 = vsel %vm430_vm0, %v1781_v56, 0.0  ;;  %v1785_v44 = vmul.f32 %v8483_v53, %v8483_v53  ;;  %v12410_v50 = vld [vmem:[#allocation31_spill] sm:$0xff]  ;;  %v12411_v37 = vld [vmem:[#allocation32_spill] sm:$0xff] }
 0x227   : > { %12400 = vst [vmem:[#allocation209_spill] sm:$0xff] %v8515_v61  ;;  %12403 = vst [vmem:[#allocation212_spill] sm:$0xff] %v8526_v29  ;;  %v1276_v21 = vmul.f32 0.03125, %v12409_v17  ;;  %v1279_v29 = vmul.f32 0.03125, %v12410_v50  ;;  %v1278_v0 = vmul.f32 0.03125, %v12411_v37  ;;  %v8545_v39 = vsel %vm430_vm0, %v1780_v33, 0.0 }
 0x228   : > { %12404 = vst [vmem:[#allocation213_spill] sm:$0xff] %v8529_v35  ;;  %12406 = vst [vmem:[#allocation29_spill] sm:$0xff] %v8532_v10  ;;  %v6743_v59 = vld [vmem:[%s6976_s18 + $0x250] sm:$0xff]  ;;  %v8552_v56 = vsel %vm430_vm0, %v1783_v4, 0.0  ;;  %v8555_v53 = vsel %vm430_vm0, %v1782_v26, 0.0  ;;  %v12417_v17 = vld [vmem:[#allocation34_spill] sm:$0xff]  ;;  %1996 = vadd.xlane.f32.xlu1 %v7882_v47  ;;  %v1787_v47 = vmul.f32 %v8529_v35, %v8529_v35 }
 0x229   : > { %12407 = vst [vmem:[#allocation214_spill] sm:$0xff] %v8534_v43  ;;  %12408 = vst [vmem:[#allocation215_spill] sm:$0xff] %v8537_v30  ;;  %v8548_v20 = vsub.f32 %v6743_v59, %v1274_v34  ;;  %v12414_v43 = vld [vmem:[#allocation33_spill] sm:$0xff]  ;;  %v1280_v50 = vmul.f32 0.03125, %v12417_v17  ;;  %v12418_v30 = vld [vmem:[#allocation35_spill] sm:$0xff]  ;;  %v1282_v33 = vmul.f32 0.03125, %v12419_v57  ;;  %1993 = vadd.xlane.f32.xlu0 %v7885_v31  ;;  %v1784_v34 = vmul.f32 %v8515_v61, %v8515_v61 }
 0x22a   : > { %12412 = vst [vmem:[#allocation30_spill] sm:$0xff] %v8545_v39  ;;  %v1281_v10 = vmul.f32 0.03125, %v12414_v43  ;;  %12415 = vst [vmem:[#allocation32_spill] sm:$0xff] %v8552_v56  ;;  %v1283_v37 = vmul.f32 0.03125, %v12418_v30  ;;  %v6744_v4 = vld [vmem:[%s6976_s18 + $0x268] sm:$0xff]  ;;  %v12421_v26 = vld [vmem:[#allocation37_spill] sm:$0xff]  ;;  %v8570_v30 = vpop.xlane.xlu0 %1014 }
 0x22b   : > { %12413 = vst [vmem:[#allocation31_spill] sm:$0xff] %v8548_v20  ;;  %12416 = vst [vmem:[#allocation33_spill] sm:$0xff] %v8555_v53  ;;  %v8565_v43 = vsub.f32 %v6744_v4, %v1277_v49  ;;  %v1285_v59 = vmul.f32 0.03125, %v12421_v26  ;;  %v8568_v53 = vpop.xlane.xlu1 %1017  ;;  %v8573_v57 = vsel %vm430_vm0, %v1785_v44, 0.0  ;;  %v6745_v31 = vld [vmem:[%s6976_s18 + $0x260] sm:$0xff]  ;;  %v6746_v49 = vld [vmem:[%s6976_s18 + $0x278] sm:$0xff] }
 0x22c   : > { %12422 = vst [vmem:[#allocation35_spill] sm:$0xff] %v8568_v53  ;;  %12423 = vst [vmem:[#allocation36_spill] sm:$0xff] %v8570_v30  ;;  %v8578_v17 = vsub.f32 %v6745_v31, %v1276_v21  ;;  %v8581_v4 = vsub.f32 %v6746_v49, %v1279_v29  ;;  %v6747_v26 = vld [vmem:[%s6976_s18 + $0x270] sm:$0xff]  ;;  %v12428_v56 = vld [vmem:[#allocation38_spill] sm:$0xff]  ;;  %v1286_v35 = vmul.f32 0.03125, %v12431_v18  ;;  %v1786_v21 = vmul.f32 %v8548_v20, %v8548_v20 }
 0x22d   : > { %12420 = vst [vmem:[#allocation34_spill] sm:$0xff] %v8565_v43  ;;  %12424 = vst [vmem:[#allocation37_spill] sm:$0xff] %v8573_v57  ;;  %v8584_v61 = vsub.f32 %v6747_v26, %v1278_v0  ;;  %v1284_v39 = vmul.f32 0.03125, %v12428_v56  ;;  %v6748_v30 = vld [vmem:[%s6976_s18 + $0x288] sm:$0xff]  ;;  %v6749_v31 = vld [vmem:[%s6976_s18 + $0x280] sm:$0xff]  ;;  %2002 = vadd.xlane.f32.xlu1 %v7888_v24  ;;  %1999 = vadd.xlane.f32.xlu0 %v7907_v42  ;;  %v8606_v18 = vsel %vm430_vm0, %v1784_v34, 0.0 }
 0x22e   : > { %12425 = vst [vmem:[#allocation216_spill] sm:$0xff] %v8578_v17  ;;  %12426 = vst [vmem:[#allocation217_spill] sm:$0xff] %v8581_v4  ;;  %v8588_v44 = vsub.f32 %v6748_v30, %v1281_v10  ;;  %v12430_v57 = vld [vmem:[#allocation39_spill] sm:$0xff]  ;;  %v8595_v29 = vsub.f32 %v6749_v31, %v1280_v50  ;;  %v6750_v49 = vld [vmem:[%s6976_s18 + $0x298] sm:$0xff]  ;;  %v1789_v24 = vmul.f32 %v8565_v43, %v8565_v43  ;;  %v8637_v43 = vsel %vm430_vm0, %v1786_v21, 0.0 }
 0x22f   : > { %12427 = vst [vmem:[#allocation218_spill] sm:$0xff] %v8584_v61  ;;  %v1287_v53 = vmul.f32 0.03125, %v12430_v57  ;;  %v8598_v0 = vsub.f32 %v6750_v49, %v1283_v37  ;;  %v6751_v26 = vld [vmem:[%s6976_s18 + $0x290] sm:$0xff]  ;;  %12435 = vst [vmem:[#allocation220_spill] sm:$0xff] %v8606_v18  ;;  %v6752_v10 = vld [vmem:[%s6976_s18 + $0x2a8] sm:$0xff]  ;;  %v8612_v57 = vpop.xlane.xlu1 %1023  ;;  %v8614_v37 = vpop.xlane.xlu0 %1020  ;;  %v1788_v34 = vmul.f32 %v8578_v17, %v8578_v17  ;;  %v1790_v49 = vmul.f32 %v8584_v61, %v8584_v61 }
 0x230   : > { %12429 = vst [vmem:[#allocation38_spill] sm:$0xff] %v8588_v44  ;;  %12432 = vst [vmem:[#allocation39_spill] sm:$0xff] %v8595_v29  ;;  %v8601_v16 = vsub.f32 %v6751_v26, %v1282_v33  ;;  %v8609_v56 = vsub.f32 %v6752_v10, %v1285_v59  ;;  %v12437_v50 = vld [vmem:[#allocation41_spill] sm:$0xff]  ;;  %v8617_v33 = vsel %vm430_vm0, %v1787_v47, 0.0  ;;  %v6753_v42 = vld [vmem:[%s6976_s18 + $0x2a0] sm:$0xff]  ;;  %v1791_v59 = vmul.f32 %v8581_v4, %v8581_v4 }
 0x231   : > { %12433 = vst [vmem:[#allocation40_spill] sm:$0xff] %v8598_v0  ;;  %v1289_v30 = vmul.f32 0.03125, %v12437_v50  ;;  %12438 = vst [vmem:[#allocation41_spill] sm:$0xff] %v8617_v33  ;;  %v8622_v31 = vsub.f32 %v6753_v42, %v1284_v39  ;;  %v6754_v26 = vld [vmem:[%s6976_s18 + $0x2b8] sm:$0xff]  ;;  %v6755_v47 = vld [vmem:[%s6976_s18 + $0x2b0] sm:$0xff]  ;;  %v1793_v39 = vmul.f32 %v8588_v44, %v8588_v44  ;;  %2008 = vadd.xlane.f32.xlu1 %v7912_v7  ;;  %2005 = vadd.xlane.f32.xlu0 %v7915_v48 }
 0x232   : > { %12434 = vst [vmem:[#allocation219_spill] sm:$0xff] %v8601_v16  ;;  %12436 = vst [vmem:[#allocation221_spill] sm:$0xff] %v8609_v56  ;;  %v8631_v10 = vsub.f32 %v6754_v26, %v1287_v53  ;;  %v8634_v50 = vsub.f32 %v6755_v47, %v1286_v35  ;;  %v12443_v42 = vld [vmem:[#allocation42_spill] sm:$0xff]  ;;  %v1792_v61 = vmul.f32 %v8595_v29, %v8595_v29  ;;  %v6756_v21 = vld [vmem:[%s6976_s18 + $0x2c8] sm:$0xff]  ;;  %v8659_v48 = vsel %vm430_vm0, %v1789_v24, 0.0 }
 0x233   : > { %12439 = vst [vmem:[#allocation222_spill] sm:$0xff] %v8622_v31  ;;  %12442 = vst [vmem:[#allocation225_spill] sm:$0xff] %v8637_v43  ;;  %v1288_v17 = vmul.f32 0.03125, %v12443_v42  ;;  %v1795_v53 = vmul.f32 %v8598_v0, %v8598_v0  ;;  %v1794_v35 = vmul.f32 %v8601_v16, %v8601_v16  ;;  %v8651_v26 = vsub.f32 %v6756_v21, %v1289_v30  ;;  %v12445_v47 = vld [vmem:[#allocation43_spill] sm:$0xff]  ;;  %v8654_v42 = vpop.xlane.xlu1 %1029  ;;  %v8656_v7 = vpop.xlane.xlu0 %1026  ;;  %v6757_v20 = vld [vmem:[%s6976_s18 + $0x2c0] sm:$0xff] }
 0x234   : > { %12440 = vst [vmem:[#allocation223_spill] sm:$0xff] %v8631_v10  ;;  %12441 = vst [vmem:[#allocation224_spill] sm:$0xff] %v8634_v50  ;;  %v1291_v44 = vmul.f32 0.03125, %v12445_v47  ;;  %v1797_v29 = vmul.f32 %v8609_v56, %v8609_v56  ;;  %v8664_v0 = vsel %vm430_vm0, %v1788_v34, 0.0  ;;  %v8667_v16 = vsel %vm430_vm0, %v1791_v59, 0.0  ;;  %v12450_v47 = vld [vmem:[#allocation44_spill] sm:$0xff] }
 0x235   : > { %12444 = vst [vmem:[#allocation42_spill] sm:$0xff] %v8651_v26  ;;  %12446 = vst [vmem:[#allocation43_spill] sm:$0xff] %v8659_v48  ;;  %v8670_v30 = vsel %vm430_vm0, %v1790_v49, 0.0  ;;  %v1796_v21 = vmul.f32 %v8622_v31, %v8622_v31  ;;  %v1290_v4 = vmul.f32 0.03125, %v12450_v47  ;;  %v8676_v24 = vsel %vm430_vm0, %v1793_v39, 0.0  ;;  %2014 = vadd.xlane.f32.xlu1 %v7932_v32  ;;  %2011 = vadd.xlane.f32.xlu0 %v7963_v62  ;;  %v6764_v48 = vld [vmem:[%s6976_s18 + $0x308] sm:$0xff] }
 0x236   : > { %12447 = vst [vmem:[#allocation226_spill] sm:$0xff] %v8664_v0  ;;  %12448 = vst [vmem:[#allocation227_spill] sm:$0xff] %v8667_v16  ;;  %v1799_v56 = vmul.f32 %v8631_v10, %v8631_v10  ;;  %v1798_v34 = vmul.f32 %v8634_v50, %v8634_v50  ;;  %v8683_v59 = vsub.f32 %v6757_v20, %v1288_v17  ;;  %v8688_v49 = vsel %vm430_vm0, %v1792_v61, 0.0  ;;  %v6758_v10 = vld [vmem:[%s6976_s18 + $0x2d8] sm:$0xff]  ;;  %v12469_v0 = vld [vmem:[#allocation52_spill] sm:$0xff] }
 0x237   : > { %12449 = vst [vmem:[#allocation228_spill] sm:$0xff] %v8670_v30  ;;  %12451 = vst [vmem:[#allocation44_spill] sm:$0xff] %v8676_v24  ;;  %v8691_v39 = vsel %vm430_vm0, %v1795_v53, 0.0  ;;  %v8694_v47 = vsel %vm430_vm0, %v1794_v35, 0.0  ;;  %v8697_v31 = vsub.f32 %v6758_v10, %v1291_v44  ;;  %v12457_v50 = vld [vmem:[#allocation45_spill] sm:$0xff]  ;;  %v8700_v17 = vpop.xlane.xlu1 %1035  ;;  %v8702_v32 = vpop.xlane.xlu0 %1032  ;;  %v8705_v62 = vsel %vm430_vm0, %v1797_v29, 0.0 }
 0x238   : > { %12452 = vst [vmem:[#allocation229_spill] sm:$0xff] %v8683_v59  ;;  %12453 = vst [vmem:[#allocation230_spill] sm:$0xff] %v8688_v49  ;;  %v1293_v20 = vmul.f32 0.03125, %v12457_v50  ;;  %v1801_v61 = vmul.f32 %v8651_v26, %v8651_v26  ;;  %v12459_v53 = vld [vmem:[#allocation46_spill] sm:$0xff]  ;;  %v12460_v35 = vld [vmem:[#allocation47_spill] sm:$0xff]  ;;  %v8713_v10 = vsel %vm430_vm0, %v1796_v21, 0.0 }
 0x239   : > { %12454 = vst [vmem:[#allocation231_spill] sm:$0xff] %v8691_v39  ;;  %12455 = vst [vmem:[#allocation232_spill] sm:$0xff] %v8694_v47  ;;  %v1292_v39 = vmul.f32 0.03125, %v12459_v53  ;;  %v1295_v47 = vmul.f32 0.03125, %v12460_v35  ;;  %v12461_v49 = vld [vmem:[#allocation48_spill] sm:$0xff]  ;;  %v12464_v30 = vld [vmem:[#allocation49_spill] sm:$0xff]  ;;  %2020 = vadd.xlane.f32.xlu1 %v7980_v6  ;;  %2017 = vadd.xlane.f32.xlu0 %v8013_v9  ;;  %v1803_v6 = vmul.f32 %v8697_v31, %v8697_v31 }
 0x23a   : > { %12456 = vst [vmem:[#allocation233_spill] sm:$0xff] %v8697_v31  ;;  %12458 = vst [vmem:[#allocation45_spill] sm:$0xff] %v8705_v62  ;;  %v1294_v44 = vmul.f32 0.03125, %v12461_v49  ;;  %v6759_v50 = vld [vmem:[%s6976_s18 + $0x2d0] sm:$0xff]  ;;  %v1297_v16 = vmul.f32 0.03125, %v12464_v30  ;;  %v8720_v29 = vsel %vm430_vm0, %v1799_v56, 0.0 }
 0x23b   : > { %12462 = vst [vmem:[#allocation46_spill] sm:$0xff] %v8713_v10  ;;  %v8716_v24 = vsub.f32 %v6759_v50, %v1290_v4  ;;  %12465 = vst [vmem:[#allocation48_spill] sm:$0xff] %v8720_v29  ;;  %v8723_v26 = vsel %vm430_vm0, %v1798_v34, 0.0  ;;  %v12467_v53 = vld [vmem:[#allocation50_spill] sm:$0xff]  ;;  %v12468_v62 = vld [vmem:[#allocation51_spill] sm:$0xff]  ;;  %v1298_v21 = vmul.f32 0.03125, %v12469_v0  ;;  %v1800_v4 = vmul.f32 %v8683_v59, %v8683_v59 }
 0x23c   : > { %12466 = vst [vmem:[#allocation49_spill] sm:$0xff] %v8723_v26  ;;  %v1296_v35 = vmul.f32 0.03125, %v12467_v53  ;;  %v1299_v49 = vmul.f32 0.03125, %v12468_v62  ;;  %v6760_v56 = vld [vmem:[%s6976_s18 + $0x2e8] sm:$0xff]  ;;  %v12471_v34 = vld [vmem:[#allocation53_spill] sm:$0xff]  ;;  %v8736_v26 = vpop.xlane.xlu1 %1041  ;;  %v8738_v62 = vpop.xlane.xlu0 %1038  ;;  %v8741_v0 = vsel %vm430_vm0, %v1801_v61, 0.0  ;;  %v8756_v61 = vsub.f32 %v6764_v48, %v1297_v16 }
 0x23d   : > { %12463 = vst [vmem:[#allocation47_spill] sm:$0xff] %v8716_v24  ;;  %v8733_v30 = vsub.f32 %v6760_v56, %v1293_v20  ;;  %v1301_v50 = vmul.f32 0.03125, %v12471_v34  ;;  %12472 = vst [vmem:[#allocation51_spill] sm:$0xff] %v8741_v0  ;;  %v6761_v9 = vld [vmem:[%s6976_s18 + $0x2e0] sm:$0xff]  ;;  %v6762_v20 = vld [vmem:[%s6976_s18 + $0x2f8] sm:$0xff]  ;;  %2026 = vadd.xlane.f32.xlu1 %v8019_v55  ;;  %2023 = vadd.xlane.f32.xlu0 %v8022_v40  ;;  %v8774_v16 = vsel %vm430_vm0, %v1800_v4, 0.0 }
 0x23e   : > { %v8746_v53 = vsub.f32 %v6761_v9, %v1292_v39  ;;  %v8749_v56 = vsub.f32 %v6762_v20, %v1295_v47  ;;  %v6763_v34 = vld [vmem:[%s6976_s18 + $0x2f0] sm:$0xff]  ;;  %v12476_v29 = vld [vmem:[#allocation54_spill] sm:$0xff]  ;;  %v12478_v0 = vld [vmem:[#allocation55_spill] sm:$0xff]  ;;  %v1802_v39 = vmul.f32 %v8716_v24, %v8716_v24  ;;  %12483 = vst [vmem:[#allocation236_spill] sm:$0xff] %v8774_v16 }
 0x23f   : > { %12470 = vst [vmem:[#allocation50_spill] sm:$0xff] %v8733_v30  ;;  %v8752_v59 = vsub.f32 %v6763_v34, %v1294_v44  ;;  %v1300_v10 = vmul.f32 0.03125, %v12476_v29  ;;  %12477 = vst [vmem:[#allocation54_spill] sm:$0xff] %v8756_v61  ;;  %v1303_v43 = vmul.f32 0.03125, %v12478_v0  ;;  %v12479_v33 = vld [vmem:[#allocation56_spill] sm:$0xff]  ;;  %v6765_v9 = vld [vmem:[%s6976_s18 + $0x300] sm:$0xff]  ;;  %v1805_v55 = vmul.f32 %v8733_v30, %v8733_v30 }
 0x240   : > { %12473 = vst [vmem:[#allocation52_spill] sm:$0xff] %v8746_v53  ;;  %12474 = vst [vmem:[#allocation53_spill] sm:$0xff] %v8749_v56  ;;  %v1302_v31 = vmul.f32 0.03125, %v12479_v33  ;;  %v8763_v47 = vsub.f32 %v6765_v9, %v1296_v35  ;;  %v6766_v20 = vld [vmem:[%s6976_s18 + $0x318] sm:$0xff]  ;;  %v6767_v34 = vld [vmem:[%s6976_s18 + $0x310] sm:$0xff]  ;;  %v8780_v0 = vpop.xlane.xlu1 %1047  ;;  %v1804_v4 = vmul.f32 %v8746_v53, %v8746_v53  ;;  %v8805_v30 = vsel %vm430_vm0, %v1802_v39, 0.0 }
 0x241   : > { %12475 = vst [vmem:[#allocation234_spill] sm:$0xff] %v8752_v59  ;;  %v8766_v44 = vsub.f32 %v6766_v20, %v1299_v49  ;;  %v8769_v18 = vsub.f32 %v6767_v34, %v1298_v21  ;;  %v6768_v33 = vld [vmem:[%s6976_s18 + $0x328] sm:$0xff]  ;;  %v12485_v29 = vld [vmem:[#allocation57_spill] sm:$0xff]  ;;  %v8782_v49 = vpop.xlane.xlu0 %1044  ;;  %v8785_v21 = vsel %vm430_vm0, %v1803_v6, 0.0  ;;  %v6769_v40 = vld [vmem:[%s6976_s18 + $0x320] sm:$0xff]  ;;  %v1806_v20 = vmul.f32 %v8752_v59, %v8752_v59  ;;  %2032 = vadd.xlane.f32.xlu1 %v8027_v23 }
 0x242   : > { %12480 = vst [vmem:[#allocation55_spill] sm:$0xff] %v8763_v47  ;;  %v8777_v48 = vsub.f32 %v6768_v33, %v1301_v50  ;;  %v1305_v35 = vmul.f32 0.03125, %v12485_v29  ;;  %12486 = vst [vmem:[#allocation57_spill] sm:$0xff] %v8785_v21  ;;  %v8790_v9 = vsub.f32 %v6769_v40, %v1300_v10  ;;  %v1807_v50 = vmul.f32 %v8749_v56, %v8749_v56  ;;  %v6770_v34 = vld [vmem:[%s6976_s18 + $0x338] sm:$0xff]  ;;  %v6771_v6 = vld [vmem:[%s6976_s18 + $0x330] sm:$0xff] }
 0x243   : > { %12481 = vst [vmem:[#allocation56_spill] sm:$0xff] %v8766_v44  ;;  %12482 = vst [vmem:[#allocation235_spill] sm:$0xff] %v8769_v18  ;;  %v8799_v33 = vsub.f32 %v6770_v34, %v1303_v43  ;;  %v8802_v29 = vsub.f32 %v6771_v6, %v1302_v31  ;;  %v1809_v10 = vmul.f32 %v8756_v61, %v8756_v61  ;;  %v12491_v40 = vld [vmem:[#allocation58_spill] sm:$0xff]  ;;  %2029 = vadd.xlane.f32.xlu0 %v8030_v14  ;;  %v6772_v39 = vld [vmem:[%s6976_s18 + $0x348] sm:$0xff] }
 0x244   : > { %12484 = vst [vmem:[#allocation237_spill] sm:$0xff] %v8777_v48  ;;  %12487 = vst [vmem:[#allocation238_spill] sm:$0xff] %v8790_v9  ;;  %v1304_v53 = vmul.f32 0.03125, %v12491_v40  ;;  %v1808_v59 = vmul.f32 %v8763_v47, %v8763_v47  ;;  %v1811_v43 = vmul.f32 %v8766_v44, %v8766_v44  ;;  %v1810_v31 = vmul.f32 %v8769_v18, %v8769_v18  ;;  %v12493_v6 = vld [vmem:[#allocation59_spill] sm:$0xff]  ;;  %v8822_v40 = vpop.xlane.xlu1 %1053  ;;  %v6773_v24 = vld [vmem:[%s6976_s18 + $0x340] sm:$0xff] }
 0x245   : > { %12488 = vst [vmem:[#allocation239_spill] sm:$0xff] %v8799_v33  ;;  %12489 = vst [vmem:[#allocation240_spill] sm:$0xff] %v8802_v29  ;;  %v8819_v34 = vsub.f32 %v6772_v39, %v1305_v35  ;;  %v1307_v61 = vmul.f32 0.03125, %v12493_v6  ;;  %v8824_v23 = vpop.xlane.xlu0 %1050  ;;  %v8827_v14 = vsel %vm430_vm0, %v1805_v55, 0.0  ;;  %v1813_v47 = vmul.f32 %v8777_v48, %v8777_v48  ;;  %v12498_v6 = vld [vmem:[#allocation60_spill] sm:$0xff]  ;;  %2038 = vadd.xlane.f32.xlu1 %v8040_v2 }
 0x246   : > { %12490 = vst [vmem:[#allocation241_spill] sm:$0xff] %v8805_v30  ;;  %12494 = vst [vmem:[#allocation59_spill] sm:$0xff] %v8827_v14  ;;  %v8832_v44 = vsel %vm430_vm0, %v1804_v4, 0.0  ;;  %v8835_v18 = vsel %vm430_vm0, %v1807_v50, 0.0  ;;  %v8838_v35 = vsel %vm430_vm0, %v1806_v20, 0.0  ;;  %v1812_v39 = vmul.f32 %v8790_v9, %v8790_v9  ;;  %v6780_v14 = vld [vmem:[%s6976_s18 + $0x388] sm:$0xff] }
 0x247   : > { %12492 = vst [vmem:[#allocation58_spill] sm:$0xff] %v8819_v34  ;;  %12495 = vst [vmem:[#allocation242_spill] sm:$0xff] %v8832_v44  ;;  %v1306_v56 = vmul.f32 0.03125, %v12498_v6  ;;  %v8844_v55 = vsel %vm430_vm0, %v1809_v10, 0.0  ;;  %v1815_v48 = vmul.f32 %v8799_v33, %v8799_v33  ;;  %v1814_v4 = vmul.f32 %v8802_v29, %v8802_v29  ;;  %2035 = vadd.xlane.f32.xlu0 %v8043_v15  ;;  %v6774_v33 = vld [vmem:[%s6976_s18 + $0x358] sm:$0xff]  ;;  %v12517_v44 = vld [vmem:[#allocation68_spill] sm:$0xff] }
 0x248   : > { %12496 = vst [vmem:[#allocation243_spill] sm:$0xff] %v8835_v18  ;;  %12497 = vst [vmem:[#allocation244_spill] sm:$0xff] %v8838_v35  ;;  %v8851_v50 = vsub.f32 %v6773_v24, %v1304_v53  ;;  %v8856_v20 = vsel %vm430_vm0, %v1808_v59, 0.0  ;;  %v8859_v10 = vsel %vm430_vm0, %v1811_v43, 0.0  ;;  %v8862_v6 = vsel %vm430_vm0, %v1810_v31, 0.0  ;;  %v12505_v29 = vld [vmem:[#allocation61_spill] sm:$0xff]  ;;  %v8868_v53 = vpop.xlane.xlu1 %1059 }
 0x249   : > { %12499 = vst [vmem:[#allocation60_spill] sm:$0xff] %v8844_v55  ;;  %12501 = vst [vmem:[#allocation246_spill] sm:$0xff] %v8856_v20  ;;  %v8865_v9 = vsub.f32 %v6774_v33, %v1307_v61  ;;  %v1309_v24 = vmul.f32 0.03125, %v12505_v29  ;;  %v8870_v2 = vpop.xlane.xlu0 %1056  ;;  %v8873_v15 = vsel %vm430_vm0, %v1813_v47, 0.0  ;;  %v1817_v59 = vmul.f32 %v8819_v34, %v8819_v34  ;;  %v12507_v43 = vld [vmem:[#allocation62_spill] sm:$0xff]  ;;  %v12508_v31 = vld [vmem:[#allocation63_spill] sm:$0xff]  ;;  %2044 = vadd.xlane.f32.xlu1 %v8046_v3 }
 0x24a   : > { %12500 = vst [vmem:[#allocation245_spill] sm:$0xff] %v8851_v50  ;;  %12502 = vst [vmem:[#allocation247_spill] sm:$0xff] %v8859_v10  ;;  %v1308_v10 = vmul.f32 0.03125, %v12507_v43  ;;  %v12509_v20 = vld [vmem:[#allocation64_spill] sm:$0xff]  ;;  %v8881_v33 = vsel %vm430_vm0, %v1812_v39, 0.0  ;;  %v12512_v35 = vld [vmem:[#allocation65_spill] sm:$0xff] }
 0x24b   : > { %12503 = vst [vmem:[#allocation248_spill] sm:$0xff] %v8862_v6  ;;  %12504 = vst [vmem:[#allocation249_spill] sm:$0xff] %v8865_v9  ;;  %v1311_v6 = vmul.f32 0.03125, %v12508_v31  ;;  %v1310_v61 = vmul.f32 0.03125, %v12509_v20  ;;  %v6775_v29 = vld [vmem:[%s6976_s18 + $0x350] sm:$0xff]  ;;  %v1313_v18 = vmul.f32 0.03125, %v12512_v35  ;;  %2041 = vadd.xlane.f32.xlu0 %v8065_v22  ;;  %v1819_v22 = vmul.f32 %v8865_v9, %v8865_v9 }
 0x24c   : > { %12506 = vst [vmem:[#allocation61_spill] sm:$0xff] %v8873_v15  ;;  %12510 = vst [vmem:[#allocation62_spill] sm:$0xff] %v8881_v33  ;;  %v8884_v55 = vsub.f32 %v6775_v29, %v1306_v56  ;;  %v8888_v47 = vsel %vm430_vm0, %v1815_v48, 0.0  ;;  %v8891_v34 = vsel %vm430_vm0, %v1814_v4, 0.0  ;;  %v12515_v43 = vld [vmem:[#allocation66_spill] sm:$0xff]  ;;  %v12516_v15 = vld [vmem:[#allocation67_spill] sm:$0xff]  ;;  %v1816_v56 = vmul.f32 %v8851_v50, %v8851_v50 }
 0x24d   : > { %12513 = vst [vmem:[#allocation64_spill] sm:$0xff] %v8888_v47  ;;  %12514 = vst [vmem:[#allocation65_spill] sm:$0xff] %v8891_v34  ;;  %v1312_v31 = vmul.f32 0.03125, %v12515_v43  ;;  %v1315_v20 = vmul.f32 0.03125, %v12516_v15  ;;  %v1314_v39 = vmul.f32 0.03125, %v12517_v44  ;;  %v6776_v48 = vld [vmem:[%s6976_s18 + $0x368] sm:$0xff]  ;;  %v8904_v34 = vpop.xlane.xlu1 %1065  ;;  %v8906_v15 = vpop.xlane.xlu0 %1062  ;;  %2050 = vadd.xlane.f32.xlu1 %v8070_v45 }
 0x24e   : > { %12511 = vst [vmem:[#allocation63_spill] sm:$0xff] %v8884_v55  ;;  %v8901_v35 = vsub.f32 %v6776_v48, %v1309_v24  ;;  %v12519_v4 = vld [vmem:[#allocation69_spill] sm:$0xff]  ;;  %v8909_v44 = vsel %vm430_vm0, %v1817_v59, 0.0  ;;  %v6777_v3 = vld [vmem:[%s6976_s18 + $0x360] sm:$0xff]  ;;  %v8924_v59 = vsub.f32 %v6780_v14, %v1313_v18  ;;  %v12527_v21 = vld [vmem:[#allocation72_spill] sm:$0xff]  ;;  %v8942_v18 = vsel %vm430_vm0, %v1816_v56, 0.0 }
 0x24f   : > { %v1317_v29 = vmul.f32 0.03125, %v12519_v4  ;;  %12520 = vst [vmem:[#allocation67_spill] sm:$0xff] %v8909_v44  ;;  %v8914_v43 = vsub.f32 %v6777_v3, %v1308_v10  ;;  %v6778_v24 = vld [vmem:[%s6976_s18 + $0x378] sm:$0xff]  ;;  %v6779_v4 = vld [vmem:[%s6976_s18 + $0x370] sm:$0xff]  ;;  %v12524_v47 = vld [vmem:[#allocation70_spill] sm:$0xff]  ;;  %v1318_v9 = vmul.f32 0.03125, %v12527_v21  ;;  %v1818_v10 = vmul.f32 %v8884_v55, %v8884_v55  ;;  %2047 = vadd.xlane.f32.xlu0 %v8073_v11 }
 0x250   : > { %12518 = vst [vmem:[#allocation66_spill] sm:$0xff] %v8901_v35  ;;  %v8917_v48 = vsub.f32 %v6778_v24, %v1311_v6  ;;  %v8920_v50 = vsub.f32 %v6779_v4, %v1310_v61  ;;  %v1316_v33 = vmul.f32 0.03125, %v12524_v47  ;;  %12525 = vst [vmem:[#allocation70_spill] sm:$0xff] %v8924_v59  ;;  %v12526_v44 = vld [vmem:[#allocation71_spill] sm:$0xff]  ;;  %v6781_v3 = vld [vmem:[%s6976_s18 + $0x380] sm:$0xff]  ;;  %v1821_v45 = vmul.f32 %v8901_v35, %v8901_v35 }
 0x251   : > { %12521 = vst [vmem:[#allocation68_spill] sm:$0xff] %v8914_v43  ;;  %v1319_v30 = vmul.f32 0.03125, %v12526_v44  ;;  %v8931_v6 = vsub.f32 %v6781_v3, %v1312_v31  ;;  %v6782_v24 = vld [vmem:[%s6976_s18 + $0x398] sm:$0xff]  ;;  %v6783_v4 = vld [vmem:[%s6976_s18 + $0x390] sm:$0xff]  ;;  %12531 = vst [vmem:[#allocation252_spill] sm:$0xff] %v8942_v18  ;;  %v8948_v44 = vpop.xlane.xlu1 %1071  ;;  %v1820_v56 = vmul.f32 %v8914_v43, %v8914_v43  ;;  %v8973_v35 = vsel %vm430_vm0, %v1818_v10, 0.0  ;;  %2056 = vadd.xlane.f32.xlu1 %v8090_v38 }
 0x252   : > { %12522 = vst [vmem:[#allocation69_spill] sm:$0xff] %v8917_v48  ;;  %12523 = vst [vmem:[#allocation250_spill] sm:$0xff] %v8920_v50  ;;  %v8934_v61 = vsub.f32 %v6782_v24, %v1315_v20  ;;  %v8937_v16 = vsub.f32 %v6783_v4, %v1314_v39  ;;  %v6784_v21 = vld [vmem:[%s6976_s18 + $0x3a8] sm:$0xff]  ;;  %v12533_v47 = vld [vmem:[#allocation73_spill] sm:$0xff]  ;;  %v8950_v20 = vpop.xlane.xlu0 %1068  ;;  %v8953_v39 = vsel %vm430_vm0, %v1819_v22, 0.0  ;;  %v1822_v24 = vmul.f32 %v8920_v50, %v8920_v50 }
 0x253   : > { %12528 = vst [vmem:[#allocation71_spill] sm:$0xff] %v8931_v6  ;;  %v8945_v14 = vsub.f32 %v6784_v21, %v1317_v29  ;;  %v1321_v31 = vmul.f32 0.03125, %v12533_v47  ;;  %12534 = vst [vmem:[#allocation73_spill] sm:$0xff] %v8953_v39  ;;  %v6785_v11 = vld [vmem:[%s6976_s18 + $0x3a0] sm:$0xff]  ;;  %v1823_v29 = vmul.f32 %v8917_v48, %v8917_v48  ;;  %v6786_v4 = vld [vmem:[%s6976_s18 + $0x3b8] sm:$0xff]  ;;  %2053 = vadd.xlane.f32.xlu0 %v8121_v28  ;;  %v8995_v28 = vsel %vm430_vm0, %v1821_v45, 0.0 }
 0x254   : > { %12529 = vst [vmem:[#allocation72_spill] sm:$0xff] %v8934_v61  ;;  %12530 = vst [vmem:[#allocation251_spill] sm:$0xff] %v8937_v16  ;;  %v8958_v3 = vsub.f32 %v6785_v11, %v1316_v33  ;;  %v8967_v21 = vsub.f32 %v6786_v4, %v1319_v30  ;;  %v6787_v22 = vld [vmem:[%s6976_s18 + $0x3b0] sm:$0xff]  ;;  %v1825_v33 = vmul.f32 %v8924_v59, %v8924_v59  ;;  %v12539_v11 = vld [vmem:[#allocation74_spill] sm:$0xff] }
 0x255   : > { %12532 = vst [vmem:[#allocation253_spill] sm:$0xff] %v8945_v14  ;;  %v8970_v47 = vsub.f32 %v6787_v22, %v1318_v9  ;;  %12538 = vst [vmem:[#allocation257_spill] sm:$0xff] %v8973_v35  ;;  %v1320_v43 = vmul.f32 0.03125, %v12539_v11  ;;  %v1824_v50 = vmul.f32 %v8931_v6, %v8931_v6  ;;  %v1827_v30 = vmul.f32 %v8934_v61, %v8934_v61  ;;  %v6788_v10 = vld [vmem:[%s6976_s18 + $0x3c8] sm:$0xff]  ;;  %v8990_v11 = vpop.xlane.xlu1 %1077  ;;  %v6789_v55 = vld [vmem:[%s6976_s18 + $0x3c0] sm:$0xff] }
 0x256   : > { %12535 = vst [vmem:[#allocation254_spill] sm:$0xff] %v8958_v3  ;;  %12536 = vst [vmem:[#allocation255_spill] sm:$0xff] %v8967_v21  ;;  %v1826_v9 = vmul.f32 %v8937_v16, %v8937_v16  ;;  %v8987_v4 = vsub.f32 %v6788_v10, %v1321_v31  ;;  %v12541_v22 = vld [vmem:[#allocation75_spill] sm:$0xff]  ;;  %v8992_v38 = vpop.xlane.xlu0 %1074  ;;  %v1829_v6 = vmul.f32 %v8945_v14, %v8945_v14  ;;  %v9000_v61 = vsel %vm430_vm0, %v1820_v56, 0.0  ;;  %v12575_v39 = vld [vmem:[#allocation88_spill] sm:$0xff] }
 0x257   : > { %12537 = vst [vmem:[#allocation256_spill] sm:$0xff] %v8970_v47  ;;  %v1323_v59 = vmul.f32 0.03125, %v12541_v22  ;;  %12542 = vst [vmem:[#allocation75_spill] sm:$0xff] %v8995_v28  ;;  %v9003_v16 = vsel %vm430_vm0, %v1823_v29, 0.0  ;;  %v9006_v31 = vsel %vm430_vm0, %v1822_v24, 0.0  ;;  %v1828_v10 = vmul.f32 %v8958_v3, %v8958_v3  ;;  %v12546_v22 = vld [vmem:[#allocation76_spill] sm:$0xff]  ;;  %2062 = vadd.xlane.f32.xlu1 %v8138_v36  ;;  %2059 = vadd.xlane.f32.xlu0 %v8171_v5 }
 0x258   : > { %12540 = vst [vmem:[#allocation74_spill] sm:$0xff] %v8987_v4  ;;  %12543 = vst [vmem:[#allocation258_spill] sm:$0xff] %v9000_v61  ;;  %v1322_v48 = vmul.f32 0.03125, %v12546_v22  ;;  %v9012_v45 = vsel %vm430_vm0, %v1825_v33, 0.0  ;;  %v1831_v14 = vmul.f32 %v8967_v21, %v8967_v21  ;;  %v1830_v56 = vmul.f32 %v8970_v47, %v8970_v47  ;;  %v6790_v21 = vld [vmem:[%s6976_s18 + $0x3d8] sm:$0xff]  ;;  %v12565_v61 = vld [vmem:[#allocation84_spill] sm:$0xff] }
 0x259   : > { %12544 = vst [vmem:[#allocation259_spill] sm:$0xff] %v9003_v16  ;;  %12545 = vst [vmem:[#allocation260_spill] sm:$0xff] %v9006_v31  ;;  %v9019_v29 = vsub.f32 %v6789_v55, %v1320_v43  ;;  %v9024_v24 = vsel %vm430_vm0, %v1824_v50, 0.0  ;;  %v9027_v33 = vsel %vm430_vm0, %v1827_v30, 0.0  ;;  %v9030_v22 = vsel %vm430_vm0, %v1826_v9, 0.0  ;;  %v12553_v47 = vld [vmem:[#allocation77_spill] sm:$0xff]  ;;  %v9036_v43 = vpop.xlane.xlu1 %1083 }
 0x25a   : > { %12547 = vst [vmem:[#allocation76_spill] sm:$0xff] %v9012_v45  ;;  %12549 = vst [vmem:[#allocation262_spill] sm:$0xff] %v9024_v24  ;;  %v9033_v3 = vsub.f32 %v6790_v21, %v1323_v59  ;;  %v1325_v55 = vmul.f32 0.03125, %v12553_v47  ;;  %v9038_v36 = vpop.xlane.xlu0 %1080  ;;  %v9041_v5 = vsel %vm430_vm0, %v1829_v6, 0.0  ;;  %v1833_v50 = vmul.f32 %v8987_v4, %v8987_v4  ;;  %v12555_v30 = vld [vmem:[#allocation78_spill] sm:$0xff]  ;;  %v12556_v9 = vld [vmem:[#allocation79_spill] sm:$0xff] }
 0x25b   : > { %12548 = vst [vmem:[#allocation261_spill] sm:$0xff] %v9019_v29  ;;  %12550 = vst [vmem:[#allocation263_spill] sm:$0xff] %v9027_v33  ;;  %v1324_v33 = vmul.f32 0.03125, %v12555_v30  ;;  %v12557_v24 = vld [vmem:[#allocation80_spill] sm:$0xff]  ;;  %v9049_v21 = vsel %vm430_vm0, %v1828_v10, 0.0  ;;  %v12560_v31 = vld [vmem:[#allocation81_spill] sm:$0xff]  ;;  %2068 = vadd.xlane.f32.xlu1 %v8177_v41  ;;  %2065 = vadd.xlane.f32.xlu0 %v8180_v52 }
 0x25c   : > { %12551 = vst [vmem:[#allocation264_spill] sm:$0xff] %v9030_v22  ;;  %12552 = vst [vmem:[#allocation265_spill] sm:$0xff] %v9033_v3  ;;  %v1327_v22 = vmul.f32 0.03125, %v12556_v9  ;;  %v1326_v59 = vmul.f32 0.03125, %v12557_v24  ;;  %v6791_v47 = vld [vmem:[%s6976_s18 + $0x3d0] sm:$0xff]  ;;  %v1329_v16 = vmul.f32 0.03125, %v12560_v31  ;;  %v1835_v41 = vmul.f32 %v9033_v3, %v9033_v3 }
 0x25d   : > { %12554 = vst [vmem:[#allocation77_spill] sm:$0xff] %v9041_v5  ;;  %12558 = vst [vmem:[#allocation78_spill] sm:$0xff] %v9049_v21  ;;  %v9052_v45 = vsub.f32 %v6791_v47, %v1322_v48  ;;  %v9056_v6 = vsel %vm430_vm0, %v1831_v14, 0.0  ;;  %v9059_v4 = vsel %vm430_vm0, %v1830_v56, 0.0  ;;  %v12563_v30 = vld [vmem:[#allocation82_spill] sm:$0xff]  ;;  %v12564_v5 = vld [vmem:[#allocation83_spill] sm:$0xff]  ;;  %v1832_v48 = vmul.f32 %v9019_v29, %v9019_v29 }
 0x25e   : > { %12561 = vst [vmem:[#allocation80_spill] sm:$0xff] %v9056_v6  ;;  %12562 = vst [vmem:[#allocation81_spill] sm:$0xff] %v9059_v4  ;;  %v1328_v9 = vmul.f32 0.03125, %v12563_v30  ;;  %v1331_v24 = vmul.f32 0.03125, %v12564_v5  ;;  %v1330_v10 = vmul.f32 0.03125, %v12565_v61  ;;  %v6792_v14 = vld [vmem:[%s6976_s18 + $0x3e8] sm:$0xff]  ;;  %v9072_v4 = vpop.xlane.xlu1 %1089  ;;  %v9074_v5 = vpop.xlane.xlu0 %1086 }
 0x25f   : > { %12559 = vst [vmem:[#allocation79_spill] sm:$0xff] %v9052_v45  ;;  %v9069_v31 = vsub.f32 %v6792_v14, %v1325_v55  ;;  %v12567_v56 = vld [vmem:[#allocation85_spill] sm:$0xff]  ;;  %v9077_v61 = vsel %vm430_vm0, %v1833_v50, 0.0  ;;  %v6793_v52 = vld [vmem:[%s6976_s18 + $0x3e0] sm:$0xff]  ;;  %v6796_v28 = vld [vmem:[%s6976_s18 + $0x408] sm:$0xff]  ;;  %v1334_v3 = vmul.f32 0.03125, %v12575_v39  ;;  %2074 = vadd.xlane.f32.xlu1 %v8185_v27  ;;  %2071 = vadd.xlane.f32.xlu0 %v8188_v12 }
 0x260   : > { %v1333_v47 = vmul.f32 0.03125, %v12567_v56  ;;  %12568 = vst [vmem:[#allocation83_spill] sm:$0xff] %v9077_v61  ;;  %v9082_v30 = vsub.f32 %v6793_v52, %v1324_v33  ;;  %v6794_v55 = vld [vmem:[%s6976_s18 + $0x3f8] sm:$0xff]  ;;  %v6795_v56 = vld [vmem:[%s6976_s18 + $0x3f0] sm:$0xff]  ;;  %v12572_v6 = vld [vmem:[#allocation86_spill] sm:$0xff]  ;;  %v9092_v50 = vsub.f32 %v6796_v28, %v1329_v16  ;;  %v1834_v33 = vmul.f32 %v9052_v45, %v9052_v45 }
 0x261   : > { %12566 = vst [vmem:[#allocation82_spill] sm:$0xff] %v9069_v31  ;;  %v9085_v14 = vsub.f32 %v6794_v55, %v1327_v22  ;;  %v9088_v29 = vsub.f32 %v6795_v56, %v1326_v59  ;;  %v1332_v21 = vmul.f32 0.03125, %v12572_v6  ;;  %v12574_v61 = vld [vmem:[#allocation87_spill] sm:$0xff]  ;;  %v6797_v52 = vld [vmem:[%s6976_s18 + $0x400] sm:$0xff]  ;;  %v6798_v55 = vld [vmem:[%s6976_s18 + $0x418] sm:$0xff]  ;;  %v9110_v16 = vsel %vm430_vm0, %v1832_v48, 0.0 }
 0x262   : > { %12569 = vst [vmem:[#allocation84_spill] sm:$0xff] %v9082_v30  ;;  %12573 = vst [vmem:[#allocation86_spill] sm:$0xff] %v9092_v50  ;;  %v1335_v35 = vmul.f32 0.03125, %v12574_v61  ;;  %v9099_v22 = vsub.f32 %v6797_v52, %v1328_v9  ;;  %v9102_v59 = vsub.f32 %v6798_v55, %v1331_v24  ;;  %v6799_v56 = vld [vmem:[%s6976_s18 + $0x410] sm:$0xff]  ;;  %v6800_v39 = vld [vmem:[%s6976_s18 + $0x428] sm:$0xff]  ;;  %v9116_v61 = vpop.xlane.xlu1 %1095  ;;  %v9118_v24 = vpop.xlane.xlu0 %1092  ;;  %v1837_v27 = vmul.f32 %v9069_v31, %v9069_v31 }
 0x263   : > { %12570 = vst [vmem:[#allocation85_spill] sm:$0xff] %v9085_v14  ;;  %12571 = vst [vmem:[#allocation266_spill] sm:$0xff] %v9088_v29  ;;  %v9105_v18 = vsub.f32 %v6799_v56, %v1330_v10  ;;  %v9113_v28 = vsub.f32 %v6800_v39, %v1333_v47  ;;  %v12581_v6 = vld [vmem:[#allocation89_spill] sm:$0xff]  ;;  %v9121_v10 = vsel %vm430_vm0, %v1835_v41, 0.0  ;;  %v6801_v12 = vld [vmem:[%s6976_s18 + $0x420] sm:$0xff]  ;;  %v1836_v48 = vmul.f32 %v9082_v30, %v9082_v30 }
 0x264   : > { %12576 = vst [vmem:[#allocation87_spill] sm:$0xff] %v9099_v22  ;;  %12577 = vst [vmem:[#allocation88_spill] sm:$0xff] %v9102_v59  ;;  %v1337_v9 = vmul.f32 0.03125, %v12581_v6  ;;  %v9126_v52 = vsub.f32 %v6801_v12, %v1332_v21  ;;  %v1839_v47 = vmul.f32 %v9085_v14, %v9085_v14  ;;  %v1838_v55 = vmul.f32 %v9088_v29, %v9088_v29  ;;  %v6802_v56 = vld [vmem:[%s6976_s18 + $0x438] sm:$0xff]  ;;  %v6803_v41 = vld [vmem:[%s6976_s18 + $0x430] sm:$0xff] }
 0x265   : > { %12578 = vst [vmem:[#allocation267_spill] sm:$0xff] %v9105_v18  ;;  %12579 = vst [vmem:[#allocation268_spill] sm:$0xff] %v9110_v16  ;;  %v9135_v39 = vsub.f32 %v6802_v56, %v1335_v35  ;;  %v9138_v6 = vsub.f32 %v6803_v41, %v1334_v3  ;;  %v9141_v31 = vsel %vm430_vm0, %v1834_v33, 0.0  ;;  %v1841_v21 = vmul.f32 %v9092_v50, %v9092_v50  ;;  %v12587_v12 = vld [vmem:[#allocation90_spill] sm:$0xff]  ;;  %v12589_v14 = vld [vmem:[#allocation175_spill] sm:$0xff] }
 0x266   : > { %12580 = vst [vmem:[#allocation269_spill] sm:$0xff] %v9113_v28  ;;  %12582 = vst [vmem:[#allocation89_spill] sm:$0xff] %v9121_v10  ;;  %v1336_v30 = vmul.f32 0.03125, %v12587_v12  ;;  %v12588_v45 = vld [vmem:[#allocation174_spill] sm:$0xff]  ;;  %2077 = vadd.xlane.f32.xlu0 %v12589_v14  ;;  %v1840_v29 = vmul.f32 %v9099_v22, %v9099_v22  ;;  %v1843_v35 = vmul.f32 %v9102_v59, %v9102_v59  ;;  %v6804_v33 = vld [vmem:[%s6976_s18 + $0x448] sm:$0xff]  ;;  %v9158_v12 = vpop.xlane.xlu1 %1101  ;;  %v9163_v14 = vsel %vm430_vm0, %v1837_v27, 0.0 }
 0x267   : > { %12583 = vst [vmem:[#allocation270_spill] sm:$0xff] %v9126_v52  ;;  %12584 = vst [vmem:[#allocation271_spill] sm:$0xff] %v9135_v39  ;;  %2080 = vadd.xlane.f32.xlu1 %v12588_v45  ;;  %v1842_v3 = vmul.f32 %v9105_v18, %v9105_v18  ;;  %v9155_v56 = vsub.f32 %v6804_v33, %v1337_v9  ;;  %v12591_v41 = vld [vmem:[#allocation91_spill] sm:$0xff]  ;;  %v9160_v45 = vpop.xlane.xlu0 %1098  ;;  %v1845_v22 = vmul.f32 %v9113_v28, %v9113_v28  ;;  %v12621_v10 = vld [vmem:[#allocation100_spill] sm:$0xff] }
 0x268   : > { %12585 = vst [vmem:[#allocation272_spill] sm:$0xff] %v9138_v6  ;;  %12586 = vst [vmem:[#allocation273_spill] sm:$0xff] %v9141_v31  ;;  %v1339_v50 = vmul.f32 0.03125, %v12591_v41  ;;  %v9168_v59 = vsel %vm430_vm0, %v1836_v48, 0.0  ;;  %v9171_v18 = vsel %vm430_vm0, %v1839_v47, 0.0  ;;  %v9174_v9 = vsel %vm430_vm0, %v1838_v55, 0.0 }
 0x269   : > { %12590 = vst [vmem:[#allocation90_spill] sm:$0xff] %v9155_v56  ;;  %12592 = vst [vmem:[#allocation174_spill] sm:$0xff] %v9158_v12  ;;  %v1844_v33 = vmul.f32 %v9126_v52, %v9126_v52  ;;  %v12598_v41 = vld [vmem:[#allocation92_spill] sm:$0xff]  ;;  %v9180_v27 = vsel %vm430_vm0, %v1841_v21, 0.0  ;;  %v1847_v28 = vmul.f32 %v9135_v39, %v9135_v39  ;;  %v1846_v48 = vmul.f32 %v9138_v6, %v9138_v6  ;;  %v6806_v39 = vld [vmem:[%s6976_s18 + $0x458] sm:$0xff] }
 0x26a   : > { %12593 = vst [vmem:[#allocation175_spill] sm:$0xff] %v9160_v45  ;;  %12594 = vst [vmem:[#allocation91_spill] sm:$0xff] %v9163_v14  ;;  %v1338_v31 = vmul.f32 0.03125, %v12598_v41  ;;  %v12602_v55 = vld [vmem:[#allocation180_spill] sm:$0xff]  ;;  %v9192_v52 = vsel %vm430_vm0, %v1840_v29, 0.0  ;;  %v9195_v21 = vsel %vm430_vm0, %v1843_v35, 0.0  ;;  %v1849_v29 = vmul.f32 %v9155_v56, %v9155_v56 }
 0x26b   : > { %12595 = vst [vmem:[#allocation274_spill] sm:$0xff] %v9168_v59  ;;  %12596 = vst [vmem:[#allocation275_spill] sm:$0xff] %v9171_v18  ;;  %v6805_v59 = vld [vmem:[%s6976_s18 + $0x440] sm:$0xff]  ;;  %v12601_v18 = vld [vmem:[#allocation176_spill] sm:$0xff]  ;;  %2083 = vadd.xlane.f32.xlu0 %v12602_v55  ;;  %v9198_v41 = vsel %vm430_vm0, %v1842_v3, 0.0  ;;  %v9209_v55 = vsel %vm430_vm0, %v1845_v22, 0.0 }
 0x26c   : > { %12597 = vst [vmem:[#allocation276_spill] sm:$0xff] %v9174_v9  ;;  %12599 = vst [vmem:[#allocation92_spill] sm:$0xff] %v9180_v27  ;;  %v9187_v47 = vsub.f32 %v6805_v59, %v1336_v30  ;;  %2086 = vadd.xlane.f32.xlu1 %v12601_v18  ;;  %v9201_v27 = vsub.f32 %v6806_v39, %v1339_v50  ;;  %v12607_v6 = vld [vmem:[#allocation93_spill] sm:$0xff]  ;;  %v9204_v59 = vpop.xlane.xlu1 %1107  ;;  %v9206_v18 = vpop.xlane.xlu0 %1104  ;;  %v12611_v35 = vld [vmem:[#allocation94_spill] sm:$0xff]  ;;  %v9217_v39 = vsel %vm430_vm0, %v1844_v33, 0.0  ;;  %v9224_v22 = vsel %vm430_vm0, %v1847_v28, 0.0 }
 0x26d   : > { %12603 = vst [vmem:[#allocation176_spill] sm:$0xff] %v9192_v52  ;;  %12604 = vst [vmem:[#allocation180_spill] sm:$0xff] %v9195_v21  ;;  %v1341_v30 = vmul.f32 0.03125, %v12607_v6  ;;  %v1340_v21 = vmul.f32 0.03125, %v12611_v35  ;;  %v12612_v3 = vld [vmem:[#allocation95_spill] sm:$0xff]  ;;  %v12613_v52 = vld [vmem:[#allocation96_spill] sm:$0xff] }
 0x26e   : > { %12600 = vst [vmem:[#allocation277_spill] sm:$0xff] %v9187_v47  ;;  %12605 = vst [vmem:[#allocation278_spill] sm:$0xff] %v9198_v41  ;;  %v1343_v41 = vmul.f32 0.03125, %v12612_v3  ;;  %v1342_v50 = vmul.f32 0.03125, %v12613_v52  ;;  %v6807_v6 = vld [vmem:[%s6976_s18 + $0x450] sm:$0xff]  ;;  %v12616_v14 = vld [vmem:[#allocation97_spill] sm:$0xff]  ;;  %v1848_v28 = vmul.f32 %v9187_v47, %v9187_v47 }
 0x26f   : > { %12606 = vst [vmem:[#allocation279_spill] sm:$0xff] %v9201_v27  ;;  %12608 = vst [vmem:[#allocation93_spill] sm:$0xff] %v9204_v59  ;;  %v9220_v9 = vsub.f32 %v6807_v6, %v1338_v31  ;;  %v9227_v56 = vsel %vm430_vm0, %v1846_v48, 0.0  ;;  %v12619_v35 = vld [vmem:[#allocation98_spill] sm:$0xff]  ;;  %v1346_v33 = vmul.f32 0.03125, %v12621_v10  ;;  %v12623_v31 = vld [vmem:[#allocation181_spill] sm:$0xff] }
 0x270   : > { %12609 = vst [vmem:[#allocation280_spill] sm:$0xff] %v9206_v18  ;;  %12610 = vst [vmem:[#allocation281_spill] sm:$0xff] %v9209_v55  ;;  %v1345_v18 = vmul.f32 0.03125, %v12616_v14  ;;  %v1344_v3 = vmul.f32 0.03125, %v12619_v35  ;;  %v12620_v55 = vld [vmem:[#allocation99_spill] sm:$0xff]  ;;  %2089 = vadd.xlane.f32.xlu0 %v12623_v31  ;;  %v12625_v48 = vld [vmem:[#allocation101_spill] sm:$0xff] }
 0x271   : > { %12614 = vst [vmem:[#allocation94_spill] sm:$0xff] %v9217_v39  ;;  %12615 = vst [vmem:[#allocation95_spill] sm:$0xff] %v9220_v9  ;;  %v1347_v52 = vmul.f32 0.03125, %v12620_v55  ;;  %v12622_v39 = vld [vmem:[#allocation2_spill] sm:$0xff]  ;;  %v6808_v14 = vld [vmem:[%s6976_s18 + $0x468] sm:$0xff]  ;;  %v9242_v55 = vpop.xlane.xlu0 %1110  ;;  %v9245_v10 = vsel %vm430_vm0, %v1849_v29, 0.0 }
 0x272   : > { %12617 = vst [vmem:[#allocation96_spill] sm:$0xff] %v9224_v22  ;;  %12618 = vst [vmem:[#allocation97_spill] sm:$0xff] %v9227_v56  ;;  %2092 = vadd.xlane.f32.xlu1 %v12622_v39  ;;  %v9237_v6 = vsub.f32 %v6808_v14, %v1341_v30  ;;  %v1349_v56 = vmul.f32 0.03125, %v12625_v48  ;;  %v9240_v22 = vpop.xlane.xlu1 %1113  ;;  %v1851_v39 = vmul.f32 %v9201_v27, %v9201_v27  ;;  %v6809_v35 = vld [vmem:[%s6976_s18 + $0x460] sm:$0xff]  ;;  %v6810_v30 = vld [vmem:[%s6976_s18 + $0x478] sm:$0xff] }
 0x273   : > { %12626 = vst [vmem:[#allocation99_spill] sm:$0xff] %v9240_v22  ;;  %12627 = vst [vmem:[#allocation100_spill] sm:$0xff] %v9242_v55  ;;  %v9250_v31 = vsub.f32 %v6809_v35, %v1340_v21  ;;  %v9253_v14 = vsub.f32 %v6810_v30, %v1343_v41  ;;  %v6811_v48 = vld [vmem:[%s6976_s18 + $0x470] sm:$0xff]  ;;  %v12632_v22 = vld [vmem:[#allocation102_spill] sm:$0xff]  ;;  %v1850_v21 = vmul.f32 %v9220_v9, %v9220_v9 }
 0x274   : > { %12624 = vst [vmem:[#allocation98_spill] sm:$0xff] %v9237_v6  ;;  %12628 = vst [vmem:[#allocation2_spill] sm:$0xff] %v9245_v10  ;;  %v9256_v47 = vsub.f32 %v6811_v48, %v1342_v50  ;;  %v1348_v55 = vmul.f32 0.03125, %v12632_v22  ;;  %v6812_v59 = vld [vmem:[%s6976_s18 + $0x488] sm:$0xff]  ;;  %v12634_v10 = vld [vmem:[#allocation104_spill] sm:$0xff]  ;;  %2095 = vadd.xlane.f32.xlu0 %v8279_v19 }
 0x275   : > { %12629 = vst [vmem:[#allocation181_spill] sm:$0xff] %v9250_v31  ;;  %12630 = vst [vmem:[#allocation101_spill] sm:$0xff] %v9253_v14  ;;  %v9260_v29 = vsub.f32 %v6812_v59, %v1345_v18  ;;  %v1351_v16 = vmul.f32 0.03125, %v12634_v10  ;;  %v12635_v45 = vld [vmem:[#allocation105_spill] sm:$0xff]  ;;  %v6813_v35 = vld [vmem:[%s6976_s18 + $0x480] sm:$0xff] }
 0x276   : > { %12631 = vst [vmem:[#allocation282_spill] sm:$0xff] %v9256_v47  ;;  %v1350_v27 = vmul.f32 0.03125, %v12635_v45  ;;  %v9267_v41 = vsub.f32 %v6813_v35, %v1344_v3  ;;  %v6814_v30 = vld [vmem:[%s6976_s18 + $0x498] sm:$0xff]  ;;  %v6815_v48 = vld [vmem:[%s6976_s18 + $0x490] sm:$0xff]  ;;  %v12639_v22 = vld [vmem:[#allocation182_spill] sm:$0xff]  ;;  %v9278_v45 = vsel %vm430_vm0, %v1848_v28, 0.0  ;;  %v9284_v35 = vpop.xlane.xlu1 %1119  ;;  %v1855_v28 = vmul.f32 %v9253_v14, %v9253_v14 }
 0x277   : > { %12633 = vst [vmem:[#allocation102_spill] sm:$0xff] %v9260_v29  ;;  %v9270_v50 = vsub.f32 %v6814_v30, %v1347_v52  ;;  %v9273_v12 = vsub.f32 %v6815_v48, %v1346_v33  ;;  %2098 = vadd.xlane.f32.xlu1 %v12639_v22  ;;  %v6816_v59 = vld [vmem:[%s6976_s18 + $0x4a8] sm:$0xff]  ;;  %v9286_v52 = vpop.xlane.xlu0 %1116  ;;  %v9289_v33 = vsel %vm430_vm0, %v1851_v39, 0.0  ;;  %v1853_v30 = vmul.f32 %v9237_v6, %v9237_v6  ;;  %v6817_v19 = vld [vmem:[%s6976_s18 + $0x4a0] sm:$0xff]  ;;  %v6819_v39 = vld [vmem:[%s6976_s18 + $0x4b0] sm:$0xff] }
 0x278   : > { %12636 = vst [vmem:[#allocation104_spill] sm:$0xff] %v9267_v41  ;;  %v9281_v18 = vsub.f32 %v6816_v59, %v1349_v56  ;;  %v12641_v3 = vld [vmem:[#allocation107_spill] sm:$0xff]  ;;  %v9294_v48 = vsub.f32 %v6817_v19, %v1348_v55  ;;  %v1852_v56 = vmul.f32 %v9250_v31, %v9250_v31  ;;  %v1854_v22 = vmul.f32 %v9256_v47, %v9256_v47  ;;  %v6818_v59 = vld [vmem:[%s6976_s18 + $0x4b8] sm:$0xff]  ;;  %v12647_v19 = vld [vmem:[#allocation108_spill] sm:$0xff] }
 0x279   : > { %12637 = vst [vmem:[#allocation105_spill] sm:$0xff] %v9270_v50  ;;  %12638 = vst [vmem:[#allocation283_spill] sm:$0xff] %v9273_v12  ;;  %v1353_v10 = vmul.f32 0.03125, %v12641_v3  ;;  %v9303_v3 = vsub.f32 %v6818_v59, %v1351_v16  ;;  %v9306_v9 = vsub.f32 %v6819_v39, %v1350_v27  ;;  %v9309_v6 = vsel %vm430_vm0, %v1850_v21, 0.0  ;;  %2101 = vadd.xlane.f32.xlu0 %v8330_v13  ;;  %v6820_v21 = vld [vmem:[%s6976_s18 + $0x4c8] sm:$0xff] }
 0x27a   : > { %12640 = vst [vmem:[#allocation182_spill] sm:$0xff] %v9281_v18  ;;  %12642 = vst [vmem:[#allocation107_spill] sm:$0xff] %v9286_v52  ;;  %v1857_v55 = vmul.f32 %v9260_v29, %v9260_v29  ;;  %v1352_v31 = vmul.f32 0.03125, %v12647_v19  ;;  %v1856_v47 = vmul.f32 %v9267_v41, %v9267_v41  ;;  %v1859_v16 = vmul.f32 %v9270_v50, %v9270_v50  ;;  %v12649_v39 = vld [vmem:[#allocation111_spill] sm:$0xff]  ;;  %v9326_v19 = vpop.xlane.xlu1 %1125  ;;  %v12693_v52 = vld [vmem:[#allocation150_spill] sm:$0xff] }
 0x27b   : > { %12643 = vst [vmem:[#allocation284_spill] sm:$0xff] %v9294_v48  ;;  %12644 = vst [vmem:[#allocation285_spill] sm:$0xff] %v9303_v3  ;;  %2104 = vadd.xlane.f32.xlu1 %v8296_v1  ;;  %v1858_v27 = vmul.f32 %v9273_v12, %v9273_v12  ;;  %v9323_v59 = vsub.f32 %v6820_v21, %v1353_v10  ;;  %v1355_v29 = vmul.f32 0.03125, %v12649_v39  ;;  %v9328_v1 = vpop.xlane.xlu0 %1122  ;;  %v9331_v13 = vsel %vm430_vm0, %v1853_v30, 0.0  ;;  %v12656_v39 = vld [vmem:[#allocation112_spill] sm:$0xff] }
 0x27c   : > { %12645 = vst [vmem:[#allocation286_spill] sm:$0xff] %v9306_v9  ;;  %12646 = vst [vmem:[#allocation287_spill] sm:$0xff] %v9309_v6  ;;  %v1861_v41 = vmul.f32 %v9281_v18, %v9281_v18  ;;  %v9336_v50 = vsel %vm430_vm0, %v1852_v56, 0.0  ;;  %v9339_v12 = vsel %vm430_vm0, %v1855_v28, 0.0  ;;  %v9342_v10 = vsel %vm430_vm0, %v1854_v22, 0.0  ;;  %v12660_v22 = vld [vmem:[#allocation193_spill] sm:$0xff] }
 0x27d   : > { %12648 = vst [vmem:[#allocation108_spill] sm:$0xff] %v9323_v59  ;;  %12650 = vst [vmem:[#allocation111_spill] sm:$0xff] %v9326_v19  ;;  %v1860_v21 = vmul.f32 %v9294_v48, %v9294_v48  ;;  %v1354_v14 = vmul.f32 0.03125, %v12656_v39  ;;  %v9348_v30 = vsel %vm430_vm0, %v1857_v55, 0.0  ;;  %v1863_v18 = vmul.f32 %v9303_v3, %v9303_v3  ;;  %v12659_v19 = vld [vmem:[#allocation192_spill] sm:$0xff]  ;;  %2107 = vadd.xlane.f32.xlu0 %v12660_v22  ;;  %v6822_v3 = vld [vmem:[%s6976_s18 + $0x4d8] sm:$0xff] }
 0x27e   : > { %12651 = vst [vmem:[#allocation288_spill] sm:$0xff] %v9328_v1  ;;  %12652 = vst [vmem:[#allocation289_spill] sm:$0xff] %v9331_v13  ;;  %v1862_v56 = vmul.f32 %v9306_v9, %v9306_v9  ;;  %v6821_v1 = vld [vmem:[%s6976_s18 + $0x4c0] sm:$0xff]  ;;  %v9360_v48 = vsel %vm430_vm0, %v1856_v47, 0.0  ;;  %v9363_v55 = vsel %vm430_vm0, %v1859_v16, 0.0  ;;  %v9366_v39 = vsel %vm430_vm0, %v1858_v27, 0.0 }
 0x27f   : > { %12653 = vst [vmem:[#allocation290_spill] sm:$0xff] %v9336_v50  ;;  %12654 = vst [vmem:[#allocation291_spill] sm:$0xff] %v9339_v12  ;;  %v9355_v28 = vsub.f32 %v6821_v1, %v1352_v31  ;;  %2110 = vadd.xlane.f32.xlu1 %v12659_v19  ;;  %v12665_v9 = vld [vmem:[#allocation121_spill] sm:$0xff]  ;;  %v9372_v1 = vpop.xlane.xlu1 %1131  ;;  %v9374_v19 = vpop.xlane.xlu0 %1128  ;;  %v9377_v22 = vsel %vm430_vm0, %v1861_v41, 0.0  ;;  %v1865_v47 = vmul.f32 %v9323_v59, %v9323_v59  ;;  %v12669_v16 = vld [vmem:[#allocation122_spill] sm:$0xff]  ;;  %v9392_v41 = vsel %vm430_vm0, %v1863_v18, 0.0 }
 0x280   : > { %12655 = vst [vmem:[#allocation292_spill] sm:$0xff] %v9342_v10  ;;  %12657 = vst [vmem:[#allocation112_spill] sm:$0xff] %v9348_v30  ;;  %v9369_v30 = vsub.f32 %v6822_v3, %v1355_v29  ;;  %v1357_v31 = vmul.f32 0.03125, %v12665_v9  ;;  %v12670_v27 = vld [vmem:[#allocation127_spill] sm:$0xff]  ;;  %v9385_v3 = vsel %vm430_vm0, %v1860_v21, 0.0  ;;  %v6823_v9 = vld [vmem:[%s6976_s18 + $0x4d0] sm:$0xff] }
 0x281   : > { %12658 = vst [vmem:[#allocation293_spill] sm:$0xff] %v9355_v28  ;;  %12661 = vst [vmem:[#allocation192_spill] sm:$0xff] %v9360_v48  ;;  %v12671_v48 = vld [vmem:[#allocation128_spill] sm:$0xff]  ;;  %v9395_v59 = vsel %vm430_vm0, %v1862_v56, 0.0  ;;  %v12679_v12 = vld [vmem:[#allocation135_spill] sm:$0xff]  ;;  %v1864_v18 = vmul.f32 %v9355_v28, %v9355_v28 }
 0x282   : > { %12662 = vst [vmem:[#allocation193_spill] sm:$0xff] %v9363_v55  ;;  %12663 = vst [vmem:[#allocation294_spill] sm:$0xff] %v9366_v39  ;;  %v1356_v55 = vmul.f32 0.03125, %v12669_v16  ;;  %v1359_v39 = vmul.f32 0.03125, %v12670_v27  ;;  %v1358_v29 = vmul.f32 0.03125, %v12671_v48  ;;  %v12677_v16 = vld [vmem:[#allocation131_spill] sm:$0xff] }
 0x283   : > { %12664 = vst [vmem:[#allocation295_spill] sm:$0xff] %v9369_v30  ;;  %12666 = vst [vmem:[#allocation121_spill] sm:$0xff] %v9372_v1  ;;  %v9388_v1 = vsub.f32 %v6823_v9, %v1354_v14  ;;  %v1360_v27 = vmul.f32 0.03125, %v12677_v16  ;;  %v1362_v21 = vmul.f32 0.03125, %v12679_v12  ;;  %v12681_v14 = vld [vmem:[#allocation195_spill] sm:$0xff]  ;;  %v9413_v12 = vsel %vm430_vm0, %v1865_v47, 0.0 }
 0x284   : > { %12667 = vst [vmem:[#allocation296_spill] sm:$0xff] %v9374_v19  ;;  %12668 = vst [vmem:[#allocation297_spill] sm:$0xff] %v9377_v22  ;;  %v12674_v19 = vld [vmem:[#allocation130_spill] sm:$0xff]  ;;  %2113 = vadd.xlane.f32.xlu0 %v12681_v14  ;;  %v12683_v56 = vld [vmem:[#allocation143_spill] sm:$0xff] }
 0x285   : > { %12672 = vst [vmem:[#allocation122_spill] sm:$0xff] %v9385_v3  ;;  %12673 = vst [vmem:[#allocation127_spill] sm:$0xff] %v9388_v1  ;;  %v1361_v10 = vmul.f32 0.03125, %v12674_v19  ;;  %v12678_v22 = vld [vmem:[#allocation134_spill] sm:$0xff]  ;;  %v12680_v3 = vld [vmem:[#allocation12_spill] sm:$0xff] }
 0x286   : > { %12675 = vst [vmem:[#allocation128_spill] sm:$0xff] %v9392_v41  ;;  %12676 = vst [vmem:[#allocation130_spill] sm:$0xff] %v9395_v59  ;;  %v1363_v48 = vmul.f32 0.03125, %v12678_v22  ;;  %2116 = vadd.xlane.f32.xlu1 %v12680_v3  ;;  %v6824_v19 = vld [vmem:[%s6976_s18 + $0x4e8] sm:$0xff]  ;;  %v1365_v59 = vmul.f32 0.03125, %v12683_v56  ;;  %v9408_v41 = vpop.xlane.xlu1 %1137  ;;  %v9410_v22 = vpop.xlane.xlu0 %1134  ;;  %v1867_v3 = vmul.f32 %v9369_v30, %v9369_v30  ;;  %v6825_v16 = vld [vmem:[%s6976_s18 + $0x4e0] sm:$0xff] }
 0x287   : > { %v9405_v9 = vsub.f32 %v6824_v19, %v1357_v31  ;;  %12684 = vst [vmem:[#allocation134_spill] sm:$0xff] %v9408_v41  ;;  %12685 = vst [vmem:[#allocation135_spill] sm:$0xff] %v9410_v22  ;;  %v9418_v14 = vsub.f32 %v6825_v16, %v1356_v55  ;;  %v6826_v31 = vld [vmem:[%s6976_s18 + $0x4f8] sm:$0xff]  ;;  %v6827_v56 = vld [vmem:[%s6976_s18 + $0x4f0] sm:$0xff]  ;;  %v1366_v30 = vmul.f32 0.03125, %v12693_v52  ;;  %v1866_v55 = vmul.f32 %v9388_v1, %v9388_v1 }
 0x288   : > { %12686 = vst [vmem:[#allocation12_spill] sm:$0xff] %v9413_v12  ;;  %v9421_v19 = vsub.f32 %v6826_v31, %v1359_v39  ;;  %v9424_v28 = vsub.f32 %v6827_v56, %v1358_v29  ;;  %v12690_v41 = vld [vmem:[#allocation144_spill] sm:$0xff]  ;;  %v6828_v50 = vld [vmem:[%s6976_s18 + $0x508] sm:$0xff]  ;;  %v12692_v12 = vld [vmem:[#allocation149_spill] sm:$0xff]  ;;  %v9446_v52 = vsel %vm430_vm0, %v1864_v18, 0.0 }
 0x289   : > { %12682 = vst [vmem:[#allocation131_spill] sm:$0xff] %v9405_v9  ;;  %12687 = vst [vmem:[#allocation195_spill] sm:$0xff] %v9418_v14  ;;  %v1364_v22 = vmul.f32 0.03125, %v12690_v41  ;;  %v9428_v47 = vsub.f32 %v6828_v50, %v1361_v10  ;;  %v1367_v13 = vmul.f32 0.03125, %v12692_v12  ;;  %v6829_v16 = vld [vmem:[%s6976_s18 + $0x500] sm:$0xff]  ;;  %v6830_v31 = vld [vmem:[%s6976_s18 + $0x518] sm:$0xff] }
 0x28a   : > { %12688 = vst [vmem:[#allocation143_spill] sm:$0xff] %v9421_v19  ;;  %12689 = vst [vmem:[#allocation298_spill] sm:$0xff] %v9424_v28  ;;  %v9435_v39 = vsub.f32 %v6829_v16, %v1360_v27  ;;  %v9438_v29 = vsub.f32 %v6830_v31, %v1363_v48  ;;  %v6831_v56 = vld [vmem:[%s6976_s18 + $0x510] sm:$0xff]  ;;  %v12698_v50 = vld [vmem:[#allocation197_spill] sm:$0xff]  ;;  %v9452_v1 = vpop.xlane.xlu1 %1143  ;;  %v9454_v48 = vpop.xlane.xlu0 %1140  ;;  %v1869_v31 = vmul.f32 %v9405_v9, %v9405_v9  ;;  %v9477_v9 = vsel %vm430_vm0, %v1866_v55, 0.0 }
 0x28b   : > { %12691 = vst [vmem:[#allocation144_spill] sm:$0xff] %v9428_v47  ;;  %v9441_v6 = vsub.f32 %v6831_v56, %v1362_v21  ;;  %v12697_v41 = vld [vmem:[#allocation196_spill] sm:$0xff]  ;;  %2119 = vadd.xlane.f32.xlu0 %v12698_v50  ;;  %v6832_v10 = vld [vmem:[%s6976_s18 + $0x528] sm:$0xff]  ;;  %12701 = vst [vmem:[#allocation197_spill] sm:$0xff] %v9452_v1  ;;  %v9457_v21 = vsel %vm430_vm0, %v1867_v3, 0.0  ;;  %v1871_v18 = vmul.f32 %v9421_v19, %v9421_v19 }
 0x28c   : > { %12694 = vst [vmem:[#allocation149_spill] sm:$0xff] %v9435_v39  ;;  %12695 = vst [vmem:[#allocation150_spill] sm:$0xff] %v9438_v29  ;;  %2122 = vadd.xlane.f32.xlu1 %v12697_v41  ;;  %v9449_v12 = vsub.f32 %v6832_v10, %v1365_v59  ;;  %v12700_v27 = vld [vmem:[#allocation152_spill] sm:$0xff]  ;;  %v6833_v56 = vld [vmem:[%s6976_s18 + $0x520] sm:$0xff]  ;;  %v1868_v59 = vmul.f32 %v9418_v14, %v9418_v14  ;;  %v1870_v50 = vmul.f32 %v9424_v28, %v9424_v28 }
 0x28d   : > { %12696 = vst [vmem:[#allocation299_spill] sm:$0xff] %v9441_v6  ;;  %v1369_v16 = vmul.f32 0.03125, %v12700_v27  ;;  %12702 = vst [vmem:[#allocation152_spill] sm:$0xff] %v9454_v48  ;;  %v9462_v41 = vsub.f32 %v6833_v56, %v1364_v22  ;;  %v6834_v10 = vld [vmem:[%s6976_s18 + $0x538] sm:$0xff]  ;;  %v6835_v3 = vld [vmem:[%s6976_s18 + $0x530] sm:$0xff]  ;;  %v1873_v22 = vmul.f32 %v9428_v47, %v9428_v47  ;;  %v1872_v28 = vmul.f32 %v9435_v39, %v9435_v39 }
 0x28e   : > { %12699 = vst [vmem:[#allocation196_spill] sm:$0xff] %v9449_v12  ;;  %12703 = vst [vmem:[#allocation300_spill] sm:$0xff] %v9457_v21  ;;  %v9471_v27 = vsub.f32 %v6834_v10, %v1367_v13  ;;  %v9474_v48 = vsub.f32 %v6835_v3, %v1366_v30  ;;  %v12708_v56 = vld [vmem:[#allocation153_spill] sm:$0xff]  ;;  %v12709_v1 = vld [vmem:[#allocation200_spill] sm:$0xff]  ;;  %v1875_v13 = vmul.f32 %v9438_v29, %v9438_v29  ;;  %v9504_v29 = vsel %vm430_vm0, %v1868_v59, 0.0 }
 0x28f   : > { %12704 = vst [vmem:[#allocation301_spill] sm:$0xff] %v9462_v41  ;;  %12707 = vst [vmem:[#allocation304_spill] sm:$0xff] %v9477_v9  ;;  %v1368_v14 = vmul.f32 0.03125, %v12708_v56  ;;  %v12710_v19 = vld [vmem:[#allocation14_spill] sm:$0xff]  ;;  %v1874_v30 = vmul.f32 %v9441_v6, %v9441_v6  ;;  %v6836_v55 = vld [vmem:[%s6976_s18 + $0x548] sm:$0xff]  ;;  %v9494_v56 = vpop.xlane.xlu1 %1149  ;;  %v1877_v39 = vmul.f32 %v9449_v12, %v9449_v12  ;;  %v9507_v6 = vsel %vm430_vm0, %v1871_v18, 0.0 }
 0x290   : > { %12705 = vst [vmem:[#allocation302_spill] sm:$0xff] %v9471_v27  ;;  %12706 = vst [vmem:[#allocation303_spill] sm:$0xff] %v9474_v48  ;;  %2128 = vadd.xlane.f32.xlu1 %v12709_v1  ;;  %2125 = vadd.xlane.f32.xlu0 %v12710_v19  ;;  %v9491_v10 = vsub.f32 %v6836_v55, %v1369_v16  ;;  %v12712_v3 = vld [vmem:[#allocation156_spill] sm:$0xff]  ;;  %v9496_v1 = vpop.xlane.xlu0 %1146  ;;  %v9499_v19 = vsel %vm430_vm0, %v1869_v31, 0.0  ;;  %v9510_v16 = vsel %vm430_vm0, %v1870_v50, 0.0  ;;  %v9516_v31 = vsel %vm430_vm0, %v1873_v22, 0.0 }
 0x291   : > { %v1371_v47 = vmul.f32 0.03125, %v12712_v3  ;;  %12713 = vst [vmem:[#allocation200_spill] sm:$0xff] %v9494_v56  ;;  %12714 = vst [vmem:[#allocation14_spill] sm:$0xff] %v9496_v1  ;;  %v1876_v55 = vmul.f32 %v9462_v41, %v9462_v41  ;;  %v12719_v3 = vld [vmem:[#allocation157_spill] sm:$0xff]  ;;  %v1879_v12 = vmul.f32 %v9471_v27, %v9471_v27  ;;  %v1878_v59 = vmul.f32 %v9474_v48, %v9474_v48  ;;  %v6837_v56 = vld [vmem:[%s6976_s18 + $0x540] sm:$0xff] }
 0x292   : > { %12711 = vst [vmem:[#allocation153_spill] sm:$0xff] %v9491_v10  ;;  %12715 = vst [vmem:[#allocation156_spill] sm:$0xff] %v9499_v19  ;;  %v1370_v1 = vmul.f32 0.03125, %v12719_v3  ;;  %v9523_v18 = vsub.f32 %v6837_v56, %v1368_v14  ;;  %v12723_v50 = vld [vmem:[#allocation17_spill] sm:$0xff]  ;;  %v9528_v41 = vsel %vm430_vm0, %v1872_v28, 0.0  ;;  %v9531_v22 = vsel %vm430_vm0, %v1875_v13, 0.0 }
 0x293   : > { %12716 = vst [vmem:[#allocation305_spill] sm:$0xff] %v9504_v29  ;;  %12717 = vst [vmem:[#allocation306_spill] sm:$0xff] %v9507_v6  ;;  %v12722_v6 = vld [vmem:[#allocation16_spill] sm:$0xff]  ;;  %v9534_v3 = vsel %vm430_vm0, %v1874_v30, 0.0  ;;  %v6838_v27 = vld [vmem:[%s6976_s18 + $0x558] sm:$0xff]  ;;  %v9540_v56 = vpop.xlane.xlu1 %1155  ;;  %v1881_v28 = vmul.f32 %v9491_v10, %v9491_v10  ;;  %v9563_v10 = vsel %vm430_vm0, %v1878_v59, 0.0 }
 0x294   : > { %12718 = vst [vmem:[#allocation307_spill] sm:$0xff] %v9510_v16  ;;  %12720 = vst [vmem:[#allocation157_spill] sm:$0xff] %v9516_v31  ;;  %2134 = vadd.xlane.f32.xlu1 %v12722_v6  ;;  %2131 = vadd.xlane.f32.xlu0 %v12723_v50  ;;  %v9537_v31 = vsub.f32 %v6838_v27, %v1371_v47  ;;  %v12728_v48 = vld [vmem:[#allocation165_spill] sm:$0xff]  ;;  %v9542_v6 = vpop.xlane.xlu0 %1152  ;;  %v9545_v50 = vsel %vm430_vm0, %v1877_v39, 0.0  ;;  %v12732_v13 = vld [vmem:[#allocation166_spill] sm:$0xff]  ;;  %v9553_v27 = vsel %vm430_vm0, %v1876_v55, 0.0 }
 0x295   : > { %12721 = vst [vmem:[#allocation308_spill] sm:$0xff] %v9523_v18  ;;  %12724 = vst [vmem:[#allocation16_spill] sm:$0xff] %v9528_v41  ;;  %v1373_v14 = vmul.f32 0.03125, %v12728_v48  ;;  %v12733_v30 = vld [vmem:[#allocation171_spill] sm:$0xff]  ;;  %v12734_v41 = vld [vmem:[#allocation172_spill] sm:$0xff]  ;;  %v9560_v39 = vsel %vm430_vm0, %v1879_v12, 0.0  ;;  %v1880_v12 = vmul.f32 %v9523_v18, %v9523_v18 }
 0x296   : > { %12725 = vst [vmem:[#allocation17_spill] sm:$0xff] %v9531_v22  ;;  %12726 = vst [vmem:[#allocation309_spill] sm:$0xff] %v9534_v3  ;;  %v1372_v22 = vmul.f32 0.03125, %v12732_v13  ;;  %v1375_v3 = vmul.f32 0.03125, %v12733_v30  ;;  %v1374_v47 = vmul.f32 0.03125, %v12734_v41  ;;  %v6839_v48 = vld [vmem:[%s6976_s18 + $0x550] sm:$0xff] }
 0x297   : > { %12727 = vst [vmem:[#allocation310_spill] sm:$0xff] %v9537_v31  ;;  %12729 = vst [vmem:[#allocation165_spill] sm:$0xff] %v9540_v56  ;;  %v9556_v56 = vsub.f32 %v6839_v48, %v1370_v1  ;;  %v12740_v13 = vld [vmem:[#allocation178_spill] sm:$0xff]  ;;  %v12742_v29 = vld [vmem:[#allocation5_spill] sm:$0xff] }
 0x298   : > { %12730 = vst [vmem:[#allocation311_spill] sm:$0xff] %v9542_v6  ;;  %12731 = vst [vmem:[#allocation312_spill] sm:$0xff] %v9545_v50  ;;  %v12737_v6 = vld [vmem:[#allocation177_spill] sm:$0xff]  ;;  %v1376_v30 = vmul.f32 0.03125, %v12740_v13  ;;  %v12741_v50 = vld [vmem:[#allocation4_spill] sm:$0xff]  ;;  %v1378_v55 = vmul.f32 0.03125, %v12742_v29  ;;  %2137 = vadd.xlane.f32.xlu0 %v8438_v51  ;;  %v1883_v51 = vmul.f32 %v9537_v31, %v9537_v31 }
 0x299   : > { %12735 = vst [vmem:[#allocation166_spill] sm:$0xff] %v9553_v27  ;;  %12736 = vst [vmem:[#allocation171_spill] sm:$0xff] %v9556_v56  ;;  %v1377_v16 = vmul.f32 0.03125, %v12737_v6  ;;  %v1379_v41 = vmul.f32 0.03125, %v12741_v50  ;;  %v12743_v27 = vld [vmem:[#allocation113_spill] sm:$0xff]  ;;  %v6840_v1 = vld [vmem:[%s6976_s18 + $0x568] sm:$0xff]  ;;  %v9578_v50 = vpop.xlane.xlu0 %1158 }
 0x29a   : > { %12738 = vst [vmem:[#allocation172_spill] sm:$0xff] %v9560_v39  ;;  %12739 = vst [vmem:[#allocation177_spill] sm:$0xff] %v9563_v10  ;;  %2140 = vadd.xlane.f32.xlu1 %v12743_v27  ;;  %v9573_v6 = vsub.f32 %v6840_v1, %v1373_v14  ;;  %v12745_v59 = vld [vmem:[#allocation9_spill] sm:$0xff]  ;;  %v9576_v10 = vpop.xlane.xlu1 %1161  ;;  %v9581_v29 = vsel %vm430_vm0, %v1881_v28, 0.0  ;;  %v6841_v27 = vld [vmem:[%s6976_s18 + $0x560] sm:$0xff] }
 0x29b   : > { %v1381_v48 = vmul.f32 0.03125, %v12745_v59  ;;  %12746 = vst [vmem:[#allocation4_spill] sm:$0xff] %v9576_v10  ;;  %12747 = vst [vmem:[#allocation5_spill] sm:$0xff] %v9578_v50  ;;  %v9586_v13 = vsub.f32 %v6841_v27, %v1372_v22  ;;  %v6842_v14 = vld [vmem:[%s6976_s18 + $0x578] sm:$0xff]  ;;  %v6843_v59 = vld [vmem:[%s6976_s18 + $0x570] sm:$0xff]  ;;  %v1882_v22 = vmul.f32 %v9556_v56, %v9556_v56 }
 0x29c   : > { %12744 = vst [vmem:[#allocation178_spill] sm:$0xff] %v9573_v6  ;;  %12748 = vst [vmem:[#allocation113_spill] sm:$0xff] %v9581_v29  ;;  %v9589_v1 = vsub.f32 %v6842_v14, %v1375_v3  ;;  %v9592_v18 = vsub.f32 %v6843_v59, %v1374_v47  ;;  %v12752_v10 = vld [vmem:[#allocation187_spill] sm:$0xff]  ;;  %v6845_v27 = vld [vmem:[%s6976_s18 + $0x580] sm:$0xff]  ;;  %2143 = vadd.xlane.f32.xlu0 %v8469_v8 }
 0x29d   : > { %12749 = vst [vmem:[#allocation9_spill] sm:$0xff] %v9586_v13  ;;  %v1380_v50 = vmul.f32 0.03125, %v12752_v10  ;;  %v6844_v39 = vld [vmem:[%s6976_s18 + $0x588] sm:$0xff]  ;;  %v9603_v3 = vsub.f32 %v6845_v27, %v1376_v30  ;;  %v6846_v14 = vld [vmem:[%s6976_s18 + $0x598] sm:$0xff]  ;;  %v6847_v59 = vld [vmem:[%s6976_s18 + $0x590] sm:$0xff] }
 0x29e   : > { %12750 = vst [vmem:[#allocation313_spill] sm:$0xff] %v9589_v1  ;;  %12751 = vst [vmem:[#allocation314_spill] sm:$0xff] %v9592_v18  ;;  %v9596_v28 = vsub.f32 %v6844_v39, %v1377_v16  ;;  %v12754_v29 = vld [vmem:[#allocation11_spill] sm:$0xff]  ;;  %v9606_v47 = vsub.f32 %v6846_v14, %v1379_v41  ;;  %v9609_v21 = vsub.f32 %v6847_v59, %v1378_v55  ;;  %2146 = vadd.xlane.f32.xlu1 %v8449_v25  ;;  %v12760_v39 = vld [vmem:[#allocation13_spill] sm:$0xff]  ;;  %v9622_v41 = vpop.xlane.xlu0 %1164 }
 0x29f   : > { %v1383_v19 = vmul.f32 0.03125, %v12754_v29  ;;  %v12755_v9 = vld [vmem:[#allocation191_spill] sm:$0xff]  ;;  %12756 = vst [vmem:[#allocation11_spill] sm:$0xff] %v9603_v3  ;;  %v1385_v30 = vmul.f32 0.03125, %v12760_v39  ;;  %v9620_v29 = vpop.xlane.xlu1 %1167  ;;  %12762 = vst [vmem:[#allocation317_spill] sm:$0xff] %v9622_v41  ;;  %v9625_v55 = vsel %vm430_vm0, %v1883_v51, 0.0  ;;  %v1885_v25 = vmul.f32 %v9573_v6, %v9573_v6 }
 0x2a0   : > { %12753 = vst [vmem:[#allocation187_spill] sm:$0xff] %v9596_v28  ;;  %v1382_v31 = vmul.f32 0.03125, %v12755_v9  ;;  %12757 = vst [vmem:[#allocation191_spill] sm:$0xff] %v9606_v47  ;;  %v9614_v9 = vsel %vm430_vm0, %v1880_v12, 0.0  ;;  %v6848_v10 = vld [vmem:[%s6976_s18 + $0x5a8] sm:$0xff]  ;;  %v6849_v8 = vld [vmem:[%s6976_s18 + $0x5a0] sm:$0xff]  ;;  %v1884_v12 = vmul.f32 %v9586_v13, %v9586_v13  ;;  %v1886_v14 = vmul.f32 %v9592_v18, %v9592_v18  ;;  %2149 = vadd.xlane.f32.xlu0 %v8496_v60 }
 0x2a1   : > { %12758 = vst [vmem:[#allocation315_spill] sm:$0xff] %v9609_v21  ;;  %v9617_v16 = vsub.f32 %v6848_v10, %v1381_v48  ;;  %12761 = vst [vmem:[#allocation13_spill] sm:$0xff] %v9620_v29  ;;  %v9630_v27 = vsub.f32 %v6849_v8, %v1380_v50  ;;  %v1887_v48 = vmul.f32 %v9589_v1, %v9589_v1  ;;  %v6850_v59 = vld [vmem:[%s6976_s18 + $0x5b8] sm:$0xff]  ;;  %v6851_v51 = vld [vmem:[%s6976_s18 + $0x5b0] sm:$0xff]  ;;  %v9645_v6 = vsel %vm430_vm0, %v1882_v22, 0.0 }
 0x2a2   : > { %v9639_v10 = vsub.f32 %v6850_v59, %v1383_v19  ;;  %v9642_v39 = vsub.f32 %v6851_v51, %v1382_v31  ;;  %v1889_v50 = vmul.f32 %v9596_v28, %v9596_v28  ;;  %v12766_v8 = vld [vmem:[#allocation199_spill] sm:$0xff]  ;;  %2152 = vadd.xlane.f32.xlu1 %v8491_v54  ;;  %v1888_v18 = vmul.f32 %v9603_v3, %v9603_v3  ;;  %v9664_v54 = vpop.xlane.xlu0 %1170  ;;  %v6853_v56 = vld [vmem:[%s6976_s18 + $0x5c0] sm:$0xff] }
 0x2a3   : > { %12759 = vst [vmem:[#allocation316_spill] sm:$0xff] %v9617_v16  ;;  %12763 = vst [vmem:[#allocation318_spill] sm:$0xff] %v9630_v27  ;;  %v1384_v13 = vmul.f32 0.03125, %v12766_v8  ;;  %v1891_v19 = vmul.f32 %v9606_v47, %v9606_v47  ;;  %v1890_v31 = vmul.f32 %v9609_v21, %v9609_v21  ;;  %v6852_v22 = vld [vmem:[%s6976_s18 + $0x5c8] sm:$0xff]  ;;  %v9662_v8 = vpop.xlane.xlu1 %1173  ;;  %v9667_v60 = vsel %vm430_vm0, %v1885_v25, 0.0 }
 0x2a4   : > { %12764 = vst [vmem:[#allocation319_spill] sm:$0xff] %v9639_v10  ;;  %12765 = vst [vmem:[#allocation320_spill] sm:$0xff] %v9642_v39  ;;  %v9659_v59 = vsub.f32 %v6852_v22, %v1385_v30  ;;  %v12768_v51 = vld [vmem:[#allocation19_spill] sm:$0xff]  ;;  %v1893_v3 = vmul.f32 %v9617_v16, %v9617_v16  ;;  %v9672_v47 = vsel %vm430_vm0, %v1884_v12, 0.0  ;;  %v9675_v21 = vsel %vm430_vm0, %v1887_v48, 0.0  ;;  %2155 = vadd.xlane.f32.xlu0 %v8502_v46 }
 0x2a5   : > { %v1387_v28 = vmul.f32 0.03125, %v12768_v51  ;;  %12769 = vst [vmem:[#allocation19_spill] sm:$0xff] %v9662_v8  ;;  %12770 = vst [vmem:[#allocation321_spill] sm:$0xff] %v9664_v54  ;;  %v9678_v30 = vsel %vm430_vm0, %v1886_v14, 0.0  ;;  %v1892_v22 = vmul.f32 %v9630_v27, %v9630_v27  ;;  %v12771_v51 = vld [vmem:[#allocation20_spill] sm:$0xff]  ;;  %v9684_v25 = vsel %vm430_vm0, %v1889_v50, 0.0 }
 0x2a6   : > { %12767 = vst [vmem:[#allocation199_spill] sm:$0xff] %v9659_v59  ;;  %v1386_v1 = vmul.f32 0.03125, %v12771_v51  ;;  %v1895_v16 = vmul.f32 %v9639_v10, %v9639_v10  ;;  %v1894_v12 = vmul.f32 %v9642_v39, %v9642_v39  ;;  %v9691_v48 = vsub.f32 %v6853_v56, %v1384_v13  ;;  %2158 = vadd.xlane.f32.xlu1 %v8499_v58  ;;  %v6854_v10 = vld [vmem:[%s6976_s18 + $0x5d8] sm:$0xff]  ;;  %v9710_v58 = vpop.xlane.xlu0 %1176  ;;  %v12779_v8 = vld [vmem:[#allocation208_spill] sm:$0xff]  ;;  %v12786_v29 = vld [vmem:[#allocation35_spill] sm:$0xff] }
 0x2a7   : > { %v9696_v14 = vsel %vm430_vm0, %v1888_v18, 0.0  ;;  %v9699_v50 = vsel %vm430_vm0, %v1891_v19, 0.0  ;;  %v9702_v51 = vsel %vm430_vm0, %v1890_v31, 0.0  ;;  %v9705_v27 = vsub.f32 %v6854_v10, %v1387_v28  ;;  %v9708_v13 = vpop.xlane.xlu1 %1179  ;;  %12775 = vst [vmem:[#allocation324_spill] sm:$0xff] %v9710_v58  ;;  %v12777_v19 = vld [vmem:[#allocation25_spill] sm:$0xff]  ;;  %v12778_v31 = vld [vmem:[#allocation27_spill] sm:$0xff] }
 0x2a8   : > { %12772 = vst [vmem:[#allocation20_spill] sm:$0xff] %v9691_v48  ;;  %v1389_v56 = vmul.f32 0.03125, %v8444_v63  ;;  %12774 = vst [vmem:[#allocation323_spill] sm:$0xff] %v9708_v13  ;;  %v9713_v46 = vsel %vm430_vm0, %v1893_v3, 0.0  ;;  %v1897_v18 = vmul.f32 %v9659_v59, %v9659_v59  ;;  %v1388_v39 = vmul.f32 0.03125, %v12777_v19  ;;  %v6855_v63 = vld [vmem:[%s6976_s18 + $0x5d0] sm:$0xff] }
 0x2a9   : > { %12773 = vst [vmem:[#allocation322_spill] sm:$0xff] %v9705_v27  ;;  %12776 = vst [vmem:[#allocation325_spill] sm:$0xff] %v9713_v46  ;;  %v1391_v54 = vmul.f32 0.03125, %v12778_v31  ;;  %v1390_v28 = vmul.f32 0.03125, %v12779_v8  ;;  %v9721_v10 = vsel %vm430_vm0, %v1892_v22, 0.0  ;;  %v9724_v13 = vsub.f32 %v6855_v63, %v1386_v1  ;;  %v12782_v58 = vld [vmem:[#allocation29_spill] sm:$0xff] }
 0x2aa   : > { %12780 = vst [vmem:[#allocation25_spill] sm:$0xff] %v9721_v10  ;;  %v1393_v41 = vmul.f32 0.03125, %v12782_v58  ;;  %v9728_v3 = vsel %vm430_vm0, %v1895_v16, 0.0  ;;  %v9731_v59 = vsel %vm430_vm0, %v1894_v12, 0.0  ;;  %v12785_v19 = vld [vmem:[#allocation214_spill] sm:$0xff]  ;;  %v1395_v8 = vmul.f32 0.03125, %v12786_v29  ;;  %v9746_v29 = vpop.xlane.xlu0 %1182 }
 0x2ab   : > { %12781 = vst [vmem:[#allocation27_spill] sm:$0xff] %v9724_v13  ;;  %12783 = vst [vmem:[#allocation208_spill] sm:$0xff] %v9728_v3  ;;  %v1392_v31 = vmul.f32 0.03125, %v12785_v19  ;;  %v12787_v46 = vld [vmem:[#allocation36_spill] sm:$0xff]  ;;  %v12789_v1 = vld [vmem:[#allocation210_spill] sm:$0xff]  ;;  %v1896_v16 = vmul.f32 %v9691_v48, %v9691_v48  ;;  %v1397_v12 = vmul.f32 0.03125, %v8612_v57 }
 0x2ac   : > { %12784 = vst [vmem:[#allocation29_spill] sm:$0xff] %v9731_v59  ;;  %v1394_v22 = vmul.f32 0.03125, %v12787_v46  ;;  %v12788_v10 = vld [vmem:[#allocation28_spill] sm:$0xff]  ;;  %2161 = vadd.xlane.f32.xlu0 %v12789_v1  ;;  %v6856_v58 = vld [vmem:[%s6976_s18 + $0x5e8] sm:$0xff]  ;;  %v9744_v59 = vpop.xlane.xlu1 %1185  ;;  %12792 = vst [vmem:[#allocation36_spill] sm:$0xff] %v9746_v29  ;;  %v9749_v46 = vsel %vm430_vm0, %v1897_v18, 0.0 }
 0x2ad   : > { %2164 = vadd.xlane.f32.xlu1 %v12788_v10  ;;  %v9741_v63 = vsub.f32 %v6856_v58, %v1389_v56  ;;  %12791 = vst [vmem:[#allocation35_spill] sm:$0xff] %v9744_v59  ;;  %12793 = vst [vmem:[#allocation28_spill] sm:$0xff] %v9749_v46  ;;  %v1899_v10 = vmul.f32 %v9705_v27, %v9705_v27  ;;  %v6857_v19 = vld [vmem:[%s6976_s18 + $0x5e0] sm:$0xff]  ;;  %v6858_v56 = vld [vmem:[%s6976_s18 + $0x5f8] sm:$0xff]  ;;  %v1396_v29 = vmul.f32 0.03125, %v8614_v37  ;;  %v1399_v46 = vmul.f32 0.03125, %v8654_v42 }
 0x2ae   : > { %v9754_v1 = vsub.f32 %v6857_v19, %v1388_v39  ;;  %v9757_v58 = vsub.f32 %v6858_v56, %v1391_v54  ;;  %v6859_v57 = vld [vmem:[%s6976_s18 + $0x5f0] sm:$0xff]  ;;  %v6860_v59 = vld [vmem:[%s6976_s18 + $0x608] sm:$0xff]  ;;  %v1398_v27 = vmul.f32 0.03125, %v8656_v7  ;;  %v1898_v39 = vmul.f32 %v9724_v13, %v9724_v13  ;;  %v6861_v19 = vld [vmem:[%s6976_s18 + $0x600] sm:$0xff] }
 0x2af   : > { %12790 = vst [vmem:[#allocation214_spill] sm:$0xff] %v9741_v63  ;;  %v9760_v48 = vsub.f32 %v6859_v57, %v1390_v28  ;;  %v9764_v18 = vsub.f32 %v6860_v59, %v1393_v41  ;;  %v9771_v54 = vsub.f32 %v6861_v19, %v1392_v31  ;;  %v6862_v56 = vld [vmem:[%s6976_s18 + $0x618] sm:$0xff]  ;;  %v6863_v57 = vld [vmem:[%s6976_s18 + $0x610] sm:$0xff]  ;;  %v12801_v37 = vld [vmem:[#allocation211_spill] sm:$0xff]  ;;  %v9782_v42 = vsel %vm430_vm0, %v1896_v16, 0.0 }
 0x2b0   : > { %12794 = vst [vmem:[#allocation210_spill] sm:$0xff] %v9754_v1  ;;  %12795 = vst [vmem:[#allocation326_spill] sm:$0xff] %v9757_v58  ;;  %v9774_v28 = vsub.f32 %v6862_v56, %v1395_v8  ;;  %v9777_v3 = vsub.f32 %v6863_v57, %v1394_v22  ;;  %v12802_v41 = vld [vmem:[#allocation212_spill] sm:$0xff]  ;;  %v6864_v7 = vld [vmem:[%s6976_s18 + $0x628] sm:$0xff]  ;;  %v1401_v31 = vmul.f32 0.03125, %v8700_v17  ;;  %v1400_v8 = vmul.f32 0.03125, %v8702_v32  ;;  %v9789_v19 = vpop.xlane.xlu1 %1191  ;;  %v9791_v22 = vpop.xlane.xlu0 %1188 }
 0x2b1   : > { %12796 = vst [vmem:[#allocation327_spill] sm:$0xff] %v9760_v48  ;;  %12797 = vst [vmem:[#allocation328_spill] sm:$0xff] %v9764_v18  ;;  %2170 = vadd.xlane.f32.xlu1 %v12801_v37  ;;  %2167 = vadd.xlane.f32.xlu0 %v12802_v41  ;;  %v9785_v59 = vsub.f32 %v6864_v7, %v1397_v12  ;;  %v1901_v56 = vmul.f32 %v9741_v63, %v9741_v63  ;;  %v6865_v57 = vld [vmem:[%s6976_s18 + $0x620] sm:$0xff]  ;;  %v6866_v32 = vld [vmem:[%s6976_s18 + $0x638] sm:$0xff] }
 0x2b2   : > { %12798 = vst [vmem:[#allocation329_spill] sm:$0xff] %v9771_v54  ;;  %12799 = vst [vmem:[#allocation330_spill] sm:$0xff] %v9774_v28  ;;  %v9796_v37 = vsub.f32 %v6865_v57, %v1396_v29  ;;  %v1900_v16 = vmul.f32 %v9754_v1, %v9754_v1  ;;  %v1903_v12 = vmul.f32 %v9757_v58, %v9757_v58  ;;  %v6867_v7 = vld [vmem:[%s6976_s18 + $0x630] sm:$0xff]  ;;  %v9811_v29 = vsel %vm430_vm0, %v1899_v10, 0.0  ;;  %v12809_v1 = vld [vmem:[#allocation215_spill] sm:$0xff] }
 0x2b3   : > { %12800 = vst [vmem:[#allocation331_spill] sm:$0xff] %v9777_v3  ;;  %12803 = vst [vmem:[#allocation211_spill] sm:$0xff] %v9785_v59  ;;  %v1902_v17 = vmul.f32 %v9760_v48, %v9760_v48  ;;  %v9805_v41 = vsub.f32 %v6866_v32, %v1399_v46  ;;  %v9808_v13 = vsub.f32 %v6867_v7, %v1398_v27  ;;  %v12810_v63 = vld [vmem:[#allocation30_spill] sm:$0xff]  ;;  %v9818_v58 = vsel %vm430_vm0, %v1898_v39, 0.0  ;;  %v6868_v32 = vld [vmem:[%s6976_s18 + $0x648] sm:$0xff] }
 0x2b4   : > { %12804 = vst [vmem:[#allocation212_spill] sm:$0xff] %v9789_v19  ;;  %12805 = vst [vmem:[#allocation332_spill] sm:$0xff] %v9791_v22  ;;  %v1905_v57 = vmul.f32 %v9764_v18, %v9764_v18  ;;  %v1904_v46 = vmul.f32 %v9771_v54, %v9771_v54  ;;  %v1907_v27 = vmul.f32 %v9774_v28, %v9774_v28  ;;  %v6869_v18 = vld [vmem:[%s6976_s18 + $0x640] sm:$0xff]  ;;  %v9837_v39 = vsel %vm430_vm0, %v1901_v56, 0.0 }
 0x2b5   : > { %12806 = vst [vmem:[#allocation333_spill] sm:$0xff] %v9796_v37  ;;  %12807 = vst [vmem:[#allocation334_spill] sm:$0xff] %v9805_v41  ;;  %2176 = vadd.xlane.f32.xlu1 %v12809_v1  ;;  %2173 = vadd.xlane.f32.xlu0 %v12810_v63  ;;  %v1906_v10 = vmul.f32 %v9777_v3, %v9777_v3  ;;  %v9827_v7 = vsub.f32 %v6868_v32, %v1401_v31  ;;  %v9832_v1 = vpop.xlane.xlu1 %1197  ;;  %v9834_v63 = vpop.xlane.xlu0 %1194  ;;  %v9842_v28 = vsel %vm430_vm0, %v1900_v16, 0.0 }
 0x2b6   : > { %12808 = vst [vmem:[#allocation335_spill] sm:$0xff] %v9808_v13  ;;  %v9830_v48 = vsub.f32 %v6869_v18, %v1400_v8  ;;  %12813 = vst [vmem:[#allocation336_spill] sm:$0xff] %v9832_v1  ;;  %v1909_v54 = vmul.f32 %v9785_v59, %v9785_v59  ;;  %v9845_v3 = vsel %vm430_vm0, %v1903_v12, 0.0  ;;  %v9848_v31 = vsel %vm430_vm0, %v1902_v17, 0.0  ;;  %v12815_v59 = vld [vmem:[#allocation32_spill] sm:$0xff]  ;;  %v12816_v17 = vld [vmem:[#allocation33_spill] sm:$0xff] }
 0x2b7   : > { %12811 = vst [vmem:[#allocation215_spill] sm:$0xff] %v9827_v7  ;;  %12814 = vst [vmem:[#allocation337_spill] sm:$0xff] %v9834_v63  ;;  %v1908_v18 = vmul.f32 %v9796_v37, %v9796_v37  ;;  %v1403_v8 = vmul.f32 0.03125, %v8736_v26  ;;  %v9854_v56 = vsel %vm430_vm0, %v1905_v57, 0.0  ;;  %v1911_v32 = vmul.f32 %v9805_v41, %v9805_v41 }
 0x2b8   : > { %12812 = vst [vmem:[#allocation30_spill] sm:$0xff] %v9830_v48  ;;  %v1910_v16 = vmul.f32 %v9808_v13, %v9808_v13  ;;  %v1402_v12 = vmul.f32 0.03125, %v8738_v62  ;;  %v9864_v37 = vsel %vm430_vm0, %v1904_v46, 0.0  ;;  %v9867_v26 = vsel %vm430_vm0, %v1907_v27, 0.0 }
 0x2b9   : > { %2182 = vadd.xlane.f32.xlu1 %v12815_v59  ;;  %2179 = vadd.xlane.f32.xlu0 %v12816_v17  ;;  %v9870_v57 = vsel %vm430_vm0, %v1906_v10, 0.0  ;;  %v1405_v41 = vmul.f32 0.03125, %v8780_v0  ;;  %v1973_v13 = vpop.xlane.xlu1 %1972  ;;  %v1970_v63 = vpop.xlane.xlu0 %1969  ;;  %v9874_v62 = vsel %vm430_vm0, %v1909_v54, 0.0  ;;  %v1913_v59 = vmul.f32 %v9827_v7, %v9827_v7  ;;  %v6870_v0 = vld [vmem:[%s6976_s18 + $0x658] sm:$0xff] }
 0x2ba   : > { %v1912_v46 = vmul.f32 %v9830_v48, %v9830_v48  ;;  %v1404_v27 = vmul.f32 0.03125, %v8782_v49  ;;  %v2737_v17 = vmul.f32 0.03125, %v1973_v13  ;;  %v2736_v10 = vmul.f32 0.03125, %v1970_v63  ;;  %v6871_v48 = vld [vmem:[%s6976_s18 + $0x650] sm:$0xff] }
 0x2bb   : > { %v9882_v1 = vsel %vm430_vm0, %v1908_v18, 0.0  ;;  %v9885_v22 = vsub.f32 %v6870_v0, %v1403_v8  ;;  %v1407_v54 = vmul.f32 0.03125, %v8822_v40  ;;  %v9889_v19 = vsel %vm430_vm0, %v1911_v32, 0.0  ;;  %v12822_v8 = vld [vmem:[#allocation220_spill] sm:$0xff]  ;;  %v6872_v40 = vld [vmem:[%s6976_s18 + $0x668] sm:$0xff] }
 0x2bc   : > { %12817 = vst [vmem:[#allocation32_spill] sm:$0xff] %v9882_v1  ;;  %v9892_v7 = vsel %vm430_vm0, %v1910_v16, 0.0  ;;  %v9895_v49 = vsub.f32 %v6871_v48, %v1402_v12  ;;  %v1406_v13 = vmul.f32 0.03125, %v8824_v23  ;;  %v2993_v63 = vadd.f32 1e-06, %v2737_v17  ;;  %v12821_v1 = vld [vmem:[#allocation37_spill] sm:$0xff] }
 0x2bd   : > { %12818 = vst [vmem:[#allocation33_spill] sm:$0xff] %v9885_v22  ;;  %12819 = vst [vmem:[#allocation338_spill] sm:$0xff] %v9892_v7  ;;  %v2992_v18 = vadd.f32 1e-06, %v2736_v10  ;;  %2188 = vadd.xlane.f32.xlu1 %v12821_v1  ;;  %2185 = vadd.xlane.f32.xlu0 %v12822_v8  ;;  %v9901_v0 = vsub.f32 %v6872_v40, %v1405_v41  ;;  %v1409_v32 = vmul.f32 0.03125, %v8868_v53  ;;  %v1979_v16 = vpop.xlane.xlu1 %1978  ;;  %v1976_v7 = vpop.xlane.xlu0 %1975  ;;  %v9905_v48 = vsel %vm430_vm0, %v1913_v59, 0.0 }
 0x2be   : > { %12820 = vst [vmem:[#allocation339_spill] sm:$0xff] %v9895_v49  ;;  %12824 = vst [vmem:[#allocation220_spill] sm:$0xff] %v9905_v48  ;;  %v9908_v23 = vsel %vm430_vm0, %v1912_v46, 0.0  ;;  %v6873_v12 = vld [vmem:[%s6976_s18 + $0x660] sm:$0xff]  ;;  %6156 = vrsqrt.f32 %v2993_v63  ;;  %v2739_v1 = vmul.f32 0.03125, %v1979_v16  ;;  %v2738_v10 = vmul.f32 0.03125, %v1976_v7 }
 0x2bf   : > { %12823 = vst [vmem:[#allocation37_spill] sm:$0xff] %v9901_v0  ;;  %v9911_v17 = vsub.f32 %v6873_v12, %v1404_v27  ;;  %v6874_v41 = vld [vmem:[%s6976_s18 + $0x678] sm:$0xff]  ;;  %v1408_v53 = vmul.f32 0.03125, %v8870_v2  ;;  %6158 = vrsqrt.f32 %v2992_v18  ;;  %v1915_v59 = vmul.f32 %v9885_v22, %v9885_v22  ;;  %v6875_v40 = vld [vmem:[%s6976_s18 + $0x670] sm:$0xff] }
 0x2c0   : > { %v9914_v8 = vsub.f32 %v6874_v41, %v1407_v54  ;;  %v9920_v48 = vsub.f32 %v6875_v40, %v1406_v13  ;;  %v2995_v46 = vadd.f32 1e-06, %v2739_v1  ;;  %v2994_v27 = vadd.f32 1e-06, %v2738_v10  ;;  %v12828_v12 = vld [vmem:[#allocation41_spill] sm:$0xff]  ;;  %v6876_v54 = vld [vmem:[%s6976_s18 + $0x688] sm:$0xff] }
 0x2c1   : > { %12825 = vst [vmem:[#allocation340_spill] sm:$0xff] %v9911_v17  ;;  %2194 = vadd.xlane.f32.xlu1 %v12828_v12  ;;  %v12829_v63 = vld [vmem:[#allocation225_spill] sm:$0xff]  ;;  %v1914_v7 = vmul.f32 %v9895_v49, %v9895_v49  ;;  %v9927_v16 = vsub.f32 %v6876_v54, %v1409_v32  ;;  %v1411_v2 = vmul.f32 0.03125, %v8904_v34  ;;  %v1410_v18 = vmul.f32 0.03125, %v8906_v15  ;;  %v1985_v41 = vpop.xlane.xlu1 %1984  ;;  %v1982_v13 = vpop.xlane.xlu0 %1981  ;;  %v12832_v49 = vld [vmem:[#allocation43_spill] sm:$0xff] }
 0x2c2   : > { %12826 = vst [vmem:[#allocation341_spill] sm:$0xff] %v9914_v8  ;;  %12827 = vst [vmem:[#allocation342_spill] sm:$0xff] %v9920_v48  ;;  %2191 = vadd.xlane.f32.xlu0 %v12829_v63  ;;  %v1917_v1 = vmul.f32 %v9901_v0, %v9901_v0  ;;  %6160 = vrsqrt.f32 %v2995_v46  ;;  %v2741_v10 = vmul.f32 0.03125, %v1985_v41  ;;  %v2740_v40 = vmul.f32 0.03125, %v1982_v13  ;;  %v6877_v63 = vld [vmem:[%s6976_s18 + $0x680] sm:$0xff]  ;;  %v6878_v13 = vld [vmem:[%s6976_s18 + $0x698] sm:$0xff] }
 0x2c3   : > { %12830 = vst [vmem:[#allocation41_spill] sm:$0xff] %v9927_v16  ;;  %v1916_v12 = vmul.f32 %v9911_v17, %v9911_v17  ;;  %v9936_v32 = vsub.f32 %v6877_v63, %v1408_v53  ;;  %6162 = vrsqrt.f32 %v2994_v27  ;;  %v9939_v34 = vsel %vm430_vm0, %v1915_v59, 0.0  ;;  %v12833_v46 = vld [vmem:[#allocation226_spill] sm:$0xff]  ;;  %v6879_v59 = vld [vmem:[%s6976_s18 + $0x690] sm:$0xff] }
 0x2c4   : > { %v1919_v15 = vmul.f32 %v9914_v8, %v9914_v8  ;;  %v2997_v54 = vadd.f32 1e-06, %v2741_v10  ;;  %v2996_v0 = vadd.f32 1e-06, %v2740_v40  ;;  %v9946_v41 = vsel %vm430_vm0, %v1914_v7, 0.0 }
 0x2c5   : > { %12831 = vst [vmem:[#allocation225_spill] sm:$0xff] %v9936_v32  ;;  %2200 = vadd.xlane.f32.xlu1 %v12832_v49  ;;  %v1918_v53 = vmul.f32 %v9920_v48, %v9920_v48  ;;  %v9951_v27 = vsub.f32 %v6878_v13, %v1411_v2  ;;  %v9954_v63 = vsub.f32 %v6879_v59, %v1410_v18  ;;  %v1991_v17 = vpop.xlane.xlu1 %1990  ;;  %v1988_v8 = vpop.xlane.xlu0 %1987  ;;  %v9957_v10 = vsel %vm430_vm0, %v1917_v1, 0.0  ;;  %v9968_v18 = vld [vmem:[%s11900_s1] ss:$0 sm:$0xff]  ;;  %v12839_v59 = vld [vmem:[#allocation227_spill] sm:$0xff] }
 0x2c6   : > { %2197 = vadd.xlane.f32.xlu0 %v12833_v46  ;;  %12836 = vst [vmem:[#allocation343_spill] sm:$0xff] %v9957_v10  ;;  %v1921_v49 = vmul.f32 %v9927_v16, %v9927_v16  ;;  %6164 = vrsqrt.f32 %v2997_v54  ;;  %v2743_v7 = vmul.f32 0.03125, %v1991_v17  ;;  %v2742_v40 = vmul.f32 0.03125, %v1988_v8 }
 0x2c7   : > { %12834 = vst [vmem:[#allocation43_spill] sm:$0xff] %v9951_v27  ;;  %12835 = vst [vmem:[#allocation226_spill] sm:$0xff] %v9954_v63  ;;  %v9962_v46 = vsel %vm430_vm0, %v1916_v12, 0.0  ;;  %v1413_v2 = vmul.f32 0.03125, %v8948_v44  ;;  %6166 = vrsqrt.f32 %v2996_v0  ;;  %v9971_v1 = vsel %vm430_vm0, %v1919_v15, 0.0  ;;  %v12840_v44 = vld [vmem:[#allocation228_spill] sm:$0xff] }
 0x2c8   : > { %12837 = vst [vmem:[#allocation344_spill] sm:$0xff] %v9962_v46  ;;  %12838 = vst [vmem:[#allocation345_spill] sm:$0xff] %v9971_v1  ;;  %v1920_v13 = vmul.f32 %v9936_v32, %v9936_v32  ;;  %v6157_v54 = vpop.eup %6156  ;;  %v1412_v17 = vmul.f32 0.03125, %v8950_v20  ;;  %v2999_v8 = vadd.f32 1e-06, %v2743_v7  ;;  %v9979_v16 = vsel %vm430_vm0, %v1918_v53, 0.0 }
 0x2c9   : > { %v2998_v12 = vadd.f32 1e-06, %v2742_v40  ;;  %2206 = vadd.xlane.f32.xlu1 %v12839_v59  ;;  %12841 = vst [vmem:[#allocation227_spill] sm:$0xff] %v9979_v16  ;;  %v6159_v0 = vpop.eup %6158  ;;  %v12842_v15 = vld [vmem:[#allocation109_spill] sm:$0xff]  ;;  %v1997_v22 = vpop.xlane.xlu1 %1996  ;;  %v9983_v32 = vsel %vm430_vm0, %v1921_v49, 0.0  ;;  %v1923_v20 = vmul.f32 %v9951_v27, %v9951_v27  ;;  %v1922_v7 = vmul.f32 %v9954_v63, %v9954_v63  ;;  %v12844_v40 = vld [vmem:[#allocation103_spill] sm:$0xff] }
 0x2ca   : > { %2203 = vadd.xlane.f32.xlu0 %v12840_v44  ;;  %v3505_v48 = vmul.f32 %v6157_v54, %v12842_v15  ;;  %v1994_v1 = vpop.xlane.xlu0 %1993  ;;  %12843 = vst [vmem:[#allocation228_spill] sm:$0xff] %v9983_v32  ;;  %v9992_v53 = vld [vmem:[%s11901_s2] ss:$0 sm:$0xff]  ;;  %v3504_v59 = vmul.f32 %v6159_v0, %v12844_v40  ;;  %6168 = vrsqrt.f32 %v2999_v8  ;;  %v2745_v54 = vmul.f32 0.03125, %v1997_v22  ;;  %v6880_v15 = vld [vmem:[%s6976_s18 + $0x6a8] sm:$0xff]  ;;  %v12848_v22 = vld [vmem:[#allocation44_spill] sm:$0xff] }
 0x2cb   : > { %v2744_v44 = vmul.f32 0.03125, %v1994_v1  ;;  %v9997_v49 = vsub.f32 %v6880_v15, %v1413_v2  ;;  %6170 = vrsqrt.f32 %v2998_v12  ;;  %v10001_v27 = vsel %vm430_vm0, %v1920_v13, 0.0  ;;  %v6881_v16 = vld [vmem:[%s6976_s18 + $0x6a0] sm:$0xff] }
 0x2cc   : > { %v3768_v32 = vmul.f32 %v9968_v18, %v3505_v48  ;;  %12846 = vst [vmem:[#allocation103_spill] sm:$0xff] %v10001_v27  ;;  %v6161_v63 = vpop.eup %6160  ;;  %v10004_v46 = vsub.f32 %v6881_v16, %v1412_v17  ;;  %v3767_v10 = vmul.f32 %v9968_v18, %v3504_v59  ;;  %v3001_v0 = vadd.f32 1e-06, %v2745_v54  ;;  %v12849_v1 = vld [vmem:[#allocation230_spill] sm:$0xff] }
 0x2cd   : > { %12845 = vst [vmem:[#allocation109_spill] sm:$0xff] %v9997_v49  ;;  %v3000_v8 = vadd.f32 1e-06, %v2744_v44  ;;  %2212 = vadd.xlane.f32.xlu1 %v12848_v22  ;;  %v6163_v2 = vpop.eup %6162  ;;  %v12850_v48 = vld [vmem:[#allocation110_spill] sm:$0xff]  ;;  %v2003_v15 = vpop.xlane.xlu1 %2002  ;;  %v10012_v27 = vsel %vm430_vm0, %v1923_v20, 0.0  ;;  %v10015_v16 = vsel %vm430_vm0, %v1922_v7, 0.0 }
 0x2ce   : > { %12847 = vst [vmem:[#allocation346_spill] sm:$0xff] %v10004_v46  ;;  %2209 = vadd.xlane.f32.xlu0 %v12849_v1  ;;  %v4031_v40 = vadd.f32 %v9992_v53, %v3768_v32  ;;  %v3507_v12 = vmul.f32 %v6161_v63, %v12850_v48  ;;  %v2000_v13 = vpop.xlane.xlu0 %1999  ;;  %12851 = vst [vmem:[#allocation44_spill] sm:$0xff] %v10012_v27  ;;  %v4030_v17 = vadd.f32 %v9992_v53, %v3767_v10  ;;  %v12853_v59 = vld [vmem:[#allocation106_spill] sm:$0xff]  ;;  %v12854_v27 = vld [vmem:[#allocation231_spill] sm:$0xff] }
 0x2cf   : > { %12852 = vst [vmem:[#allocation230_spill] sm:$0xff] %v10015_v16  ;;  %v3506_v54 = vmul.f32 %v6163_v2, %v12853_v59  ;;  %6172 = vrsqrt.f32 %v3001_v0  ;;  %v2747_v32 = vmul.f32 0.03125, %v2003_v15  ;;  %v2746_v20 = vmul.f32 0.03125, %v2000_v13  ;;  %v12855_v10 = vld [vmem:[#allocation232_spill] sm:$0xff]  ;;  %v12857_v59 = vld [vmem:[#allocation115_spill] sm:$0xff] }
 0x2d0   : > { %v5893_v63 = vpack.c.bf16 %v4031_v40, %v4031_v40  ;;  %v3770_v44 = vmul.f32 %v9968_v18, %v3507_v12  ;;  %6174 = vrsqrt.f32 %v3000_v8  ;;  %v6165_v7 = vpop.eup %6164  ;;  %v1415_v22 = vmul.f32 0.03125, %v8990_v11  ;;  %v12856_v40 = vld [vmem:[#allocation114_spill] sm:$0xff] }
 0x2d1   : > { %v5892_v1 = vpack.c.bf16 %v4030_v17, %v4030_v17  ;;  %v3769_v48 = vmul.f32 %v9968_v18, %v3506_v54  ;;  %v3003_v16 = vadd.f32 1e-06, %v2747_v32  ;;  %2218 = vadd.xlane.f32.xlu1 %v12854_v27  ;;  %v6167_v2 = vpop.eup %6166  ;;  %v1414_v0 = vmul.f32 0.03125, %v8992_v38  ;;  %v2009_v13 = vpop.xlane.xlu1 %2008 }
 0x2d2   : > { %2215 = vadd.xlane.f32.xlu0 %v12855_v10  ;;  %5312 = vst.msk [vmem:[%s10020_s26 + $0x4] sm:$0xf] %vm5310_vm1, %v5893_v63  ;;  %v4033_v8 = vadd.f32 %v9992_v53, %v3770_v44  ;;  %v3509_v12 = vmul.f32 %v6165_v7, %v12856_v40  ;;  %v3002_v15 = vadd.f32 1e-06, %v2746_v20  ;;  %v2006_v11 = vpop.xlane.xlu0 %2005  ;;  %v3508_v27 = vmul.f32 %v6167_v2, %v12857_v59  ;;  %v12858_v40 = vld [vmem:[#allocation45_spill] sm:$0xff] }
 0x2d3   : > { %5311 = vst.msk [vmem:[%s10020_s26] sm:$0xf] %vm5310_vm1, %v5892_v1  ;;  %v4032_v17 = vadd.f32 %v9992_v53, %v3769_v48  ;;  %6176 = vrsqrt.f32 %v3003_v16  ;;  %v2749_v54 = vmul.f32 0.03125, %v2009_v13  ;;  %v2748_v63 = vmul.f32 0.03125, %v2006_v11  ;;  %v12859_v1 = vld [vmem:[#allocation46_spill] sm:$0xff] }
 0x2d4   : > { %v5895_v32 = vpack.c.bf16 %v4033_v8, %v4033_v8  ;;  %v3772_v38 = vmul.f32 %v9968_v18, %v3509_v12  ;;  %6178 = vrsqrt.f32 %v3002_v15  ;;  %v6169_v44 = vpop.eup %6168  ;;  %v3771_v20 = vmul.f32 %v9968_v18, %v3508_v27  ;;  %v12860_v8 = vld [vmem:[#allocation116_spill] sm:$0xff]  ;;  %v12861_v27 = vld [vmem:[#allocation117_spill] sm:$0xff] }
 0x2d5   : > { %v5894_v7 = vpack.c.bf16 %v4032_v17, %v4032_v17  ;;  %v3005_v10 = vadd.f32 1e-06, %v2749_v54  ;;  %2224 = vadd.xlane.f32.xlu1 %v12858_v40  ;;  %v1925_v48 = vmul.f32 %v9997_v49, %v9997_v49  ;;  %v6171_v16 = vpop.eup %6170  ;;  %v3511_v12 = vmul.f32 %v6169_v44, %v12860_v8  ;;  %v2015_v13 = vpop.xlane.xlu1 %2014  ;;  %v12863_v49 = vld [vmem:[#allocation48_spill] sm:$0xff] }
 0x2d6   : > { %2221 = vadd.xlane.f32.xlu0 %v12859_v1  ;;  %5314 = vst.msk [vmem:[%s10020_s26 + $0xc] sm:$0xf] %vm5310_vm1, %v5895_v32  ;;  %v4035_v2 = vadd.f32 %v9992_v53, %v3772_v38  ;;  %v3004_v15 = vadd.f32 1e-06, %v2748_v63  ;;  %v2012_v11 = vpop.xlane.xlu0 %2011  ;;  %v1924_v17 = vmul.f32 %v10004_v46, %v10004_v46  ;;  %v4034_v59 = vadd.f32 %v9992_v53, %v3771_v20  ;;  %v6882_v1 = vld [vmem:[%s6976_s18 + $0x6b8] sm:$0xff] }
 0x2d7   : > { %5313 = vst.msk [vmem:[%s10020_s26 + $0x8] sm:$0xf] %vm5310_vm1, %v5894_v7  ;;  %v3510_v54 = vmul.f32 %v6171_v16, %v12861_v27  ;;  %6180 = vrsqrt.f32 %v3005_v10  ;;  %v2751_v32 = vmul.f32 0.03125, %v2015_v13  ;;  %v3774_v40 = vmul.f32 %v9968_v18, %v3511_v12  ;;  %v12864_v16 = vld [vmem:[#allocation49_spill] sm:$0xff]  ;;  %v6883_v13 = vld [vmem:[%s6976_s18 + $0x6b0] sm:$0xff] }
 0x2d8   : > { %v5897_v38 = vpack.c.bf16 %v4035_v2, %v4035_v2  ;;  %6182 = vrsqrt.f32 %v3004_v15  ;;  %v2750_v63 = vmul.f32 0.03125, %v2012_v11  ;;  %v10056_v8 = vsub.f32 %v6882_v1, %v1415_v22  ;;  %v12866_v15 = vld [vmem:[#allocation118_spill] sm:$0xff] }
 0x2d9   : > { %v6173_v44 = vpop.eup %6172  ;;  %v5896_v46 = vpack.c.bf16 %v4034_v59, %v4034_v59  ;;  %v3773_v7 = vmul.f32 %v9968_v18, %v3510_v54  ;;  %v3007_v20 = vadd.f32 1e-06, %v2751_v32  ;;  %2230 = vadd.xlane.f32.xlu1 %v12863_v49  ;;  %v10062_v2 = vsub.f32 %v6883_v13, %v1414_v0  ;;  %v2021_v27 = vpop.xlane.xlu1 %2020  ;;  %v12867_v49 = vld [vmem:[#allocation119_spill] sm:$0xff] }
 0x2da   : > { %12862 = vst [vmem:[#allocation110_spill] sm:$0xff] %v10056_v8  ;;  %2227 = vadd.xlane.f32.xlu0 %v12864_v16  ;;  %v6175_v10 = vpop.eup %6174  ;;  %5316 = vst.msk [vmem:[%s10020_s26 + $0x14] sm:$0xf] %vm5310_vm1, %v5897_v38  ;;  %v4037_v12 = vadd.f32 %v9992_v53, %v3774_v40  ;;  %v3513_v11 = vmul.f32 %v6173_v44, %v12866_v15  ;;  %v3006_v22 = vadd.f32 1e-06, %v2750_v63  ;;  %v2018_v59 = vpop.xlane.xlu0 %2017  ;;  %v2753_v1 = vmul.f32 0.03125, %v2021_v27 }
 0x2db   : > { %12865 = vst [vmem:[#allocation106_spill] sm:$0xff] %v10062_v2  ;;  %5315 = vst.msk [vmem:[%s10020_s26 + $0x10] sm:$0xf] %vm5310_vm1, %v5896_v46  ;;  %v4036_v54 = vadd.f32 %v9992_v53, %v3773_v7  ;;  %v3512_v32 = vmul.f32 %v6175_v10, %v12867_v49  ;;  %6184 = vrsqrt.f32 %v3007_v20  ;;  %v2752_v38 = vmul.f32 0.03125, %v2018_v59  ;;  %v12868_v15 = vld [vmem:[#allocation51_spill] sm:$0xff]  ;;  %v12869_v46 = vld [vmem:[#allocation236_spill] sm:$0xff] }
 0x2dc   : > { %v5899_v0 = vpack.c.bf16 %v4037_v12, %v4037_v12  ;;  %v3776_v16 = vmul.f32 %v9968_v18, %v3513_v11  ;;  %6186 = vrsqrt.f32 %v3006_v22  ;;  %v3009_v13 = vadd.f32 1e-06, %v2753_v1  ;;  %v12870_v12 = vld [vmem:[#allocation120_spill] sm:$0xff] }
 0x2dd   : > { %v6177_v40 = vpop.eup %6176  ;;  %v5898_v44 = vpack.c.bf16 %v4036_v54, %v4036_v54  ;;  %v3775_v63 = vmul.f32 %v9968_v18, %v3512_v32  ;;  %2236 = vadd.xlane.f32.xlu1 %v12868_v15  ;;  %v10077_v7 = vsel %vm430_vm0, %v1925_v48, 0.0  ;;  %v3008_v22 = vadd.f32 1e-06, %v2752_v38  ;;  %v2027_v27 = vpop.xlane.xlu1 %2026  ;;  %v12871_v32 = vld [vmem:[#allocation123_spill] sm:$0xff] }
 0x2de   : > { %2233 = vadd.xlane.f32.xlu0 %v12869_v46  ;;  %v6179_v20 = vpop.eup %6178  ;;  %5318 = vst.msk [vmem:[%s10020_s26 + $0x1c] sm:$0xf] %vm5310_vm1, %v5899_v0  ;;  %v4039_v10 = vadd.f32 %v9992_v53, %v3776_v16  ;;  %v3515_v11 = vmul.f32 %v6177_v40, %v12870_v12  ;;  %v2024_v59 = vpop.xlane.xlu0 %2023  ;;  %v10084_v54 = vsel %vm430_vm0, %v1924_v17, 0.0  ;;  %6188 = vrsqrt.f32 %v3009_v13  ;;  %v12872_v12 = vld [vmem:[#allocation57_spill] sm:$0xff] }
 0x2df   : > { %5317 = vst.msk [vmem:[%s10020_s26 + $0x18] sm:$0xf] %vm5310_vm1, %v5898_v44  ;;  %v4038_v49 = vadd.f32 %v9992_v53, %v3775_v63  ;;  %v3514_v48 = vmul.f32 %v6179_v20, %v12871_v32  ;;  %v2755_v1 = vmul.f32 0.03125, %v2027_v27  ;;  %6190 = vrsqrt.f32 %v3008_v22  ;;  %v12873_v63 = vld [vmem:[#allocation241_spill] sm:$0xff] }
 0x2e0   : > { %v5901_v0 = vpack.c.bf16 %v4039_v10, %v4039_v10  ;;  %v3778_v16 = vmul.f32 %v9968_v18, %v3515_v11  ;;  %v2754_v40 = vmul.f32 0.03125, %v2024_v59  ;;  %v1417_v15 = vmul.f32 0.03125, %v9036_v43  ;;  %v12874_v11 = vld [vmem:[#allocation124_spill] sm:$0xff]  ;;  %v12875_v32 = vld [vmem:[#allocation125_spill] sm:$0xff] }
 0x2e1   : > { %v6181_v38 = vpop.eup %6180  ;;  %v5900_v17 = vpack.c.bf16 %v4038_v49, %v4038_v49  ;;  %v3777_v46 = vmul.f32 %v9968_v18, %v3514_v48  ;;  %v3011_v44 = vadd.f32 1e-06, %v2755_v1  ;;  %2242 = vadd.xlane.f32.xlu1 %v12872_v12  ;;  %v1416_v13 = vmul.f32 0.03125, %v9038_v36  ;;  %v2033_v59 = vpop.xlane.xlu1 %2032 }
 0x2e2   : > { %2239 = vadd.xlane.f32.xlu0 %v12873_v63  ;;  %v6183_v20 = vpop.eup %6182  ;;  %5320 = vst.msk [vmem:[%s10020_s26 + $0x24] sm:$0xf] %vm5310_vm1, %v5901_v0  ;;  %v4041_v10 = vadd.f32 %v9992_v53, %v3778_v16  ;;  %v3517_v22 = vmul.f32 %v6181_v38, %v12874_v11  ;;  %v3010_v27 = vadd.f32 1e-06, %v2754_v40  ;;  %v2030_v43 = vpop.xlane.xlu0 %2029  ;;  %v2757_v1 = vmul.f32 0.03125, %v2033_v59  ;;  %v12876_v11 = vld [vmem:[#allocation59_spill] sm:$0xff] }
 0x2e3   : > { %5319 = vst.msk [vmem:[%s10020_s26 + $0x20] sm:$0xf] %vm5310_vm1, %v5900_v17  ;;  %v4040_v49 = vadd.f32 %v9992_v53, %v3777_v46  ;;  %v3516_v48 = vmul.f32 %v6183_v20, %v12875_v32  ;;  %6192 = vrsqrt.f32 %v3011_v44  ;;  %v2756_v0 = vmul.f32 0.03125, %v2030_v43  ;;  %v12877_v17 = vld [vmem:[#allocation242_spill] sm:$0xff] }
 0x2e4   : > { %v5903_v12 = vpack.c.bf16 %v4041_v10, %v4041_v10  ;;  %v3780_v36 = vmul.f32 %v9968_v18, %v3517_v22  ;;  %6194 = vrsqrt.f32 %v3010_v27  ;;  %v3013_v63 = vadd.f32 1e-06, %v2757_v1  ;;  %v12878_v10 = vld [vmem:[#allocation126_spill] sm:$0xff] }
 0x2e5   : > { %v6185_v16 = vpop.eup %6184  ;;  %v5902_v38 = vpack.c.bf16 %v4040_v49, %v4040_v49  ;;  %v3779_v40 = vmul.f32 %v9968_v18, %v3516_v48  ;;  %2248 = vadd.xlane.f32.xlu1 %v12876_v11  ;;  %v1927_v46 = vmul.f32 %v10056_v8, %v10056_v8  ;;  %v3012_v27 = vadd.f32 1e-06, %v2756_v0  ;;  %v2039_v59 = vpop.xlane.xlu1 %2038  ;;  %v12879_v48 = vld [vmem:[#allocation129_spill] sm:$0xff]  ;;  %v12881_v8 = vld [vmem:[#allocation243_spill] sm:$0xff] }
 0x2e6   : > { %2245 = vadd.xlane.f32.xlu0 %v12877_v17  ;;  %v6187_v44 = vpop.eup %6186  ;;  %5322 = vst.msk [vmem:[%s10020_s26 + $0x2c] sm:$0xf] %vm5310_vm1, %v5903_v12  ;;  %v4043_v20 = vadd.f32 %v9992_v53, %v3780_v36  ;;  %v3519_v22 = vmul.f32 %v6185_v16, %v12878_v10  ;;  %v2036_v43 = vpop.xlane.xlu0 %2035  ;;  %v1926_v49 = vmul.f32 %v10062_v2, %v10062_v2  ;;  %6196 = vrsqrt.f32 %v3013_v63  ;;  %v6884_v17 = vld [vmem:[%s6976_s18 + $0x6c8] sm:$0xff] }
 0x2e7   : > { %5321 = vst.msk [vmem:[%s10020_s26 + $0x28] sm:$0xf] %vm5310_vm1, %v5902_v38  ;;  %v4042_v32 = vadd.f32 %v9992_v53, %v3779_v40  ;;  %v3518_v1 = vmul.f32 %v6187_v44, %v12879_v48  ;;  %v2759_v12 = vmul.f32 0.03125, %v2039_v59  ;;  %6198 = vrsqrt.f32 %v3012_v27  ;;  %v12882_v44 = vld [vmem:[#allocation244_spill] sm:$0xff]  ;;  %v6885_v59 = vld [vmem:[%s6976_s18 + $0x6c0] sm:$0xff] }
 0x2e8   : > { %v5905_v36 = vpack.c.bf16 %v4043_v20, %v4043_v20  ;;  %v3782_v11 = vmul.f32 %v9968_v18, %v3519_v22  ;;  %v2758_v0 = vmul.f32 0.03125, %v2036_v43  ;;  %v6189_v16 = vpop.eup %6188  ;;  %v10122_v10 = vsub.f32 %v6884_v17, %v1417_v15  ;;  %v12884_v27 = vld [vmem:[#allocation132_spill] sm:$0xff] }
 0x2e9   : > { %v5904_v2 = vpack.c.bf16 %v4042_v32, %v4042_v32  ;;  %v3781_v38 = vmul.f32 %v9968_v18, %v3518_v1  ;;  %v3015_v40 = vadd.f32 1e-06, %v2759_v12  ;;  %2254 = vadd.xlane.f32.xlu1 %v12881_v8  ;;  %v6191_v63 = vpop.eup %6190  ;;  %v10128_v20 = vsub.f32 %v6885_v59, %v1416_v13  ;;  %v2045_v48 = vpop.xlane.xlu1 %2044  ;;  %v12885_v8 = vld [vmem:[#allocation133_spill] sm:$0xff] }
 0x2ea   : > { %12880 = vst [vmem:[#allocation231_spill] sm:$0xff] %v10122_v10  ;;  %2251 = vadd.xlane.f32.xlu0 %v12882_v44  ;;  %5324 = vst.msk [vmem:[%s10020_s26 + $0x34] sm:$0xf] %vm5310_vm1, %v5905_v36  ;;  %v4045_v22 = vadd.f32 %v9992_v53, %v3782_v11  ;;  %v3521_v43 = vmul.f32 %v6189_v16, %v12884_v27  ;;  %v3014_v15 = vadd.f32 1e-06, %v2758_v0  ;;  %v2042_v32 = vpop.xlane.xlu0 %2041  ;;  %v2761_v17 = vmul.f32 0.03125, %v2045_v48 }
 0x2eb   : > { %12883 = vst [vmem:[#allocation232_spill] sm:$0xff] %v10128_v20  ;;  %5323 = vst.msk [vmem:[%s10020_s26 + $0x30] sm:$0xf] %vm5310_vm1, %v5904_v2  ;;  %v4044_v1 = vadd.f32 %v9992_v53, %v3781_v38  ;;  %v3520_v12 = vmul.f32 %v6191_v63, %v12885_v8  ;;  %6200 = vrsqrt.f32 %v3015_v40  ;;  %v2760_v36 = vmul.f32 0.03125, %v2042_v32  ;;  %v12886_v27 = vld [vmem:[#allocation60_spill] sm:$0xff]  ;;  %v12887_v2 = vld [vmem:[#allocation246_spill] sm:$0xff] }
 0x2ec   : > { %v5907_v13 = vpack.c.bf16 %v4045_v22, %v4045_v22  ;;  %v3784_v44 = vmul.f32 %v9968_v18, %v3521_v43  ;;  %6202 = vrsqrt.f32 %v3014_v15  ;;  %v3017_v59 = vadd.f32 1e-06, %v2761_v17  ;;  %v12888_v22 = vld [vmem:[#allocation136_spill] sm:$0xff] }
 0x2ed   : > { %v6193_v11 = vpop.eup %6192  ;;  %v5906_v16 = vpack.c.bf16 %v4044_v1, %v4044_v1  ;;  %v3783_v0 = vmul.f32 %v9968_v18, %v3520_v12  ;;  %2260 = vadd.xlane.f32.xlu1 %v12886_v27  ;;  %v10143_v38 = vsel %vm430_vm0, %v1927_v46, 0.0  ;;  %v3016_v15 = vadd.f32 1e-06, %v2760_v36  ;;  %v2051_v48 = vpop.xlane.xlu1 %2050  ;;  %v12889_v12 = vld [vmem:[#allocation137_spill] sm:$0xff] }
 0x2ee   : > { %2257 = vadd.xlane.f32.xlu0 %v12887_v2  ;;  %v6195_v40 = vpop.eup %6194  ;;  %5326 = vst.msk [vmem:[%s10020_s26 + $0x3c] sm:$0xf] %vm5310_vm1, %v5907_v13  ;;  %v4047_v63 = vadd.f32 %v9992_v53, %v3784_v44  ;;  %v3523_v43 = vmul.f32 %v6193_v11, %v12888_v22  ;;  %v2048_v32 = vpop.xlane.xlu0 %2047  ;;  %v10150_v1 = vsel %vm430_vm0, %v1926_v49, 0.0  ;;  %6204 = vrsqrt.f32 %v3017_v59  ;;  %v12890_v22 = vld [vmem:[#allocation247_spill] sm:$0xff] }
 0x2ef   : > { %5325 = vst.msk [vmem:[%s10020_s26 + $0x38] sm:$0xf] %vm5310_vm1, %v5906_v16  ;;  %v4046_v8 = vadd.f32 %v9992_v53, %v3783_v0  ;;  %v3522_v46 = vmul.f32 %v6195_v40, %v12889_v12  ;;  %v2763_v17 = vmul.f32 0.03125, %v2051_v48  ;;  %6206 = vrsqrt.f32 %v3016_v15  ;;  %v12891_v0 = vld [vmem:[#allocation248_spill] sm:$0xff]  ;;  %v12893_v12 = vld [vmem:[#allocation139_spill] sm:$0xff] }
 0x2f0   : > { %v5909_v13 = vpack.c.bf16 %v4047_v63, %v4047_v63  ;;  %v3786_v44 = vmul.f32 %v9968_v18, %v3523_v43  ;;  %v2762_v11 = vmul.f32 0.03125, %v2048_v32  ;;  %v6197_v36 = vpop.eup %6196  ;;  %v1419_v27 = vmul.f32 0.03125, %v9072_v4  ;;  %v12892_v43 = vld [vmem:[#allocation138_spill] sm:$0xff] }
 0x2f1   : > { %v5908_v49 = vpack.c.bf16 %v4046_v8, %v4046_v8  ;;  %v3785_v2 = vmul.f32 %v9968_v18, %v3522_v46  ;;  %v3019_v16 = vadd.f32 1e-06, %v2763_v17  ;;  %2266 = vadd.xlane.f32.xlu1 %v12890_v22  ;;  %v6199_v40 = vpop.eup %6198  ;;  %v1418_v59 = vmul.f32 0.03125, %v9074_v5  ;;  %v2057_v32 = vpop.xlane.xlu1 %2056 }
 0x2f2   : > { %2263 = vadd.xlane.f32.xlu0 %v12891_v0  ;;  %5328 = vst.msk [vmem:[%s10020_s26 + $0x44] sm:$0xf] %vm5310_vm1, %v5909_v13  ;;  %v4049_v63 = vadd.f32 %v9992_v53, %v3786_v44  ;;  %v3525_v15 = vmul.f32 %v6197_v36, %v12892_v43  ;;  %v3018_v48 = vadd.f32 1e-06, %v2762_v11  ;;  %v2054_v4 = vpop.xlane.xlu0 %2053  ;;  %v3524_v46 = vmul.f32 %v6199_v40, %v12893_v12  ;;  %v12894_v43 = vld [vmem:[#allocation61_spill] sm:$0xff] }
 0x2f3   : > { %5327 = vst.msk [vmem:[%s10020_s26 + $0x40] sm:$0xf] %vm5310_vm1, %v5908_v49  ;;  %v4048_v8 = vadd.f32 %v9992_v53, %v3785_v2  ;;  %6208 = vrsqrt.f32 %v3019_v16  ;;  %v2765_v17 = vmul.f32 0.03125, %v2057_v32  ;;  %v2764_v13 = vmul.f32 0.03125, %v2054_v4  ;;  %v12895_v49 = vld [vmem:[#allocation62_spill] sm:$0xff] }
 0x2f4   : > { %v5911_v22 = vpack.c.bf16 %v4049_v63, %v4049_v63  ;;  %v3788_v5 = vmul.f32 %v9968_v18, %v3525_v15  ;;  %6210 = vrsqrt.f32 %v3018_v48  ;;  %v3787_v11 = vmul.f32 %v9968_v18, %v3524_v46  ;;  %v12896_v63 = vld [vmem:[#allocation140_spill] sm:$0xff]  ;;  %v12897_v46 = vld [vmem:[#allocation141_spill] sm:$0xff] }
 0x2f5   : > { %v6201_v44 = vpop.eup %6200  ;;  %v5910_v36 = vpack.c.bf16 %v4048_v8, %v4048_v8  ;;  %v3021_v0 = vadd.f32 1e-06, %v2765_v17  ;;  %2272 = vadd.xlane.f32.xlu1 %v12894_v43  ;;  %v1929_v2 = vmul.f32 %v10122_v10, %v10122_v10  ;;  %v3020_v48 = vadd.f32 1e-06, %v2764_v13  ;;  %v2063_v32 = vpop.xlane.xlu1 %2062  ;;  %v12899_v10 = vld [vmem:[#allocation64_spill] sm:$0xff] }
 0x2f6   : > { %2269 = vadd.xlane.f32.xlu0 %v12895_v49  ;;  %v6203_v16 = vpop.eup %6202  ;;  %5330 = vst.msk [vmem:[%s10020_s26 + $0x4c] sm:$0xf] %vm5310_vm1, %v5911_v22  ;;  %v4051_v40 = vadd.f32 %v9992_v53, %v3788_v5  ;;  %v3527_v15 = vmul.f32 %v6201_v44, %v12896_v63  ;;  %v2060_v4 = vpop.xlane.xlu0 %2059  ;;  %v1928_v8 = vmul.f32 %v10128_v20, %v10128_v20  ;;  %v2767_v22 = vmul.f32 0.03125, %v2063_v32  ;;  %v6886_v49 = vld [vmem:[%s6976_s18 + $0x6d8] sm:$0xff]  ;;  %v6887_v32 = vld [vmem:[%s6976_s18 + $0x6d0] sm:$0xff] }
 0x2f7   : > { %5329 = vst.msk [vmem:[%s10020_s26 + $0x48] sm:$0xf] %vm5310_vm1, %v5910_v36  ;;  %v4050_v12 = vadd.f32 %v9992_v53, %v3787_v11  ;;  %v3526_v17 = vmul.f32 %v6203_v16, %v12897_v46  ;;  %6212 = vrsqrt.f32 %v3021_v0  ;;  %v2766_v13 = vmul.f32 0.03125, %v2060_v4  ;;  %v12900_v16 = vld [vmem:[#allocation65_spill] sm:$0xff] }
 0x2f8   : > { %v5913_v5 = vpack.c.bf16 %v4051_v40, %v4051_v40  ;;  %v3790_v43 = vmul.f32 %v9968_v18, %v3527_v15  ;;  %6214 = vrsqrt.f32 %v3020_v48  ;;  %v6205_v44 = vpop.eup %6204  ;;  %v10188_v63 = vsub.f32 %v6886_v49, %v1419_v27  ;;  %v12902_v48 = vld [vmem:[#allocation142_spill] sm:$0xff] }
 0x2f9   : > { %v5912_v20 = vpack.c.bf16 %v4050_v12, %v4050_v12  ;;  %v3789_v36 = vmul.f32 %v9968_v18, %v3526_v17  ;;  %v3023_v11 = vadd.f32 1e-06, %v2767_v22  ;;  %2278 = vadd.xlane.f32.xlu1 %v12899_v10  ;;  %v6207_v0 = vpop.eup %6206  ;;  %v10194_v40 = vsub.f32 %v6887_v32, %v1418_v59  ;;  %v2069_v46 = vpop.xlane.xlu1 %2068  ;;  %v12903_v10 = vld [vmem:[#allocation145_spill] sm:$0xff] }
 0x2fa   : > { %12898 = vst [vmem:[#allocation114_spill] sm:$0xff] %v10188_v63  ;;  %2275 = vadd.xlane.f32.xlu0 %v12900_v16  ;;  %5332 = vst.msk [vmem:[%s10020_s26 + $0x54] sm:$0xf] %vm5310_vm1, %v5913_v5  ;;  %v4053_v15 = vadd.f32 %v9992_v53, %v3790_v43  ;;  %v3529_v4 = vmul.f32 %v6205_v44, %v12902_v48  ;;  %v3022_v27 = vadd.f32 1e-06, %v2766_v13  ;;  %v2066_v12 = vpop.xlane.xlu0 %2065  ;;  %v2769_v49 = vmul.f32 0.03125, %v2069_v46 }
 0x2fb   : > { %12901 = vst [vmem:[#allocation115_spill] sm:$0xff] %v10194_v40  ;;  %5331 = vst.msk [vmem:[%s10020_s26 + $0x50] sm:$0xf] %vm5310_vm1, %v5912_v20  ;;  %v4052_v17 = vadd.f32 %v9992_v53, %v3789_v36  ;;  %v3528_v22 = vmul.f32 %v6207_v0, %v12903_v10  ;;  %6216 = vrsqrt.f32 %v3023_v11  ;;  %v2768_v5 = vmul.f32 0.03125, %v2066_v12  ;;  %v12904_v48 = vld [vmem:[#allocation67_spill] sm:$0xff]  ;;  %v12905_v20 = vld [vmem:[#allocation252_spill] sm:$0xff] }
 0x2fc   : > { %v5915_v59 = vpack.c.bf16 %v4053_v15, %v4053_v15  ;;  %v3792_v16 = vmul.f32 %v9968_v18, %v3529_v4  ;;  %6218 = vrsqrt.f32 %v3022_v27  ;;  %v3025_v32 = vadd.f32 1e-06, %v2769_v49  ;;  %v12906_v15 = vld [vmem:[#allocation146_spill] sm:$0xff] }
 0x2fd   : > { %v6209_v43 = vpop.eup %6208  ;;  %v5914_v44 = vpack.c.bf16 %v4052_v17, %v4052_v17  ;;  %v3791_v13 = vmul.f32 %v9968_v18, %v3528_v22  ;;  %2284 = vadd.xlane.f32.xlu1 %v12904_v48  ;;  %v10209_v36 = vsel %vm430_vm0, %v1929_v2, 0.0  ;;  %v3024_v27 = vadd.f32 1e-06, %v2768_v5  ;;  %v2075_v46 = vpop.xlane.xlu1 %2074  ;;  %v12907_v22 = vld [vmem:[#allocation147_spill] sm:$0xff] }
 0x2fe   : > { %2281 = vadd.xlane.f32.xlu0 %v12905_v20  ;;  %v6211_v11 = vpop.eup %6210  ;;  %5334 = vst.msk [vmem:[%s10020_s26 + $0x5c] sm:$0xf] %vm5310_vm1, %v5915_v59  ;;  %v4055_v0 = vadd.f32 %v9992_v53, %v3792_v16  ;;  %v3531_v4 = vmul.f32 %v6209_v43, %v12906_v15  ;;  %v2072_v12 = vpop.xlane.xlu0 %2071  ;;  %v10216_v17 = vsel %vm430_vm0, %v1928_v8, 0.0  ;;  %6220 = vrsqrt.f32 %v3025_v32  ;;  %v12908_v15 = vld [vmem:[#allocation73_spill] sm:$0xff] }
 0x2ff   : > { %5333 = vst.msk [vmem:[%s10020_s26 + $0x58] sm:$0xf] %vm5310_vm1, %v5914_v44  ;;  %v4054_v10 = vadd.f32 %v9992_v53, %v3791_v13  ;;  %v3530_v2 = vmul.f32 %v6211_v11, %v12907_v22  ;;  %v2771_v49 = vmul.f32 0.03125, %v2075_v46  ;;  %6222 = vrsqrt.f32 %v3024_v27  ;;  %v12909_v13 = vld [vmem:[#allocation257_spill] sm:$0xff]  ;;  %v12911_v22 = vld [vmem:[#allocation151_spill] sm:$0xff] }
 0x300   : > { %v5917_v59 = vpack.c.bf16 %v4055_v0, %v4055_v0  ;;  %v3794_v16 = vmul.f32 %v9968_v18, %v3531_v4  ;;  %v2770_v43 = vmul.f32 0.03125, %v2072_v12  ;;  %v1421_v48 = vmul.f32 0.03125, %v9116_v61  ;;  %v12910_v4 = vld [vmem:[#allocation148_spill] sm:$0xff] }
 0x301   : > { %v6213_v5 = vpop.eup %6212  ;;  %v5916_v8 = vpack.c.bf16 %v4054_v10, %v4054_v10  ;;  %v3793_v20 = vmul.f32 %v9968_v18, %v3530_v2  ;;  %v3027_v44 = vadd.f32 1e-06, %v2771_v49  ;;  %2290 = vadd.xlane.f32.xlu1 %v12908_v15  ;;  %v1420_v32 = vmul.f32 0.03125, %v9118_v24  ;;  %v2081_v12 = vpop.xlane.xlu1 %2080 }
 0x302   : > { %2287 = vadd.xlane.f32.xlu0 %v12909_v13  ;;  %v6215_v11 = vpop.eup %6214  ;;  %5336 = vst.msk [vmem:[%s10020_s26 + $0x64] sm:$0xf] %vm5310_vm1, %v5917_v59  ;;  %v4057_v0 = vadd.f32 %v9992_v53, %v3794_v16  ;;  %v3533_v27 = vmul.f32 %v6213_v5, %v12910_v4  ;;  %v3026_v46 = vadd.f32 1e-06, %v2770_v43  ;;  %v2078_v61 = vpop.xlane.xlu0 %2077  ;;  %v2773_v49 = vmul.f32 0.03125, %v2081_v12  ;;  %v12912_v4 = vld [vmem:[#allocation75_spill] sm:$0xff] }
 0x303   : > { %5335 = vst.msk [vmem:[%s10020_s26 + $0x60] sm:$0xf] %vm5310_vm1, %v5916_v8  ;;  %v4056_v10 = vadd.f32 %v9992_v53, %v3793_v20  ;;  %v3532_v2 = vmul.f32 %v6215_v11, %v12911_v22  ;;  %6224 = vrsqrt.f32 %v3027_v44  ;;  %v2772_v59 = vmul.f32 0.03125, %v2078_v61  ;;  %v12913_v8 = vld [vmem:[#allocation258_spill] sm:$0xff] }
 0x304   : > { %v5919_v15 = vpack.c.bf16 %v4057_v0, %v4057_v0  ;;  %v3796_v24 = vmul.f32 %v9968_v18, %v3533_v27  ;;  %6226 = vrsqrt.f32 %v3026_v46  ;;  %v3029_v13 = vadd.f32 1e-06, %v2773_v49  ;;  %v12914_v0 = vld [vmem:[#allocation154_spill] sm:$0xff] }
 0x305   : > { %v6217_v16 = vpop.eup %6216  ;;  %v5918_v5 = vpack.c.bf16 %v4056_v10, %v4056_v10  ;;  %v3795_v43 = vmul.f32 %v9968_v18, %v3532_v2  ;;  %2296 = vadd.xlane.f32.xlu1 %v12912_v4  ;;  %v1931_v20 = vmul.f32 %v10188_v63, %v10188_v63  ;;  %v3028_v46 = vadd.f32 1e-06, %v2772_v59  ;;  %v2087_v12 = vpop.xlane.xlu1 %2086  ;;  %v12915_v2 = vld [vmem:[#allocation155_spill] sm:$0xff] }
 0x306   : > { %2293 = vadd.xlane.f32.xlu0 %v12913_v8  ;;  %v6219_v44 = vpop.eup %6218  ;;  %5338 = vst.msk [vmem:[%s10020_s26 + $0x6c] sm:$0xf] %vm5310_vm1, %v5919_v15  ;;  %v4059_v11 = vadd.f32 %v9992_v53, %v3796_v24  ;;  %v3535_v27 = vmul.f32 %v6217_v16, %v12914_v0  ;;  %v2084_v61 = vpop.xlane.xlu0 %2083  ;;  %v1930_v10 = vmul.f32 %v10194_v40, %v10194_v40  ;;  %6228 = vrsqrt.f32 %v3029_v13  ;;  %v6888_v8 = vld [vmem:[%s6976_s18 + $0x6e8] sm:$0xff] }
 0x307   : > { %5337 = vst.msk [vmem:[%s10020_s26 + $0x68] sm:$0xf] %vm5310_vm1, %v5918_v5  ;;  %v4058_v22 = vadd.f32 %v9992_v53, %v3795_v43  ;;  %v3534_v49 = vmul.f32 %v6219_v44, %v12915_v2  ;;  %v2775_v15 = vmul.f32 0.03125, %v2087_v12  ;;  %6230 = vrsqrt.f32 %v3028_v46  ;;  %v12917_v63 = vld [vmem:[#allocation259_spill] sm:$0xff]  ;;  %v12918_v44 = vld [vmem:[#allocation260_spill] sm:$0xff]  ;;  %v6889_v12 = vld [vmem:[%s6976_s18 + $0x6e0] sm:$0xff] }
 0x308   : > { %v5921_v24 = vpack.c.bf16 %v4059_v11, %v4059_v11  ;;  %v3798_v4 = vmul.f32 %v9968_v18, %v3535_v27  ;;  %v2774_v59 = vmul.f32 0.03125, %v2084_v61  ;;  %v6221_v16 = vpop.eup %6220  ;;  %v10254_v0 = vsub.f32 %v6888_v8, %v1421_v48  ;;  %v12920_v46 = vld [vmem:[#allocation158_spill] sm:$0xff] }
 0x309   : > { %v5920_v40 = vpack.c.bf16 %v4058_v22, %v4058_v22  ;;  %v3797_v5 = vmul.f32 %v9968_v18, %v3534_v49  ;;  %v3031_v43 = vadd.f32 1e-06, %v2775_v15  ;;  %2302 = vadd.xlane.f32.xlu1 %v12917_v63  ;;  %v6223_v13 = vpop.eup %6222  ;;  %v10260_v11 = vsub.f32 %v6889_v12, %v1420_v32  ;;  %v2093_v2 = vpop.xlane.xlu1 %2092  ;;  %v12921_v63 = vld [vmem:[#allocation159_spill] sm:$0xff] }
 0x30a   : > { %12916 = vst [vmem:[#allocation45_spill] sm:$0xff] %v10254_v0  ;;  %2299 = vadd.xlane.f32.xlu0 %v12918_v44  ;;  %5340 = vst.msk [vmem:[%s10020_s26 + $0x74] sm:$0xf] %vm5310_vm1, %v5921_v24  ;;  %v4061_v27 = vadd.f32 %v9992_v53, %v3798_v4  ;;  %v3537_v61 = vmul.f32 %v6221_v16, %v12920_v46  ;;  %v3030_v48 = vadd.f32 1e-06, %v2774_v59  ;;  %v2090_v22 = vpop.xlane.xlu0 %2089  ;;  %v2777_v8 = vmul.f32 0.03125, %v2093_v2 }
 0x30b   : > { %12919 = vst [vmem:[#allocation46_spill] sm:$0xff] %v10260_v11  ;;  %5339 = vst.msk [vmem:[%s10020_s26 + $0x70] sm:$0xf] %vm5310_vm1, %v5920_v40  ;;  %v4060_v49 = vadd.f32 %v9992_v53, %v3797_v5  ;;  %v3536_v15 = vmul.f32 %v6223_v13, %v12921_v63  ;;  %6232 = vrsqrt.f32 %v3031_v43  ;;  %v2776_v24 = vmul.f32 0.03125, %v2090_v22  ;;  %v12922_v46 = vld [vmem:[#allocation76_spill] sm:$0xff]  ;;  %v12923_v40 = vld [vmem:[#allocation262_spill] sm:$0xff] }
 0x30c   : > { %v5923_v32 = vpack.c.bf16 %v4061_v27, %v4061_v27  ;;  %v3800_v44 = vmul.f32 %v9968_v18, %v3537_v61  ;;  %6234 = vrsqrt.f32 %v3030_v48  ;;  %v3033_v12 = vadd.f32 1e-06, %v2777_v8  ;;  %v12925_v27 = vld [vmem:[#allocation160_spill] sm:$0xff] }
 0x30d   : > { %v6225_v4 = vpop.eup %6224  ;;  %v5922_v16 = vpack.c.bf16 %v4060_v49, %v4060_v49  ;;  %v3799_v59 = vmul.f32 %v9968_v18, %v3536_v15  ;;  %2308 = vadd.xlane.f32.xlu1 %v12922_v46  ;;  %v10275_v5 = vsel %vm430_vm0, %v1931_v20, 0.0  ;;  %v3032_v48 = vadd.f32 1e-06, %v2776_v24  ;;  %v2099_v2 = vpop.xlane.xlu1 %2098  ;;  %v12927_v15 = vld [vmem:[#allocation161_spill] sm:$0xff]  ;;  %v12928_v46 = vld [vmem:[#allocation174_spill] sm:$0xff] }
 0x30e   : > { %2305 = vadd.xlane.f32.xlu0 %v12923_v40  ;;  %12924 = vst [vmem:[#allocation116_spill] sm:$0xff] %v10275_v5  ;;  %v6227_v43 = vpop.eup %6226  ;;  %5342 = vst.msk [vmem:[%s10020_s26 + $0x7c] sm:$0xf] %vm5310_vm1, %v5923_v32  ;;  %v4063_v13 = vadd.f32 %v9992_v53, %v3800_v44  ;;  %v3539_v61 = vmul.f32 %v6225_v4, %v12925_v27  ;;  %v2096_v22 = vpop.xlane.xlu0 %2095  ;;  %v10282_v49 = vsel %vm430_vm0, %v1930_v10, 0.0  ;;  %6236 = vrsqrt.f32 %v3033_v12  ;;  %v12931_v12 = vld [vmem:[#allocation175_spill] sm:$0xff]  ;;  %v12934_v5 = vld [vmem:[#allocation77_spill] sm:$0xff] }
 0x30f   : > { %12926 = vst [vmem:[#allocation117_spill] sm:$0xff] %v10282_v49  ;;  %5341 = vst.msk [vmem:[%s10020_s26 + $0x78] sm:$0xf] %vm5310_vm1, %v5922_v16  ;;  %v4062_v63 = vadd.f32 %v9992_v53, %v3799_v59  ;;  %v3538_v20 = vmul.f32 %v6227_v43, %v12927_v15  ;;  %v2779_v8 = vmul.f32 0.03125, %v2099_v2  ;;  %6238 = vrsqrt.f32 %v3032_v48  ;;  %v12929_v49 = vld [vmem:[#allocation263_spill] sm:$0xff]  ;;  %v12930_v59 = vld [vmem:[#allocation264_spill] sm:$0xff] }
 0x310   : > { %v5925_v32 = vpack.c.bf16 %v4063_v13, %v4063_v13  ;;  %v3802_v44 = vmul.f32 %v9968_v18, %v3539_v61  ;;  %v2778_v4 = vmul.f32 0.03125, %v2096_v22  ;;  %v6229_v24 = vpop.eup %6228  ;;  %v1423_v40 = vmul.f32 0.03125, %v12928_v46  ;;  %v12932_v61 = vld [vmem:[#allocation162_spill] sm:$0xff] }
 0x311   : > { %v5924_v10 = vpack.c.bf16 %v4062_v63, %v4062_v63  ;;  %v3801_v27 = vmul.f32 %v9968_v18, %v3538_v20  ;;  %v3035_v16 = vadd.f32 1e-06, %v2779_v8  ;;  %2314 = vadd.xlane.f32.xlu1 %v12929_v49  ;;  %v6231_v43 = vpop.eup %6230  ;;  %v1422_v2 = vmul.f32 0.03125, %v12931_v12  ;;  %v2105_v15 = vpop.xlane.xlu1 %2104  ;;  %v12933_v20 = vld [vmem:[#allocation163_spill] sm:$0xff] }
 0x312   : > { %2311 = vadd.xlane.f32.xlu0 %v12930_v59  ;;  %5344 = vst.msk [vmem:[%s10020_s26 + $0x84] sm:$0xf] %vm5310_vm1, %v5925_v32  ;;  %v4065_v13 = vadd.f32 %v9992_v53, %v3802_v44  ;;  %v3541_v48 = vmul.f32 %v6229_v24, %v12932_v61  ;;  %v3034_v22 = vadd.f32 1e-06, %v2778_v4  ;;  %v2102_v46 = vpop.xlane.xlu0 %2101  ;;  %v3540_v49 = vmul.f32 %v6231_v43, %v12933_v20  ;;  %v12937_v20 = vld [vmem:[#allocation167_spill] sm:$0xff] }
 0x313   : > { %5343 = vst.msk [vmem:[%s10020_s26 + $0x80] sm:$0xf] %vm5310_vm1, %v5924_v10  ;;  %v4064_v63 = vadd.f32 %v9992_v53, %v3801_v27  ;;  %6240 = vrsqrt.f32 %v3035_v16  ;;  %v2781_v8 = vmul.f32 0.03125, %v2105_v15  ;;  %v2780_v32 = vmul.f32 0.03125, %v2102_v46  ;;  %v12935_v10 = vld [vmem:[#allocation78_spill] sm:$0xff] }
 0x314   : > { %v5927_v59 = vpack.c.bf16 %v4065_v13, %v4065_v13  ;;  %v3804_v12 = vmul.f32 %v9968_v18, %v3541_v48  ;;  %6242 = vrsqrt.f32 %v3034_v22  ;;  %v3803_v4 = vmul.f32 %v9968_v18, %v3540_v49  ;;  %v12936_v13 = vld [vmem:[#allocation164_spill] sm:$0xff] }
 0x315   : > { %v6233_v44 = vpop.eup %6232  ;;  %v5926_v24 = vpack.c.bf16 %v4064_v63, %v4064_v63  ;;  %v3037_v61 = vadd.f32 1e-06, %v2781_v8  ;;  %2320 = vadd.xlane.f32.xlu1 %v12934_v5  ;;  %v1933_v27 = vmul.f32 %v10254_v0, %v10254_v0  ;;  %v3036_v22 = vadd.f32 1e-06, %v2780_v32  ;;  %v2111_v15 = vpop.xlane.xlu1 %2110  ;;  %v12939_v0 = vld [vmem:[#allocation80_spill] sm:$0xff] }
 0x316   : > { %2317 = vadd.xlane.f32.xlu0 %v12935_v10  ;;  %v6235_v16 = vpop.eup %6234  ;;  %5346 = vst.msk [vmem:[%s10020_s26 + $0x8c] sm:$0xf] %vm5310_vm1, %v5927_v59  ;;  %v4067_v43 = vadd.f32 %v9992_v53, %v3804_v12  ;;  %v3543_v48 = vmul.f32 %v6233_v44, %v12936_v13  ;;  %v2108_v46 = vpop.xlane.xlu0 %2107  ;;  %v1932_v63 = vmul.f32 %v10260_v11, %v10260_v11  ;;  %v2783_v8 = vmul.f32 0.03125, %v2111_v15  ;;  %v6890_v10 = vld [vmem:[%s6976_s18 + $0x6f8] sm:$0xff]  ;;  %v6891_v15 = vld [vmem:[%s6976_s18 + $0x6f0] sm:$0xff] }
 0x317   : > { %5345 = vst.msk [vmem:[%s10020_s26 + $0x88] sm:$0xf] %vm5310_vm1, %v5926_v24  ;;  %v4066_v5 = vadd.f32 %v9992_v53, %v3803_v4  ;;  %v3542_v49 = vmul.f32 %v6235_v16, %v12937_v20  ;;  %6244 = vrsqrt.f32 %v3037_v61  ;;  %v2782_v32 = vmul.f32 0.03125, %v2108_v46  ;;  %v12940_v16 = vld [vmem:[#allocation81_spill] sm:$0xff] }
 0x318   : > { %v5929_v59 = vpack.c.bf16 %v4067_v43, %v4067_v43  ;;  %v3806_v12 = vmul.f32 %v9968_v18, %v3543_v48  ;;  %6246 = vrsqrt.f32 %v3036_v22  ;;  %v6237_v44 = vpop.eup %6236  ;;  %v10320_v13 = vsub.f32 %v6890_v10, %v1423_v40  ;;  %v12942_v22 = vld [vmem:[#allocation168_spill] sm:$0xff] }
 0x319   : > { %v5928_v11 = vpack.c.bf16 %v4066_v5, %v4066_v5  ;;  %v3805_v24 = vmul.f32 %v9968_v18, %v3542_v49  ;;  %v3039_v4 = vadd.f32 1e-06, %v2783_v8  ;;  %2326 = vadd.xlane.f32.xlu1 %v12939_v0  ;;  %v6239_v61 = vpop.eup %6238  ;;  %v10326_v43 = vsub.f32 %v6891_v15, %v1422_v2  ;;  %v2117_v20 = vpop.xlane.xlu1 %2116  ;;  %v12943_v0 = vld [vmem:[#allocation169_spill] sm:$0xff] }
 0x31a   : > { %12938 = vst [vmem:[#allocation48_spill] sm:$0xff] %v10320_v13  ;;  %2323 = vadd.xlane.f32.xlu0 %v12940_v16  ;;  %5348 = vst.msk [vmem:[%s10020_s26 + $0x94] sm:$0xf] %vm5310_vm1, %v5929_v59  ;;  %v4069_v48 = vadd.f32 %v9992_v53, %v3806_v12  ;;  %v3545_v46 = vmul.f32 %v6237_v44, %v12942_v22  ;;  %v3038_v40 = vadd.f32 1e-06, %v2782_v32  ;;  %v2114_v5 = vpop.xlane.xlu0 %2113  ;;  %v2785_v10 = vmul.f32 0.03125, %v2117_v20 }
 0x31b   : > { %12941 = vst [vmem:[#allocation49_spill] sm:$0xff] %v10326_v43  ;;  %5347 = vst.msk [vmem:[%s10020_s26 + $0x90] sm:$0xf] %vm5310_vm1, %v5928_v11  ;;  %v4068_v49 = vadd.f32 %v9992_v53, %v3805_v24  ;;  %v3544_v8 = vmul.f32 %v6239_v61, %v12943_v0  ;;  %6248 = vrsqrt.f32 %v3039_v4  ;;  %v2784_v59 = vmul.f32 0.03125, %v2114_v5  ;;  %v12944_v22 = vld [vmem:[#allocation83_spill] sm:$0xff]  ;;  %v12945_v11 = vld [vmem:[#allocation268_spill] sm:$0xff] }
 0x31c   : > { %v5931_v2 = vpack.c.bf16 %v4069_v48, %v4069_v48  ;;  %v3808_v16 = vmul.f32 %v9968_v18, %v3545_v46  ;;  %6250 = vrsqrt.f32 %v3038_v40  ;;  %v3041_v15 = vadd.f32 1e-06, %v2785_v10  ;;  %v12947_v48 = vld [vmem:[#allocation170_spill] sm:$0xff]  ;;  %v12949_v0 = vld [vmem:[#allocation173_spill] sm:$0xff] }
 0x31d   : > { %v6241_v12 = vpop.eup %6240  ;;  %v5930_v44 = vpack.c.bf16 %v4068_v49, %v4068_v49  ;;  %v3807_v32 = vmul.f32 %v9968_v18, %v3544_v8  ;;  %2332 = vadd.xlane.f32.xlu1 %v12944_v22  ;;  %v10341_v24 = vsel %vm430_vm0, %v1933_v27, 0.0  ;;  %v3040_v40 = vadd.f32 1e-06, %v2784_v59  ;;  %v2123_v20 = vpop.xlane.xlu1 %2122  ;;  %v12951_v22 = vld [vmem:[#allocation89_spill] sm:$0xff] }
 0x31e   : > { %2329 = vadd.xlane.f32.xlu0 %v12945_v11  ;;  %12946 = vst [vmem:[#allocation118_spill] sm:$0xff] %v10341_v24  ;;  %v6243_v4 = vpop.eup %6242  ;;  %5350 = vst.msk [vmem:[%s10020_s26 + $0x9c] sm:$0xf] %vm5310_vm1, %v5931_v2  ;;  %v4071_v61 = vadd.f32 %v9992_v53, %v3808_v16  ;;  %v3547_v46 = vmul.f32 %v6241_v12, %v12947_v48  ;;  %v2120_v5 = vpop.xlane.xlu0 %2119  ;;  %v10348_v18 = vsel %vm430_vm0, %v1932_v63, 0.0  ;;  %6252 = vrsqrt.f32 %v3041_v15  ;;  %v10357_v2 = vld [vmem:[%s11900_s1] ss:$0 sm:$0xff] }
 0x31f   : > { %12948 = vst [vmem:[#allocation119_spill] sm:$0xff] %v10348_v18  ;;  %5349 = vst.msk [vmem:[%s10020_s26 + $0x98] sm:$0xf] %vm5310_vm1, %v5930_v44  ;;  %v4070_v49 = vadd.f32 %v9992_v53, %v3807_v32  ;;  %v3546_v27 = vmul.f32 %v6243_v4, %v12949_v0  ;;  %v2787_v8 = vmul.f32 0.03125, %v2123_v20  ;;  %6254 = vrsqrt.f32 %v3040_v40  ;;  %v12950_v12 = vld [vmem:[#allocation93_spill] sm:$0xff]  ;;  %v12954_v20 = vld [vmem:[#allocation179_spill] sm:$0xff] }
 0x320   : > { %v5933_v10 = vpack.c.bf16 %v4071_v61, %v4071_v61  ;;  %v3810_v16 = vmul.f32 %v10357_v2, %v3547_v46  ;;  %v2786_v63 = vmul.f32 0.03125, %v2120_v5  ;;  %v1425_v44 = vmul.f32 0.03125, %v12950_v12  ;;  %v12952_v11 = vld [vmem:[#allocation273_spill] sm:$0xff]  ;;  %v12953_v61 = vld [vmem:[#allocation280_spill] sm:$0xff]  ;;  %v10370_v46 = vld [vmem:[%s11901_s2] ss:$0 sm:$0xff] }
 0x321   : > { %v6245_v59 = vpop.eup %6244  ;;  %v5932_v53 = vpack.c.bf16 %v4070_v49, %v4070_v49  ;;  %v3809_v32 = vmul.f32 %v10357_v2, %v3546_v27  ;;  %v3043_v15 = vadd.f32 1e-06, %v2787_v8  ;;  %2338 = vadd.xlane.f32.xlu1 %v12951_v22  ;;  %v1424_v48 = vmul.f32 0.03125, %v12953_v61  ;;  %v2129_v0 = vpop.xlane.xlu1 %2128  ;;  %v12955_v12 = vld [vmem:[#allocation3_spill] sm:$0xff] }
 0x322   : > { %2335 = vadd.xlane.f32.xlu0 %v12952_v11  ;;  %v6247_v4 = vpop.eup %6246  ;;  %5352 = vst.msk [vmem:[%s10020_s26 + $0xa4] sm:$0xf] %vm5310_vm1, %v5933_v10  ;;  %v4073_v40 = vadd.f32 %v10370_v46, %v3810_v16  ;;  %v3549_v5 = vmul.f32 %v6245_v59, %v12954_v20  ;;  %v3042_v49 = vadd.f32 1e-06, %v2786_v63  ;;  %v2126_v27 = vpop.xlane.xlu0 %2125  ;;  %v2789_v10 = vmul.f32 0.03125, %v2129_v0  ;;  %v12956_v24 = vld [vmem:[#allocation91_spill] sm:$0xff] }
 0x323   : > { %5351 = vst.msk [vmem:[%s10020_s26 + $0xa0] sm:$0xf] %vm5310_vm1, %v5932_v53  ;;  %v4072_v8 = vadd.f32 %v10370_v46, %v3809_v32  ;;  %v3548_v22 = vmul.f32 %v6247_v4, %v12955_v12  ;;  %6256 = vrsqrt.f32 %v3043_v15  ;;  %v2788_v18 = vmul.f32 0.03125, %v2126_v27  ;;  %v12957_v53 = vld [vmem:[#allocation274_spill] sm:$0xff]  ;;  %v12959_v12 = vld [vmem:[#allocation184_spill] sm:$0xff] }
 0x324   : > { %v5935_v11 = vpack.c.bf16 %v4073_v40, %v4073_v40  ;;  %v3812_v61 = vmul.f32 %v10357_v2, %v3549_v5  ;;  %6258 = vrsqrt.f32 %v3042_v49  ;;  %v3045_v20 = vadd.f32 1e-06, %v2789_v10  ;;  %v12958_v40 = vld [vmem:[#allocation183_spill] sm:$0xff] }
 0x325   : > { %v6249_v16 = vpop.eup %6248  ;;  %v5934_v59 = vpack.c.bf16 %v4072_v8, %v4072_v8  ;;  %v3811_v63 = vmul.f32 %v10357_v2, %v3548_v22  ;;  %2344 = vadd.xlane.f32.xlu1 %v12956_v24  ;;  %v1935_v32 = vmul.f32 %v10320_v13, %v10320_v13  ;;  %v3044_v49 = vadd.f32 1e-06, %v2788_v18  ;;  %v2135_v0 = vpop.xlane.xlu1 %2134  ;;  %v12961_v13 = vld [vmem:[#allocation275_spill] sm:$0xff] }
 0x326   : > { %2341 = vadd.xlane.f32.xlu0 %v12957_v53  ;;  %v6251_v15 = vpop.eup %6250  ;;  %5354 = vst.msk [vmem:[%s10020_s26 + $0xac] sm:$0xf] %vm5310_vm1, %v5935_v11  ;;  %v4075_v4 = vadd.f32 %v10370_v46, %v3812_v61  ;;  %v3551_v5 = vmul.f32 %v6249_v16, %v12958_v40  ;;  %v2132_v27 = vpop.xlane.xlu0 %2131  ;;  %v1934_v8 = vmul.f32 %v10326_v43, %v10326_v43  ;;  %6260 = vrsqrt.f32 %v3045_v20  ;;  %v6894_v53 = vld [vmem:[%s6976_s18 + $0x708] sm:$0xff] }
 0x327   : > { %5353 = vst.msk [vmem:[%s10020_s26 + $0xa8] sm:$0xf] %vm5310_vm1, %v5934_v59  ;;  %v4074_v24 = vadd.f32 %v10370_v46, %v3811_v63  ;;  %v3550_v22 = vmul.f32 %v6251_v15, %v12959_v12  ;;  %v2791_v10 = vmul.f32 0.03125, %v2135_v0  ;;  %6262 = vrsqrt.f32 %v3044_v49  ;;  %v12962_v15 = vld [vmem:[#allocation276_spill] sm:$0xff]  ;;  %v6895_v0 = vld [vmem:[%s6976_s18 + $0x700] sm:$0xff] }
 0x328   : > { %v5937_v11 = vpack.c.bf16 %v4075_v4, %v4075_v4  ;;  %v3814_v61 = vmul.f32 %v10357_v2, %v3551_v5  ;;  %v2790_v18 = vmul.f32 0.03125, %v2132_v27  ;;  %v6253_v16 = vpop.eup %6252  ;;  %v10396_v40 = vsub.f32 %v6894_v53, %v1425_v44  ;;  %v12964_v49 = vld [vmem:[#allocation6_spill] sm:$0xff] }
 0x329   : > { %v5936_v43 = vpack.c.bf16 %v4074_v24, %v4074_v24  ;;  %v3813_v59 = vmul.f32 %v10357_v2, %v3550_v22  ;;  %v3047_v63 = vadd.f32 1e-06, %v2791_v10  ;;  %2350 = vadd.xlane.f32.xlu1 %v12961_v13  ;;  %v6255_v20 = vpop.eup %6254  ;;  %v10402_v4 = vsub.f32 %v6895_v0, %v1424_v48  ;;  %v2141_v12 = vpop.xlane.xlu1 %2140  ;;  %v12965_v13 = vld [vmem:[#allocation185_spill] sm:$0xff] }
 0x32a   : > { %12960 = vst [vmem:[#allocation51_spill] sm:$0xff] %v10396_v40  ;;  %2347 = vadd.xlane.f32.xlu0 %v12962_v15  ;;  %5356 = vst.msk [vmem:[%s10020_s26 + $0xb4] sm:$0xf] %vm5310_vm1, %v5937_v11  ;;  %v4077_v5 = vadd.f32 %v10370_v46, %v3814_v61  ;;  %v3553_v27 = vmul.f32 %v6253_v16, %v12964_v49  ;;  %v3046_v44 = vadd.f32 1e-06, %v2790_v18  ;;  %v2138_v24 = vpop.xlane.xlu0 %2137  ;;  %v2793_v53 = vmul.f32 0.03125, %v2141_v12 }
 0x32b   : > { %12963 = vst [vmem:[#allocation236_spill] sm:$0xff] %v10402_v4  ;;  %5355 = vst.msk [vmem:[%s10020_s26 + $0xb0] sm:$0xf] %vm5310_vm1, %v5936_v43  ;;  %v4076_v22 = vadd.f32 %v10370_v46, %v3813_v59  ;;  %v3552_v10 = vmul.f32 %v6255_v20, %v12965_v13  ;;  %6264 = vrsqrt.f32 %v3047_v63  ;;  %v2792_v11 = vmul.f32 0.03125, %v2138_v24  ;;  %v12966_v49 = vld [vmem:[#allocation92_spill] sm:$0xff] }
 0x32c   : > { %v5939_v48 = vpack.c.bf16 %v4077_v5, %v4077_v5  ;;  %v3816_v15 = vmul.f32 %v10357_v2, %v3553_v27  ;;  %6266 = vrsqrt.f32 %v3046_v44  ;;  %v3049_v0 = vadd.f32 1e-06, %v2793_v53  ;;  %v12967_v43 = vld [vmem:[#allocation176_spill] sm:$0xff]  ;;  %v12969_v5 = vld [vmem:[#allocation7_spill] sm:$0xff] }
 0x32d   : > { %v6257_v61 = vpop.eup %6256  ;;  %v5938_v16 = vpack.c.bf16 %v4076_v22, %v4076_v22  ;;  %v3815_v18 = vmul.f32 %v10357_v2, %v3552_v10  ;;  %2356 = vadd.xlane.f32.xlu1 %v12966_v49  ;;  %v10417_v59 = vsel %vm430_vm0, %v1935_v32, 0.0  ;;  %v3048_v44 = vadd.f32 1e-06, %v2792_v11  ;;  %v2147_v12 = vpop.xlane.xlu1 %2146  ;;  %v12971_v10 = vld [vmem:[#allocation8_spill] sm:$0xff]  ;;  %v12972_v49 = vld [vmem:[#allocation99_spill] sm:$0xff] }
 0x32e   : > { %2353 = vadd.xlane.f32.xlu0 %v12967_v43  ;;  %12968 = vst [vmem:[#allocation120_spill] sm:$0xff] %v10417_v59  ;;  %v6259_v63 = vpop.eup %6258  ;;  %5358 = vst.msk [vmem:[%s10020_s26 + $0xbc] sm:$0xf] %vm5310_vm1, %v5939_v48  ;;  %v4079_v20 = vadd.f32 %v10370_v46, %v3816_v15  ;;  %v3555_v27 = vmul.f32 %v6257_v61, %v12969_v5  ;;  %v2144_v24 = vpop.xlane.xlu0 %2143  ;;  %v10424_v22 = vsel %vm430_vm0, %v1934_v8, 0.0  ;;  %6268 = vrsqrt.f32 %v3049_v0  ;;  %v12975_v0 = vld [vmem:[#allocation100_spill] sm:$0xff]  ;;  %v12978_v59 = vld [vmem:[#allocation281_spill] sm:$0xff] }
 0x32f   : > { %12970 = vst [vmem:[#allocation123_spill] sm:$0xff] %v10424_v22  ;;  %5357 = vst.msk [vmem:[%s10020_s26 + $0xb8] sm:$0xf] %vm5310_vm1, %v5938_v16  ;;  %v4078_v13 = vadd.f32 %v10370_v46, %v3815_v18  ;;  %v3554_v32 = vmul.f32 %v6259_v63, %v12971_v10  ;;  %v2795_v53 = vmul.f32 0.03125, %v2147_v12  ;;  %6270 = vrsqrt.f32 %v3048_v44  ;;  %v12973_v22 = vld [vmem:[#allocation180_spill] sm:$0xff]  ;;  %v12974_v18 = vld [vmem:[#allocation278_spill] sm:$0xff] }
 0x330   : > { %v5941_v48 = vpack.c.bf16 %v4079_v20, %v4079_v20  ;;  %v3818_v15 = vmul.f32 %v10357_v2, %v3555_v27  ;;  %v2794_v61 = vmul.f32 0.03125, %v2144_v24  ;;  %v6261_v11 = vpop.eup %6260  ;;  %v1427_v43 = vmul.f32 0.03125, %v12972_v49  ;;  %v12976_v27 = vld [vmem:[#allocation186_spill] sm:$0xff] }
 0x331   : > { %v5940_v8 = vpack.c.bf16 %v4078_v13, %v4078_v13  ;;  %v3817_v5 = vmul.f32 %v10357_v2, %v3554_v32  ;;  %v3051_v16 = vadd.f32 1e-06, %v2795_v53  ;;  %2362 = vadd.xlane.f32.xlu1 %v12973_v22  ;;  %v6263_v63 = vpop.eup %6262  ;;  %v1426_v12 = vmul.f32 0.03125, %v12975_v0  ;;  %v2153_v10 = vpop.xlane.xlu1 %2152  ;;  %v12977_v32 = vld [vmem:[#allocation188_spill] sm:$0xff] }
 0x332   : > { %2359 = vadd.xlane.f32.xlu0 %v12974_v18  ;;  %5360 = vst.msk [vmem:[%s10020_s26 + $0xc4] sm:$0xf] %vm5310_vm1, %v5941_v48  ;;  %v4081_v20 = vadd.f32 %v10370_v46, %v3818_v15  ;;  %v3557_v44 = vmul.f32 %v6261_v11, %v12976_v27  ;;  %v3050_v24 = vadd.f32 1e-06, %v2794_v61  ;;  %v2150_v49 = vpop.xlane.xlu0 %2149  ;;  %v3556_v22 = vmul.f32 %v6263_v63, %v12977_v32  ;;  %v12981_v32 = vld [vmem:[#allocation190_spill] sm:$0xff] }
 0x333   : > { %5359 = vst.msk [vmem:[%s10020_s26 + $0xc0] sm:$0xf] %vm5310_vm1, %v5940_v8  ;;  %v4080_v13 = vadd.f32 %v10370_v46, %v3817_v5  ;;  %6272 = vrsqrt.f32 %v3051_v16  ;;  %v2797_v53 = vmul.f32 0.03125, %v2153_v10  ;;  %v2796_v48 = vmul.f32 0.03125, %v2150_v49  ;;  %v12979_v8 = vld [vmem:[#allocation94_spill] sm:$0xff] }
 0x334   : > { %v5943_v18 = vpack.c.bf16 %v4081_v20, %v4081_v20  ;;  %v3820_v0 = vmul.f32 %v10357_v2, %v3557_v44  ;;  %6274 = vrsqrt.f32 %v3050_v24  ;;  %v3819_v61 = vmul.f32 %v10357_v2, %v3556_v22  ;;  %v12980_v20 = vld [vmem:[#allocation189_spill] sm:$0xff] }
 0x335   : > { %v6265_v15 = vpop.eup %6264  ;;  %v5942_v11 = vpack.c.bf16 %v4080_v13, %v4080_v13  ;;  %v3053_v27 = vadd.f32 1e-06, %v2797_v53  ;;  %2368 = vadd.xlane.f32.xlu1 %v12978_v59  ;;  %v1937_v5 = vmul.f32 %v10396_v40, %v10396_v40  ;;  %v3052_v24 = vadd.f32 1e-06, %v2796_v48  ;;  %v2159_v10 = vpop.xlane.xlu1 %2158  ;;  %v12983_v40 = vld [vmem:[#allocation96_spill] sm:$0xff] }
 0x336   : > { %2365 = vadd.xlane.f32.xlu0 %v12979_v8  ;;  %v6267_v16 = vpop.eup %6266  ;;  %5362 = vst.msk [vmem:[%s10020_s26 + $0xcc] sm:$0xf] %vm5310_vm1, %v5943_v18  ;;  %v4083_v63 = vadd.f32 %v10370_v46, %v3820_v0  ;;  %v3559_v44 = vmul.f32 %v6265_v15, %v12980_v20  ;;  %v2156_v49 = vpop.xlane.xlu0 %2155  ;;  %v1936_v13 = vmul.f32 %v10402_v4, %v10402_v4  ;;  %v2799_v53 = vmul.f32 0.03125, %v2159_v10  ;;  %v6896_v8 = vld [vmem:[%s6976_s18 + $0x718] sm:$0xff]  ;;  %v6897_v10 = vld [vmem:[%s6976_s18 + $0x710] sm:$0xff] }
 0x337   : > { %5361 = vst.msk [vmem:[%s10020_s26 + $0xc8] sm:$0xf] %vm5310_vm1, %v5942_v11  ;;  %v4082_v59 = vadd.f32 %v10370_v46, %v3819_v61  ;;  %v3558_v22 = vmul.f32 %v6267_v16, %v12981_v32  ;;  %6276 = vrsqrt.f32 %v3053_v27  ;;  %v2798_v48 = vmul.f32 0.03125, %v2156_v49  ;;  %v12984_v16 = vld [vmem:[#allocation97_spill] sm:$0xff] }
 0x338   : > { %v5945_v18 = vpack.c.bf16 %v4083_v63, %v4083_v63  ;;  %v3822_v0 = vmul.f32 %v10357_v2, %v3559_v44  ;;  %6278 = vrsqrt.f32 %v3052_v24  ;;  %v6269_v15 = vpop.eup %6268  ;;  %v10462_v20 = vsub.f32 %v6896_v8, %v1427_v43  ;;  %v12986_v24 = vld [vmem:[#allocation10_spill] sm:$0xff] }
 0x339   : > { %v5944_v4 = vpack.c.bf16 %v4082_v59, %v4082_v59  ;;  %v3821_v11 = vmul.f32 %v10357_v2, %v3558_v22  ;;  %v3055_v61 = vadd.f32 1e-06, %v2799_v53  ;;  %2374 = vadd.xlane.f32.xlu1 %v12983_v40  ;;  %v6271_v27 = vpop.eup %6270  ;;  %v10468_v63 = vsub.f32 %v6897_v10, %v1426_v12  ;;  %v12987_v40 = vld [vmem:[#allocation194_spill] sm:$0xff] }
 0x33a   : > { %12982 = vst [vmem:[#allocation57_spill] sm:$0xff] %v10462_v20  ;;  %2371 = vadd.xlane.f32.xlu0 %v12984_v16  ;;  %5364 = vst.msk [vmem:[%s10020_s26 + $0xd4] sm:$0xf] %vm5310_vm1, %v5945_v18  ;;  %v4085_v44 = vadd.f32 %v10370_v46, %v3822_v0  ;;  %v3561_v49 = vmul.f32 %v6269_v15, %v12986_v24  ;;  %v3054_v43 = vadd.f32 1e-06, %v2798_v48  ;;  %v2165_v32 = vpop.xlane.xlu1 %2164  ;;  %v2162_v59 = vpop.xlane.xlu0 %2161  ;;  %v12988_v24 = vld [vmem:[#allocation2_spill] sm:$0xff] }
 0x33b   : > { %12985 = vst [vmem:[#allocation241_spill] sm:$0xff] %v10468_v63  ;;  %5363 = vst.msk [vmem:[%s10020_s26 + $0xd0] sm:$0xf] %vm5310_vm1, %v5944_v4  ;;  %v4084_v22 = vadd.f32 %v10370_v46, %v3821_v11  ;;  %v3560_v53 = vmul.f32 %v6271_v27, %v12987_v40  ;;  %6280 = vrsqrt.f32 %v3055_v61  ;;  %v2801_v8 = vmul.f32 0.03125, %v2165_v32  ;;  %v12989_v27 = vld [vmem:[#allocation198_spill] sm:$0xff] }
 0x33c   : > { %v5947_v12 = vpack.c.bf16 %v4085_v44, %v4085_v44  ;;  %v3824_v16 = vmul.f32 %v10357_v2, %v3561_v49  ;;  %6282 = vrsqrt.f32 %v3054_v43  ;;  %v2800_v18 = vmul.f32 0.03125, %v2162_v59 }
 0x33d   : > { %v6273_v0 = vpop.eup %6272  ;;  %v5946_v15 = vpack.c.bf16 %v4084_v22, %v4084_v22  ;;  %v3823_v48 = vmul.f32 %v10357_v2, %v3560_v53  ;;  %v3057_v10 = vadd.f32 1e-06, %v2801_v8  ;;  %2380 = vadd.xlane.f32.xlu1 %v12988_v24  ;;  %v10483_v4 = vsel %vm430_vm0, %v1937_v5, 0.0  ;;  %v12990_v22 = vld [vmem:[#allocation15_spill] sm:$0xff] }
 0x33e   : > { %2377 = vadd.xlane.f32.xlu0 %v9278_v45  ;;  %v6275_v11 = vpop.eup %6274  ;;  %5366 = vst.msk [vmem:[%s10020_s26 + $0xdc] sm:$0xf] %vm5310_vm1, %v5947_v12  ;;  %v4087_v61 = vadd.f32 %v10370_v46, %v3824_v16  ;;  %v3563_v44 = vmul.f32 %v6273_v0, %v12989_v27  ;;  %v3056_v49 = vadd.f32 1e-06, %v2800_v18  ;;  %v2171_v43 = vpop.xlane.xlu1 %2170  ;;  %v10490_v59 = vsel %vm430_vm0, %v1936_v13, 0.0  ;;  %v12993_v27 = vld [vmem:[#allocation18_spill] sm:$0xff] }
 0x33f   : > { %v2168_v32 = vpop.xlane.xlu0 %2167  ;;  %5365 = vst.msk [vmem:[%s10020_s26 + $0xd8] sm:$0xf] %vm5310_vm1, %v5946_v15  ;;  %v4086_v45 = vadd.f32 %v10370_v46, %v3823_v48  ;;  %v3562_v5 = vmul.f32 %v6275_v11, %v12990_v22  ;;  %6284 = vrsqrt.f32 %v3057_v10  ;;  %v2803_v40 = vmul.f32 0.03125, %v2171_v43  ;;  %v12991_v48 = vld [vmem:[#allocation287_spill] sm:$0xff] }
 0x340   : > { %v5949_v53 = vpack.c.bf16 %v4087_v61, %v4087_v61  ;;  %v3826_v8 = vmul.f32 %v10357_v2, %v3563_v44  ;;  %6286 = vrsqrt.f32 %v3056_v49  ;;  %v2802_v12 = vmul.f32 0.03125, %v2168_v32  ;;  %v12992_v10 = vld [vmem:[#allocation107_spill] sm:$0xff] }
 0x341   : > { %v6277_v16 = vpop.eup %6276  ;;  %v1429_v18 = vmul.f32 0.03125, %v9284_v35  ;;  %v5948_v13 = vpack.c.bf16 %v4086_v45, %v4086_v45  ;;  %v3825_v0 = vmul.f32 %v10357_v2, %v3562_v5  ;;  %v3059_v15 = vadd.f32 1e-06, %v2803_v40  ;;  %2386 = vadd.xlane.f32.xlu1 %v9289_v33  ;;  %v12994_v45 = vld [vmem:[#allocation21_spill] sm:$0xff] }
 0x342   : > { %2383 = vadd.xlane.f32.xlu0 %v12991_v48  ;;  %v6279_v24 = vpop.eup %6278  ;;  %v1428_v11 = vmul.f32 0.03125, %v12992_v10  ;;  %5368 = vst.msk [vmem:[%s10020_s26 + $0xe4] sm:$0xf] %vm5310_vm1, %v5949_v53  ;;  %v4089_v61 = vadd.f32 %v10370_v46, %v3826_v8  ;;  %v3565_v44 = vmul.f32 %v6277_v16, %v12993_v27  ;;  %v3058_v49 = vadd.f32 1e-06, %v2802_v12  ;;  %v2177_v43 = vpop.xlane.xlu1 %2176  ;;  %v12995_v10 = vld [vmem:[#allocation289_spill] sm:$0xff] }
 0x343   : > { %v2174_v35 = vpop.xlane.xlu0 %2173  ;;  %5367 = vst.msk [vmem:[%s10020_s26 + $0xe0] sm:$0xf] %vm5310_vm1, %v5948_v13  ;;  %v4088_v32 = vadd.f32 %v10370_v46, %v3825_v0  ;;  %v3564_v33 = vmul.f32 %v6279_v24, %v12994_v45  ;;  %6288 = vrsqrt.f32 %v3059_v15  ;;  %v2805_v22 = vmul.f32 0.03125, %v2177_v43  ;;  %v12996_v13 = vld [vmem:[#allocation290_spill] sm:$0xff] }
 0x344   : > { %v5951_v5 = vpack.c.bf16 %v4089_v61, %v4089_v61  ;;  %v3828_v40 = vmul.f32 %v10357_v2, %v3565_v44  ;;  %6290 = vrsqrt.f32 %v3058_v49  ;;  %v2804_v53 = vmul.f32 0.03125, %v2174_v35  ;;  %v12997_v61 = vld [vmem:[#allocation201_spill] sm:$0xff]  ;;  %v12998_v45 = vld [vmem:[#allocation202_spill] sm:$0xff] }
 0x345   : > { %v6281_v8 = vpop.eup %6280  ;;  %v5950_v16 = vpack.c.bf16 %v4088_v32, %v4088_v32  ;;  %v3827_v12 = vmul.f32 %v10357_v2, %v3564_v33  ;;  %v3061_v48 = vadd.f32 1e-06, %v2805_v22  ;;  %2392 = vadd.xlane.f32.xlu1 %v12995_v10  ;;  %v1939_v0 = vmul.f32 %v10462_v20, %v10462_v20  ;;  %v6898_v10 = vld [vmem:[%s6976_s18 + $0x728] sm:$0xff]  ;;  %v13011_v20 = vld [vmem:[#allocation193_spill] sm:$0xff] }
 0x346   : > { %2389 = vadd.xlane.f32.xlu0 %v12996_v13  ;;  %v6283_v15 = vpop.eup %6282  ;;  %5370 = vst.msk [vmem:[%s10020_s26 + $0xec] sm:$0xf] %vm5310_vm1, %v5951_v5  ;;  %v4091_v24 = vadd.f32 %v10370_v46, %v3828_v40  ;;  %v3567_v27 = vmul.f32 %v6281_v8, %v12997_v61  ;;  %v3060_v44 = vadd.f32 1e-06, %v2804_v53  ;;  %v2183_v49 = vpop.xlane.xlu1 %2182  ;;  %v1938_v35 = vmul.f32 %v10468_v63, %v10468_v63  ;;  %v13000_v63 = vld [vmem:[#allocation291_spill] sm:$0xff] }
 0x347   : > { %v2180_v43 = vpop.xlane.xlu0 %2179  ;;  %5369 = vst.msk [vmem:[%s10020_s26 + $0xe8] sm:$0xf] %vm5310_vm1, %v5950_v16  ;;  %v4090_v32 = vadd.f32 %v10370_v46, %v3827_v12  ;;  %v3566_v33 = vmul.f32 %v6283_v15, %v12998_v45  ;;  %6292 = vrsqrt.f32 %v3061_v48  ;;  %v2807_v22 = vmul.f32 0.03125, %v2183_v49  ;;  %v13001_v15 = vld [vmem:[#allocation292_spill] sm:$0xff]  ;;  %v6899_v49 = vld [vmem:[%s6976_s18 + $0x720] sm:$0xff] }
 0x348   : > { %v5953_v5 = vpack.c.bf16 %v4091_v24, %v4091_v24  ;;  %v3830_v40 = vmul.f32 %v10357_v2, %v3567_v27  ;;  %6294 = vrsqrt.f32 %v3060_v44  ;;  %v2806_v53 = vmul.f32 0.03125, %v2180_v43  ;;  %v13003_v44 = vld [vmem:[#allocation22_spill] sm:$0xff] }
 0x349   : > { %v6285_v8 = vpop.eup %6284  ;;  %v10528_v13 = vsub.f32 %v6898_v10, %v1429_v18  ;;  %v5952_v61 = vpack.c.bf16 %v4090_v32, %v4090_v32  ;;  %v3829_v16 = vmul.f32 %v10357_v2, %v3566_v33  ;;  %v3063_v12 = vadd.f32 1e-06, %v2807_v22  ;;  %2398 = vadd.xlane.f32.xlu1 %v13000_v63  ;;  %v13004_v63 = vld [vmem:[#allocation23_spill] sm:$0xff] }
 0x34a   : > { %2395 = vadd.xlane.f32.xlu0 %v13001_v15  ;;  %v6287_v48 = vpop.eup %6286  ;;  %v10534_v24 = vsub.f32 %v6899_v49, %v1428_v11  ;;  %5372 = vst.msk [vmem:[%s10020_s26 + $0xf4] sm:$0xf] %vm5310_vm1, %v5953_v5  ;;  %v4093_v27 = vadd.f32 %v10370_v46, %v3830_v40  ;;  %v3569_v43 = vmul.f32 %v6285_v8, %v13003_v44  ;;  %v3062_v18 = vadd.f32 1e-06, %v2806_v53  ;;  %v2189_v45 = vpop.xlane.xlu1 %2188  ;;  %v13005_v44 = vld [vmem:[#allocation112_spill] sm:$0xff] }
 0x34b   : > { %12999 = vst [vmem:[#allocation124_spill] sm:$0xff] %v10528_v13  ;;  %v2186_v32 = vpop.xlane.xlu0 %2185  ;;  %5371 = vst.msk [vmem:[%s10020_s26 + $0xf0] sm:$0xf] %vm5310_vm1, %v5952_v61  ;;  %v4092_v33 = vadd.f32 %v10370_v46, %v3829_v16  ;;  %v3568_v22 = vmul.f32 %v6287_v48, %v13004_v63  ;;  %6296 = vrsqrt.f32 %v3063_v12  ;;  %v2809_v10 = vmul.f32 0.03125, %v2189_v45  ;;  %v13006_v61 = vld [vmem:[#allocation192_spill] sm:$0xff] }
 0x34c   : > { %13002 = vst [vmem:[#allocation125_spill] sm:$0xff] %v10534_v24  ;;  %v5955_v11 = vpack.c.bf16 %v4093_v27, %v4093_v27  ;;  %v3832_v15 = vmul.f32 %v10357_v2, %v3569_v43  ;;  %6298 = vrsqrt.f32 %v3062_v18  ;;  %v2808_v5 = vmul.f32 0.03125, %v2186_v32  ;;  %v13007_v27 = vld [vmem:[#allocation24_spill] sm:$0xff] }
 0x34d   : > { %v6289_v40 = vpop.eup %6288  ;;  %v5954_v8 = vpack.c.bf16 %v4092_v33, %v4092_v33  ;;  %v3831_v53 = vmul.f32 %v10357_v2, %v3568_v22  ;;  %v3065_v49 = vadd.f32 1e-06, %v2809_v10  ;;  %2404 = vadd.xlane.f32.xlu1 %v13005_v44  ;;  %v10549_v16 = vsel %vm430_vm0, %v1939_v0, 0.0  ;;  %v13009_v22 = vld [vmem:[#allocation203_spill] sm:$0xff] }
 0x34e   : > { %2401 = vadd.xlane.f32.xlu0 %v13006_v61  ;;  %v6291_v12 = vpop.eup %6290  ;;  %5374 = vst.msk [vmem:[%s10020_s26 + $0xfc] sm:$0xf] %vm5310_vm1, %v5955_v11  ;;  %v4095_v48 = vadd.f32 %v10370_v46, %v3832_v15  ;;  %v3571_v43 = vmul.f32 %v6289_v40, %v13007_v27  ;;  %v3064_v18 = vadd.f32 1e-06, %v2808_v5  ;;  %v2195_v45 = vpop.xlane.xlu1 %2194  ;;  %v10556_v33 = vsel %vm430_vm0, %v1938_v35, 0.0  ;;  %v13010_v44 = vld [vmem:[#allocation111_spill] sm:$0xff] }
 0x34f   : > { %v2192_v32 = vpop.xlane.xlu0 %2191  ;;  %13008 = vst [vmem:[#allocation59_spill] sm:$0xff] %v10556_v33  ;;  %5373 = vst.msk [vmem:[%s10020_s26 + $0xf8] sm:$0xf] %vm5310_vm1, %v5954_v8  ;;  %v4094_v63 = vadd.f32 %v10370_v46, %v3831_v53  ;;  %v3570_v0 = vmul.f32 %v6291_v12, %v13009_v22  ;;  %6300 = vrsqrt.f32 %v3065_v49  ;;  %v2811_v10 = vmul.f32 0.03125, %v2195_v45  ;;  %v13012_v53 = vld [vmem:[#allocation294_spill] sm:$0xff]  ;;  %v13013_v49 = vld [vmem:[#allocation288_spill] sm:$0xff] }
 0x350   : > { %v5957_v11 = vpack.c.bf16 %v4095_v48, %v4095_v48  ;;  %v3834_v15 = vmul.f32 %v10357_v2, %v3571_v43  ;;  %6302 = vrsqrt.f32 %v3064_v18  ;;  %v2810_v40 = vmul.f32 0.03125, %v2192_v32  ;;  %v13014_v43 = vld [vmem:[#allocation204_spill] sm:$0xff]  ;;  %v13016_v33 = vld [vmem:[#allocation297_spill] sm:$0xff] }
 0x351   : > { %v6293_v5 = vpop.eup %6292  ;;  %v1431_v61 = vmul.f32 0.03125, %v13010_v44  ;;  %v5956_v35 = vpack.c.bf16 %v4094_v63, %v4094_v63  ;;  %v3833_v27 = vmul.f32 %v10357_v2, %v3570_v0  ;;  %v3067_v8 = vadd.f32 1e-06, %v2811_v10  ;;  %2410 = vadd.xlane.f32.xlu1 %v13011_v20  ;;  %v13015_v0 = vld [vmem:[#allocation205_spill] sm:$0xff] }
 0x352   : > { %2407 = vadd.xlane.f32.xlu0 %v13012_v53  ;;  %v6295_v12 = vpop.eup %6294  ;;  %v1430_v45 = vmul.f32 0.03125, %v13013_v49  ;;  %5376 = vst.msk [vmem:[%s10020_s26 + $0x104] sm:$0xf] %vm5310_vm1, %v5957_v11  ;;  %v4097_v48 = vadd.f32 %v10370_v46, %v3834_v15  ;;  %v3573_v18 = vmul.f32 %v6293_v5, %v13014_v43  ;;  %v3066_v32 = vadd.f32 1e-06, %v2810_v40  ;;  %v2201_v22 = vpop.xlane.xlu1 %2200 }
 0x353   : > { %v2198_v44 = vpop.xlane.xlu0 %2197  ;;  %5375 = vst.msk [vmem:[%s10020_s26 + $0x100] sm:$0xf] %vm5310_vm1, %v5956_v35  ;;  %v4096_v63 = vadd.f32 %v10370_v46, %v3833_v27  ;;  %v3572_v20 = vmul.f32 %v6295_v12, %v13015_v0  ;;  %6304 = vrsqrt.f32 %v3067_v8  ;;  %v2813_v10 = vmul.f32 0.03125, %v2201_v22  ;;  %v13017_v35 = vld [vmem:[#allocation122_spill] sm:$0xff]  ;;  %v13019_v0 = vld [vmem:[#allocation207_spill] sm:$0xff] }
 0x354   : > { %v5959_v53 = vpack.c.bf16 %v4097_v48, %v4097_v48  ;;  %v3836_v49 = vmul.f32 %v10357_v2, %v3573_v18  ;;  %6306 = vrsqrt.f32 %v3066_v32  ;;  %v2812_v11 = vmul.f32 0.03125, %v2198_v44  ;;  %v13018_v48 = vld [vmem:[#allocation206_spill] sm:$0xff] }
 0x355   : > { %v6297_v15 = vpop.eup %6296  ;;  %v5958_v5 = vpack.c.bf16 %v4096_v63, %v4096_v63  ;;  %v3835_v40 = vmul.f32 %v10357_v2, %v3572_v20  ;;  %v3069_v43 = vadd.f32 1e-06, %v2813_v10  ;;  %2416 = vadd.xlane.f32.xlu1 %v13016_v33  ;;  %v1941_v27 = vmul.f32 %v10528_v13, %v10528_v13  ;;  %v13021_v13 = vld [vmem:[#allocation128_spill] sm:$0xff] }
 0x356   : > { %2413 = vadd.xlane.f32.xlu0 %v13017_v35  ;;  %v6299_v8 = vpop.eup %6298  ;;  %5378 = vst.msk [vmem:[%s10020_s26 + $0x10c] sm:$0xf] %vm5310_vm1, %v5959_v53  ;;  %v4099_v12 = vadd.f32 %v10370_v46, %v3836_v49  ;;  %v3575_v18 = vmul.f32 %v6297_v15, %v13018_v48  ;;  %v3068_v32 = vadd.f32 1e-06, %v2812_v11  ;;  %v2207_v22 = vpop.xlane.xlu1 %2206  ;;  %v1940_v63 = vmul.f32 %v10534_v24, %v10534_v24  ;;  %v6900_v35 = vld [vmem:[%s6976_s18 + $0x738] sm:$0xff] }
 0x357   : > { %v2204_v44 = vpop.xlane.xlu0 %2203  ;;  %5377 = vst.msk [vmem:[%s10020_s26 + $0x108] sm:$0xf] %vm5310_vm1, %v5958_v5  ;;  %v4098_v33 = vadd.f32 %v10370_v46, %v3835_v40  ;;  %v3574_v20 = vmul.f32 %v6299_v8, %v13019_v0  ;;  %6308 = vrsqrt.f32 %v3069_v43  ;;  %v2815_v10 = vmul.f32 0.03125, %v2207_v22  ;;  %v13022_v8 = vld [vmem:[#allocation130_spill] sm:$0xff]  ;;  %v6901_v22 = vld [vmem:[%s6976_s18 + $0x730] sm:$0xff] }
 0x358   : > { %v5961_v53 = vpack.c.bf16 %v4099_v12, %v4099_v12  ;;  %v3838_v49 = vmul.f32 %v10357_v2, %v3575_v18  ;;  %6310 = vrsqrt.f32 %v3068_v32  ;;  %v2814_v11 = vmul.f32 0.03125, %v2204_v44  ;;  %v13024_v32 = vld [vmem:[#allocation26_spill] sm:$0xff] }
 0x359   : > { %v6301_v15 = vpop.eup %6300  ;;  %v10594_v48 = vsub.f32 %v6900_v35, %v1431_v61  ;;  %v5960_v24 = vpack.c.bf16 %v4098_v33, %v4098_v33  ;;  %v3837_v5 = vmul.f32 %v10357_v2, %v3574_v20  ;;  %v3071_v40 = vadd.f32 1e-06, %v2815_v10  ;;  %2422 = vadd.xlane.f32.xlu1 %v13021_v13  ;;  %v13025_v13 = vld [vmem:[#allocation209_spill] sm:$0xff] }
 0x35a   : > { %2419 = vadd.xlane.f32.xlu0 %v13022_v8  ;;  %v6303_v43 = vpop.eup %6302  ;;  %v10600_v12 = vsub.f32 %v6901_v22, %v1430_v45  ;;  %5380 = vst.msk [vmem:[%s10020_s26 + $0x114] sm:$0xf] %vm5310_vm1, %v5961_v53  ;;  %v4101_v18 = vadd.f32 %v10370_v46, %v3838_v49  ;;  %v3577_v44 = vmul.f32 %v6301_v15, %v13024_v32  ;;  %v3070_v61 = vadd.f32 1e-06, %v2814_v11  ;;  %v2213_v0 = vpop.xlane.xlu1 %2212  ;;  %v13026_v32 = vld [vmem:[#allocation12_spill] sm:$0xff] }
 0x35b   : > { %13020 = vst [vmem:[#allocation242_spill] sm:$0xff] %v10594_v48  ;;  %v2210_v33 = vpop.xlane.xlu0 %2209  ;;  %5379 = vst.msk [vmem:[%s10020_s26 + $0x110] sm:$0xf] %vm5310_vm1, %v5960_v24  ;;  %v4100_v20 = vadd.f32 %v10370_v46, %v3837_v5  ;;  %v3576_v10 = vmul.f32 %v6303_v43, %v13025_v13  ;;  %6312 = vrsqrt.f32 %v3071_v40  ;;  %v2817_v35 = vmul.f32 0.03125, %v2213_v0  ;;  %v13027_v43 = vld [vmem:[#allocation213_spill] sm:$0xff] }
 0x35c   : > { %13023 = vst [vmem:[#allocation126_spill] sm:$0xff] %v10600_v12  ;;  %v5963_v45 = vpack.c.bf16 %v4101_v18, %v4101_v18  ;;  %v3840_v8 = vmul.f32 %v10357_v2, %v3577_v44  ;;  %6314 = vrsqrt.f32 %v3070_v61  ;;  %v2816_v53 = vmul.f32 0.03125, %v2210_v33 }
 0x35d   : > { %v6305_v49 = vpop.eup %6304  ;;  %v5962_v15 = vpack.c.bf16 %v4100_v20, %v4100_v20  ;;  %v3839_v11 = vmul.f32 %v10357_v2, %v3576_v10  ;;  %v3073_v22 = vadd.f32 1e-06, %v2817_v35  ;;  %2428 = vadd.xlane.f32.xlu1 %v13026_v32  ;;  %v10615_v24 = vsel %vm430_vm0, %v1941_v27, 0.0  ;;  %v13029_v20 = vld [vmem:[#allocation31_spill] sm:$0xff] }
 0x35e   : > { %2425 = vadd.xlane.f32.xlu0 %v9446_v52  ;;  %v6307_v5 = vpop.eup %6306  ;;  %5382 = vst.msk [vmem:[%s10020_s26 + $0x11c] sm:$0xf] %vm5310_vm1, %v5963_v45  ;;  %v4103_v40 = vadd.f32 %v10370_v46, %v3840_v8  ;;  %v3579_v18 = vmul.f32 %v6305_v49, %v13027_v43  ;;  %v3072_v44 = vadd.f32 1e-06, %v2816_v53  ;;  %v2219_v61 = vpop.xlane.xlu1 %2218  ;;  %v10622_v33 = vsel %vm430_vm0, %v1940_v63, 0.0  ;;  %v13030_v53 = vld [vmem:[#allocation121_spill] sm:$0xff] }
 0x35f   : > { %v2216_v0 = vpop.xlane.xlu0 %2215  ;;  %13028 = vst [vmem:[#allocation129_spill] sm:$0xff] %v10622_v33  ;;  %5381 = vst.msk [vmem:[%s10020_s26 + $0x118] sm:$0xf] %vm5310_vm1, %v5962_v15  ;;  %v4102_v52 = vadd.f32 %v10370_v46, %v3839_v11  ;;  %v3578_v27 = vmul.f32 %v6307_v5, %v13029_v20  ;;  %6316 = vrsqrt.f32 %v3073_v22  ;;  %v2819_v13 = vmul.f32 0.03125, %v2219_v61  ;;  %v13031_v43 = vld [vmem:[#allocation300_spill] sm:$0xff] }
 0x360   : > { %v5965_v10 = vpack.c.bf16 %v4103_v40, %v4103_v40  ;;  %v3842_v35 = vmul.f32 %v10357_v2, %v3579_v18  ;;  %6318 = vrsqrt.f32 %v3072_v44  ;;  %v2818_v45 = vmul.f32 0.03125, %v2216_v0  ;;  %v13032_v11 = vld [vmem:[#allocation304_spill] sm:$0xff]  ;;  %v13034_v18 = vld [vmem:[#allocation34_spill] sm:$0xff] }
 0x361   : > { %v6309_v8 = vpop.eup %6308  ;;  %v1433_v49 = vmul.f32 0.03125, %v13030_v53  ;;  %v5964_v63 = vpack.c.bf16 %v4102_v52, %v4102_v52  ;;  %v3841_v32 = vmul.f32 %v10357_v2, %v3578_v27  ;;  %v3075_v15 = vadd.f32 1e-06, %v2819_v13  ;;  %2434 = vadd.xlane.f32.xlu1 %v13031_v43  ;;  %v13033_v22 = vld [vmem:[#allocation296_spill] sm:$0xff] }
 0x362   : > { %2431 = vadd.xlane.f32.xlu0 %v13032_v11  ;;  %v6311_v5 = vpop.eup %6310  ;;  %v1432_v61 = vmul.f32 0.03125, %v13033_v22  ;;  %5384 = vst.msk [vmem:[%s10020_s26 + $0x124] sm:$0xf] %vm5310_vm1, %v5965_v10  ;;  %v4105_v40 = vadd.f32 %v10370_v46, %v3842_v35  ;;  %v3581_v44 = vmul.f32 %v6309_v8, %v13034_v18  ;;  %v3074_v0 = vadd.f32 1e-06, %v2818_v45  ;;  %v2225_v20 = vpop.xlane.xlu1 %2224  ;;  %v13035_v27 = vld [vmem:[#allocation216_spill] sm:$0xff] }
 0x363   : > { %v2222_v53 = vpop.xlane.xlu0 %2221  ;;  %5383 = vst.msk [vmem:[%s10020_s26 + $0x120] sm:$0xf] %vm5310_vm1, %v5964_v63  ;;  %v4104_v52 = vadd.f32 %v10370_v46, %v3841_v32  ;;  %v3580_v13 = vmul.f32 %v6311_v5, %v13035_v27  ;;  %6320 = vrsqrt.f32 %v3075_v15  ;;  %v2821_v43 = vmul.f32 0.03125, %v2225_v20  ;;  %v13036_v33 = vld [vmem:[#allocation156_spill] sm:$0xff]  ;;  %v13037_v63 = vld [vmem:[#allocation305_spill] sm:$0xff]  ;;  %v13039_v27 = vld [vmem:[#allocation218_spill] sm:$0xff] }
 0x364   : > { %v5967_v11 = vpack.c.bf16 %v4105_v40, %v4105_v40  ;;  %v3844_v22 = vmul.f32 %v10357_v2, %v3581_v44  ;;  %6322 = vrsqrt.f32 %v3074_v0  ;;  %v2820_v10 = vmul.f32 0.03125, %v2222_v53  ;;  %v13038_v40 = vld [vmem:[#allocation217_spill] sm:$0xff] }
 0x365   : > { %v6313_v35 = vpop.eup %6312  ;;  %v5966_v8 = vpack.c.bf16 %v4104_v52, %v4104_v52  ;;  %v3843_v45 = vmul.f32 %v10357_v2, %v3580_v13  ;;  %v3077_v18 = vadd.f32 1e-06, %v2821_v43  ;;  %2440 = vadd.xlane.f32.xlu1 %v13036_v33  ;;  %v1943_v32 = vmul.f32 %v10594_v48, %v10594_v48  ;;  %v13041_v48 = vld [vmem:[#allocation306_spill] sm:$0xff] }
 0x366   : > { %2437 = vadd.xlane.f32.xlu0 %v13037_v63  ;;  %v6315_v15 = vpop.eup %6314  ;;  %5386 = vst.msk [vmem:[%s10020_s26 + $0x12c] sm:$0xf] %vm5310_vm1, %v5967_v11  ;;  %v4107_v5 = vadd.f32 %v10370_v46, %v3844_v22  ;;  %v3583_v44 = vmul.f32 %v6313_v35, %v13038_v40  ;;  %v3076_v0 = vadd.f32 1e-06, %v2820_v10  ;;  %v2231_v20 = vpop.xlane.xlu1 %2230  ;;  %v1942_v52 = vmul.f32 %v10600_v12, %v10600_v12  ;;  %v6902_v63 = vld [vmem:[%s6976_s18 + $0x748] sm:$0xff] }
 0x367   : > { %v2228_v53 = vpop.xlane.xlu0 %2227  ;;  %5385 = vst.msk [vmem:[%s10020_s26 + $0x128] sm:$0xf] %vm5310_vm1, %v5966_v8  ;;  %v4106_v33 = vadd.f32 %v10370_v46, %v3843_v45  ;;  %v3582_v13 = vmul.f32 %v6315_v15, %v13039_v27  ;;  %6324 = vrsqrt.f32 %v3077_v18  ;;  %v2823_v43 = vmul.f32 0.03125, %v2231_v20  ;;  %v13042_v15 = vld [vmem:[#allocation307_spill] sm:$0xff]  ;;  %v6903_v20 = vld [vmem:[%s6976_s18 + $0x740] sm:$0xff] }
 0x368   : > { %v5969_v11 = vpack.c.bf16 %v4107_v5, %v4107_v5  ;;  %v3846_v22 = vmul.f32 %v10357_v2, %v3583_v44  ;;  %6326 = vrsqrt.f32 %v3076_v0  ;;  %v2822_v10 = vmul.f32 0.03125, %v2228_v53  ;;  %v13044_v0 = vld [vmem:[#allocation38_spill] sm:$0xff] }
 0x369   : > { %v6317_v35 = vpop.eup %6316  ;;  %v10660_v40 = vsub.f32 %v6902_v63, %v1433_v49  ;;  %v5968_v12 = vpack.c.bf16 %v4106_v33, %v4106_v33  ;;  %v3845_v8 = vmul.f32 %v10357_v2, %v3582_v13  ;;  %v3079_v45 = vadd.f32 1e-06, %v2823_v43  ;;  %2446 = vadd.xlane.f32.xlu1 %v13041_v48  ;;  %v13045_v48 = vld [vmem:[#allocation39_spill] sm:$0xff] }
 0x36a   : > { %2443 = vadd.xlane.f32.xlu0 %v13042_v15  ;;  %v6319_v18 = vpop.eup %6318  ;;  %v10666_v5 = vsub.f32 %v6903_v20, %v1432_v61  ;;  %5388 = vst.msk [vmem:[%s10020_s26 + $0x134] sm:$0xf] %vm5310_vm1, %v5969_v11  ;;  %v4109_v44 = vadd.f32 %v10370_v46, %v3846_v22  ;;  %v3585_v53 = vmul.f32 %v6317_v35, %v13044_v0  ;;  %v3078_v49 = vadd.f32 1e-06, %v2822_v10  ;;  %v2237_v27 = vpop.xlane.xlu1 %2236  ;;  %v13046_v0 = vld [vmem:[#allocation157_spill] sm:$0xff] }
 0x36b   : > { %13040 = vst [vmem:[#allocation243_spill] sm:$0xff] %v10660_v40  ;;  %v2234_v33 = vpop.xlane.xlu0 %2233  ;;  %5387 = vst.msk [vmem:[%s10020_s26 + $0x130] sm:$0xf] %vm5310_vm1, %v5968_v12  ;;  %v4108_v13 = vadd.f32 %v10370_v46, %v3845_v8  ;;  %v3584_v43 = vmul.f32 %v6319_v18, %v13045_v48  ;;  %6328 = vrsqrt.f32 %v3079_v45  ;;  %v2825_v63 = vmul.f32 0.03125, %v2237_v27  ;;  %v13047_v12 = vld [vmem:[#allocation16_spill] sm:$0xff] }
 0x36c   : > { %13043 = vst [vmem:[#allocation244_spill] sm:$0xff] %v10666_v5  ;;  %v5971_v61 = vpack.c.bf16 %v4109_v44, %v4109_v44  ;;  %v3848_v15 = vmul.f32 %v10357_v2, %v3585_v53  ;;  %6330 = vrsqrt.f32 %v3078_v49  ;;  %v2824_v11 = vmul.f32 0.03125, %v2234_v33  ;;  %v13049_v44 = vld [vmem:[#allocation40_spill] sm:$0xff] }
 0x36d   : > { %v6321_v22 = vpop.eup %6320  ;;  %v5970_v35 = vpack.c.bf16 %v4108_v13, %v4108_v13  ;;  %v3847_v10 = vmul.f32 %v10357_v2, %v3584_v43  ;;  %v3081_v20 = vadd.f32 1e-06, %v2825_v63  ;;  %2452 = vadd.xlane.f32.xlu1 %v13046_v0  ;;  %v10681_v8 = vsel %vm430_vm0, %v1943_v32, 0.0  ;;  %v13051_v43 = vld [vmem:[#allocation219_spill] sm:$0xff]  ;;  %v13052_v0 = vld [vmem:[#allocation134_spill] sm:$0xff] }
 0x36e   : > { %2449 = vadd.xlane.f32.xlu0 %v13047_v12  ;;  %13048 = vst [vmem:[#allocation132_spill] sm:$0xff] %v10681_v8  ;;  %v6323_v45 = vpop.eup %6322  ;;  %5390 = vst.msk [vmem:[%s10020_s26 + $0x13c] sm:$0xf] %vm5310_vm1, %v5971_v61  ;;  %v4111_v18 = vadd.f32 %v10370_v46, %v3848_v15  ;;  %v3587_v53 = vmul.f32 %v6321_v22, %v13049_v44  ;;  %v3080_v49 = vadd.f32 1e-06, %v2824_v11  ;;  %v2243_v27 = vpop.xlane.xlu1 %2242  ;;  %v10688_v13 = vsel %vm430_vm0, %v1942_v52, 0.0 }
 0x36f   : > { %v2240_v33 = vpop.xlane.xlu0 %2239  ;;  %13050 = vst [vmem:[#allocation133_spill] sm:$0xff] %v10688_v13  ;;  %5389 = vst.msk [vmem:[%s10020_s26 + $0x138] sm:$0xf] %vm5310_vm1, %v5970_v35  ;;  %v4110_v48 = vadd.f32 %v10370_v46, %v3847_v10  ;;  %v3586_v32 = vmul.f32 %v6323_v45, %v13051_v43  ;;  %6332 = vrsqrt.f32 %v3081_v20  ;;  %v2827_v63 = vmul.f32 0.03125, %v2243_v27  ;;  %v13053_v13 = vld [vmem:[#allocation17_spill] sm:$0xff]  ;;  %v13055_v20 = vld [vmem:[#allocation135_spill] sm:$0xff] }
 0x370   : > { %v5973_v61 = vpack.c.bf16 %v4111_v18, %v4111_v18  ;;  %v3850_v15 = vmul.f32 %v10357_v2, %v3587_v53  ;;  %6334 = vrsqrt.f32 %v3080_v49  ;;  %v2826_v22 = vmul.f32 0.03125, %v2240_v33  ;;  %v13054_v10 = vld [vmem:[#allocation309_spill] sm:$0xff]  ;;  %v13058_v8 = vld [vmem:[#allocation312_spill] sm:$0xff] }
 0x371   : > { %v6325_v11 = vpop.eup %6324  ;;  %v1435_v12 = vmul.f32 0.03125, %v13052_v0  ;;  %v5972_v52 = vpack.c.bf16 %v4110_v48, %v4110_v48  ;;  %v3849_v44 = vmul.f32 %v10357_v2, %v3586_v32  ;;  %v3083_v35 = vadd.f32 1e-06, %v2827_v63  ;;  %2458 = vadd.xlane.f32.xlu1 %v13053_v13  ;;  %v13056_v53 = vld [vmem:[#allocation221_spill] sm:$0xff]  ;;  %v13057_v32 = vld [vmem:[#allocation222_spill] sm:$0xff] }
 0x372   : > { %2455 = vadd.xlane.f32.xlu0 %v13054_v10  ;;  %v6327_v45 = vpop.eup %6326  ;;  %v1434_v27 = vmul.f32 0.03125, %v13055_v20  ;;  %5392 = vst.msk [vmem:[%s10020_s26 + $0x144] sm:$0xf] %vm5310_vm1, %v5973_v61  ;;  %v4113_v18 = vadd.f32 %v10370_v46, %v3850_v15  ;;  %v3589_v49 = vmul.f32 %v6325_v11, %v13056_v53  ;;  %v3082_v33 = vadd.f32 1e-06, %v2826_v22  ;;  %v2249_v43 = vpop.xlane.xlu1 %2248 }
 0x373   : > { %v2246_v0 = vpop.xlane.xlu0 %2245  ;;  %5391 = vst.msk [vmem:[%s10020_s26 + $0x140] sm:$0xf] %vm5310_vm1, %v5972_v52  ;;  %v4112_v48 = vadd.f32 %v10370_v46, %v3849_v44  ;;  %v3588_v13 = vmul.f32 %v6327_v45, %v13057_v32  ;;  %6336 = vrsqrt.f32 %v3083_v35  ;;  %v2829_v63 = vmul.f32 0.03125, %v2249_v43  ;;  %v13059_v52 = vld [vmem:[#allocation166_spill] sm:$0xff] }
 0x374   : > { %v5975_v10 = vpack.c.bf16 %v4113_v18, %v4113_v18  ;;  %v3852_v20 = vmul.f32 %v10357_v2, %v3589_v49  ;;  %6338 = vrsqrt.f32 %v3082_v33  ;;  %v2828_v61 = vmul.f32 0.03125, %v2246_v0  ;;  %v13060_v18 = vld [vmem:[#allocation223_spill] sm:$0xff] }
 0x375   : > { %v6329_v15 = vpop.eup %6328  ;;  %v5974_v11 = vpack.c.bf16 %v4112_v48, %v4112_v48  ;;  %v3851_v22 = vmul.f32 %v10357_v2, %v3588_v13  ;;  %v3085_v53 = vadd.f32 1e-06, %v2829_v63  ;;  %2464 = vadd.xlane.f32.xlu1 %v13058_v8  ;;  %v1945_v44 = vmul.f32 %v10660_v40, %v10660_v40  ;;  %v13061_v48 = vld [vmem:[#allocation224_spill] sm:$0xff]  ;;  %v13066_v40 = vld [vmem:[#allocation113_spill] sm:$0xff] }
 0x376   : > { %2461 = vadd.xlane.f32.xlu0 %v13059_v52  ;;  %v6331_v35 = vpop.eup %6330  ;;  %5394 = vst.msk [vmem:[%s10020_s26 + $0x14c] sm:$0xf] %vm5310_vm1, %v5975_v10  ;;  %v4115_v45 = vadd.f32 %v10370_v46, %v3852_v20  ;;  %v3591_v49 = vmul.f32 %v6329_v15, %v13060_v18  ;;  %v3084_v33 = vadd.f32 1e-06, %v2828_v61  ;;  %v2255_v43 = vpop.xlane.xlu1 %2254  ;;  %v1944_v2 = vmul.f32 %v10666_v5, %v10666_v5  ;;  %v10727_v10 = vld [vmem:[%s11900_s1] ss:$0 sm:$0xff] }
 0x377   : > { %v2252_v0 = vpop.xlane.xlu0 %2251  ;;  %5393 = vst.msk [vmem:[%s10020_s26 + $0x148] sm:$0xf] %vm5310_vm1, %v5974_v11  ;;  %v4114_v8 = vadd.f32 %v10370_v46, %v3851_v22  ;;  %v3590_v32 = vmul.f32 %v6331_v35, %v13061_v48  ;;  %6340 = vrsqrt.f32 %v3085_v53  ;;  %v2831_v13 = vmul.f32 0.03125, %v2255_v43  ;;  %v6905_v11 = vld [vmem:[%s6976_s18 + $0x758] sm:$0xff]  ;;  %v13062_v35 = vld [vmem:[#allocation172_spill] sm:$0xff] }
 0x378   : > { %v5977_v63 = vpack.c.bf16 %v4115_v45, %v4115_v45  ;;  %v3854_v20 = vmul.f32 %v10727_v10, %v3591_v49  ;;  %6342 = vrsqrt.f32 %v3084_v33  ;;  %v2830_v61 = vmul.f32 0.03125, %v2252_v0  ;;  %v13063_v45 = vld [vmem:[#allocation177_spill] sm:$0xff]  ;;  %v6906_v43 = vld [vmem:[%s6976_s18 + $0x750] sm:$0xff]  ;;  %v13064_v33 = vld [vmem:[#allocation42_spill] sm:$0xff] }
 0x379   : > { %v6333_v15 = vpop.eup %6332  ;;  %v10731_v52 = vsub.f32 %v6905_v11, %v1435_v12  ;;  %v5976_v46 = vpack.c.bf16 %v4114_v8, %v4114_v8  ;;  %v3853_v22 = vmul.f32 %v10727_v10, %v3590_v32  ;;  %v3087_v53 = vadd.f32 1e-06, %v2831_v13  ;;  %2470 = vadd.xlane.f32.xlu1 %v13062_v35  ;;  %v10744_v12 = vld [vmem:[%s11901_s2] ss:$0 sm:$0xff] }
 0x37a   : > { %2467 = vadd.xlane.f32.xlu0 %v13063_v45  ;;  %v6335_v18 = vpop.eup %6334  ;;  %v10737_v48 = vsub.f32 %v6906_v43, %v1434_v27  ;;  %5396 = vst.msk [vmem:[%s10020_s26 + $0x154] sm:$0xf] %vm5310_vm1, %v5977_v63  ;;  %v4117_v49 = vadd.f32 %v10744_v12, %v3854_v20  ;;  %v3593_v0 = vmul.f32 %v6333_v15, %v13064_v33  ;;  %v3086_v8 = vadd.f32 1e-06, %v2830_v61  ;;  %v2261_v32 = vpop.xlane.xlu1 %2260  ;;  %v13065_v27 = vld [vmem:[#allocation229_spill] sm:$0xff] }
 0x37b   : > { %v2258_v13 = vpop.xlane.xlu0 %2257  ;;  %5395 = vst.msk [vmem:[%s10020_s26 + $0x150] sm:$0xf] %vm5310_vm1, %v5976_v46  ;;  %v4116_v11 = vadd.f32 %v10744_v12, %v3853_v22  ;;  %v3592_v35 = vmul.f32 %v6335_v18, %v13065_v27  ;;  %6344 = vrsqrt.f32 %v3087_v53  ;;  %v2833_v63 = vmul.f32 0.03125, %v2261_v32  ;;  %v13067_v18 = vld [vmem:[#allocation233_spill] sm:$0xff] }
 0x37c   : > { %v5979_v45 = vpack.c.bf16 %v4117_v49, %v4117_v49  ;;  %v3856_v43 = vmul.f32 %v10727_v10, %v3593_v0  ;;  %6346 = vrsqrt.f32 %v3086_v8  ;;  %v2832_v5 = vmul.f32 0.03125, %v2258_v13 }
 0x37d   : > { %v6337_v20 = vpop.eup %6336  ;;  %v5978_v15 = vpack.c.bf16 %v4116_v11, %v4116_v11  ;;  %v3855_v61 = vmul.f32 %v10727_v10, %v3592_v35  ;;  %v3089_v33 = vadd.f32 1e-06, %v2833_v63  ;;  %2476 = vadd.xlane.f32.xlu1 %v13066_v40  ;;  %v10757_v46 = vsel %vm430_vm0, %v1945_v44, 0.0  ;;  %v13068_v40 = vld [vmem:[#allocation47_spill] sm:$0xff] }
 0x37e   : > { %2473 = vadd.xlane.f32.xlu0 %v9614_v9  ;;  %v6339_v22 = vpop.eup %6338  ;;  %5398 = vst.msk [vmem:[%s10020_s26 + $0x15c] sm:$0xf] %vm5310_vm1, %v5979_v45  ;;  %v4119_v53 = vadd.f32 %v10744_v12, %v3856_v43  ;;  %v3595_v49 = vmul.f32 %v6337_v20, %v13067_v18  ;;  %v3088_v0 = vadd.f32 1e-06, %v2832_v5  ;;  %v2267_v8 = vpop.xlane.xlu1 %2266  ;;  %v10764_v13 = vsel %vm430_vm0, %v1944_v2, 0.0  ;;  %v13069_v45 = vld [vmem:[#allocation197_spill] sm:$0xff] }
 0x37f   : > { %v2264_v32 = vpop.xlane.xlu0 %2263  ;;  %5397 = vst.msk [vmem:[%s10020_s26 + $0x158] sm:$0xf] %vm5310_vm1, %v5978_v15  ;;  %v4118_v9 = vadd.f32 %v10744_v12, %v3855_v61  ;;  %v3594_v44 = vmul.f32 %v6339_v22, %v13068_v40  ;;  %6348 = vrsqrt.f32 %v3089_v33  ;;  %v2835_v11 = vmul.f32 0.03125, %v2267_v8  ;;  %v13070_v33 = vld [vmem:[#allocation152_spill] sm:$0xff]  ;;  %v13071_v18 = vld [vmem:[#allocation50_spill] sm:$0xff] }
 0x380   : > { %v5981_v27 = vpack.c.bf16 %v4119_v53, %v4119_v53  ;;  %v3858_v35 = vmul.f32 %v10727_v10, %v3595_v49  ;;  %6350 = vrsqrt.f32 %v3088_v0  ;;  %v2834_v63 = vmul.f32 0.03125, %v2264_v32  ;;  %v13072_v40 = vld [vmem:[#allocation52_spill] sm:$0xff] }
 0x381   : > { %v6341_v5 = vpop.eup %6340  ;;  %v1437_v43 = vmul.f32 0.03125, %v13069_v45  ;;  %v5980_v2 = vpack.c.bf16 %v4118_v9, %v4118_v9  ;;  %v3857_v20 = vmul.f32 %v10727_v10, %v3594_v44  ;;  %v3091_v15 = vadd.f32 1e-06, %v2835_v11  ;;  %2482 = vadd.xlane.f32.xlu1 %v9625_v55 }
 0x382   : > { %2479 = vadd.xlane.f32.xlu0 %v9645_v6  ;;  %v6343_v61 = vpop.eup %6342  ;;  %v1436_v22 = vmul.f32 0.03125, %v13070_v33  ;;  %5400 = vst.msk [vmem:[%s10020_s26 + $0x164] sm:$0xf] %vm5310_vm1, %v5981_v27  ;;  %v4121_v53 = vadd.f32 %v10744_v12, %v3858_v35  ;;  %v3597_v49 = vmul.f32 %v6341_v5, %v13071_v18  ;;  %v3090_v0 = vadd.f32 1e-06, %v2834_v63  ;;  %v2273_v8 = vpop.xlane.xlu1 %2272 }
 0x383   : > { %v2270_v32 = vpop.xlane.xlu0 %2269  ;;  %5399 = vst.msk [vmem:[%s10020_s26 + $0x160] sm:$0xf] %vm5310_vm1, %v5980_v2  ;;  %v4120_v9 = vadd.f32 %v10744_v12, %v3857_v20  ;;  %v3596_v55 = vmul.f32 %v6343_v61, %v13072_v40  ;;  %6352 = vrsqrt.f32 %v3091_v15  ;;  %v2837_v6 = vmul.f32 0.03125, %v2273_v8  ;;  %v13073_v61 = vld [vmem:[#allocation53_spill] sm:$0xff] }
 0x384   : > { %v5983_v44 = vpack.c.bf16 %v4121_v53, %v4121_v53  ;;  %v3860_v11 = vmul.f32 %v10727_v10, %v3597_v49  ;;  %6354 = vrsqrt.f32 %v3090_v0  ;;  %v2836_v27 = vmul.f32 0.03125, %v2270_v32 }
 0x385   : > { %v6345_v35 = vpop.eup %6344  ;;  %v5982_v5 = vpack.c.bf16 %v4120_v9, %v4120_v9  ;;  %v3859_v63 = vmul.f32 %v10727_v10, %v3596_v55  ;;  %v3093_v45 = vadd.f32 1e-06, %v2837_v6  ;;  %2488 = vadd.xlane.f32.xlu1 %v9667_v60  ;;  %v1947_v2 = vmul.f32 %v10731_v52, %v10731_v52  ;;  %v13074_v60 = vld [vmem:[#allocation234_spill] sm:$0xff] }
 0x386   : > { %2485 = vadd.xlane.f32.xlu0 %v9672_v47  ;;  %v6347_v20 = vpop.eup %6346  ;;  %5402 = vst.msk [vmem:[%s10020_s26 + $0x16c] sm:$0xf] %vm5310_vm1, %v5983_v44  ;;  %v4123_v15 = vadd.f32 %v10744_v12, %v3860_v11  ;;  %v3599_v33 = vmul.f32 %v6345_v35, %v13073_v61  ;;  %v3092_v53 = vadd.f32 1e-06, %v2836_v27  ;;  %v2279_v18 = vpop.xlane.xlu1 %2278  ;;  %v1946_v0 = vmul.f32 %v10737_v48, %v10737_v48  ;;  %v6908_v44 = vld [vmem:[%s6976_s18 + $0x768] sm:$0xff]  ;;  %v13075_v61 = vld [vmem:[#allocation54_spill] sm:$0xff] }
 0x387   : > { %v2276_v49 = vpop.xlane.xlu0 %2275  ;;  %5401 = vst.msk [vmem:[%s10020_s26 + $0x168] sm:$0xf] %vm5310_vm1, %v5982_v5  ;;  %v4122_v47 = vadd.f32 %v10744_v12, %v3859_v63  ;;  %v3598_v8 = vmul.f32 %v6347_v20, %v13074_v60  ;;  %6356 = vrsqrt.f32 %v3093_v45  ;;  %v2839_v32 = vmul.f32 0.03125, %v2279_v18  ;;  %v6909_v45 = vld [vmem:[%s6976_s18 + $0x760] sm:$0xff] }
 0x388   : > { %v5985_v9 = vpack.c.bf16 %v4123_v15, %v4123_v15  ;;  %v3862_v40 = vmul.f32 %v10727_v10, %v3599_v33  ;;  %6358 = vrsqrt.f32 %v3092_v53  ;;  %v2838_v55 = vmul.f32 0.03125, %v2276_v49 }
 0x389   : > { %v6349_v6 = vpop.eup %6348  ;;  %v10802_v11 = vsub.f32 %v6908_v44, %v1437_v43  ;;  %v5984_v27 = vpack.c.bf16 %v4122_v47, %v4122_v47  ;;  %v3861_v35 = vmul.f32 %v10727_v10, %v3598_v8  ;;  %v3095_v5 = vadd.f32 1e-06, %v2839_v32  ;;  %2494 = vadd.xlane.f32.xlu1 %v9675_v21  ;;  %v13076_v21 = vld [vmem:[#allocation55_spill] sm:$0xff] }
 0x38a   : > { %2491 = vadd.xlane.f32.xlu0 %v9678_v30  ;;  %v6351_v63 = vpop.eup %6350  ;;  %v10808_v20 = vsub.f32 %v6909_v45, %v1436_v22  ;;  %5404 = vst.msk [vmem:[%s10020_s26 + $0x174] sm:$0xf] %vm5310_vm1, %v5985_v9  ;;  %v4125_v15 = vadd.f32 %v10744_v12, %v3862_v40  ;;  %v3601_v33 = vmul.f32 %v6349_v6, %v13075_v61  ;;  %v3094_v43 = vadd.f32 1e-06, %v2838_v55  ;;  %v2285_v53 = vpop.xlane.xlu1 %2284 }
 0x38b   : > { %v2282_v18 = vpop.xlane.xlu0 %2281  ;;  %5403 = vst.msk [vmem:[%s10020_s26 + $0x170] sm:$0xf] %vm5310_vm1, %v5984_v27  ;;  %v4124_v49 = vadd.f32 %v10744_v12, %v3861_v35  ;;  %v3600_v30 = vmul.f32 %v6351_v63, %v13076_v21  ;;  %6360 = vrsqrt.f32 %v3095_v5  ;;  %v2841_v47 = vmul.f32 0.03125, %v2285_v53  ;;  %v13077_v35 = vld [vmem:[#allocation56_spill] sm:$0xff] }
 0x38c   : > { %v5987_v22 = vpack.c.bf16 %v4125_v15, %v4125_v15  ;;  %v3864_v60 = vmul.f32 %v10727_v10, %v3601_v33  ;;  %6362 = vrsqrt.f32 %v3094_v43  ;;  %v2840_v8 = vmul.f32 0.03125, %v2282_v18  ;;  %v13079_v21 = vld [vmem:[#allocation200_spill] sm:$0xff] }
 0x38d   : > { %v6353_v32 = vpop.eup %6352  ;;  %v5986_v9 = vpack.c.bf16 %v4124_v49, %v4124_v49  ;;  %v3863_v40 = vmul.f32 %v10727_v10, %v3600_v30  ;;  %v3097_v55 = vadd.f32 1e-06, %v2841_v47  ;;  %2500 = vadd.xlane.f32.xlu1 %v9684_v25  ;;  %v10823_v6 = vsel %vm430_vm0, %v1947_v2, 0.0 }
 0x38e   : > { %2497 = vadd.xlane.f32.xlu0 %v9696_v14  ;;  %v6355_v44 = vpop.eup %6354  ;;  %5406 = vst.msk [vmem:[%s10020_s26 + $0x17c] sm:$0xf] %vm5310_vm1, %v5987_v22  ;;  %v4127_v27 = vadd.f32 %v10744_v12, %v3864_v60  ;;  %v3603_v5 = vmul.f32 %v6353_v32, %v13077_v35  ;;  %v3096_v63 = vadd.f32 1e-06, %v2840_v8  ;;  %v2291_v45 = vpop.xlane.xlu1 %2290  ;;  %v10830_v61 = vsel %vm430_vm0, %v1946_v0, 0.0  ;;  %v13078_v14 = vld [vmem:[#allocation235_spill] sm:$0xff] }
 0x38f   : > { %v2288_v15 = vpop.xlane.xlu0 %2287  ;;  %5405 = vst.msk [vmem:[%s10020_s26 + $0x178] sm:$0xf] %vm5310_vm1, %v5986_v9  ;;  %v4126_v25 = vadd.f32 %v10744_v12, %v3863_v40  ;;  %v3602_v2 = vmul.f32 %v6355_v44, %v13078_v14  ;;  %6364 = vrsqrt.f32 %v3097_v55  ;;  %v2843_v33 = vmul.f32 0.03125, %v2291_v45  ;;  %v13080_v8 = vld [vmem:[#allocation14_spill] sm:$0xff]  ;;  %v13081_v40 = vld [vmem:[#allocation237_spill] sm:$0xff] }
 0x390   : > { %v5989_v43 = vpack.c.bf16 %v4127_v27, %v4127_v27  ;;  %v3866_v53 = vmul.f32 %v10727_v10, %v3603_v5  ;;  %6366 = vrsqrt.f32 %v3096_v63  ;;  %v2842_v18 = vmul.f32 0.03125, %v2288_v15  ;;  %v13082_v63 = vld [vmem:[#allocation238_spill] sm:$0xff] }
 0x391   : > { %v6357_v49 = vpop.eup %6356  ;;  %v1439_v30 = vmul.f32 0.03125, %v13079_v21  ;;  %v5988_v0 = vpack.c.bf16 %v4126_v25, %v4126_v25  ;;  %v3865_v47 = vmul.f32 %v10727_v10, %v3602_v2  ;;  %v3099_v22 = vadd.f32 1e-06, %v2843_v33  ;;  %2506 = vadd.xlane.f32.xlu1 %v9699_v50 }
 0x392   : > { %2503 = vadd.xlane.f32.xlu0 %v9702_v51  ;;  %v6359_v60 = vpop.eup %6358  ;;  %v1438_v32 = vmul.f32 0.03125, %v13080_v8  ;;  %5408 = vst.msk [vmem:[%s10020_s26 + $0x184] sm:$0xf] %vm5310_vm1, %v5989_v43  ;;  %v4129_v9 = vadd.f32 %v10744_v12, %v3866_v53  ;;  %v3605_v55 = vmul.f32 %v6357_v49, %v13081_v40  ;;  %v3098_v44 = vadd.f32 1e-06, %v2842_v18  ;;  %v2297_v27 = vpop.xlane.xlu1 %2296  ;;  %v13083_v53 = vld [vmem:[#allocation325_spill] sm:$0xff] }
 0x393   : > { %v2294_v35 = vpop.xlane.xlu0 %2293  ;;  %5407 = vst.msk [vmem:[%s10020_s26 + $0x180] sm:$0xf] %vm5310_vm1, %v5988_v0  ;;  %v4128_v5 = vadd.f32 %v10744_v12, %v3865_v47  ;;  %v3604_v50 = vmul.f32 %v6359_v60, %v13082_v63  ;;  %6368 = vrsqrt.f32 %v3099_v22  ;;  %v2845_v51 = vmul.f32 0.03125, %v2297_v27  ;;  %v13084_v18 = vld [vmem:[#allocation25_spill] sm:$0xff]  ;;  %v13085_v47 = vld [vmem:[#allocation239_spill] sm:$0xff] }
 0x394   : > { %v5991_v45 = vpack.c.bf16 %v4129_v9, %v4129_v9  ;;  %v3868_v15 = vmul.f32 %v10727_v10, %v3605_v55  ;;  %6370 = vrsqrt.f32 %v3098_v44  ;;  %v2844_v25 = vmul.f32 0.03125, %v2294_v35  ;;  %v13086_v44 = vld [vmem:[#allocation240_spill] sm:$0xff] }
 0x395   : > { %v6361_v14 = vpop.eup %6360  ;;  %v5990_v2 = vpack.c.bf16 %v4128_v5, %v4128_v5  ;;  %v3867_v33 = vmul.f32 %v10727_v10, %v3604_v50  ;;  %v3101_v43 = vadd.f32 1e-06, %v2845_v51  ;;  %2512 = vadd.xlane.f32.xlu1 %v13083_v53  ;;  %v1949_v49 = vmul.f32 %v10802_v11, %v10802_v11  ;;  %v13088_v53 = vld [vmem:[#allocation29_spill] sm:$0xff] }
 0x396   : > { %2509 = vadd.xlane.f32.xlu0 %v13084_v18  ;;  %v6363_v21 = vpop.eup %6362  ;;  %5410 = vst.msk [vmem:[%s10020_s26 + $0x18c] sm:$0xf] %vm5310_vm1, %v5991_v45  ;;  %v4131_v0 = vadd.f32 %v10744_v12, %v3868_v15  ;;  %v3607_v22 = vmul.f32 %v6361_v14, %v13085_v47  ;;  %v3100_v60 = vadd.f32 1e-06, %v2844_v25  ;;  %v2303_v8 = vpop.xlane.xlu1 %2302  ;;  %v1948_v40 = vmul.f32 %v10808_v20, %v10808_v20  ;;  %v6910_v45 = vld [vmem:[%s6976_s18 + $0x778] sm:$0xff]  ;;  %v6911_v18 = vld [vmem:[%s6976_s18 + $0x770] sm:$0xff] }
 0x397   : > { %v2300_v9 = vpop.xlane.xlu0 %2299  ;;  %5409 = vst.msk [vmem:[%s10020_s26 + $0x188] sm:$0xf] %vm5310_vm1, %v5990_v2  ;;  %v4130_v55 = vadd.f32 %v10744_v12, %v3867_v33  ;;  %v3606_v27 = vmul.f32 %v6363_v21, %v13086_v44  ;;  %6372 = vrsqrt.f32 %v3101_v43  ;;  %v2847_v35 = vmul.f32 0.03125, %v2303_v8  ;;  %v13087_v33 = vld [vmem:[#allocation208_spill] sm:$0xff]  ;;  %v13089_v47 = vld [vmem:[#allocation58_spill] sm:$0xff] }
 0x398   : > { %v5993_v5 = vpack.c.bf16 %v4131_v0, %v4131_v0  ;;  %v3870_v63 = vmul.f32 %v10727_v10, %v3607_v22  ;;  %6374 = vrsqrt.f32 %v3100_v60  ;;  %v2846_v50 = vmul.f32 0.03125, %v2300_v9 }
 0x399   : > { %v6365_v51 = vpop.eup %6364  ;;  %v10868_v15 = vsub.f32 %v6910_v45, %v1439_v30  ;;  %v5992_v25 = vpack.c.bf16 %v4130_v55, %v4130_v55  ;;  %v3869_v14 = vmul.f32 %v10727_v10, %v3606_v27  ;;  %v3103_v2 = vadd.f32 1e-06, %v2847_v35  ;;  %2518 = vadd.xlane.f32.xlu1 %v13087_v33  ;;  %v13090_v55 = vld [vmem:[#allocation245_spill] sm:$0xff]  ;;  %v13091_v33 = vld [vmem:[#allocation28_spill] sm:$0xff] }
 0x39a   : > { %2515 = vadd.xlane.f32.xlu0 %v13088_v53  ;;  %v6367_v43 = vpop.eup %6366  ;;  %v10874_v21 = vsub.f32 %v6911_v18, %v1438_v32  ;;  %5412 = vst.msk [vmem:[%s10020_s26 + $0x194] sm:$0xf] %vm5310_vm1, %v5993_v5  ;;  %v4133_v0 = vadd.f32 %v10744_v12, %v3870_v63  ;;  %v3609_v22 = vmul.f32 %v6365_v51, %v13089_v47  ;;  %v3102_v30 = vadd.f32 1e-06, %v2846_v50  ;;  %v2309_v60 = vpop.xlane.xlu1 %2308  ;;  %v13092_v53 = vld [vmem:[#allocation249_spill] sm:$0xff] }
 0x39b   : > { %v2306_v8 = vpop.xlane.xlu0 %2305  ;;  %5411 = vst.msk [vmem:[%s10020_s26 + $0x190] sm:$0xf] %vm5310_vm1, %v5992_v25  ;;  %v4132_v9 = vadd.f32 %v10744_v12, %v3869_v14  ;;  %v3608_v44 = vmul.f32 %v6367_v43, %v13090_v55  ;;  %6376 = vrsqrt.f32 %v3103_v2  ;;  %v2849_v27 = vmul.f32 0.03125, %v2309_v60 }
 0x39c   : > { %v5995_v32 = vpack.c.bf16 %v4133_v0, %v4133_v0  ;;  %v3872_v35 = vmul.f32 %v10727_v10, %v3609_v22  ;;  %6378 = vrsqrt.f32 %v3102_v30  ;;  %v2848_v5 = vmul.f32 0.03125, %v2306_v8  ;;  %v13093_v30 = vld [vmem:[#allocation63_spill] sm:$0xff] }
 0x39d   : > { %v6369_v63 = vpop.eup %6368  ;;  %v5994_v51 = vpack.c.bf16 %v4132_v9, %v4132_v9  ;;  %v3871_v50 = vmul.f32 %v10727_v10, %v3608_v44  ;;  %v3105_v45 = vadd.f32 1e-06, %v2849_v27  ;;  %2524 = vadd.xlane.f32.xlu1 %v13091_v33  ;;  %v10889_v25 = vsel %vm430_vm0, %v1949_v49, 0.0  ;;  %v13094_v27 = vld [vmem:[#allocation165_spill] sm:$0xff]  ;;  %v13096_v33 = vld [vmem:[#allocation66_spill] sm:$0xff] }
 0x39e   : > { %2521 = vadd.xlane.f32.xlu0 %v9782_v42  ;;  %v6371_v14 = vpop.eup %6370  ;;  %5414 = vst.msk [vmem:[%s10020_s26 + $0x19c] sm:$0xf] %vm5310_vm1, %v5995_v32  ;;  %v4135_v2 = vadd.f32 %v10744_v12, %v3872_v35  ;;  %v3611_v43 = vmul.f32 %v6369_v63, %v13092_v53  ;;  %v3104_v18 = vadd.f32 1e-06, %v2848_v5  ;;  %v2315_v0 = vpop.xlane.xlu1 %2314  ;;  %v10896_v22 = vsel %vm430_vm0, %v1948_v40, 0.0 }
 0x39f   : > { %v2312_v47 = vpop.xlane.xlu0 %2311  ;;  %5413 = vst.msk [vmem:[%s10020_s26 + $0x198] sm:$0xf] %vm5310_vm1, %v5994_v51  ;;  %v4134_v42 = vadd.f32 %v10744_v12, %v3871_v50  ;;  %v3610_v49 = vmul.f32 %v6371_v14, %v13093_v30  ;;  %6380 = vrsqrt.f32 %v3105_v45  ;;  %v2851_v60 = vmul.f32 0.03125, %v2315_v0  ;;  %v13095_v51 = vld [vmem:[#allocation311_spill] sm:$0xff]  ;;  %v13097_v0 = vld [vmem:[#allocation68_spill] sm:$0xff] }
 0x3a0   : > { %v5997_v8 = vpack.c.bf16 %v4135_v2, %v4135_v2  ;;  %v3874_v9 = vmul.f32 %v10727_v10, %v3611_v43  ;;  %6382 = vrsqrt.f32 %v3104_v18  ;;  %v2850_v55 = vmul.f32 0.03125, %v2312_v47 }
 0x3a1   : > { %v6373_v44 = vpop.eup %6372  ;;  %v1441_v32 = vmul.f32 0.03125, %v13094_v27  ;;  %v5996_v40 = vpack.c.bf16 %v4134_v42, %v4134_v42  ;;  %v3873_v35 = vmul.f32 %v10727_v10, %v3610_v49  ;;  %v3107_v5 = vadd.f32 1e-06, %v2851_v60  ;;  %2530 = vadd.xlane.f32.xlu1 %v9811_v29 }
 0x3a2   : > { %2527 = vadd.xlane.f32.xlu0 %v9818_v58  ;;  %v6375_v63 = vpop.eup %6374  ;;  %v1440_v50 = vmul.f32 0.03125, %v13095_v51  ;;  %5416 = vst.msk [vmem:[%s10020_s26 + $0x1a4] sm:$0xf] %vm5310_vm1, %v5997_v8  ;;  %v4137_v45 = vadd.f32 %v10744_v12, %v3874_v9  ;;  %v3613_v14 = vmul.f32 %v6373_v44, %v13096_v33  ;;  %v3106_v2 = vadd.f32 1e-06, %v2850_v55  ;;  %v2321_v53 = vpop.xlane.xlu1 %2320 }
 0x3a3   : > { %v2318_v43 = vpop.xlane.xlu0 %2317  ;;  %5415 = vst.msk [vmem:[%s10020_s26 + $0x1a0] sm:$0xf] %vm5310_vm1, %v5996_v40  ;;  %v4136_v18 = vadd.f32 %v10744_v12, %v3873_v35  ;;  %v3612_v29 = vmul.f32 %v6375_v63, %v13097_v0  ;;  %6384 = vrsqrt.f32 %v3107_v5  ;;  %v2853_v58 = vmul.f32 0.03125, %v2321_v53  ;;  %v13098_v40 = vld [vmem:[#allocation69_spill] sm:$0xff]  ;;  %v6912_v0 = vld [vmem:[%s6976_s18 + $0x788] sm:$0xff] }
 0x3a4   : > { %v5999_v47 = vpack.c.bf16 %v4137_v45, %v4137_v45  ;;  %v3876_v42 = vmul.f32 %v10727_v10, %v3613_v14  ;;  %6386 = vrsqrt.f32 %v3106_v2  ;;  %v2852_v30 = vmul.f32 0.03125, %v2318_v43 }
 0x3a5   : > { %v6377_v49 = vpop.eup %6376  ;;  %v5998_v60 = vpack.c.bf16 %v4136_v18, %v4136_v18  ;;  %v3875_v8 = vmul.f32 %v10727_v10, %v3612_v29  ;;  %v3109_v9 = vadd.f32 1e-06, %v2853_v58  ;;  %2536 = vadd.xlane.f32.xlu1 %v9837_v39  ;;  %v1951_v55 = vmul.f32 %v10868_v15, %v10868_v15  ;;  %v13099_v39 = vld [vmem:[#allocation250_spill] sm:$0xff] }
 0x3a6   : > { %2533 = vadd.xlane.f32.xlu0 %v9842_v28  ;;  %v6379_v44 = vpop.eup %6378  ;;  %5418 = vst.msk [vmem:[%s10020_s26 + $0x1ac] sm:$0xf] %vm5310_vm1, %v5999_v47  ;;  %v4139_v27 = vadd.f32 %v10744_v12, %v3876_v42  ;;  %v3615_v35 = vmul.f32 %v6377_v49, %v13098_v40  ;;  %v3108_v5 = vadd.f32 1e-06, %v2852_v30  ;;  %v2327_v63 = vpop.xlane.xlu1 %2326  ;;  %v1950_v45 = vmul.f32 %v10874_v21, %v10874_v21  ;;  %v6913_v49 = vld [vmem:[%s6976_s18 + $0x780] sm:$0xff] }
 0x3a7   : > { %v2324_v51 = vpop.xlane.xlu0 %2323  ;;  %5417 = vst.msk [vmem:[%s10020_s26 + $0x1a8] sm:$0xf] %vm5310_vm1, %v5998_v60  ;;  %v4138_v28 = vadd.f32 %v10744_v12, %v3875_v8  ;;  %v3614_v33 = vmul.f32 %v6379_v44, %v13099_v39  ;;  %6388 = vrsqrt.f32 %v3109_v9  ;;  %v2855_v14 = vmul.f32 0.03125, %v2327_v63  ;;  %v13100_v9 = vld [vmem:[#allocation70_spill] sm:$0xff] }
 0x3a8   : > { %v6001_v2 = vpack.c.bf16 %v4139_v27, %v4139_v27  ;;  %v3878_v53 = vmul.f32 %v10727_v10, %v3615_v35  ;;  %6390 = vrsqrt.f32 %v3108_v5  ;;  %v2854_v43 = vmul.f32 0.03125, %v2324_v51 }
 0x3a9   : > { %v6381_v18 = vpop.eup %6380  ;;  %v10934_v29 = vsub.f32 %v6912_v0, %v1441_v32  ;;  %v6000_v58 = vpack.c.bf16 %v4138_v28, %v4138_v28  ;;  %v3877_v47 = vmul.f32 %v10727_v10, %v3614_v33  ;;  %v3111_v42 = vadd.f32 1e-06, %v2855_v14  ;;  %2542 = vadd.xlane.f32.xlu1 %v9845_v3  ;;  %v13101_v3 = vld [vmem:[#allocation71_spill] sm:$0xff] }
 0x3aa   : > { %2539 = vadd.xlane.f32.xlu0 %v9848_v31  ;;  %v6383_v30 = vpop.eup %6382  ;;  %v10940_v60 = vsub.f32 %v6913_v49, %v1440_v50  ;;  %5420 = vst.msk [vmem:[%s10020_s26 + $0x1b4] sm:$0xf] %vm5310_vm1, %v6001_v2  ;;  %v4141_v8 = vadd.f32 %v10744_v12, %v3878_v53  ;;  %v3617_v44 = vmul.f32 %v6381_v18, %v13100_v9  ;;  %v3110_v32 = vadd.f32 1e-06, %v2854_v43  ;;  %v2333_v27 = vpop.xlane.xlu1 %2332  ;;  %v13102_v18 = vld [vmem:[#allocation72_spill] sm:$0xff] }
 0x3ab   : > { %v2330_v40 = vpop.xlane.xlu0 %2329  ;;  %5419 = vst.msk [vmem:[%s10020_s26 + $0x1b0] sm:$0xf] %vm5310_vm1, %v6000_v58  ;;  %v4140_v35 = vadd.f32 %v10744_v12, %v3877_v47  ;;  %v3616_v31 = vmul.f32 %v6383_v30, %v13101_v3  ;;  %6392 = vrsqrt.f32 %v3111_v42  ;;  %v2857_v5 = vmul.f32 0.03125, %v2333_v27  ;;  %v13104_v27 = vld [vmem:[#allocation4_spill] sm:$0xff] }
 0x3ac   : > { %v6003_v50 = vpack.c.bf16 %v4141_v8, %v4141_v8  ;;  %v3880_v63 = vmul.f32 %v10727_v10, %v3617_v44  ;;  %6394 = vrsqrt.f32 %v3110_v32  ;;  %v2856_v51 = vmul.f32 0.03125, %v2330_v40 }
 0x3ad   : > { %v6385_v28 = vpop.eup %6384  ;;  %v6002_v39 = vpack.c.bf16 %v4140_v35, %v4140_v35  ;;  %v3879_v33 = vmul.f32 %v10727_v10, %v3616_v31  ;;  %v3113_v14 = vadd.f32 1e-06, %v2857_v5  ;;  %2548 = vadd.xlane.f32.xlu1 %v9854_v56  ;;  %v10955_v2 = vsel %vm430_vm0, %v1951_v55, 0.0  ;;  %v13103_v56 = vld [vmem:[#allocation251_spill] sm:$0xff]  ;;  %v13105_v5 = vld [vmem:[#allocation5_spill] sm:$0xff] }
 0x3ae   : > { %2545 = vadd.xlane.f32.xlu0 %v9864_v37  ;;  %v6387_v53 = vpop.eup %6386  ;;  %5422 = vst.msk [vmem:[%s10020_s26 + $0x1bc] sm:$0xf] %vm5310_vm1, %v6003_v50  ;;  %v4143_v43 = vadd.f32 %v10744_v12, %v3880_v63  ;;  %v3619_v0 = vmul.f32 %v6385_v28, %v13102_v18  ;;  %v3112_v58 = vadd.f32 1e-06, %v2856_v51  ;;  %v2339_v47 = vpop.xlane.xlu1 %2338  ;;  %v10962_v30 = vsel %vm430_vm0, %v1950_v45, 0.0  ;;  %v13106_v51 = vld [vmem:[#allocation253_spill] sm:$0xff] }
 0x3af   : > { %v2336_v42 = vpop.xlane.xlu0 %2335  ;;  %5421 = vst.msk [vmem:[%s10020_s26 + $0x1b8] sm:$0xf] %vm5310_vm1, %v6002_v39  ;;  %v4142_v37 = vadd.f32 %v10744_v12, %v3879_v33  ;;  %v3618_v55 = vmul.f32 %v6387_v53, %v13103_v56  ;;  %6396 = vrsqrt.f32 %v3113_v14  ;;  %v2859_v49 = vmul.f32 0.03125, %v2339_v47 }
 0x3b0   : > { %v6005_v8 = vpack.c.bf16 %v4143_v43, %v4143_v43  ;;  %v3882_v9 = vmul.f32 %v10727_v10, %v3619_v0  ;;  %6398 = vrsqrt.f32 %v3112_v58  ;;  %v2858_v44 = vmul.f32 0.03125, %v2336_v42  ;;  %v13107_v43 = vld [vmem:[#allocation254_spill] sm:$0xff] }
 0x3b1   : > { %v6389_v32 = vpop.eup %6388  ;;  %v1443_v40 = vmul.f32 0.03125, %v13104_v27  ;;  %v6004_v45 = vpack.c.bf16 %v4142_v37, %v4142_v37  ;;  %v3881_v35 = vmul.f32 %v10727_v10, %v3618_v55  ;;  %v3115_v3 = vadd.f32 1e-06, %v2859_v49  ;;  %2554 = vadd.xlane.f32.xlu1 %v9867_v26  ;;  %v13108_v55 = vld [vmem:[#allocation32_spill] sm:$0xff] }
 0x3b2   : > { %2551 = vadd.xlane.f32.xlu0 %v9870_v57  ;;  %v6391_v31 = vpop.eup %6390  ;;  %v1442_v50 = vmul.f32 0.03125, %v13105_v5  ;;  %5424 = vst.msk [vmem:[%s10020_s26 + $0x1c4] sm:$0xf] %vm5310_vm1, %v6005_v8  ;;  %v4145_v63 = vadd.f32 %v10744_v12, %v3882_v9  ;;  %v3621_v28 = vmul.f32 %v6389_v32, %v13106_v51  ;;  %v3114_v39 = vadd.f32 1e-06, %v2858_v44  ;;  %v2345_v33 = vpop.xlane.xlu1 %2344  ;;  %v13109_v44 = vld [vmem:[#allocation255_spill] sm:$0xff] }
 0x3b3   : > { %v2342_v14 = vpop.xlane.xlu0 %2341  ;;  %5423 = vst.msk [vmem:[%s10020_s26 + $0x1c0] sm:$0xf] %vm5310_vm1, %v6004_v45  ;;  %v4144_v53 = vadd.f32 %v10744_v12, %v3881_v35  ;;  %v3620_v26 = vmul.f32 %v6391_v31, %v13107_v43  ;;  %6400 = vrsqrt.f32 %v3115_v3  ;;  %v2861_v57 = vmul.f32 0.03125, %v2345_v33  ;;  %v13110_v31 = vld [vmem:[#allocation256_spill] sm:$0xff] }
 0x3b4   : > { %v6007_v18 = vpack.c.bf16 %v4145_v63, %v4145_v63  ;;  %v3884_v0 = vmul.f32 %v10727_v10, %v3621_v28  ;;  %6402 = vrsqrt.f32 %v3114_v39  ;;  %v2860_v58 = vmul.f32 0.03125, %v2342_v14  ;;  %v6914_v14 = vld [vmem:[%s6976_s18 + $0x798] sm:$0xff] }
 0x3b5   : > { %v6393_v47 = vpop.eup %6392  ;;  %v6006_v42 = vpack.c.bf16 %v4144_v53, %v4144_v53  ;;  %v3883_v37 = vmul.f32 %v10727_v10, %v3620_v26  ;;  %v3117_v56 = vadd.f32 1e-06, %v2861_v57  ;;  %2560 = vadd.xlane.f32.xlu1 %v9874_v62  ;;  %v1953_v49 = vmul.f32 %v10934_v29, %v10934_v29 }
 0x3b6   : > { %2557 = vadd.xlane.f32.xlu0 %v13108_v55  ;;  %v6395_v8 = vpop.eup %6394  ;;  %5426 = vst.msk [vmem:[%s10020_s26 + $0x1cc] sm:$0xf] %vm5310_vm1, %v6007_v18  ;;  %v4147_v9 = vadd.f32 %v10744_v12, %v3884_v0  ;;  %v3623_v32 = vmul.f32 %v6393_v47, %v13109_v44  ;;  %v3116_v27 = vadd.f32 1e-06, %v2860_v58  ;;  %v2351_v45 = vpop.xlane.xlu1 %2350  ;;  %v1952_v3 = vmul.f32 %v10940_v60, %v10940_v60  ;;  %v13111_v18 = vld [vmem:[#allocation338_spill] sm:$0xff]  ;;  %v6915_v58 = vld [vmem:[%s6976_s18 + $0x790] sm:$0xff] }
 0x3b7   : > { %v2348_v35 = vpop.xlane.xlu0 %2347  ;;  %5425 = vst.msk [vmem:[%s10020_s26 + $0x1c8] sm:$0xf] %vm5310_vm1, %v6006_v42  ;;  %v4146_v62 = vadd.f32 %v10744_v12, %v3883_v37  ;;  %v3622_v5 = vmul.f32 %v6395_v8, %v13110_v31  ;;  %6404 = vrsqrt.f32 %v3117_v56  ;;  %v2863_v63 = vmul.f32 0.03125, %v2351_v45  ;;  %v13112_v37 = vld [vmem:[#allocation74_spill] sm:$0xff] }
 0x3b8   : > { %v6009_v51 = vpack.c.bf16 %v4147_v9, %v4147_v9  ;;  %v3886_v28 = vmul.f32 %v10727_v10, %v3623_v32  ;;  %6406 = vrsqrt.f32 %v3116_v27  ;;  %v2862_v39 = vmul.f32 0.03125, %v2348_v35 }
 0x3b9   : > { %v6397_v33 = vpop.eup %6396  ;;  %v11000_v53 = vsub.f32 %v6914_v14, %v1443_v40  ;;  %v6008_v43 = vpack.c.bf16 %v4146_v62, %v4146_v62  ;;  %v3885_v26 = vmul.f32 %v10727_v10, %v3622_v5  ;;  %v3119_v57 = vadd.f32 1e-06, %v2863_v63  ;;  %2566 = vadd.xlane.f32.xlu1 %v9889_v19  ;;  %v13113_v19 = vld [vmem:[#allocation261_spill] sm:$0xff]  ;;  %v13114_v63 = vld [vmem:[#allocation220_spill] sm:$0xff] }
 0x3ba   : > { %2563 = vadd.xlane.f32.xlu0 %v13111_v18  ;;  %v6399_v0 = vpop.eup %6398  ;;  %v11006_v47 = vsub.f32 %v6915_v58, %v1442_v50  ;;  %5428 = vst.msk [vmem:[%s10020_s26 + $0x1d4] sm:$0xf] %vm5310_vm1, %v6009_v51  ;;  %v4149_v42 = vadd.f32 %v10744_v12, %v3886_v28  ;;  %v3625_v56 = vmul.f32 %v6397_v33, %v13112_v37  ;;  %v3118_v40 = vadd.f32 1e-06, %v2862_v39  ;;  %v2357_v55 = vpop.xlane.xlu1 %2356  ;;  %v13115_v33 = vld [vmem:[#allocation265_spill] sm:$0xff] }
 0x3bb   : > { %v2354_v8 = vpop.xlane.xlu0 %2353  ;;  %5427 = vst.msk [vmem:[%s10020_s26 + $0x1d0] sm:$0xf] %vm5310_vm1, %v6008_v43  ;;  %v4148_v9 = vadd.f32 %v10744_v12, %v3885_v26  ;;  %v3624_v44 = vmul.f32 %v6399_v0, %v13113_v19  ;;  %6408 = vrsqrt.f32 %v3119_v57  ;;  %v2865_v32 = vmul.f32 0.03125, %v2357_v55  ;;  %v13116_v0 = vld [vmem:[#allocation79_spill] sm:$0xff]  ;;  %v13117_v55 = vld [vmem:[#allocation13_spill] sm:$0xff] }
 0x3bc   : > { %v6011_v50 = vpack.c.bf16 %v4149_v42, %v4149_v42  ;;  %v3888_v27 = vmul.f32 %v10727_v10, %v3625_v56  ;;  %6410 = vrsqrt.f32 %v3118_v40  ;;  %v2864_v45 = vmul.f32 0.03125, %v2354_v8 }
 0x3bd   : > { %v6401_v35 = vpop.eup %6400  ;;  %v6010_v62 = vpack.c.bf16 %v4148_v9, %v4148_v9  ;;  %v3887_v31 = vmul.f32 %v10727_v10, %v3624_v44  ;;  %v3121_v5 = vadd.f32 1e-06, %v2865_v32  ;;  %2572 = vadd.xlane.f32.xlu1 %v13114_v63  ;;  %v11021_v51 = vsel %vm430_vm0, %v1953_v49, 0.0  ;;  %v13118_v32 = vld [vmem:[#allocation317_spill] sm:$0xff] }
 0x3be   : > { %2569 = vadd.xlane.f32.xlu0 %v9908_v23  ;;  %v6403_v28 = vpop.eup %6402  ;;  %5430 = vst.msk [vmem:[%s10020_s26 + $0x1dc] sm:$0xf] %vm5310_vm1, %v6011_v50  ;;  %v4151_v39 = vadd.f32 %v10744_v12, %v3888_v27  ;;  %v3627_v14 = vmul.f32 %v6401_v35, %v13115_v33  ;;  %v3120_v43 = vadd.f32 1e-06, %v2864_v45  ;;  %v2363_v26 = vpop.xlane.xlu1 %2362  ;;  %v11028_v18 = vsel %vm430_vm0, %v1952_v3, 0.0  ;;  %v13119_v45 = vld [vmem:[#allocation82_spill] sm:$0xff] }
 0x3bf   : > { %v2360_v57 = vpop.xlane.xlu0 %2359  ;;  %5429 = vst.msk [vmem:[%s10020_s26 + $0x1d8] sm:$0xf] %vm5310_vm1, %v6010_v62  ;;  %v4150_v23 = vadd.f32 %v10744_v12, %v3887_v31  ;;  %v3626_v49 = vmul.f32 %v6403_v28, %v13116_v0  ;;  %6412 = vrsqrt.f32 %v3121_v5  ;;  %v2867_v58 = vmul.f32 0.03125, %v2363_v26  ;;  %v13120_v28 = vld [vmem:[#allocation84_spill] sm:$0xff]  ;;  %v13121_v0 = vld [vmem:[#allocation343_spill] sm:$0xff] }
 0x3c0   : > { %v6013_v42 = vpack.c.bf16 %v4151_v39, %v4151_v39  ;;  %v3890_v37 = vmul.f32 %v10727_v10, %v3627_v14  ;;  %6414 = vrsqrt.f32 %v3120_v43  ;;  %v2866_v56 = vmul.f32 0.03125, %v2360_v57 }
 0x3c1   : > { %v6405_v40 = vpop.eup %6404  ;;  %v1445_v8 = vmul.f32 0.03125, %v13117_v55  ;;  %v6012_v3 = vpack.c.bf16 %v4150_v23, %v4150_v23  ;;  %v3889_v9 = vmul.f32 %v10727_v10, %v3626_v49  ;;  %v3123_v19 = vadd.f32 1e-06, %v2867_v58  ;;  %2578 = vadd.xlane.f32.xlu1 %v9939_v34  ;;  %v13122_v49 = vld [vmem:[#allocation344_spill] sm:$0xff] }
 0x3c2   : > { %2575 = vadd.xlane.f32.xlu0 %v9946_v41  ;;  %v6407_v44 = vpop.eup %6406  ;;  %v1444_v50 = vmul.f32 0.03125, %v13118_v32  ;;  %5432 = vst.msk [vmem:[%s10020_s26 + $0x1e4] sm:$0xf] %vm5310_vm1, %v6013_v42  ;;  %v4153_v27 = vadd.f32 %v10744_v12, %v3890_v37  ;;  %v3629_v35 = vmul.f32 %v6405_v40, %v13119_v45  ;;  %v3122_v62 = vadd.f32 1e-06, %v2866_v56  ;;  %v2369_v31 = vpop.xlane.xlu1 %2368  ;;  %v13123_v56 = vld [vmem:[#allocation85_spill] sm:$0xff] }
 0x3c3   : > { %v2366_v5 = vpop.xlane.xlu0 %2365  ;;  %5431 = vst.msk [vmem:[%s10020_s26 + $0x1e0] sm:$0xf] %vm5310_vm1, %v6012_v3  ;;  %v4152_v63 = vadd.f32 %v10744_v12, %v3889_v9  ;;  %v3628_v34 = vmul.f32 %v6407_v44, %v13120_v28  ;;  %6416 = vrsqrt.f32 %v3123_v19  ;;  %v2869_v41 = vmul.f32 0.03125, %v2369_v31  ;;  %v13124_v32 = vld [vmem:[#allocation266_spill] sm:$0xff] }
 0x3c4   : > { %v6015_v39 = vpack.c.bf16 %v4153_v27, %v4153_v27  ;;  %v3892_v33 = vmul.f32 %v10727_v10, %v3629_v35  ;;  %6418 = vrsqrt.f32 %v3122_v62  ;;  %v2868_v14 = vmul.f32 0.03125, %v2366_v5 }
 0x3c5   : > { %v6409_v43 = vpop.eup %6408  ;;  %v6014_v26 = vpack.c.bf16 %v4152_v63, %v4152_v63  ;;  %v3891_v57 = vmul.f32 %v10727_v10, %v3628_v34  ;;  %v3125_v23 = vadd.f32 1e-06, %v2869_v41  ;;  %2584 = vadd.xlane.f32.xlu1 %v13121_v0  ;;  %v1955_v58 = vmul.f32 %v11000_v53, %v11000_v53  ;;  %v6916_v63 = vld [vmem:[%s6976_s18 + $0x7a8] sm:$0xff]  ;;  %v13127_v0 = vld [vmem:[#allocation86_spill] sm:$0xff] }
 0x3c6   : > { %2581 = vadd.xlane.f32.xlu0 %v13122_v49  ;;  %v6411_v42 = vpop.eup %6410  ;;  %5434 = vst.msk [vmem:[%s10020_s26 + $0x1ec] sm:$0xf] %vm5310_vm1, %v6015_v39  ;;  %v4155_v37 = vadd.f32 %v10744_v12, %v3892_v33  ;;  %v3631_v40 = vmul.f32 %v6409_v43, %v13123_v56  ;;  %v3124_v55 = vadd.f32 1e-06, %v2868_v14  ;;  %v2375_v3 = vpop.xlane.xlu1 %2374  ;;  %v1954_v19 = vmul.f32 %v11006_v47, %v11006_v47  ;;  %v13125_v33 = vld [vmem:[#allocation345_spill] sm:$0xff]  ;;  %v13126_v14 = vld [vmem:[#allocation227_spill] sm:$0xff] }
 0x3c7   : > { %v2372_v9 = vpop.xlane.xlu0 %2371  ;;  %5433 = vst.msk [vmem:[%s10020_s26 + $0x1e8] sm:$0xf] %vm5310_vm1, %v6014_v26  ;;  %v4154_v44 = vadd.f32 %v10744_v12, %v3891_v57  ;;  %v3630_v27 = vmul.f32 %v6411_v42, %v13124_v32  ;;  %6420 = vrsqrt.f32 %v3125_v23  ;;  %v2871_v45 = vmul.f32 0.03125, %v2375_v3  ;;  %v6917_v26 = vld [vmem:[%s6976_s18 + $0x7a0] sm:$0xff] }
 0x3c8   : > { %v6017_v35 = vpack.c.bf16 %v4155_v37, %v4155_v37  ;;  %v3894_v62 = vmul.f32 %v10727_v10, %v3631_v40  ;;  %6422 = vrsqrt.f32 %v3124_v55  ;;  %v2870_v31 = vmul.f32 0.03125, %v2372_v9  ;;  %v13128_v40 = vld [vmem:[#allocation87_spill] sm:$0xff] }
 0x3c9   : > { %v6413_v5 = vpop.eup %6412  ;;  %v11066_v28 = vsub.f32 %v6916_v63, %v1445_v8  ;;  %v6016_v34 = vpack.c.bf16 %v4154_v44, %v4154_v44  ;;  %v3893_v41 = vmul.f32 %v10727_v10, %v3630_v27  ;;  %v3127_v39 = vadd.f32 1e-06, %v2871_v45  ;;  %2590 = vadd.xlane.f32.xlu1 %v13125_v33 }
 0x3ca   : > { %2587 = vadd.xlane.f32.xlu0 %v13126_v14  ;;  %v6415_v43 = vpop.eup %6414  ;;  %v11072_v57 = vsub.f32 %v6917_v26, %v1444_v50  ;;  %5436 = vst.msk [vmem:[%s10020_s26 + $0x1f4] sm:$0xf] %vm5310_vm1, %v6017_v35  ;;  %v4157_v23 = vadd.f32 %v10744_v12, %v3894_v62  ;;  %v3633_v49 = vmul.f32 %v6413_v5, %v13127_v0  ;;  %v3126_v8 = vadd.f32 1e-06, %v2870_v31  ;;  %v2381_v42 = vpop.xlane.xlu1 %2380  ;;  %v13129_v62 = vld [vmem:[#allocation228_spill] sm:$0xff]  ;;  %v13130_v31 = vld [vmem:[#allocation103_spill] sm:$0xff] }
 0x3cb   : > { %v2378_v37 = vpop.xlane.xlu0 %2377  ;;  %5435 = vst.msk [vmem:[%s10020_s26 + $0x1f0] sm:$0xf] %vm5310_vm1, %v6016_v34  ;;  %v4156_v56 = vadd.f32 %v10744_v12, %v3893_v41  ;;  %v3632_v55 = vmul.f32 %v6415_v43, %v13128_v40  ;;  %6424 = vrsqrt.f32 %v3127_v39  ;;  %v2873_v3 = vmul.f32 0.03125, %v2381_v42  ;;  %v13131_v41 = vld [vmem:[#allocation88_spill] sm:$0xff] }
 0x3cc   : > { %v6019_v50 = vpack.c.bf16 %v4157_v23, %v4157_v23  ;;  %v3896_v9 = vmul.f32 %v10727_v10, %v3633_v49  ;;  %6426 = vrsqrt.f32 %v3126_v8  ;;  %v2872_v44 = vmul.f32 0.03125, %v2378_v37  ;;  %v13132_v23 = vld [vmem:[#allocation267_spill] sm:$0xff]  ;;  %v11103_v8 = vld [vmem:[%s11900_s1] ss:$0 sm:$0xff] }
 0x3cd   : > { %v6417_v32 = vpop.eup %6416  ;;  %v6018_v27 = vpack.c.bf16 %v4156_v56, %v4156_v56  ;;  %v3895_v45 = vmul.f32 %v10727_v10, %v3632_v55  ;;  %v3129_v35 = vadd.f32 1e-06, %v2873_v3  ;;  %2596 = vadd.xlane.f32.xlu1 %v13129_v62  ;;  %v11087_v5 = vsel %vm430_vm0, %v1955_v58, 0.0  ;;  %v13133_v56 = vld [vmem:[#allocation19_spill] sm:$0xff]  ;;  %v13137_v62 = vld [vmem:[#allocation269_spill] sm:$0xff] }
 0x3ce   : > { %2593 = vadd.xlane.f32.xlu0 %v13130_v31  ;;  %v6419_v63 = vpop.eup %6418  ;;  %5438 = vst.msk [vmem:[%s10020_s26 + $0x1fc] sm:$0xf] %vm5310_vm1, %v6019_v50  ;;  %v4159_v34 = vadd.f32 %v10744_v12, %v3896_v9  ;;  %v3635_v39 = vmul.f32 %v6417_v32, %v13131_v41  ;;  %v3128_v33 = vadd.f32 1e-06, %v2872_v44  ;;  %v2387_v14 = vpop.xlane.xlu1 %2386  ;;  %v11094_v10 = vsel %vm430_vm0, %v1954_v19, 0.0  ;;  %v13134_v50 = vld [vmem:[#allocation44_spill] sm:$0xff] }
 0x3cf   : > { %v2384_v43 = vpop.xlane.xlu0 %2383  ;;  %5437 = vst.msk [vmem:[%s10020_s26 + $0x1f8] sm:$0xf] %vm5310_vm1, %v6018_v27  ;;  %v4158_v26 = vadd.f32 %v10744_v12, %v3895_v45  ;;  %v3634_v58 = vmul.f32 %v6419_v63, %v13132_v23  ;;  %6428 = vrsqrt.f32 %v3129_v35  ;;  %v2875_v0 = vmul.f32 0.03125, %v2387_v14  ;;  %v13135_v9 = vld [vmem:[#allocation230_spill] sm:$0xff]  ;;  %v13136_v32 = vld [vmem:[#allocation321_spill] sm:$0xff] }
 0x3d0   : > { %v6021_v49 = vpack.c.bf16 %v4159_v34, %v4159_v34  ;;  %v3898_v42 = vmul.f32 %v11103_v8, %v3635_v39  ;;  %6430 = vrsqrt.f32 %v3128_v33  ;;  %v2874_v19 = vmul.f32 0.03125, %v2384_v43  ;;  %v11116_v45 = vld [vmem:[%s11901_s2] ss:$0 sm:$0xff] }
 0x3d1   : > { %v6421_v37 = vpop.eup %6420  ;;  %v1447_v40 = vmul.f32 0.03125, %v13133_v56  ;;  %v6020_v12 = vpack.c.bf16 %v4158_v26, %v4158_v26  ;;  %v3897_v55 = vmul.f32 %v11103_v8, %v3634_v58  ;;  %v3131_v3 = vadd.f32 1e-06, %v2875_v0  ;;  %2602 = vadd.xlane.f32.xlu1 %v13134_v50  ;;  %v13138_v33 = vld [vmem:[#allocation270_spill] sm:$0xff] }
 0x3d2   : > { %2599 = vadd.xlane.f32.xlu0 %v13135_v9  ;;  %v6423_v44 = vpop.eup %6422  ;;  %v1446_v27 = vmul.f32 0.03125, %v13136_v32  ;;  %5440 = vst.msk [vmem:[%s10020_s26 + $0x204] sm:$0xf] %vm5310_vm1, %v6021_v49  ;;  %v4161_v35 = vadd.f32 %v11116_v45, %v3898_v42  ;;  %v3637_v31 = vmul.f32 %v6421_v37, %v13137_v62  ;;  %v3130_v63 = vadd.f32 1e-06, %v2874_v19  ;;  %v2393_v34 = vpop.xlane.xlu1 %2392 }
 0x3d3   : > { %v2390_v41 = vpop.xlane.xlu0 %2389  ;;  %5439 = vst.msk [vmem:[%s10020_s26 + $0x200] sm:$0xf] %vm5310_vm1, %v6020_v12  ;;  %v4160_v39 = vadd.f32 %v11116_v45, %v3897_v55  ;;  %v3636_v14 = vmul.f32 %v6423_v44, %v13138_v33  ;;  %6432 = vrsqrt.f32 %v3131_v3  ;;  %v2877_v43 = vmul.f32 0.03125, %v2393_v34  ;;  %v13139_v55 = vld [vmem:[#allocation271_spill] sm:$0xff] }
 0x3d4   : > { %v6023_v26 = vpack.c.bf16 %v4161_v35, %v4161_v35  ;;  %v3900_v23 = vmul.f32 %v11103_v8, %v3637_v31  ;;  %6434 = vrsqrt.f32 %v3130_v63  ;;  %v2876_v58 = vmul.f32 0.03125, %v2390_v41 }
 0x3d5   : > { %v6425_v0 = vpop.eup %6424  ;;  %v6022_v49 = vpack.c.bf16 %v4160_v39, %v4160_v39  ;;  %v3899_v42 = vmul.f32 %v11103_v8, %v3636_v14  ;;  %v3133_v19 = vadd.f32 1e-06, %v2877_v43  ;;  %2608 = vadd.xlane.f32.xlu1 %v10077_v7  ;;  %v1957_v37 = vmul.f32 %v11066_v28, %v11066_v28  ;;  %v6920_v39 = vld [vmem:[%s6976_s18 + $0x7b8] sm:$0xff] }
 0x3d6   : > { %2605 = vadd.xlane.f32.xlu0 %v10084_v54  ;;  %v6427_v56 = vpop.eup %6426  ;;  %5442 = vst.msk [vmem:[%s10020_s26 + $0x20c] sm:$0xf] %vm5310_vm1, %v6023_v26  ;;  %v4163_v12 = vadd.f32 %v11116_v45, %v3900_v23  ;;  %v3639_v3 = vmul.f32 %v6425_v0, %v13139_v55  ;;  %v3132_v50 = vadd.f32 1e-06, %v2876_v58  ;;  %v2399_v9 = vpop.xlane.xlu1 %2398  ;;  %v1956_v32 = vmul.f32 %v11072_v57, %v11072_v57  ;;  %v13140_v54 = vld [vmem:[#allocation272_spill] sm:$0xff] }
 0x3d7   : > { %v2396_v44 = vpop.xlane.xlu0 %2395  ;;  %5441 = vst.msk [vmem:[%s10020_s26 + $0x208] sm:$0xf] %vm5310_vm1, %v6022_v49  ;;  %v4162_v7 = vadd.f32 %v11116_v45, %v3899_v42  ;;  %v3638_v35 = vmul.f32 %v6427_v56, %v13140_v54  ;;  %6436 = vrsqrt.f32 %v3133_v19  ;;  %v2879_v62 = vmul.f32 0.03125, %v2399_v9  ;;  %v6921_v58 = vld [vmem:[%s6976_s18 + $0x7b0] sm:$0xff]  ;;  %v13141_v42 = vld [vmem:[#allocation90_spill] sm:$0xff] }
 0x3d8   : > { %v6025_v31 = vpack.c.bf16 %v4163_v12, %v4163_v12  ;;  %v3902_v63 = vmul.f32 %v11103_v8, %v3639_v3  ;;  %6438 = vrsqrt.f32 %v3132_v50  ;;  %v2878_v34 = vmul.f32 0.03125, %v2396_v44 }
 0x3d9   : > { %v6429_v41 = vpop.eup %6428  ;;  %v11142_v33 = vsub.f32 %v6920_v39, %v1447_v40  ;;  %v6024_v14 = vpack.c.bf16 %v4162_v7, %v4162_v7  ;;  %v3901_v43 = vmul.f32 %v11103_v8, %v3638_v35  ;;  %v3135_v26 = vadd.f32 1e-06, %v2879_v62  ;;  %2614 = vadd.xlane.f32.xlu1 %v10143_v38  ;;  %v13142_v38 = vld [vmem:[#allocation277_spill] sm:$0xff] }
 0x3da   : > { %2611 = vadd.xlane.f32.xlu0 %v10150_v1  ;;  %v6431_v23 = vpop.eup %6430  ;;  %v11148_v0 = vsub.f32 %v6921_v58, %v1446_v27  ;;  %5444 = vst.msk [vmem:[%s10020_s26 + $0x214] sm:$0xf] %vm5310_vm1, %v6025_v31  ;;  %v4165_v49 = vadd.f32 %v11116_v45, %v3902_v63  ;;  %v3641_v19 = vmul.f32 %v6429_v41, %v13141_v42  ;;  %v3134_v40 = vadd.f32 1e-06, %v2878_v34  ;;  %v2405_v56 = vpop.xlane.xlu1 %2404  ;;  %v13143_v34 = vld [vmem:[#allocation279_spill] sm:$0xff] }
 0x3db   : > { %v2402_v12 = vpop.xlane.xlu0 %2401  ;;  %5443 = vst.msk [vmem:[%s10020_s26 + $0x210] sm:$0xf] %vm5310_vm1, %v6024_v14  ;;  %v4164_v55 = vadd.f32 %v11116_v45, %v3901_v43  ;;  %v3640_v1 = vmul.f32 %v6431_v23, %v13142_v38  ;;  %6440 = vrsqrt.f32 %v3135_v26  ;;  %v2881_v3 = vmul.f32 0.03125, %v2405_v56  ;;  %v13146_v38 = vld [vmem:[#allocation116_spill] sm:$0xff] }
 0x3dc   : > { %v6027_v27 = vpack.c.bf16 %v4165_v49, %v4165_v49  ;;  %v3904_v50 = vmul.f32 %v11103_v8, %v3641_v19  ;;  %6442 = vrsqrt.f32 %v3134_v40  ;;  %v2880_v9 = vmul.f32 0.03125, %v2402_v12  ;;  %v13145_v40 = vld [vmem:[#allocation323_spill] sm:$0xff] }
 0x3dd   : > { %v6433_v44 = vpop.eup %6432  ;;  %v6026_v7 = vpack.c.bf16 %v4164_v55, %v4164_v55  ;;  %v3903_v54 = vmul.f32 %v11103_v8, %v3640_v1  ;;  %v3137_v35 = vadd.f32 1e-06, %v2881_v3  ;;  %2620 = vadd.xlane.f32.xlu1 %v10209_v36  ;;  %v11163_v62 = vsel %vm430_vm0, %v1957_v37, 0.0  ;;  %v13147_v1 = vld [vmem:[#allocation117_spill] sm:$0xff] }
 0x3de   : > { %2617 = vadd.xlane.f32.xlu0 %v10216_v17  ;;  %v6435_v31 = vpop.eup %6434  ;;  %5446 = vst.msk [vmem:[%s10020_s26 + $0x21c] sm:$0xf] %vm5310_vm1, %v6027_v27  ;;  %v4167_v63 = vadd.f32 %v11116_v45, %v3904_v50  ;;  %v3643_v41 = vmul.f32 %v6433_v44, %v13143_v34  ;;  %v3136_v39 = vadd.f32 1e-06, %v2880_v9  ;;  %v2411_v14 = vpop.xlane.xlu1 %2410  ;;  %v11170_v26 = vsel %vm430_vm0, %v1956_v32, 0.0  ;;  %v13144_v17 = vld [vmem:[#allocation95_spill] sm:$0xff] }
 0x3df   : > { %v2408_v43 = vpop.xlane.xlu0 %2407  ;;  %5445 = vst.msk [vmem:[%s10020_s26 + $0x218] sm:$0xf] %vm5310_vm1, %v6026_v7  ;;  %v4166_v36 = vadd.f32 %v11116_v45, %v3903_v54  ;;  %v3642_v37 = vmul.f32 %v6435_v31, %v13144_v17  ;;  %6444 = vrsqrt.f32 %v3137_v35  ;;  %v2883_v23 = vmul.f32 0.03125, %v2411_v14  ;;  %v13148_v27 = vld [vmem:[#allocation324_spill] sm:$0xff]  ;;  %v13149_v44 = vld [vmem:[#allocation98_spill] sm:$0xff]  ;;  %v13150_v34 = vld [vmem:[#allocation181_spill] sm:$0xff] }
 0x3e0   : > { %v6029_v58 = vpack.c.bf16 %v4167_v63, %v4167_v63  ;;  %v3906_v49 = vmul.f32 %v11103_v8, %v3643_v41  ;;  %6446 = vrsqrt.f32 %v3136_v39  ;;  %v2882_v42 = vmul.f32 0.03125, %v2408_v43 }
 0x3e1   : > { %v6437_v19 = vpop.eup %6436  ;;  %v1449_v56 = vmul.f32 0.03125, %v13145_v40  ;;  %v6028_v32 = vpack.c.bf16 %v4166_v36, %v4166_v36  ;;  %v3905_v12 = vmul.f32 %v11103_v8, %v3642_v37  ;;  %v3139_v55 = vadd.f32 1e-06, %v2883_v23  ;;  %2626 = vadd.xlane.f32.xlu1 %v13146_v38 }
 0x3e2   : > { %2623 = vadd.xlane.f32.xlu0 %v13147_v1  ;;  %v6439_v3 = vpop.eup %6438  ;;  %v1448_v50 = vmul.f32 0.03125, %v13148_v27  ;;  %5448 = vst.msk [vmem:[%s10020_s26 + $0x224] sm:$0xf] %vm5310_vm1, %v6029_v58  ;;  %v4169_v9 = vadd.f32 %v11116_v45, %v3906_v49  ;;  %v3645_v7 = vmul.f32 %v6437_v19, %v13149_v44  ;;  %v3138_v54 = vadd.f32 1e-06, %v2882_v42  ;;  %v2417_v35 = vpop.xlane.xlu1 %2416  ;;  %v13151_v49 = vld [vmem:[#allocation118_spill] sm:$0xff] }
 0x3e3   : > { %v2414_v31 = vpop.xlane.xlu0 %2413  ;;  %5447 = vst.msk [vmem:[%s10020_s26 + $0x220] sm:$0xf] %vm5310_vm1, %v6028_v32  ;;  %v4168_v63 = vadd.f32 %v11116_v45, %v3905_v12  ;;  %v3644_v41 = vmul.f32 %v6439_v3, %v13150_v34  ;;  %6448 = vrsqrt.f32 %v3139_v55  ;;  %v2885_v39 = vmul.f32 0.03125, %v2417_v35  ;;  %v13152_v42 = vld [vmem:[#allocation119_spill] sm:$0xff]  ;;  %v13153_v12 = vld [vmem:[#allocation101_spill] sm:$0xff]  ;;  %v13154_v44 = vld [vmem:[#allocation282_spill] sm:$0xff] }
 0x3e4   : > { %v6031_v14 = vpack.c.bf16 %v4169_v9, %v4169_v9  ;;  %v3908_v43 = vmul.f32 %v11103_v8, %v3645_v7  ;;  %6450 = vrsqrt.f32 %v3138_v54  ;;  %v2884_v36 = vmul.f32 0.03125, %v2414_v31 }
 0x3e5   : > { %v6441_v17 = vpop.eup %6440  ;;  %v6030_v37 = vpack.c.bf16 %v4168_v63, %v4168_v63  ;;  %v3907_v23 = vmul.f32 %v11103_v8, %v3644_v41  ;;  %v3141_v58 = vadd.f32 1e-06, %v2885_v39  ;;  %2632 = vadd.xlane.f32.xlu1 %v13151_v49  ;;  %v1959_v19 = vmul.f32 %v11142_v33, %v11142_v33  ;;  %v6922_v41 = vld [vmem:[%s6976_s18 + $0x7c8] sm:$0xff] }
 0x3e6   : > { %2629 = vadd.xlane.f32.xlu0 %v13152_v42  ;;  %v6443_v40 = vpop.eup %6442  ;;  %5450 = vst.msk [vmem:[%s10020_s26 + $0x22c] sm:$0xf] %vm5310_vm1, %v6031_v14  ;;  %v4171_v32 = vadd.f32 %v11116_v45, %v3908_v43  ;;  %v3647_v55 = vmul.f32 %v6441_v17, %v13153_v12  ;;  %v3140_v38 = vadd.f32 1e-06, %v2884_v36  ;;  %v2423_v1 = vpop.xlane.xlu1 %2422  ;;  %v1958_v27 = vmul.f32 %v11148_v0, %v11148_v0  ;;  %v13155_v17 = vld [vmem:[#allocation120_spill] sm:$0xff] }
 0x3e7   : > { %v2420_v3 = vpop.xlane.xlu0 %2419  ;;  %5449 = vst.msk [vmem:[%s10020_s26 + $0x228] sm:$0xf] %vm5310_vm1, %v6030_v37  ;;  %v4170_v9 = vadd.f32 %v11116_v45, %v3907_v23  ;;  %v3646_v7 = vmul.f32 %v6443_v40, %v13154_v44  ;;  %6452 = vrsqrt.f32 %v3141_v58  ;;  %v2887_v54 = vmul.f32 0.03125, %v2423_v1  ;;  %v13156_v37 = vld [vmem:[#allocation123_spill] sm:$0xff]  ;;  %v6923_v58 = vld [vmem:[%s6976_s18 + $0x7c0] sm:$0xff]  ;;  %v13158_v1 = vld [vmem:[#allocation104_spill] sm:$0xff] }
 0x3e8   : > { %v6033_v35 = vpack.c.bf16 %v4171_v32, %v4171_v32  ;;  %v3910_v31 = vmul.f32 %v11103_v8, %v3647_v55  ;;  %6454 = vrsqrt.f32 %v3140_v38  ;;  %v2886_v63 = vmul.f32 0.03125, %v2420_v3  ;;  %v13157_v40 = vld [vmem:[#allocation102_spill] sm:$0xff] }
 0x3e9   : > { %v6445_v34 = vpop.eup %6444  ;;  %v11208_v39 = vsub.f32 %v6922_v41, %v1449_v56  ;;  %v6032_v14 = vpack.c.bf16 %v4170_v9, %v4170_v9  ;;  %v3909_v43 = vmul.f32 %v11103_v8, %v3646_v7  ;;  %v3143_v36 = vadd.f32 1e-06, %v2887_v54  ;;  %2638 = vadd.xlane.f32.xlu1 %v13155_v17 }
 0x3ea   : > { %2635 = vadd.xlane.f32.xlu0 %v13156_v37  ;;  %v6447_v23 = vpop.eup %6446  ;;  %v11214_v49 = vsub.f32 %v6923_v58, %v1448_v50  ;;  %5452 = vst.msk [vmem:[%s10020_s26 + $0x234] sm:$0xf] %vm5310_vm1, %v6033_v35  ;;  %v4173_v42 = vadd.f32 %v11116_v45, %v3910_v31  ;;  %v3649_v32 = vmul.f32 %v6445_v34, %v13157_v40  ;;  %v3142_v56 = vadd.f32 1e-06, %v2886_v63  ;;  %v2429_v12 = vpop.xlane.xlu1 %2428 }
 0x3eb   : > { %v2426_v55 = vpop.xlane.xlu0 %2425  ;;  %5451 = vst.msk [vmem:[%s10020_s26 + $0x230] sm:$0xf] %vm5310_vm1, %v6032_v14  ;;  %v4172_v38 = vadd.f32 %v11116_v45, %v3909_v43  ;;  %v3648_v3 = vmul.f32 %v6447_v23, %v13158_v1  ;;  %6456 = vrsqrt.f32 %v3143_v36  ;;  %v2889_v9 = vmul.f32 0.03125, %v2429_v12  ;;  %v13159_v43 = vld [vmem:[#allocation105_spill] sm:$0xff] }
 0x3ec   : > { %v6035_v50 = vpack.c.bf16 %v4173_v42, %v4173_v42  ;;  %v3912_v44 = vmul.f32 %v11103_v8, %v3649_v32  ;;  %6458 = vrsqrt.f32 %v3142_v56  ;;  %v2888_v7 = vmul.f32 0.03125, %v2426_v55  ;;  %v13161_v55 = vld [vmem:[#allocation35_spill] sm:$0xff] }
 0x3ed   : > { %v6449_v54 = vpop.eup %6448  ;;  %v6034_v35 = vpack.c.bf16 %v4172_v38, %v4172_v38  ;;  %v3911_v31 = vmul.f32 %v11103_v8, %v3648_v3  ;;  %v3145_v63 = vadd.f32 1e-06, %v2889_v9  ;;  %2644 = vadd.xlane.f32.xlu1 %v10483_v4  ;;  %v11229_v34 = vsel %vm430_vm0, %v1959_v19, 0.0  ;;  %v13162_v9 = vld [vmem:[#allocation59_spill] sm:$0xff] }
 0x3ee   : > { %2641 = vadd.xlane.f32.xlu0 %v10490_v59  ;;  %v6451_v41 = vpop.eup %6450  ;;  %5454 = vst.msk [vmem:[%s10020_s26 + $0x23c] sm:$0xf] %vm5310_vm1, %v6035_v50  ;;  %v4175_v14 = vadd.f32 %v11116_v45, %v3912_v44  ;;  %v3651_v36 = vmul.f32 %v6449_v54, %v13159_v43  ;;  %v3144_v17 = vadd.f32 1e-06, %v2888_v7  ;;  %v2435_v37 = vpop.xlane.xlu1 %2434  ;;  %v11236_v58 = vsel %vm430_vm0, %v1958_v27, 0.0  ;;  %v13160_v59 = vld [vmem:[#allocation283_spill] sm:$0xff] }
 0x3ef   : > { %v2432_v23 = vpop.xlane.xlu0 %2431  ;;  %5453 = vst.msk [vmem:[%s10020_s26 + $0x238] sm:$0xf] %vm5310_vm1, %v6034_v35  ;;  %v4174_v4 = vadd.f32 %v11116_v45, %v3911_v31  ;;  %v3650_v19 = vmul.f32 %v6451_v41, %v13160_v59  ;;  %6460 = vrsqrt.f32 %v3145_v63  ;;  %v2891_v42 = vmul.f32 0.03125, %v2435_v37  ;;  %v13163_v44 = vld [vmem:[#allocation36_spill] sm:$0xff]  ;;  %v13164_v35 = vld [vmem:[#allocation182_spill] sm:$0xff] }
 0x3f0   : > { %v6037_v40 = vpack.c.bf16 %v4175_v14, %v4175_v14  ;;  %v3914_v32 = vmul.f32 %v11103_v8, %v3651_v36  ;;  %6462 = vrsqrt.f32 %v3144_v17  ;;  %v2890_v56 = vmul.f32 0.03125, %v2432_v23  ;;  %v13165_v36 = vld [vmem:[#allocation284_spill] sm:$0xff] }
 0x3f1   : > { %v6453_v12 = vpop.eup %6452  ;;  %v1451_v38 = vmul.f32 0.03125, %v13161_v55  ;;  %v6036_v27 = vpack.c.bf16 %v4174_v4, %v4174_v4  ;;  %v3913_v1 = vmul.f32 %v11103_v8, %v3650_v19  ;;  %v3147_v3 = vadd.f32 1e-06, %v2891_v42  ;;  %2650 = vadd.xlane.f32.xlu1 %v10549_v16 }
 0x3f2   : > { %2647 = vadd.xlane.f32.xlu0 %v13162_v9  ;;  %v6455_v50 = vpop.eup %6454  ;;  %v1450_v7 = vmul.f32 0.03125, %v13163_v44  ;;  %5456 = vst.msk [vmem:[%s10020_s26 + $0x244] sm:$0xf] %vm5310_vm1, %v6037_v40  ;;  %v4177_v54 = vadd.f32 %v11116_v45, %v3914_v32  ;;  %v3653_v31 = vmul.f32 %v6453_v12, %v13164_v35  ;;  %v3146_v63 = vadd.f32 1e-06, %v2890_v56  ;;  %v2441_v41 = vpop.xlane.xlu1 %2440  ;;  %v13166_v32 = vld [vmem:[#allocation129_spill] sm:$0xff] }
 0x3f3   : > { %v2438_v14 = vpop.xlane.xlu0 %2437  ;;  %5455 = vst.msk [vmem:[%s10020_s26 + $0x240] sm:$0xf] %vm5310_vm1, %v6036_v27  ;;  %v4176_v43 = vadd.f32 %v11116_v45, %v3913_v1  ;;  %v3652_v16 = vmul.f32 %v6455_v50, %v13165_v36  ;;  %6464 = vrsqrt.f32 %v3147_v3  ;;  %v2893_v17 = vmul.f32 0.03125, %v2441_v41  ;;  %v13167_v27 = vld [vmem:[#allocation285_spill] sm:$0xff] }
 0x3f4   : > { %v6039_v37 = vpack.c.bf16 %v4177_v54, %v4177_v54  ;;  %v3916_v23 = vmul.f32 %v11103_v8, %v3653_v31  ;;  %6466 = vrsqrt.f32 %v3146_v63  ;;  %v2892_v4 = vmul.f32 0.03125, %v2438_v14  ;;  %v13168_v54 = vld [vmem:[#allocation286_spill] sm:$0xff]  ;;  %v6924_v36 = vld [vmem:[%s6976_s18 + $0x7d8] sm:$0xff] }
 0x3f5   : > { %v6457_v59 = vpop.eup %6456  ;;  %v6038_v19 = vpack.c.bf16 %v4176_v43, %v4176_v43  ;;  %v3915_v42 = vmul.f32 %v11103_v8, %v3652_v16  ;;  %v3149_v40 = vadd.f32 1e-06, %v2893_v17  ;;  %2656 = vadd.xlane.f32.xlu1 %v10615_v24  ;;  %v1961_v56 = vmul.f32 %v11208_v39, %v11208_v39 }
 0x3f6   : > { %2653 = vadd.xlane.f32.xlu0 %v13166_v32  ;;  %v6459_v12 = vpop.eup %6458  ;;  %5458 = vst.msk [vmem:[%s10020_s26 + $0x24c] sm:$0xf] %vm5310_vm1, %v6039_v37  ;;  %v4179_v55 = vadd.f32 %v11116_v45, %v3916_v23  ;;  %v3655_v1 = vmul.f32 %v6457_v59, %v13167_v27  ;;  %v3148_v3 = vadd.f32 1e-06, %v2892_v4  ;;  %v2447_v9 = vpop.xlane.xlu1 %2446  ;;  %v1960_v44 = vmul.f32 %v11214_v49, %v11214_v49  ;;  %v13169_v4 = vld [vmem:[#allocation132_spill] sm:$0xff]  ;;  %v13170_v59 = vld [vmem:[#allocation133_spill] sm:$0xff] }
 0x3f7   : > { %v2444_v50 = vpop.xlane.xlu0 %2443  ;;  %5457 = vst.msk [vmem:[%s10020_s26 + $0x248] sm:$0xf] %vm5310_vm1, %v6038_v19  ;;  %v4178_v24 = vadd.f32 %v11116_v45, %v3915_v42  ;;  %v3654_v35 = vmul.f32 %v6459_v12, %v13168_v54  ;;  %6468 = vrsqrt.f32 %v3149_v40  ;;  %v2895_v31 = vmul.f32 0.03125, %v2447_v9  ;;  %v6925_v42 = vld [vmem:[%s6976_s18 + $0x7d0] sm:$0xff]  ;;  %v13172_v9 = vld [vmem:[#allocation293_spill] sm:$0xff] }
 0x3f8   : > { %v6041_v63 = vpack.c.bf16 %v4179_v55, %v4179_v55  ;;  %v3918_v41 = vmul.f32 %v11103_v8, %v3655_v1  ;;  %6470 = vrsqrt.f32 %v3148_v3  ;;  %v2894_v14 = vmul.f32 0.03125, %v2444_v50  ;;  %v13171_v12 = vld [vmem:[#allocation108_spill] sm:$0xff] }
 0x3f9   : > { %v6461_v43 = vpop.eup %6460  ;;  %v11274_v16 = vsub.f32 %v6924_v36, %v1451_v38  ;;  %v6040_v17 = vpack.c.bf16 %v4178_v24, %v4178_v24  ;;  %v3917_v37 = vmul.f32 %v11103_v8, %v3654_v35  ;;  %v3151_v23 = vadd.f32 1e-06, %v2895_v31  ;;  %2662 = vadd.xlane.f32.xlu1 %v13169_v4 }
 0x3fa   : > { %2659 = vadd.xlane.f32.xlu0 %v13170_v59  ;;  %v6463_v19 = vpop.eup %6462  ;;  %v11280_v40 = vsub.f32 %v6925_v42, %v1450_v7  ;;  %5460 = vst.msk [vmem:[%s10020_s26 + $0x254] sm:$0xf] %vm5310_vm1, %v6041_v63  ;;  %v4181_v32 = vadd.f32 %v11116_v45, %v3918_v41  ;;  %v3657_v55 = vmul.f32 %v6461_v43, %v13171_v12  ;;  %v3150_v38 = vadd.f32 1e-06, %v2894_v14  ;;  %v2453_v27 = vpop.xlane.xlu1 %2452 }
 0x3fb   : > { %v2450_v1 = vpop.xlane.xlu0 %2449  ;;  %5459 = vst.msk [vmem:[%s10020_s26 + $0x250] sm:$0xf] %vm5310_vm1, %v6040_v17  ;;  %v4180_v3 = vadd.f32 %v11116_v45, %v3917_v37  ;;  %v3656_v50 = vmul.f32 %v6463_v19, %v13172_v9  ;;  %6472 = vrsqrt.f32 %v3151_v23  ;;  %v2897_v24 = vmul.f32 0.03125, %v2453_v27  ;;  %v13173_v37 = vld [vmem:[#allocation295_spill] sm:$0xff] }
 0x3fc   : > { %v6043_v7 = vpack.c.bf16 %v4181_v32, %v4181_v32  ;;  %v3920_v54 = vmul.f32 %v11103_v8, %v3657_v55  ;;  %6474 = vrsqrt.f32 %v3150_v38  ;;  %v2896_v35 = vmul.f32 0.03125, %v2450_v1  ;;  %v13175_v1 = vld [vmem:[#allocation212_spill] sm:$0xff] }
 0x3fd   : > { %v6465_v31 = vpop.eup %6464  ;;  %v6042_v63 = vpack.c.bf16 %v4180_v3, %v4180_v3  ;;  %v3919_v41 = vmul.f32 %v11103_v8, %v3656_v50  ;;  %v3153_v14 = vadd.f32 1e-06, %v2897_v24  ;;  %2668 = vadd.xlane.f32.xlu1 %v10757_v46  ;;  %v11295_v43 = vsel %vm430_vm0, %v1961_v56, 0.0 }
 0x3fe   : > { %2665 = vadd.xlane.f32.xlu0 %v10764_v13  ;;  %v6467_v36 = vpop.eup %6466  ;;  %5462 = vst.msk [vmem:[%s10020_s26 + $0x25c] sm:$0xf] %vm5310_vm1, %v6043_v7  ;;  %v4183_v17 = vadd.f32 %v11116_v45, %v3920_v54  ;;  %v3659_v23 = vmul.f32 %v6465_v31, %v13173_v37  ;;  %v3152_v4 = vadd.f32 1e-06, %v2896_v35  ;;  %v2459_v59 = vpop.xlane.xlu1 %2458  ;;  %v11302_v42 = vsel %vm430_vm0, %v1960_v44, 0.0  ;;  %v13174_v13 = vld [vmem:[#allocation127_spill] sm:$0xff] }
 0x3ff   : > { %v2456_v19 = vpop.xlane.xlu0 %2455  ;;  %5461 = vst.msk [vmem:[%s10020_s26 + $0x258] sm:$0xf] %vm5310_vm1, %v6042_v63  ;;  %v4182_v46 = vadd.f32 %v11116_v45, %v3919_v41  ;;  %v3658_v56 = vmul.f32 %v6467_v36, %v13174_v13  ;;  %6476 = vrsqrt.f32 %v3153_v14  ;;  %v2899_v32 = vmul.f32 0.03125, %v2459_v59  ;;  %v13176_v7 = vld [vmem:[#allocation332_spill] sm:$0xff]  ;;  %v13177_v31 = vld [vmem:[#allocation131_spill] sm:$0xff] }
 0x400   : > { %v6045_v12 = vpack.c.bf16 %v4183_v17, %v4183_v17  ;;  %v3922_v55 = vmul.f32 %v11103_v8, %v3659_v23  ;;  %6478 = vrsqrt.f32 %v3152_v4  ;;  %v2898_v38 = vmul.f32 0.03125, %v2456_v19  ;;  %v13178_v37 = vld [vmem:[#allocation195_spill] sm:$0xff] }
 0x401   : > { %v6469_v27 = vpop.eup %6468  ;;  %v1453_v3 = vmul.f32 0.03125, %v13175_v1  ;;  %v6044_v44 = vpack.c.bf16 %v4182_v46, %v4182_v46  ;;  %v3921_v9 = vmul.f32 %v11103_v8, %v3658_v56  ;;  %v3155_v50 = vadd.f32 1e-06, %v2899_v32  ;;  %2674 = vadd.xlane.f32.xlu1 %v10823_v6 }
 0x402   : > { %2671 = vadd.xlane.f32.xlu0 %v10830_v61  ;;  %v6471_v24 = vpop.eup %6470  ;;  %v1452_v54 = vmul.f32 0.03125, %v13176_v7  ;;  %5464 = vst.msk [vmem:[%s10020_s26 + $0x264] sm:$0xf] %vm5310_vm1, %v6045_v12  ;;  %v4185_v35 = vadd.f32 %v11116_v45, %v3922_v55  ;;  %v3661_v63 = vmul.f32 %v6469_v27, %v13177_v31  ;;  %v3154_v41 = vadd.f32 1e-06, %v2898_v38  ;;  %v2465_v14 = vpop.xlane.xlu1 %2464  ;;  %v13179_v38 = vld [vmem:[#allocation143_spill] sm:$0xff] }
 0x403   : > { %v2462_v36 = vpop.xlane.xlu0 %2461  ;;  %5463 = vst.msk [vmem:[%s10020_s26 + $0x260] sm:$0xf] %vm5310_vm1, %v6044_v44  ;;  %v4184_v17 = vadd.f32 %v11116_v45, %v3921_v9  ;;  %v3660_v6 = vmul.f32 %v6471_v24, %v13178_v37  ;;  %6480 = vrsqrt.f32 %v3155_v50  ;;  %v2901_v61 = vmul.f32 0.03125, %v2465_v14  ;;  %v6926_v14 = vld [vmem:[%s6976_s18 + $0x7e8] sm:$0xff] }
 0x404   : > { %v6047_v23 = vpack.c.bf16 %v4185_v35, %v4185_v35  ;;  %v3924_v4 = vmul.f32 %v11103_v8, %v3661_v63  ;;  %6482 = vrsqrt.f32 %v3154_v41  ;;  %v2900_v59 = vmul.f32 0.03125, %v2462_v36 }
 0x405   : > { %v6473_v19 = vpop.eup %6472  ;;  %v6046_v46 = vpack.c.bf16 %v4184_v17, %v4184_v17  ;;  %v3923_v13 = vmul.f32 %v11103_v8, %v3660_v6  ;;  %v3157_v56 = vadd.f32 1e-06, %v2901_v61  ;;  %2680 = vadd.xlane.f32.xlu1 %v10889_v25  ;;  %v1963_v32 = vmul.f32 %v11274_v16, %v11274_v16 }
 0x406   : > { %2677 = vadd.xlane.f32.xlu0 %v10896_v22  ;;  %v6475_v12 = vpop.eup %6474  ;;  %5466 = vst.msk [vmem:[%s10020_s26 + $0x26c] sm:$0xf] %vm5310_vm1, %v6047_v23  ;;  %v4187_v55 = vadd.f32 %v11116_v45, %v3924_v4  ;;  %v3663_v27 = vmul.f32 %v6473_v19, %v13179_v38  ;;  %v3156_v1 = vadd.f32 1e-06, %v2900_v59  ;;  %v2471_v44 = vpop.xlane.xlu1 %2470  ;;  %v1962_v50 = vmul.f32 %v11280_v40, %v11280_v40  ;;  %v13180_v22 = vld [vmem:[#allocation298_spill] sm:$0xff]  ;;  %v13181_v19 = vld [vmem:[#allocation144_spill] sm:$0xff] }
 0x407   : > { %v2468_v9 = vpop.xlane.xlu0 %2467  ;;  %5465 = vst.msk [vmem:[%s10020_s26 + $0x268] sm:$0xf] %vm5310_vm1, %v6046_v46  ;;  %v4186_v25 = vadd.f32 %v11116_v45, %v3923_v13  ;;  %v3662_v24 = vmul.f32 %v6475_v12, %v13180_v22  ;;  %6484 = vrsqrt.f32 %v3157_v56  ;;  %v2903_v7 = vmul.f32 0.03125, %v2471_v44  ;;  %v6927_v23 = vld [vmem:[%s6976_s18 + $0x7e0] sm:$0xff] }
 0x408   : > { %v6049_v35 = vpack.c.bf16 %v4187_v55, %v4187_v55  ;;  %v3926_v31 = vmul.f32 %v11103_v8, %v3663_v27  ;;  %6486 = vrsqrt.f32 %v3156_v1  ;;  %v2902_v63 = vmul.f32 0.03125, %v2468_v9 }
 0x409   : > { %v6477_v41 = vpop.eup %6476  ;;  %v11340_v36 = vsub.f32 %v6926_v14, %v1453_v3  ;;  %v6048_v17 = vpack.c.bf16 %v4186_v25, %v4186_v25  ;;  %v3925_v37 = vmul.f32 %v11103_v8, %v3662_v24  ;;  %v3159_v6 = vadd.f32 1e-06, %v2903_v7  ;;  %2686 = vadd.xlane.f32.xlu1 %v10955_v2  ;;  %v13182_v2 = vld [vmem:[#allocation149_spill] sm:$0xff] }
 0x40a   : > { %2683 = vadd.xlane.f32.xlu0 %v10962_v30  ;;  %v6479_v61 = vpop.eup %6478  ;;  %v11346_v4 = vsub.f32 %v6927_v23, %v1452_v54  ;;  %5468 = vst.msk [vmem:[%s10020_s26 + $0x274] sm:$0xf] %vm5310_vm1, %v6049_v35  ;;  %v4189_v59 = vadd.f32 %v11116_v45, %v3926_v31  ;;  %v3665_v46 = vmul.f32 %v6477_v41, %v13181_v19  ;;  %v3158_v3 = vadd.f32 1e-06, %v2902_v63  ;;  %v2477_v13 = vpop.xlane.xlu1 %2476  ;;  %v13183_v35 = vld [vmem:[#allocation150_spill] sm:$0xff]  ;;  %v13185_v19 = vld [vmem:[#allocation336_spill] sm:$0xff] }
 0x40b   : > { %v2474_v56 = vpop.xlane.xlu0 %2473  ;;  %5467 = vst.msk [vmem:[%s10020_s26 + $0x270] sm:$0xf] %vm5310_vm1, %v6048_v17  ;;  %v4188_v12 = vadd.f32 %v11116_v45, %v3925_v37  ;;  %v3664_v30 = vmul.f32 %v6479_v61, %v13182_v2  ;;  %6488 = vrsqrt.f32 %v3159_v6  ;;  %v2905_v55 = vmul.f32 0.03125, %v2477_v13 }
 0x40c   : > { %v6051_v54 = vpack.c.bf16 %v4189_v59, %v4189_v59  ;;  %v3928_v38 = vmul.f32 %v11103_v8, %v3665_v46  ;;  %6490 = vrsqrt.f32 %v3158_v3  ;;  %v2904_v27 = vmul.f32 0.03125, %v2474_v56 }
 0x40d   : > { %v6481_v1 = vpop.eup %6480  ;;  %v6050_v44 = vpack.c.bf16 %v4188_v12, %v4188_v12  ;;  %v3927_v9 = vmul.f32 %v11103_v8, %v3664_v30  ;;  %v3161_v25 = vadd.f32 1e-06, %v2905_v55  ;;  %2692 = vadd.xlane.f32.xlu1 %v11021_v51  ;;  %v11361_v22 = vsel %vm430_vm0, %v1963_v32, 0.0  ;;  %v13186_v12 = vld [vmem:[#allocation337_spill] sm:$0xff]  ;;  %v13187_v55 = vld [vmem:[#allocation196_spill] sm:$0xff] }
 0x40e   : > { %2689 = vadd.xlane.f32.xlu0 %v11028_v18  ;;  %v6483_v24 = vpop.eup %6482  ;;  %5470 = vst.msk [vmem:[%s10020_s26 + $0x27c] sm:$0xf] %vm5310_vm1, %v6051_v54  ;;  %v4191_v7 = vadd.f32 %v11116_v45, %v3928_v38  ;;  %v3667_v31 = vmul.f32 %v6481_v1, %v13183_v35  ;;  %v3160_v63 = vadd.f32 1e-06, %v2904_v27  ;;  %v2483_v41 = vpop.xlane.xlu1 %2482  ;;  %v11368_v17 = vsel %vm430_vm0, %v1962_v50, 0.0  ;;  %v13184_v18 = vld [vmem:[#allocation299_spill] sm:$0xff] }
 0x40f   : > { %v2480_v14 = vpop.xlane.xlu0 %2479  ;;  %5469 = vst.msk [vmem:[%s10020_s26 + $0x278] sm:$0xf] %vm5310_vm1, %v6050_v44  ;;  %v4190_v51 = vadd.f32 %v11116_v45, %v3927_v9  ;;  %v3666_v32 = vmul.f32 %v6483_v24, %v13184_v18  ;;  %6492 = vrsqrt.f32 %v3161_v25  ;;  %v2907_v37 = vmul.f32 0.03125, %v2483_v41  ;;  %v13188_v9 = vld [vmem:[#allocation301_spill] sm:$0xff] }
 0x410   : > { %v6053_v6 = vpack.c.bf16 %v4191_v7, %v4191_v7  ;;  %v3930_v61 = vmul.f32 %v11103_v8, %v3667_v31  ;;  %6494 = vrsqrt.f32 %v3160_v63  ;;  %v2906_v23 = vmul.f32 0.03125, %v2480_v14 }
 0x411   : > { %v6485_v59 = vpop.eup %6484  ;;  %v1455_v46 = vmul.f32 0.03125, %v13185_v19  ;;  %v6052_v50 = vpack.c.bf16 %v4190_v51, %v4190_v51  ;;  %v3929_v3 = vmul.f32 %v11103_v8, %v3666_v32  ;;  %v3163_v13 = vadd.f32 1e-06, %v2907_v37  ;;  %2698 = vadd.xlane.f32.xlu1 %v11087_v5  ;;  %v13189_v32 = vld [vmem:[#allocation302_spill] sm:$0xff] }
 0x412   : > { %2695 = vadd.xlane.f32.xlu0 %v11094_v10  ;;  %v6487_v56 = vpop.eup %6486  ;;  %v1454_v2 = vmul.f32 0.03125, %v13186_v12  ;;  %5472 = vst.msk [vmem:[%s10020_s26 + $0x284] sm:$0xf] %vm5310_vm1, %v6053_v6  ;;  %v4193_v30 = vadd.f32 %v11116_v45, %v3930_v61  ;;  %v3669_v54 = vmul.f32 %v6485_v59, %v13187_v55  ;;  %v3162_v38 = vadd.f32 1e-06, %v2906_v23  ;;  %v2489_v27 = vpop.xlane.xlu1 %2488 }
 0x413   : > { %v2486_v1 = vpop.xlane.xlu0 %2485  ;;  %5471 = vst.msk [vmem:[%s10020_s26 + $0x280] sm:$0xf] %vm5310_vm1, %v6052_v50  ;;  %v4192_v44 = vadd.f32 %v11116_v45, %v3929_v3  ;;  %v3668_v5 = vmul.f32 %v6487_v56, %v13188_v9  ;;  %6496 = vrsqrt.f32 %v3163_v13  ;;  %v2909_v10 = vmul.f32 0.03125, %v2489_v27 }
 0x414   : > { %v6055_v25 = vpack.c.bf16 %v4193_v30, %v4193_v30  ;;  %v3932_v24 = vmul.f32 %v11103_v8, %v3669_v54  ;;  %6498 = vrsqrt.f32 %v3162_v38  ;;  %v2908_v7 = vmul.f32 0.03125, %v2486_v1  ;;  %v6928_v30 = vld [vmem:[%s6976_s18 + $0x7f8] sm:$0xff] }
 0x415   : > { %v6489_v35 = vpop.eup %6488  ;;  %v6054_v31 = vpack.c.bf16 %v4192_v44, %v4192_v44  ;;  %v3931_v63 = vmul.f32 %v11103_v8, %v3668_v5  ;;  %v3165_v41 = vadd.f32 1e-06, %v2909_v10  ;;  %2704 = vadd.xlane.f32.xlu1 %v11163_v62  ;;  %v1965_v14 = vmul.f32 %v11340_v36, %v11340_v36  ;;  %v6929_v44 = vld [vmem:[%s6976_s18 + $0x7f0] sm:$0xff]  ;;  %v13191_v10 = vld [vmem:[#allocation153_spill] sm:$0xff] }
 0x416   : > { %2701 = vadd.xlane.f32.xlu0 %v11170_v26  ;;  %v6491_v51 = vpop.eup %6490  ;;  %5474 = vst.msk [vmem:[%s10020_s26 + $0x28c] sm:$0xf] %vm5310_vm1, %v6055_v25  ;;  %v4195_v18 = vadd.f32 %v11116_v45, %v3932_v24  ;;  %v3671_v37 = vmul.f32 %v6489_v35, %v13189_v32  ;;  %v3164_v6 = vadd.f32 1e-06, %v2908_v7  ;;  %v2495_v61 = vpop.xlane.xlu1 %2494  ;;  %v1964_v59 = vmul.f32 %v11346_v4, %v11346_v4  ;;  %v13190_v26 = vld [vmem:[#allocation303_spill] sm:$0xff] }
 0x417   : > { %v2492_v23 = vpop.xlane.xlu0 %2491  ;;  %5473 = vst.msk [vmem:[%s10020_s26 + $0x288] sm:$0xf] %vm5310_vm1, %v6054_v31  ;;  %v4194_v62 = vadd.f32 %v11116_v45, %v3931_v63  ;;  %v3670_v19 = vmul.f32 %v6491_v51, %v13190_v26  ;;  %6500 = vrsqrt.f32 %v3165_v41  ;;  %v2911_v50 = vmul.f32 0.03125, %v2495_v61 }
 0x418   : > { %v6057_v3 = vpack.c.bf16 %v4195_v18, %v4195_v18  ;;  %v3934_v13 = vmul.f32 %v11103_v8, %v3671_v37  ;;  %6502 = vrsqrt.f32 %v3164_v6  ;;  %v2910_v56 = vmul.f32 0.03125, %v2492_v23 }
 0x419   : > { %v6493_v12 = vpop.eup %6492  ;;  %v11406_v55 = vsub.f32 %v6928_v30, %v1455_v46  ;;  %v6056_v54 = vpack.c.bf16 %v4194_v62, %v4194_v62  ;;  %v3933_v38 = vmul.f32 %v11103_v8, %v3670_v19  ;;  %v3167_v27 = vadd.f32 1e-06, %v2911_v50  ;;  %2710 = vadd.xlane.f32.xlu1 %v11229_v34  ;;  %v13192_v34 = vld [vmem:[#allocation308_spill] sm:$0xff]  ;;  %v13193_v62 = vld [vmem:[#allocation310_spill] sm:$0xff] }
 0x41a   : > { %2707 = vadd.xlane.f32.xlu0 %v11236_v58  ;;  %v6495_v1 = vpop.eup %6494  ;;  %v11412_v9 = vsub.f32 %v6929_v44, %v1454_v2  ;;  %5476 = vst.msk [vmem:[%s10020_s26 + $0x294] sm:$0xf] %vm5310_vm1, %v6057_v3  ;;  %v4197_v5 = vadd.f32 %v11116_v45, %v3934_v13  ;;  %v3673_v25 = vmul.f32 %v6493_v12, %v13191_v10  ;;  %v3166_v46 = vadd.f32 1e-06, %v2910_v56  ;;  %v2501_v24 = vpop.xlane.xlu1 %2500  ;;  %v13194_v56 = vld [vmem:[#allocation171_spill] sm:$0xff] }
 0x41b   : > { %v2498_v7 = vpop.xlane.xlu0 %2497  ;;  %5475 = vst.msk [vmem:[%s10020_s26 + $0x290] sm:$0xf] %vm5310_vm1, %v6056_v54  ;;  %v4196_v35 = vadd.f32 %v11116_v45, %v3933_v38  ;;  %v3672_v58 = vmul.f32 %v6495_v1, %v13192_v34  ;;  %6504 = vrsqrt.f32 %v3167_v27  ;;  %v2913_v31 = vmul.f32 0.03125, %v2501_v24 }
 0x41c   : > { %v6059_v2 = vpack.c.bf16 %v4197_v5, %v4197_v5  ;;  %v3936_v63 = vmul.f32 %v11103_v8, %v3673_v25  ;;  %6506 = vrsqrt.f32 %v3166_v46  ;;  %v2912_v41 = vmul.f32 0.03125, %v2498_v7  ;;  %v13195_v25 = vld [vmem:[#allocation178_spill] sm:$0xff] }
 0x41d   : > { %v6497_v51 = vpop.eup %6496  ;;  %v6058_v18 = vpack.c.bf16 %v4196_v35, %v4196_v35  ;;  %v3935_v32 = vmul.f32 %v11103_v8, %v3672_v58  ;;  %v3169_v37 = vadd.f32 1e-06, %v2913_v31  ;;  %2716 = vadd.xlane.f32.xlu1 %v11295_v43  ;;  %v2727_v6 = vsel %vm430_vm0, %v1965_v14, 0.0 }
 0x41e   : > { %2713 = vadd.xlane.f32.xlu0 %v11302_v42  ;;  %v6499_v61 = vpop.eup %6498  ;;  %5478 = vst.msk [vmem:[%s10020_s26 + $0x29c] sm:$0xf] %vm5310_vm1, %v6059_v2  ;;  %v4199_v23 = vadd.f32 %v11116_v45, %v3936_v63  ;;  %v3675_v26 = vmul.f32 %v6497_v51, %v13193_v62  ;;  %v3168_v19 = vadd.f32 1e-06, %v2912_v41  ;;  %v2507_v50 = vpop.xlane.xlu1 %2506  ;;  %v2724_v13 = vsel %vm430_vm0, %v1964_v59, 0.0 }
 0x41f   : > { %v2504_v3 = vpop.xlane.xlu0 %2503  ;;  %5477 = vst.msk [vmem:[%s10020_s26 + $0x298] sm:$0xf] %vm5310_vm1, %v6058_v18  ;;  %v4198_v43 = vadd.f32 %v11116_v45, %v3935_v32  ;;  %v3674_v42 = vmul.f32 %v6499_v61, %v13194_v56  ;;  %6508 = vrsqrt.f32 %v3169_v37  ;;  %v2915_v14 = vmul.f32 0.03125, %v2507_v50 }
 0x420   : > { %v6061_v12 = vpack.c.bf16 %v4199_v23, %v4199_v23  ;;  %v3938_v30 = vmul.f32 %v11103_v8, %v3675_v26  ;;  %6510 = vrsqrt.f32 %v3168_v19  ;;  %v2914_v54 = vmul.f32 0.03125, %v2504_v3  ;;  %v13197_v26 = vld [vmem:[#allocation313_spill] sm:$0xff] }
 0x421   : > { %v6501_v38 = vpop.eup %6500  ;;  %v6060_v27 = vpack.c.bf16 %v4198_v43, %v4198_v43  ;;  %v3937_v1 = vmul.f32 %v11103_v8, %v3674_v42  ;;  %v3171_v59 = vadd.f32 1e-06, %v2915_v14  ;;  %2722 = vadd.xlane.f32.xlu1 %v11361_v22  ;;  %v1967_v44 = vmul.f32 %v11406_v55, %v11406_v55 }
 0x422   : > { %2719 = vadd.xlane.f32.xlu0 %v11368_v17  ;;  %v6503_v5 = vpop.eup %6502  ;;  %5480 = vst.msk [vmem:[%s10020_s26 + $0x2a4] sm:$0xf] %vm5310_vm1, %v6061_v12  ;;  %v4201_v10 = vadd.f32 %v11116_v45, %v3938_v30  ;;  %v3677_v46 = vmul.f32 %v6501_v38, %v13195_v25  ;;  %v3170_v24 = vadd.f32 1e-06, %v2914_v54  ;;  %v2513_v7 = vpop.xlane.xlu1 %2512  ;;  %v1966_v34 = vmul.f32 %v11412_v9, %v11412_v9  ;;  %v13196_v17 = vld [vmem:[#allocation9_spill] sm:$0xff] }
 0x423   : > { %v2510_v35 = vpop.xlane.xlu0 %2509  ;;  %5479 = vst.msk [vmem:[%s10020_s26 + $0x2a0] sm:$0xf] %vm5310_vm1, %v6060_v27  ;;  %v4200_v22 = vadd.f32 %v11116_v45, %v3937_v1  ;;  %v3676_v58 = vmul.f32 %v6503_v5, %v13196_v17  ;;  %6512 = vrsqrt.f32 %v3171_v59  ;;  %v2917_v31 = vmul.f32 0.03125, %v2513_v7  ;;  %v11467_v12 = vld [vmem:[%s11900_s1] ss:$0 sm:$0xff] }
 0x424   : > { %v6063_v2 = vpack.c.bf16 %v4201_v10, %v4201_v10  ;;  %v3940_v63 = vmul.f32 %v11103_v8, %v3677_v46  ;;  %6514 = vrsqrt.f32 %v3170_v24  ;;  %v2916_v41 = vmul.f32 0.03125, %v2510_v35  ;;  %v13199_v10 = vld [vmem:[#allocation187_spill] sm:$0xff] }
 0x425   : > { %v6505_v51 = vpop.eup %6504  ;;  %v6062_v18 = vpack.c.bf16 %v4200_v22, %v4200_v22  ;;  %v3939_v32 = vmul.f32 %v11103_v8, %v3676_v58  ;;  %v3173_v37 = vadd.f32 1e-06, %v2917_v31  ;;  %2728 = vadd.xlane.f32.xlu1 %v2727_v6  ;;  %v2733_v61 = vsel %vm430_vm0, %v1967_v44, 0.0  ;;  %v13198_v6 = vld [vmem:[#allocation314_spill] sm:$0xff] }
 0x426   : > { %2725 = vadd.xlane.f32.xlu0 %v2724_v13  ;;  %v6507_v23 = vpop.eup %6506  ;;  %5482 = vst.msk [vmem:[%s10020_s26 + $0x2ac] sm:$0xf] %vm5310_vm1, %v6063_v2  ;;  %v4203_v62 = vadd.f32 %v11116_v45, %v3940_v63  ;;  %v3679_v19 = vmul.f32 %v6505_v51, %v13197_v26  ;;  %v3172_v50 = vadd.f32 1e-06, %v2916_v41  ;;  %v2519_v3 = vpop.xlane.xlu1 %2518  ;;  %v2730_v56 = vsel %vm430_vm0, %v1966_v34, 0.0  ;;  %v13200_v34 = vld [vmem:[#allocation11_spill] sm:$0xff] }
 0x427   : > { %v2516_v43 = vpop.xlane.xlu0 %2515  ;;  %5481 = vst.msk [vmem:[%s10020_s26 + $0x2a8] sm:$0xf] %vm5310_vm1, %v6062_v18  ;;  %v4202_v8 = vadd.f32 %v11116_v45, %v3939_v32  ;;  %v3678_v13 = vmul.f32 %v6507_v23, %v13198_v6  ;;  %6516 = vrsqrt.f32 %v3173_v37  ;;  %v2919_v42 = vmul.f32 0.03125, %v2519_v3  ;;  %v11476_v44 = vld [vmem:[%s11901_s2] ss:$0 sm:$0xff]  ;;  %v13202_v3 = vld [vmem:[#allocation315_spill] sm:$0xff] }
 0x428   : > { %v6065_v14 = vpack.c.bf16 %v4203_v62, %v4203_v62  ;;  %v3942_v30 = vmul.f32 %v11467_v12, %v3679_v19  ;;  %6518 = vrsqrt.f32 %v3172_v50  ;;  %v2918_v54 = vmul.f32 0.03125, %v2516_v43 }
 0x429   : > { %v6509_v38 = vpop.eup %6508  ;;  %v6064_v27 = vpack.c.bf16 %v4202_v8, %v4202_v8  ;;  %v3941_v45 = vmul.f32 %v11467_v12, %v3678_v13  ;;  %v3175_v1 = vadd.f32 1e-06, %v2919_v42  ;;  %2734 = vadd.xlane.f32.xlu1 %v2733_v61  ;;  %v13201_v61 = vld [vmem:[#allocation191_spill] sm:$0xff] }
 0x42a   : > { %2731 = vadd.xlane.f32.xlu0 %v2730_v56  ;;  %v6511_v59 = vpop.eup %6510  ;;  %5484 = vst.msk [vmem:[%s10020_s26 + $0x2b4] sm:$0xf] %vm5310_vm1, %v6065_v14  ;;  %v4205_v5 = vadd.f32 %v11476_v44, %v3942_v30  ;;  %v3681_v25 = vmul.f32 %v6509_v38, %v13199_v10  ;;  %v3174_v46 = vadd.f32 1e-06, %v2918_v54  ;;  %v2525_v24 = vpop.xlane.xlu1 %2524 }
 0x42b   : > { %v2522_v7 = vpop.xlane.xlu0 %2521  ;;  %5483 = vst.msk [vmem:[%s10020_s26 + $0x2b0] sm:$0xf] %vm5310_vm1, %v6064_v27  ;;  %v4204_v35 = vadd.f32 %v11476_v44, %v3941_v45  ;;  %v3680_v22 = vmul.f32 %v6511_v59, %v13200_v34  ;;  %6520 = vrsqrt.f32 %v3175_v1  ;;  %v2921_v17 = vmul.f32 0.03125, %v2525_v24  ;;  %v13203_v45 = vld [vmem:[#allocation316_spill] sm:$0xff] }
 0x42c   : > { %v6067_v58 = vpack.c.bf16 %v4205_v5, %v4205_v5  ;;  %v3944_v31 = vmul.f32 %v11467_v12, %v3681_v25  ;;  %6522 = vrsqrt.f32 %v3174_v46  ;;  %v2920_v2 = vmul.f32 0.03125, %v2522_v7  ;;  %v13204_v46 = vld [vmem:[#allocation318_spill] sm:$0xff] }
 0x42d   : > { %v6513_v63 = vpop.eup %6512  ;;  %v6066_v41 = vpack.c.bf16 %v4204_v35, %v4204_v35  ;;  %v3943_v51 = vmul.f32 %v11467_v12, %v3680_v22  ;;  %v3177_v18 = vadd.f32 1e-06, %v2921_v17 }
 0x42e   : > { %v6515_v32 = vpop.eup %6514  ;;  %5486 = vst.msk [vmem:[%s10020_s26 + $0x2bc] sm:$0xf] %vm5310_vm1, %v6067_v58  ;;  %v4207_v37 = vadd.f32 %v11476_v44, %v3944_v31  ;;  %v3683_v23 = vmul.f32 %v6513_v63, %v13201_v61  ;;  %v3176_v62 = vadd.f32 1e-06, %v2920_v2  ;;  %v2531_v26 = vpop.xlane.xlu1 %2530 }
 0x42f   : > { %v2528_v19 = vpop.xlane.xlu0 %2527  ;;  %5485 = vst.msk [vmem:[%s10020_s26 + $0x2b8] sm:$0xf] %vm5310_vm1, %v6066_v41  ;;  %v4206_v50 = vadd.f32 %v11476_v44, %v3943_v51  ;;  %v3682_v43 = vmul.f32 %v6515_v32, %v13202_v3  ;;  %6524 = vrsqrt.f32 %v3177_v18  ;;  %v2923_v56 = vmul.f32 0.03125, %v2531_v26  ;;  %v13205_v51 = vld [vmem:[#allocation319_spill] sm:$0xff] }
 0x430   : > { %v6069_v8 = vpack.c.bf16 %v4207_v37, %v4207_v37  ;;  %v3946_v6 = vmul.f32 %v11467_v12, %v3683_v23  ;;  %6526 = vrsqrt.f32 %v3176_v62  ;;  %v2922_v13 = vmul.f32 0.03125, %v2528_v19  ;;  %v13206_v62 = vld [vmem:[#allocation320_spill] sm:$0xff] }
 0x431   : > { %v6517_v42 = vpop.eup %6516  ;;  %v6068_v14 = vpack.c.bf16 %v4206_v50, %v4206_v50  ;;  %v3945_v30 = vmul.f32 %v11467_v12, %v3682_v43  ;;  %v3179_v54 = vadd.f32 1e-06, %v2923_v56 }
 0x432   : > { %v6519_v38 = vpop.eup %6518  ;;  %5488 = vst.msk [vmem:[%s10020_s26 + $0x2c4] sm:$0xf] %vm5310_vm1, %v6069_v8  ;;  %v4209_v27 = vadd.f32 %v11476_v44, %v3946_v6  ;;  %v3685_v1 = vmul.f32 %v6517_v42, %v13203_v45  ;;  %v3178_v59 = vadd.f32 1e-06, %v2922_v13  ;;  %v2537_v5 = vpop.xlane.xlu1 %2536 }
 0x433   : > { %v2534_v10 = vpop.xlane.xlu0 %2533  ;;  %5487 = vst.msk [vmem:[%s10020_s26 + $0x2c0] sm:$0xf] %vm5310_vm1, %v6068_v14  ;;  %v4208_v25 = vadd.f32 %v11476_v44, %v3945_v30  ;;  %v3684_v24 = vmul.f32 %v6519_v38, %v13204_v46  ;;  %6528 = vrsqrt.f32 %v3179_v54  ;;  %v2925_v7 = vmul.f32 0.03125, %v2537_v5  ;;  %v13207_v30 = vld [vmem:[#allocation199_spill] sm:$0xff] }
 0x434   : > { %v6071_v35 = vpack.c.bf16 %v4209_v27, %v4209_v27  ;;  %v3948_v34 = vmul.f32 %v11467_v12, %v3685_v1  ;;  %6530 = vrsqrt.f32 %v3178_v59  ;;  %v2924_v22 = vmul.f32 0.03125, %v2534_v10  ;;  %v13208_v59 = vld [vmem:[#allocation20_spill] sm:$0xff] }
 0x435   : > { %v6521_v17 = vpop.eup %6520  ;;  %v6070_v58 = vpack.c.bf16 %v4208_v25, %v4208_v25  ;;  %v3947_v31 = vmul.f32 %v11467_v12, %v3684_v24  ;;  %v3181_v2 = vadd.f32 1e-06, %v2925_v7 }
 0x436   : > { %v6523_v63 = vpop.eup %6522  ;;  %5490 = vst.msk [vmem:[%s10020_s26 + $0x2cc] sm:$0xf] %vm5310_vm1, %v6071_v35  ;;  %v4211_v41 = vadd.f32 %v11476_v44, %v3948_v34  ;;  %v3687_v18 = vmul.f32 %v6521_v17, %v13205_v51  ;;  %v3180_v32 = vadd.f32 1e-06, %v2924_v22  ;;  %v2543_v37 = vpop.xlane.xlu1 %2542 }
 0x437   : > { %v2540_v61 = vpop.xlane.xlu0 %2539  ;;  %5489 = vst.msk [vmem:[%s10020_s26 + $0x2c8] sm:$0xf] %vm5310_vm1, %v6070_v58  ;;  %v4210_v23 = vadd.f32 %v11476_v44, %v3947_v31  ;;  %v3686_v26 = vmul.f32 %v6523_v63, %v13206_v62  ;;  %6532 = vrsqrt.f32 %v3181_v2  ;;  %v2927_v19 = vmul.f32 0.03125, %v2543_v37  ;;  %v13209_v31 = vld [vmem:[#allocation322_spill] sm:$0xff] }
 0x438   : > { %v6073_v50 = vpack.c.bf16 %v4211_v41, %v4211_v41  ;;  %v3950_v3 = vmul.f32 %v11467_v12, %v3687_v18  ;;  %6534 = vrsqrt.f32 %v3180_v32  ;;  %v2926_v43 = vmul.f32 0.03125, %v2540_v61  ;;  %v13210_v32 = vld [vmem:[#allocation27_spill] sm:$0xff] }
 0x439   : > { %v6525_v56 = vpop.eup %6524  ;;  %v6072_v8 = vpack.c.bf16 %v4210_v23, %v4210_v23  ;;  %v3949_v6 = vmul.f32 %v11467_v12, %v3686_v26  ;;  %v3183_v13 = vadd.f32 1e-06, %v2927_v19 }
 0x43a   : > { %v6527_v42 = vpop.eup %6526  ;;  %5492 = vst.msk [vmem:[%s10020_s26 + $0x2d4] sm:$0xf] %vm5310_vm1, %v6073_v50  ;;  %v4213_v14 = vadd.f32 %v11476_v44, %v3950_v3  ;;  %v3689_v54 = vmul.f32 %v6525_v56, %v13207_v30  ;;  %v3182_v38 = vadd.f32 1e-06, %v2926_v43  ;;  %v2549_v27 = vpop.xlane.xlu1 %2548 }
 0x43b   : > { %v2546_v45 = vpop.xlane.xlu0 %2545  ;;  %5491 = vst.msk [vmem:[%s10020_s26 + $0x2d0] sm:$0xf] %vm5310_vm1, %v6072_v8  ;;  %v4212_v1 = vadd.f32 %v11476_v44, %v3949_v6  ;;  %v3688_v5 = vmul.f32 %v6527_v42, %v13208_v59  ;;  %6536 = vrsqrt.f32 %v3183_v13  ;;  %v2929_v10 = vmul.f32 0.03125, %v2549_v27  ;;  %v13211_v6 = vld [vmem:[#allocation214_spill] sm:$0xff] }
 0x43c   : > { %v6075_v25 = vpack.c.bf16 %v4213_v14, %v4213_v14  ;;  %v3952_v46 = vmul.f32 %v11467_v12, %v3689_v54  ;;  %6538 = vrsqrt.f32 %v3182_v38  ;;  %v2928_v24 = vmul.f32 0.03125, %v2546_v45  ;;  %v13212_v38 = vld [vmem:[#allocation210_spill] sm:$0xff] }
 0x43d   : > { %v6529_v7 = vpop.eup %6528  ;;  %v6074_v35 = vpack.c.bf16 %v4212_v1, %v4212_v1  ;;  %v3951_v34 = vmul.f32 %v11467_v12, %v3688_v5  ;;  %v3185_v22 = vadd.f32 1e-06, %v2929_v10 }
 0x43e   : > { %v6531_v17 = vpop.eup %6530  ;;  %5494 = vst.msk [vmem:[%s10020_s26 + $0x2dc] sm:$0xf] %vm5310_vm1, %v6075_v25  ;;  %v4215_v58 = vadd.f32 %v11476_v44, %v3952_v46  ;;  %v3691_v2 = vmul.f32 %v6529_v7, %v13209_v31  ;;  %v3184_v63 = vadd.f32 1e-06, %v2928_v24  ;;  %v2555_v41 = vpop.xlane.xlu1 %2554 }
 0x43f   : > { %v2552_v51 = vpop.xlane.xlu0 %2551  ;;  %5493 = vst.msk [vmem:[%s10020_s26 + $0x2d8] sm:$0xf] %vm5310_vm1, %v6074_v35  ;;  %v4214_v18 = vadd.f32 %v11476_v44, %v3951_v34  ;;  %v3690_v37 = vmul.f32 %v6531_v17, %v13210_v32  ;;  %6540 = vrsqrt.f32 %v3185_v22  ;;  %v2931_v61 = vmul.f32 0.03125, %v2555_v41  ;;  %v13213_v34 = vld [vmem:[#allocation326_spill] sm:$0xff] }
 0x440   : > { %v6077_v23 = vpack.c.bf16 %v4215_v58, %v4215_v58  ;;  %v3954_v62 = vmul.f32 %v11467_v12, %v3691_v2  ;;  %6542 = vrsqrt.f32 %v3184_v63  ;;  %v2930_v26 = vmul.f32 0.03125, %v2552_v51  ;;  %v13214_v63 = vld [vmem:[#allocation327_spill] sm:$0xff] }
 0x441   : > { %v6533_v19 = vpop.eup %6532  ;;  %v6076_v50 = vpack.c.bf16 %v4214_v18, %v4214_v18  ;;  %v3953_v3 = vmul.f32 %v11467_v12, %v3690_v37  ;;  %v3187_v43 = vadd.f32 1e-06, %v2931_v61 }
 0x442   : > { %v6535_v56 = vpop.eup %6534  ;;  %5496 = vst.msk [vmem:[%s10020_s26 + $0x2e4] sm:$0xf] %vm5310_vm1, %v6077_v23  ;;  %v4217_v8 = vadd.f32 %v11476_v44, %v3954_v62  ;;  %v3693_v13 = vmul.f32 %v6533_v19, %v13211_v6  ;;  %v3186_v42 = vadd.f32 1e-06, %v2930_v26  ;;  %v2561_v14 = vpop.xlane.xlu1 %2560 }
 0x443   : > { %v2558_v30 = vpop.xlane.xlu0 %2557  ;;  %5495 = vst.msk [vmem:[%s10020_s26 + $0x2e0] sm:$0xf] %vm5310_vm1, %v6076_v50  ;;  %v4216_v54 = vadd.f32 %v11476_v44, %v3953_v3  ;;  %v3692_v27 = vmul.f32 %v6535_v56, %v13212_v38  ;;  %6544 = vrsqrt.f32 %v3187_v43  ;;  %v2933_v45 = vmul.f32 0.03125, %v2561_v14  ;;  %v13215_v3 = vld [vmem:[#allocation328_spill] sm:$0xff] }
 0x444   : > { %v6079_v1 = vpack.c.bf16 %v4217_v8, %v4217_v8  ;;  %v3956_v59 = vmul.f32 %v11467_v12, %v3693_v13  ;;  %6546 = vrsqrt.f32 %v3186_v42  ;;  %v2932_v5 = vmul.f32 0.03125, %v2558_v30  ;;  %v13216_v42 = vld [vmem:[#allocation329_spill] sm:$0xff] }
 0x445   : > { %v6537_v10 = vpop.eup %6536  ;;  %v6078_v25 = vpack.c.bf16 %v4216_v54, %v4216_v54  ;;  %v3955_v46 = vmul.f32 %v11467_v12, %v3692_v27  ;;  %v3189_v24 = vadd.f32 1e-06, %v2933_v45 }
 0x446   : > { %v6539_v7 = vpop.eup %6538  ;;  %5498 = vst.msk [vmem:[%s10020_s26 + $0x2ec] sm:$0xf] %vm5310_vm1, %v6079_v1  ;;  %v4219_v35 = vadd.f32 %v11476_v44, %v3956_v59  ;;  %v3695_v22 = vmul.f32 %v6537_v10, %v13213_v34  ;;  %v3188_v17 = vadd.f32 1e-06, %v2932_v5  ;;  %v2567_v58 = vpop.xlane.xlu1 %2566 }
 0x447   : > { %v2564_v31 = vpop.xlane.xlu0 %2563  ;;  %5497 = vst.msk [vmem:[%s10020_s26 + $0x2e8] sm:$0xf] %vm5310_vm1, %v6078_v25  ;;  %v4218_v2 = vadd.f32 %v11476_v44, %v3955_v46  ;;  %v3694_v41 = vmul.f32 %v6539_v7, %v13214_v63  ;;  %6548 = vrsqrt.f32 %v3189_v24  ;;  %v2935_v51 = vmul.f32 0.03125, %v2567_v58  ;;  %v13217_v46 = vld [vmem:[#allocation330_spill] sm:$0xff] }
 0x448   : > { %v6081_v18 = vpack.c.bf16 %v4219_v35, %v4219_v35  ;;  %v3958_v32 = vmul.f32 %v11467_v12, %v3695_v22  ;;  %6550 = vrsqrt.f32 %v3188_v17  ;;  %v2934_v37 = vmul.f32 0.03125, %v2564_v31  ;;  %v13218_v17 = vld [vmem:[#allocation331_spill] sm:$0xff] }
 0x449   : > { %v6541_v61 = vpop.eup %6540  ;;  %v6080_v23 = vpack.c.bf16 %v4218_v2, %v4218_v2  ;;  %v3957_v62 = vmul.f32 %v11467_v12, %v3694_v41  ;;  %v3191_v26 = vadd.f32 1e-06, %v2935_v51 }
 0x44a   : > { %v6543_v19 = vpop.eup %6542  ;;  %5500 = vst.msk [vmem:[%s10020_s26 + $0x2f4] sm:$0xf] %vm5310_vm1, %v6081_v18  ;;  %v4221_v50 = vadd.f32 %v11476_v44, %v3958_v32  ;;  %v3697_v43 = vmul.f32 %v6541_v61, %v13215_v3  ;;  %v3190_v56 = vadd.f32 1e-06, %v2934_v37  ;;  %v2573_v8 = vpop.xlane.xlu1 %2572 }
 0x44b   : > { %v2570_v6 = vpop.xlane.xlu0 %2569  ;;  %5499 = vst.msk [vmem:[%s10020_s26 + $0x2f0] sm:$0xf] %vm5310_vm1, %v6080_v23  ;;  %v4220_v13 = vadd.f32 %v11476_v44, %v3957_v62  ;;  %v3696_v14 = vmul.f32 %v6543_v19, %v13216_v42  ;;  %6552 = vrsqrt.f32 %v3191_v26  ;;  %v2937_v30 = vmul.f32 0.03125, %v2573_v8  ;;  %v13219_v62 = vld [vmem:[#allocation211_spill] sm:$0xff] }
 0x44c   : > { %v6083_v54 = vpack.c.bf16 %v4221_v50, %v4221_v50  ;;  %v3960_v38 = vmul.f32 %v11467_v12, %v3697_v43  ;;  %6554 = vrsqrt.f32 %v3190_v56  ;;  %v2936_v27 = vmul.f32 0.03125, %v2570_v6  ;;  %v13220_v56 = vld [vmem:[#allocation333_spill] sm:$0xff] }
 0x44d   : > { %v6545_v45 = vpop.eup %6544  ;;  %v6082_v1 = vpack.c.bf16 %v4220_v13, %v4220_v13  ;;  %v3959_v59 = vmul.f32 %v11467_v12, %v3696_v14  ;;  %v3193_v5 = vadd.f32 1e-06, %v2937_v30 }
 0x44e   : > { %v6547_v10 = vpop.eup %6546  ;;  %5502 = vst.msk [vmem:[%s10020_s26 + $0x2fc] sm:$0xf] %vm5310_vm1, %v6083_v54  ;;  %v4223_v25 = vadd.f32 %v11476_v44, %v3960_v38  ;;  %v3699_v24 = vmul.f32 %v6545_v45, %v13217_v46  ;;  %v3192_v7 = vadd.f32 1e-06, %v2936_v27  ;;  %v2579_v35 = vpop.xlane.xlu1 %2578 }
 0x44f   : > { %v2576_v34 = vpop.xlane.xlu0 %2575  ;;  %5501 = vst.msk [vmem:[%s10020_s26 + $0x2f8] sm:$0xf] %vm5310_vm1, %v6082_v1  ;;  %v4222_v22 = vadd.f32 %v11476_v44, %v3959_v59  ;;  %v3698_v58 = vmul.f32 %v6547_v10, %v13218_v17  ;;  %6556 = vrsqrt.f32 %v3193_v5  ;;  %v2939_v31 = vmul.f32 0.03125, %v2579_v35  ;;  %v13221_v59 = vld [vmem:[#allocation334_spill] sm:$0xff] }
 0x450   : > { %v6085_v2 = vpack.c.bf16 %v4223_v25, %v4223_v25  ;;  %v3962_v63 = vmul.f32 %v11467_v12, %v3699_v24  ;;  %6558 = vrsqrt.f32 %v3192_v7  ;;  %v2938_v41 = vmul.f32 0.03125, %v2576_v34  ;;  %v13222_v7 = vld [vmem:[#allocation335_spill] sm:$0xff] }
 0x451   : > { %v6549_v51 = vpop.eup %6548  ;;  %v6084_v18 = vpack.c.bf16 %v4222_v22, %v4222_v22  ;;  %v3961_v32 = vmul.f32 %v11467_v12, %v3698_v58  ;;  %v3195_v37 = vadd.f32 1e-06, %v2939_v31 }
 0x452   : > { %v6551_v61 = vpop.eup %6550  ;;  %5504 = vst.msk [vmem:[%s10020_s26 + $0x304] sm:$0xf] %vm5310_vm1, %v6085_v2  ;;  %v4225_v23 = vadd.f32 %v11476_v44, %v3962_v63  ;;  %v3701_v26 = vmul.f32 %v6549_v51, %v13219_v62  ;;  %v3194_v19 = vadd.f32 1e-06, %v2938_v41  ;;  %v2585_v50 = vpop.xlane.xlu1 %2584 }
 0x453   : > { %v2582_v3 = vpop.xlane.xlu0 %2581  ;;  %5503 = vst.msk [vmem:[%s10020_s26 + $0x300] sm:$0xf] %vm5310_vm1, %v6084_v18  ;;  %v4224_v43 = vadd.f32 %v11476_v44, %v3961_v32  ;;  %v3700_v8 = vmul.f32 %v6551_v61, %v13220_v56  ;;  %6560 = vrsqrt.f32 %v3195_v37  ;;  %v2941_v6 = vmul.f32 0.03125, %v2585_v50  ;;  %v13223_v32 = vld [vmem:[#allocation215_spill] sm:$0xff] }
 0x454   : > { %v6087_v13 = vpack.c.bf16 %v4225_v23, %v4225_v23  ;;  %v3964_v42 = vmul.f32 %v11467_v12, %v3701_v26  ;;  %6562 = vrsqrt.f32 %v3194_v19  ;;  %v2940_v14 = vmul.f32 0.03125, %v2582_v3  ;;  %v13224_v19 = vld [vmem:[#allocation30_spill] sm:$0xff] }
 0x455   : > { %v6553_v30 = vpop.eup %6552  ;;  %v6086_v54 = vpack.c.bf16 %v4224_v43, %v4224_v43  ;;  %v3963_v38 = vmul.f32 %v11467_v12, %v3700_v8  ;;  %v3197_v27 = vadd.f32 1e-06, %v2941_v6 }
 0x456   : > { %v6555_v45 = vpop.eup %6554  ;;  %5506 = vst.msk [vmem:[%s10020_s26 + $0x30c] sm:$0xf] %vm5310_vm1, %v6087_v13  ;;  %v4227_v1 = vadd.f32 %v11476_v44, %v3964_v42  ;;  %v3703_v5 = vmul.f32 %v6553_v30, %v13221_v59  ;;  %v3196_v10 = vadd.f32 1e-06, %v2940_v14  ;;  %v2591_v25 = vpop.xlane.xlu1 %2590 }
 0x457   : > { %v2588_v46 = vpop.xlane.xlu0 %2587  ;;  %5505 = vst.msk [vmem:[%s10020_s26 + $0x308] sm:$0xf] %vm5310_vm1, %v6086_v54  ;;  %v4226_v24 = vadd.f32 %v11476_v44, %v3963_v38  ;;  %v3702_v35 = vmul.f32 %v6555_v45, %v13222_v7  ;;  %6564 = vrsqrt.f32 %v3197_v27  ;;  %v2943_v34 = vmul.f32 0.03125, %v2591_v25  ;;  %v13225_v38 = vld [vmem:[#allocation33_spill] sm:$0xff] }
 0x458   : > { %v6089_v22 = vpack.c.bf16 %v4227_v1, %v4227_v1  ;;  %v3966_v17 = vmul.f32 %v11467_v12, %v3703_v5  ;;  %6566 = vrsqrt.f32 %v3196_v10  ;;  %v2942_v58 = vmul.f32 0.03125, %v2588_v46  ;;  %v13226_v10 = vld [vmem:[#allocation339_spill] sm:$0xff] }
 0x459   : > { %v6557_v31 = vpop.eup %6556  ;;  %v6088_v2 = vpack.c.bf16 %v4226_v24, %v4226_v24  ;;  %v3965_v63 = vmul.f32 %v11467_v12, %v3702_v35  ;;  %v3199_v41 = vadd.f32 1e-06, %v2943_v34 }
 0x45a   : > { %v6559_v51 = vpop.eup %6558  ;;  %5508 = vst.msk [vmem:[%s10020_s26 + $0x314] sm:$0xf] %vm5310_vm1, %v6089_v22  ;;  %v4229_v18 = vadd.f32 %v11476_v44, %v3966_v17  ;;  %v3705_v37 = vmul.f32 %v6557_v31, %v13223_v32  ;;  %v3198_v61 = vadd.f32 1e-06, %v2942_v58  ;;  %v2597_v23 = vpop.xlane.xlu1 %2596 }
 0x45b   : > { %v2594_v62 = vpop.xlane.xlu0 %2593  ;;  %5507 = vst.msk [vmem:[%s10020_s26 + $0x310] sm:$0xf] %vm5310_vm1, %v6088_v2  ;;  %v4228_v26 = vadd.f32 %v11476_v44, %v3965_v63  ;;  %v3704_v50 = vmul.f32 %v6559_v51, %v13224_v19  ;;  %6568 = vrsqrt.f32 %v3199_v41  ;;  %v2945_v3 = vmul.f32 0.03125, %v2597_v23  ;;  %v13227_v63 = vld [vmem:[#allocation37_spill] sm:$0xff] }
 0x45c   : > { %v6091_v43 = vpack.c.bf16 %v4229_v18, %v4229_v18  ;;  %v3968_v56 = vmul.f32 %v11467_v12, %v3705_v37  ;;  %6570 = vrsqrt.f32 %v3198_v61  ;;  %v2944_v8 = vmul.f32 0.03125, %v2594_v62  ;;  %v13228_v61 = vld [vmem:[#allocation340_spill] sm:$0xff] }
 0x45d   : > { %v6561_v6 = vpop.eup %6560  ;;  %v6090_v13 = vpack.c.bf16 %v4228_v26, %v4228_v26  ;;  %v3967_v42 = vmul.f32 %v11467_v12, %v3704_v50  ;;  %v3201_v14 = vadd.f32 1e-06, %v2945_v3 }
 0x45e   : > { %v6563_v30 = vpop.eup %6562  ;;  %5510 = vst.msk [vmem:[%s10020_s26 + $0x31c] sm:$0xf] %vm5310_vm1, %v6091_v43  ;;  %v4231_v54 = vadd.f32 %v11476_v44, %v3968_v56  ;;  %v3707_v27 = vmul.f32 %v6561_v6, %v13225_v38  ;;  %v3200_v45 = vadd.f32 1e-06, %v2944_v8  ;;  %v2603_v1 = vpop.xlane.xlu1 %2602 }
 0x45f   : > { %v2600_v59 = vpop.xlane.xlu0 %2599  ;;  %5509 = vst.msk [vmem:[%s10020_s26 + $0x318] sm:$0xf] %vm5310_vm1, %v6090_v13  ;;  %v4230_v5 = vadd.f32 %v11476_v44, %v3967_v42  ;;  %v3706_v25 = vmul.f32 %v6563_v30, %v13226_v10  ;;  %6572 = vrsqrt.f32 %v3201_v14  ;;  %v2947_v46 = vmul.f32 0.03125, %v2603_v1  ;;  %v13229_v42 = vld [vmem:[#allocation341_spill] sm:$0xff] }
 0x460   : > { %v6093_v24 = vpack.c.bf16 %v4231_v54, %v4231_v54  ;;  %v3970_v7 = vmul.f32 %v11467_v12, %v3707_v27  ;;  %6574 = vrsqrt.f32 %v3200_v45  ;;  %v2946_v35 = vmul.f32 0.03125, %v2600_v59  ;;  %v13230_v45 = vld [vmem:[#allocation342_spill] sm:$0xff] }
 0x461   : > { %v6565_v34 = vpop.eup %6564  ;;  %v6092_v22 = vpack.c.bf16 %v4230_v5, %v4230_v5  ;;  %v3969_v17 = vmul.f32 %v11467_v12, %v3706_v25  ;;  %v3203_v58 = vadd.f32 1e-06, %v2947_v46 }
 0x462   : > { %v6567_v31 = vpop.eup %6566  ;;  %5512 = vst.msk [vmem:[%s10020_s26 + $0x324] sm:$0xf] %vm5310_vm1, %v6093_v24  ;;  %v4233_v2 = vadd.f32 %v11476_v44, %v3970_v7  ;;  %v3709_v41 = vmul.f32 %v6565_v34, %v13227_v63  ;;  %v3202_v51 = vadd.f32 1e-06, %v2946_v35  ;;  %v2609_v18 = vpop.xlane.xlu1 %2608 }
 0x463   : > { %v2606_v32 = vpop.xlane.xlu0 %2605  ;;  %5511 = vst.msk [vmem:[%s10020_s26 + $0x320] sm:$0xf] %vm5310_vm1, %v6092_v22  ;;  %v4232_v37 = vadd.f32 %v11476_v44, %v3969_v17  ;;  %v3708_v23 = vmul.f32 %v6567_v31, %v13228_v61  ;;  %6576 = vrsqrt.f32 %v3203_v58  ;;  %v2949_v62 = vmul.f32 0.03125, %v2609_v18  ;;  %v13231_v17 = vld [vmem:[#allocation41_spill] sm:$0xff] }
 0x464   : > { %v6095_v26 = vpack.c.bf16 %v4233_v2, %v4233_v2  ;;  %v3972_v19 = vmul.f32 %v11467_v12, %v3709_v41  ;;  %6578 = vrsqrt.f32 %v3202_v51  ;;  %v2948_v50 = vmul.f32 0.03125, %v2606_v32  ;;  %v13232_v51 = vld [vmem:[#allocation225_spill] sm:$0xff] }
 0x465   : > { %v6569_v3 = vpop.eup %6568  ;;  %v6094_v43 = vpack.c.bf16 %v4232_v37, %v4232_v37  ;;  %v3971_v56 = vmul.f32 %v11467_v12, %v3708_v23  ;;  %v3205_v8 = vadd.f32 1e-06, %v2949_v62 }
 0x466   : > { %v6571_v6 = vpop.eup %6570  ;;  %5514 = vst.msk [vmem:[%s10020_s26 + $0x32c] sm:$0xf] %vm5310_vm1, %v6095_v26  ;;  %v4235_v13 = vadd.f32 %v11476_v44, %v3972_v19  ;;  %v3711_v14 = vmul.f32 %v6569_v3, %v13229_v42  ;;  %v3204_v30 = vadd.f32 1e-06, %v2948_v50  ;;  %v2615_v54 = vpop.xlane.xlu1 %2614 }
 0x467   : > { %v2612_v38 = vpop.xlane.xlu0 %2611  ;;  %5513 = vst.msk [vmem:[%s10020_s26 + $0x328] sm:$0xf] %vm5310_vm1, %v6094_v43  ;;  %v4234_v27 = vadd.f32 %v11476_v44, %v3971_v56  ;;  %v3710_v1 = vmul.f32 %v6571_v6, %v13230_v45  ;;  %6580 = vrsqrt.f32 %v3205_v8  ;;  %v2951_v59 = vmul.f32 0.03125, %v2615_v54  ;;  %v13233_v56 = vld [vmem:[#allocation43_spill] sm:$0xff] }
 0x468   : > { %v6097_v5 = vpack.c.bf16 %v4235_v13, %v4235_v13  ;;  %v3974_v10 = vmul.f32 %v11467_v12, %v3711_v14  ;;  %6582 = vrsqrt.f32 %v3204_v30  ;;  %v2950_v25 = vmul.f32 0.03125, %v2612_v38  ;;  %v13234_v30 = vld [vmem:[#allocation226_spill] sm:$0xff] }
 0x469   : > { %v6573_v46 = vpop.eup %6572  ;;  %v6096_v24 = vpack.c.bf16 %v4234_v27, %v4234_v27  ;;  %v3973_v7 = vmul.f32 %v11467_v12, %v3710_v1  ;;  %v3207_v35 = vadd.f32 1e-06, %v2951_v59 }
 0x46a   : > { %v6575_v34 = vpop.eup %6574  ;;  %5516 = vst.msk [vmem:[%s10020_s26 + $0x334] sm:$0xf] %vm5310_vm1, %v6097_v5  ;;  %v4237_v22 = vadd.f32 %v11476_v44, %v3974_v10  ;;  %v3713_v58 = vmul.f32 %v6573_v46, %v13231_v17  ;;  %v3206_v31 = vadd.f32 1e-06, %v2950_v25  ;;  %v2621_v2 = vpop.xlane.xlu1 %2620 }
 0x46b   : > { %v2618_v63 = vpop.xlane.xlu0 %2617  ;;  %5515 = vst.msk [vmem:[%s10020_s26 + $0x330] sm:$0xf] %vm5310_vm1, %v6096_v24  ;;  %v4236_v41 = vadd.f32 %v11476_v44, %v3973_v7  ;;  %v3712_v18 = vmul.f32 %v6575_v34, %v13232_v51  ;;  %6584 = vrsqrt.f32 %v3207_v35  ;;  %v2953_v32 = vmul.f32 0.03125, %v2621_v2  ;;  %v13235_v7 = vld [vmem:[#allocation109_spill] sm:$0xff] }
 0x46c   : > { %v6099_v37 = vpack.c.bf16 %v4237_v22, %v4237_v22  ;;  %v3976_v61 = vmul.f32 %v11467_v12, %v3713_v58  ;;  %6586 = vrsqrt.f32 %v3206_v31  ;;  %v2952_v23 = vmul.f32 0.03125, %v2618_v63  ;;  %v13236_v31 = vld [vmem:[#allocation346_spill] sm:$0xff] }
 0x46d   : > { %v6577_v62 = vpop.eup %6576  ;;  %v6098_v26 = vpack.c.bf16 %v4236_v41, %v4236_v41  ;;  %v3975_v19 = vmul.f32 %v11467_v12, %v3712_v18  ;;  %v3209_v50 = vadd.f32 1e-06, %v2953_v32 }
 0x46e   : > { %v6579_v3 = vpop.eup %6578  ;;  %5518 = vst.msk [vmem:[%s10020_s26 + $0x33c] sm:$0xf] %vm5310_vm1, %v6099_v37  ;;  %v4239_v43 = vadd.f32 %v11476_v44, %v3976_v61  ;;  %v3715_v8 = vmul.f32 %v6577_v62, %v13233_v56  ;;  %v3208_v6 = vadd.f32 1e-06, %v2952_v23  ;;  %v2627_v13 = vpop.xlane.xlu1 %2626 }
 0x46f   : > { %v2624_v42 = vpop.xlane.xlu0 %2623  ;;  %5517 = vst.msk [vmem:[%s10020_s26 + $0x338] sm:$0xf] %vm5310_vm1, %v6098_v26  ;;  %v4238_v14 = vadd.f32 %v11476_v44, %v3975_v19  ;;  %v3714_v54 = vmul.f32 %v6579_v3, %v13234_v30  ;;  %6588 = vrsqrt.f32 %v3209_v50  ;;  %v2955_v38 = vmul.f32 0.03125, %v2627_v13  ;;  %v13237_v19 = vld [vmem:[#allocation110_spill] sm:$0xff] }
 0x470   : > { %v6101_v27 = vpack.c.bf16 %v4239_v43, %v4239_v43  ;;  %v3978_v45 = vmul.f32 %v11467_v12, %v3715_v8  ;;  %6590 = vrsqrt.f32 %v3208_v6  ;;  %v2954_v1 = vmul.f32 0.03125, %v2624_v42  ;;  %v13238_v6 = vld [vmem:[#allocation106_spill] sm:$0xff] }
 0x471   : > { %v6581_v59 = vpop.eup %6580  ;;  %v6100_v5 = vpack.c.bf16 %v4238_v14, %v4238_v14  ;;  %v3977_v10 = vmul.f32 %v11467_v12, %v3714_v54  ;;  %v3211_v25 = vadd.f32 1e-06, %v2955_v38 }
 0x472   : > { %v6583_v46 = vpop.eup %6582  ;;  %5520 = vst.msk [vmem:[%s10020_s26 + $0x344] sm:$0xf] %vm5310_vm1, %v6101_v27  ;;  %v4241_v24 = vadd.f32 %v11476_v44, %v3978_v45  ;;  %v3717_v35 = vmul.f32 %v6581_v59, %v13235_v7  ;;  %v3210_v34 = vadd.f32 1e-06, %v2954_v1  ;;  %v2633_v22 = vpop.xlane.xlu1 %2632 }
 0x473   : > { %v2630_v17 = vpop.xlane.xlu0 %2629  ;;  %5519 = vst.msk [vmem:[%s10020_s26 + $0x340] sm:$0xf] %vm5310_vm1, %v6100_v5  ;;  %v4240_v58 = vadd.f32 %v11476_v44, %v3977_v10  ;;  %v3716_v2 = vmul.f32 %v6583_v46, %v13236_v31  ;;  %6592 = vrsqrt.f32 %v3211_v25  ;;  %v2957_v63 = vmul.f32 0.03125, %v2633_v22  ;;  %v13239_v10 = vld [vmem:[#allocation231_spill] sm:$0xff] }
 0x474   : > { %v6103_v41 = vpack.c.bf16 %v4241_v24, %v4241_v24  ;;  %v3980_v51 = vmul.f32 %v11467_v12, %v3717_v35  ;;  %6594 = vrsqrt.f32 %v3210_v34  ;;  %v2956_v18 = vmul.f32 0.03125, %v2630_v17  ;;  %v13240_v34 = vld [vmem:[#allocation232_spill] sm:$0xff] }
 0x475   : > { %v6585_v32 = vpop.eup %6584  ;;  %v6102_v37 = vpack.c.bf16 %v4240_v58, %v4240_v58  ;;  %v3979_v61 = vmul.f32 %v11467_v12, %v3716_v2  ;;  %v3213_v23 = vadd.f32 1e-06, %v2957_v63 }
 0x476   : > { %v6587_v62 = vpop.eup %6586  ;;  %5522 = vst.msk [vmem:[%s10020_s26 + $0x34c] sm:$0xf] %vm5310_vm1, %v6103_v41  ;;  %v4243_v26 = vadd.f32 %v11476_v44, %v3980_v51  ;;  %v3719_v50 = vmul.f32 %v6585_v32, %v13237_v19  ;;  %v3212_v3 = vadd.f32 1e-06, %v2956_v18  ;;  %v2639_v43 = vpop.xlane.xlu1 %2638 }
 0x477   : > { %v2636_v56 = vpop.xlane.xlu0 %2635  ;;  %5521 = vst.msk [vmem:[%s10020_s26 + $0x348] sm:$0xf] %vm5310_vm1, %v6102_v37  ;;  %v4242_v8 = vadd.f32 %v11476_v44, %v3979_v61  ;;  %v3718_v13 = vmul.f32 %v6587_v62, %v13238_v6  ;;  %6596 = vrsqrt.f32 %v3213_v23  ;;  %v2959_v42 = vmul.f32 0.03125, %v2639_v43  ;;  %v13241_v61 = vld [vmem:[#allocation114_spill] sm:$0xff] }
 0x478   : > { %v6105_v14 = vpack.c.bf16 %v4243_v26, %v4243_v26  ;;  %v3982_v30 = vmul.f32 %v11467_v12, %v3719_v50  ;;  %6598 = vrsqrt.f32 %v3212_v3  ;;  %v2958_v54 = vmul.f32 0.03125, %v2636_v56  ;;  %v13242_v3 = vld [vmem:[#allocation115_spill] sm:$0xff] }
 0x479   : > { %v6589_v38 = vpop.eup %6588  ;;  %v6104_v27 = vpack.c.bf16 %v4242_v8, %v4242_v8  ;;  %v3981_v45 = vmul.f32 %v11467_v12, %v3718_v13  ;;  %v3215_v1 = vadd.f32 1e-06, %v2959_v42 }
 0x47a   : > { %v6591_v59 = vpop.eup %6590  ;;  %5524 = vst.msk [vmem:[%s10020_s26 + $0x354] sm:$0xf] %vm5310_vm1, %v6105_v14  ;;  %v4245_v5 = vadd.f32 %v11476_v44, %v3982_v30  ;;  %v3721_v25 = vmul.f32 %v6589_v38, %v13239_v10  ;;  %v3214_v46 = vadd.f32 1e-06, %v2958_v54  ;;  %v2645_v24 = vpop.xlane.xlu1 %2644 }
 0x47b   : > { %v2642_v7 = vpop.xlane.xlu0 %2641  ;;  %5523 = vst.msk [vmem:[%s10020_s26 + $0x350] sm:$0xf] %vm5310_vm1, %v6104_v27  ;;  %v4244_v35 = vadd.f32 %v11476_v44, %v3981_v45  ;;  %v3720_v22 = vmul.f32 %v6591_v59, %v13240_v34  ;;  %6600 = vrsqrt.f32 %v3215_v1  ;;  %v2961_v17 = vmul.f32 0.03125, %v2645_v24  ;;  %v13243_v45 = vld [vmem:[#allocation45_spill] sm:$0xff] }
 0x47c   : > { %v6107_v58 = vpack.c.bf16 %v4245_v5, %v4245_v5  ;;  %v3984_v31 = vmul.f32 %v11467_v12, %v3721_v25  ;;  %6602 = vrsqrt.f32 %v3214_v46  ;;  %v2960_v2 = vmul.f32 0.03125, %v2642_v7  ;;  %v13244_v46 = vld [vmem:[#allocation46_spill] sm:$0xff] }
 0x47d   : > { %v6593_v63 = vpop.eup %6592  ;;  %v6106_v41 = vpack.c.bf16 %v4244_v35, %v4244_v35  ;;  %v3983_v51 = vmul.f32 %v11467_v12, %v3720_v22  ;;  %v3217_v18 = vadd.f32 1e-06, %v2961_v17 }
 0x47e   : > { %v6595_v32 = vpop.eup %6594  ;;  %5526 = vst.msk [vmem:[%s10020_s26 + $0x35c] sm:$0xf] %vm5310_vm1, %v6107_v58  ;;  %v4247_v37 = vadd.f32 %v11476_v44, %v3984_v31  ;;  %v3723_v23 = vmul.f32 %v6593_v63, %v13241_v61  ;;  %v3216_v62 = vadd.f32 1e-06, %v2960_v2  ;;  %v2651_v26 = vpop.xlane.xlu1 %2650 }
 0x47f   : > { %v2648_v19 = vpop.xlane.xlu0 %2647  ;;  %5525 = vst.msk [vmem:[%s10020_s26 + $0x358] sm:$0xf] %vm5310_vm1, %v6106_v41  ;;  %v4246_v50 = vadd.f32 %v11476_v44, %v3983_v51  ;;  %v3722_v43 = vmul.f32 %v6595_v32, %v13242_v3  ;;  %6604 = vrsqrt.f32 %v3217_v18  ;;  %v2963_v56 = vmul.f32 0.03125, %v2651_v26  ;;  %v13245_v51 = vld [vmem:[#allocation48_spill] sm:$0xff] }
 0x480   : > { %v6109_v8 = vpack.c.bf16 %v4247_v37, %v4247_v37  ;;  %v3986_v6 = vmul.f32 %v11467_v12, %v3723_v23  ;;  %6606 = vrsqrt.f32 %v3216_v62  ;;  %v2962_v13 = vmul.f32 0.03125, %v2648_v19  ;;  %v13246_v62 = vld [vmem:[#allocation49_spill] sm:$0xff] }
 0x481   : > { %v6597_v42 = vpop.eup %6596  ;;  %v6108_v14 = vpack.c.bf16 %v4246_v50, %v4246_v50  ;;  %v3985_v30 = vmul.f32 %v11467_v12, %v3722_v43  ;;  %v3219_v54 = vadd.f32 1e-06, %v2963_v56 }
 0x482   : > { %v6599_v38 = vpop.eup %6598  ;;  %5528 = vst.msk [vmem:[%s10020_s26 + $0x364] sm:$0xf] %vm5310_vm1, %v6109_v8  ;;  %v4249_v27 = vadd.f32 %v11476_v44, %v3986_v6  ;;  %v3725_v1 = vmul.f32 %v6597_v42, %v13243_v45  ;;  %v3218_v59 = vadd.f32 1e-06, %v2962_v13  ;;  %v2657_v5 = vpop.xlane.xlu1 %2656 }
 0x483   : > { %v2654_v10 = vpop.xlane.xlu0 %2653  ;;  %5527 = vst.msk [vmem:[%s10020_s26 + $0x360] sm:$0xf] %vm5310_vm1, %v6108_v14  ;;  %v4248_v25 = vadd.f32 %v11476_v44, %v3985_v30  ;;  %v3724_v24 = vmul.f32 %v6599_v38, %v13244_v46  ;;  %6608 = vrsqrt.f32 %v3219_v54  ;;  %v2965_v7 = vmul.f32 0.03125, %v2657_v5  ;;  %v13247_v30 = vld [vmem:[#allocation51_spill] sm:$0xff] }
 0x484   : > { %v6111_v35 = vpack.c.bf16 %v4249_v27, %v4249_v27  ;;  %v3988_v34 = vmul.f32 %v11467_v12, %v3725_v1  ;;  %6610 = vrsqrt.f32 %v3218_v59  ;;  %v2964_v22 = vmul.f32 0.03125, %v2654_v10  ;;  %v13248_v59 = vld [vmem:[#allocation236_spill] sm:$0xff] }
 0x485   : > { %v6601_v17 = vpop.eup %6600  ;;  %v6110_v58 = vpack.c.bf16 %v4248_v25, %v4248_v25  ;;  %v3987_v31 = vmul.f32 %v11467_v12, %v3724_v24  ;;  %v3221_v2 = vadd.f32 1e-06, %v2965_v7 }
 0x486   : > { %v6603_v63 = vpop.eup %6602  ;;  %5530 = vst.msk [vmem:[%s10020_s26 + $0x36c] sm:$0xf] %vm5310_vm1, %v6111_v35  ;;  %v4251_v41 = vadd.f32 %v11476_v44, %v3988_v34  ;;  %v3727_v18 = vmul.f32 %v6601_v17, %v13245_v51  ;;  %v3220_v32 = vadd.f32 1e-06, %v2964_v22  ;;  %v2663_v37 = vpop.xlane.xlu1 %2662 }
 0x487   : > { %v2660_v61 = vpop.xlane.xlu0 %2659  ;;  %5529 = vst.msk [vmem:[%s10020_s26 + $0x368] sm:$0xf] %vm5310_vm1, %v6110_v58  ;;  %v4250_v23 = vadd.f32 %v11476_v44, %v3987_v31  ;;  %v3726_v26 = vmul.f32 %v6603_v63, %v13246_v62  ;;  %6612 = vrsqrt.f32 %v3221_v2  ;;  %v2967_v19 = vmul.f32 0.03125, %v2663_v37  ;;  %v13249_v31 = vld [vmem:[#allocation57_spill] sm:$0xff] }
 0x488   : > { %v6113_v50 = vpack.c.bf16 %v4251_v41, %v4251_v41  ;;  %v3990_v3 = vmul.f32 %v11467_v12, %v3727_v18  ;;  %6614 = vrsqrt.f32 %v3220_v32  ;;  %v2966_v43 = vmul.f32 0.03125, %v2660_v61  ;;  %v13250_v32 = vld [vmem:[#allocation241_spill] sm:$0xff] }
 0x489   : > { %v6605_v56 = vpop.eup %6604  ;;  %v6112_v8 = vpack.c.bf16 %v4250_v23, %v4250_v23  ;;  %v3989_v6 = vmul.f32 %v11467_v12, %v3726_v26  ;;  %v3223_v13 = vadd.f32 1e-06, %v2967_v19  ;;  %v11737_v23 = vld [vmem:[%s11900_s1] ss:$0 sm:$0xff] }
 0x48a   : > { %v6607_v42 = vpop.eup %6606  ;;  %5532 = vst.msk [vmem:[%s10020_s26 + $0x374] sm:$0xf] %vm5310_vm1, %v6113_v50  ;;  %v4253_v14 = vadd.f32 %v11476_v44, %v3990_v3  ;;  %v3729_v54 = vmul.f32 %v6605_v56, %v13247_v30  ;;  %v3222_v38 = vadd.f32 1e-06, %v2966_v43  ;;  %v2669_v27 = vpop.xlane.xlu1 %2668  ;;  %v11746_v56 = vld [vmem:[%s11901_s2] ss:$0 sm:$0xff] }
 0x48b   : > { %v2666_v45 = vpop.xlane.xlu0 %2665  ;;  %5531 = vst.msk [vmem:[%s10020_s26 + $0x370] sm:$0xf] %vm5310_vm1, %v6112_v8  ;;  %v4252_v1 = vadd.f32 %v11476_v44, %v3989_v6  ;;  %v3728_v5 = vmul.f32 %v6607_v42, %v13248_v59  ;;  %6616 = vrsqrt.f32 %v3223_v13  ;;  %v2969_v10 = vmul.f32 0.03125, %v2669_v27  ;;  %v13251_v6 = vld [vmem:[#allocation124_spill] sm:$0xff] }
 0x48c   : > { %v6115_v25 = vpack.c.bf16 %v4253_v14, %v4253_v14  ;;  %v3992_v46 = vmul.f32 %v11467_v12, %v3729_v54  ;;  %6618 = vrsqrt.f32 %v3222_v38  ;;  %v2968_v24 = vmul.f32 0.03125, %v2666_v45  ;;  %v13252_v38 = vld [vmem:[#allocation125_spill] sm:$0xff] }
 0x48d   : > { %v6609_v7 = vpop.eup %6608  ;;  %v6114_v35 = vpack.c.bf16 %v4252_v1, %v4252_v1  ;;  %v3991_v34 = vmul.f32 %v11467_v12, %v3728_v5  ;;  %v3225_v22 = vadd.f32 1e-06, %v2969_v10 }
 0x48e   : > { %v6611_v17 = vpop.eup %6610  ;;  %5534 = vst.msk [vmem:[%s10020_s26 + $0x37c] sm:$0xf] %vm5310_vm1, %v6115_v25  ;;  %v4255_v58 = vadd.f32 %v11476_v44, %v3992_v46  ;;  %v3731_v2 = vmul.f32 %v6609_v7, %v13249_v31  ;;  %v3224_v63 = vadd.f32 1e-06, %v2968_v24  ;;  %v2675_v41 = vpop.xlane.xlu1 %2674 }
 0x48f   : > { %v2672_v51 = vpop.xlane.xlu0 %2671  ;;  %5533 = vst.msk [vmem:[%s10020_s26 + $0x378] sm:$0xf] %vm5310_vm1, %v6114_v35  ;;  %v4254_v18 = vadd.f32 %v11476_v44, %v3991_v34  ;;  %v3730_v37 = vmul.f32 %v6611_v17, %v13250_v32  ;;  %6620 = vrsqrt.f32 %v3225_v22  ;;  %v2971_v12 = vmul.f32 0.03125, %v2675_v41  ;;  %v13253_v34 = vld [vmem:[#allocation242_spill] sm:$0xff] }
 0x490   : > { %v6117_v61 = vpack.c.bf16 %v4255_v58, %v4255_v58  ;;  %v3994_v62 = vmul.f32 %v11737_v23, %v3731_v2  ;;  %6622 = vrsqrt.f32 %v3224_v63  ;;  %v2970_v26 = vmul.f32 0.03125, %v2672_v51  ;;  %v13254_v63 = vld [vmem:[#allocation126_spill] sm:$0xff] }
 0x491   : > { %v6613_v19 = vpop.eup %6612  ;;  %v6116_v50 = vpack.c.bf16 %v4254_v18, %v4254_v18  ;;  %v3993_v3 = vmul.f32 %v11737_v23, %v3730_v37  ;;  %v3227_v44 = vadd.f32 1e-06, %v2971_v12 }
 0x492   : > { %v6615_v43 = vpop.eup %6614  ;;  %5536 = vst.msk [vmem:[%s10020_s26 + $0x384] sm:$0xf] %vm5310_vm1, %v6117_v61  ;;  %v4257_v8 = vadd.f32 %v11746_v56, %v3994_v62  ;;  %v3733_v13 = vmul.f32 %v6613_v19, %v13251_v6  ;;  %v3226_v42 = vadd.f32 1e-06, %v2970_v26  ;;  %v2681_v14 = vpop.xlane.xlu1 %2680 }
 0x493   : > { %v2678_v30 = vpop.xlane.xlu0 %2677  ;;  %5535 = vst.msk [vmem:[%s10020_s26 + $0x380] sm:$0xf] %vm5310_vm1, %v6116_v50  ;;  %v4256_v54 = vadd.f32 %v11746_v56, %v3993_v3  ;;  %v3732_v27 = vmul.f32 %v6615_v43, %v13252_v38  ;;  %6624 = vrsqrt.f32 %v3227_v44  ;;  %v2973_v45 = vmul.f32 0.03125, %v2681_v14  ;;  %v13255_v3 = vld [vmem:[#allocation243_spill] sm:$0xff] }
 0x494   : > { %v6119_v1 = vpack.c.bf16 %v4257_v8, %v4257_v8  ;;  %v3996_v59 = vmul.f32 %v11737_v23, %v3733_v13  ;;  %6626 = vrsqrt.f32 %v3226_v42  ;;  %v2972_v5 = vmul.f32 0.03125, %v2678_v30  ;;  %v13256_v42 = vld [vmem:[#allocation244_spill] sm:$0xff] }
 0x495   : > { %v6617_v10 = vpop.eup %6616  ;;  %v6118_v25 = vpack.c.bf16 %v4256_v54, %v4256_v54  ;;  %v3995_v46 = vmul.f32 %v11737_v23, %v3732_v27  ;;  %v3229_v24 = vadd.f32 1e-06, %v2973_v45 }
 0x496   : > { %v6619_v7 = vpop.eup %6618  ;;  %5538 = vst.msk [vmem:[%s10020_s26 + $0x38c] sm:$0xf] %vm5310_vm1, %v6119_v1  ;;  %v4259_v35 = vadd.f32 %v11746_v56, %v3996_v59  ;;  %v3735_v22 = vmul.f32 %v6617_v10, %v13253_v34  ;;  %v3228_v17 = vadd.f32 1e-06, %v2972_v5  ;;  %v2687_v58 = vpop.xlane.xlu1 %2686 }
 0x497   : > { %v2684_v31 = vpop.xlane.xlu0 %2683  ;;  %5537 = vst.msk [vmem:[%s10020_s26 + $0x388] sm:$0xf] %vm5310_vm1, %v6118_v25  ;;  %v4258_v2 = vadd.f32 %v11746_v56, %v3995_v46  ;;  %v3734_v41 = vmul.f32 %v6619_v7, %v13254_v63  ;;  %6628 = vrsqrt.f32 %v3229_v24  ;;  %v2975_v51 = vmul.f32 0.03125, %v2687_v58 }
 0x498   : > { %v6121_v18 = vpack.c.bf16 %v4259_v35, %v4259_v35  ;;  %v3998_v32 = vmul.f32 %v11737_v23, %v3735_v22  ;;  %6630 = vrsqrt.f32 %v3228_v17  ;;  %v2974_v37 = vmul.f32 0.03125, %v2684_v31 }
 0x499   : > { %v6621_v12 = vpop.eup %6620  ;;  %v6120_v61 = vpack.c.bf16 %v4258_v2, %v4258_v2  ;;  %v3997_v62 = vmul.f32 %v11737_v23, %v3734_v41  ;;  %v3231_v26 = vadd.f32 1e-06, %v2975_v51 }
 0x49a   : > { %v6623_v19 = vpop.eup %6622  ;;  %5540 = vst.msk [vmem:[%s10020_s26 + $0x394] sm:$0xf] %vm5310_vm1, %v6121_v18  ;;  %v4261_v50 = vadd.f32 %v11746_v56, %v3998_v32  ;;  %v3737_v44 = vmul.f32 %v6621_v12, %v13255_v3  ;;  %v3230_v43 = vadd.f32 1e-06, %v2974_v37  ;;  %v2693_v8 = vpop.xlane.xlu1 %2692 }
 0x49b   : > { %v2690_v6 = vpop.xlane.xlu0 %2689  ;;  %5539 = vst.msk [vmem:[%s10020_s26 + $0x390] sm:$0xf] %vm5310_vm1, %v6120_v61  ;;  %v4260_v13 = vadd.f32 %v11746_v56, %v3997_v62  ;;  %v3736_v14 = vmul.f32 %v6623_v19, %v13256_v42  ;;  %6632 = vrsqrt.f32 %v3231_v26  ;;  %v2977_v30 = vmul.f32 0.03125, %v2693_v8 }
 0x49c   : > { %v6123_v54 = vpack.c.bf16 %v4261_v50, %v4261_v50  ;;  %v4000_v38 = vmul.f32 %v11737_v23, %v3737_v44  ;;  %6634 = vrsqrt.f32 %v3230_v43  ;;  %v2976_v27 = vmul.f32 0.03125, %v2690_v6 }
 0x49d   : > { %v6625_v45 = vpop.eup %6624  ;;  %v6122_v1 = vpack.c.bf16 %v4260_v13, %v4260_v13  ;;  %v3999_v59 = vmul.f32 %v11737_v23, %v3736_v14  ;;  %v3233_v5 = vadd.f32 1e-06, %v2977_v30 }
 0x49e   : > { %v6627_v10 = vpop.eup %6626  ;;  %5542 = vst.msk [vmem:[%s10020_s26 + $0x39c] sm:$0xf] %vm5310_vm1, %v6123_v54  ;;  %v4263_v25 = vadd.f32 %v11746_v56, %v4000_v38  ;;  %v3739_v46 = vmul.f32 %v6625_v45, %v10731_v52  ;;  %v3232_v24 = vadd.f32 1e-06, %v2976_v27  ;;  %v2699_v7 = vpop.xlane.xlu1 %2698 }
 0x49f   : > { %v2696_v35 = vpop.xlane.xlu0 %2695  ;;  %5541 = vst.msk [vmem:[%s10020_s26 + $0x398] sm:$0xf] %vm5310_vm1, %v6122_v1  ;;  %v4262_v34 = vadd.f32 %v11746_v56, %v3999_v59  ;;  %v3738_v22 = vmul.f32 %v6627_v10, %v10737_v48  ;;  %6636 = vrsqrt.f32 %v3233_v5  ;;  %v2979_v17 = vmul.f32 0.03125, %v2699_v7 }
 0x4a0   : > { %v6125_v58 = vpack.c.bf16 %v4263_v25, %v4263_v25  ;;  %v4002_v31 = vmul.f32 %v11737_v23, %v3739_v46  ;;  %6638 = vrsqrt.f32 %v3232_v24  ;;  %v2978_v2 = vmul.f32 0.03125, %v2696_v35 }
 0x4a1   : > { %v6629_v63 = vpop.eup %6628  ;;  %v6124_v52 = vpack.c.bf16 %v4262_v34, %v4262_v34  ;;  %v4001_v41 = vmul.f32 %v11737_v23, %v3738_v22  ;;  %v3235_v51 = vadd.f32 1e-06, %v2979_v17 }
 0x4a2   : > { %v6631_v18 = vpop.eup %6630  ;;  %5544 = vst.msk [vmem:[%s10020_s26 + $0x3a4] sm:$0xf] %vm5310_vm1, %v6125_v58  ;;  %v4265_v32 = vadd.f32 %v11746_v56, %v4002_v31  ;;  %v3741_v48 = vmul.f32 %v6629_v63, %v10802_v11  ;;  %v3234_v37 = vadd.f32 1e-06, %v2978_v2  ;;  %v2705_v12 = vpop.xlane.xlu1 %2704 }
 0x4a3   : > { %v2702_v61 = vpop.xlane.xlu0 %2701  ;;  %5543 = vst.msk [vmem:[%s10020_s26 + $0x3a0] sm:$0xf] %vm5310_vm1, %v6124_v52  ;;  %v4264_v62 = vadd.f32 %v11746_v56, %v4001_v41  ;;  %v3740_v26 = vmul.f32 %v6631_v18, %v10808_v20  ;;  %6640 = vrsqrt.f32 %v3235_v51  ;;  %v2981_v19 = vmul.f32 0.03125, %v2705_v12 }
 0x4a4   : > { %v6127_v50 = vpack.c.bf16 %v4265_v32, %v4265_v32  ;;  %v4004_v3 = vmul.f32 %v11737_v23, %v3741_v48  ;;  %6642 = vrsqrt.f32 %v3234_v37  ;;  %v2980_v44 = vmul.f32 0.03125, %v2702_v61 }
 0x4a5   : > { %v6633_v43 = vpop.eup %6632  ;;  %v6126_v11 = vpack.c.bf16 %v4264_v62, %v4264_v62  ;;  %v4003_v8 = vmul.f32 %v11737_v23, %v3740_v26  ;;  %v3237_v6 = vadd.f32 1e-06, %v2981_v19 }
 0x4a6   : > { %v6635_v13 = vpop.eup %6634  ;;  %5546 = vst.msk [vmem:[%s10020_s26 + $0x3ac] sm:$0xf] %vm5310_vm1, %v6127_v50  ;;  %v4267_v42 = vadd.f32 %v11746_v56, %v4004_v3  ;;  %v3743_v20 = vmul.f32 %v6633_v43, %v10868_v15  ;;  %v3236_v14 = vadd.f32 1e-06, %v2980_v44  ;;  %v2711_v30 = vpop.xlane.xlu1 %2710 }
 0x4a7   : > { %v2708_v54 = vpop.xlane.xlu0 %2707  ;;  %5545 = vst.msk [vmem:[%s10020_s26 + $0x3a8] sm:$0xf] %vm5310_vm1, %v6126_v11  ;;  %v4266_v38 = vadd.f32 %v11746_v56, %v4003_v8  ;;  %v3742_v27 = vmul.f32 %v6635_v13, %v10874_v21  ;;  %6644 = vrsqrt.f32 %v3237_v6  ;;  %v2983_v45 = vmul.f32 0.03125, %v2711_v30 }
 0x4a8   : > { %v6129_v1 = vpack.c.bf16 %v4267_v42, %v4267_v42  ;;  %v4006_v59 = vmul.f32 %v11737_v23, %v3743_v20  ;;  %6646 = vrsqrt.f32 %v3236_v14  ;;  %v2982_v5 = vmul.f32 0.03125, %v2708_v54 }
 0x4a9   : > { %v6637_v10 = vpop.eup %6636  ;;  %v6128_v15 = vpack.c.bf16 %v4266_v38, %v4266_v38  ;;  %v4005_v25 = vmul.f32 %v11737_v23, %v3742_v27  ;;  %v3239_v46 = vadd.f32 1e-06, %v2983_v45 }
 0x4aa   : > { %v6639_v24 = vpop.eup %6638  ;;  %5548 = vst.msk [vmem:[%s10020_s26 + $0x3b4] sm:$0xf] %vm5310_vm1, %v6129_v1  ;;  %v4269_v7 = vadd.f32 %v11746_v56, %v4006_v59  ;;  %v3745_v21 = vmul.f32 %v6637_v10, %v10934_v29  ;;  %v3238_v35 = vadd.f32 1e-06, %v2982_v5  ;;  %v2717_v34 = vpop.xlane.xlu1 %2716 }
 0x4ab   : > { %v2714_v22 = vpop.xlane.xlu0 %2713  ;;  %5547 = vst.msk [vmem:[%s10020_s26 + $0x3b0] sm:$0xf] %vm5310_vm1, %v6128_v15  ;;  %v4268_v17 = vadd.f32 %v11746_v56, %v4005_v25  ;;  %v3744_v58 = vmul.f32 %v6639_v24, %v10940_v60  ;;  %6648 = vrsqrt.f32 %v3239_v46  ;;  %v2985_v31 = vmul.f32 0.03125, %v2717_v34 }
 0x4ac   : > { %v6131_v2 = vpack.c.bf16 %v4269_v7, %v4269_v7  ;;  %v4008_v63 = vmul.f32 %v11737_v23, %v3745_v21  ;;  %6650 = vrsqrt.f32 %v3238_v35  ;;  %v2984_v52 = vmul.f32 0.03125, %v2714_v22 }
 0x4ad   : > { %v6641_v41 = vpop.eup %6640  ;;  %v6130_v29 = vpack.c.bf16 %v4268_v17, %v4268_v17  ;;  %v4007_v51 = vmul.f32 %v11737_v23, %v3744_v58  ;;  %v3241_v18 = vadd.f32 1e-06, %v2985_v31 }
 0x4ae   : > { %v6643_v32 = vpop.eup %6642  ;;  %5550 = vst.msk [vmem:[%s10020_s26 + $0x3bc] sm:$0xf] %vm5310_vm1, %v6131_v2  ;;  %v4271_v48 = vadd.f32 %v11746_v56, %v4008_v63  ;;  %v3747_v60 = vmul.f32 %v6641_v41, %v11000_v53  ;;  %v3240_v37 = vadd.f32 1e-06, %v2984_v52  ;;  %v2723_v12 = vpop.xlane.xlu1 %2722 }
 0x4af   : > { %v2720_v61 = vpop.xlane.xlu0 %2719  ;;  %5549 = vst.msk [vmem:[%s10020_s26 + $0x3b8] sm:$0xf] %vm5310_vm1, %v6130_v29  ;;  %v4270_v62 = vadd.f32 %v11746_v56, %v4007_v51  ;;  %v3746_v26 = vmul.f32 %v6643_v32, %v11006_v47  ;;  %6652 = vrsqrt.f32 %v3241_v18  ;;  %v2987_v19 = vmul.f32 0.03125, %v2723_v12 }
 0x4b0   : > { %v6133_v50 = vpack.c.bf16 %v4271_v48, %v4271_v48  ;;  %v4010_v3 = vmul.f32 %v11737_v23, %v3747_v60  ;;  %6654 = vrsqrt.f32 %v3240_v37  ;;  %v2986_v44 = vmul.f32 0.03125, %v2720_v61 }
 0x4b1   : > { %v6645_v43 = vpop.eup %6644  ;;  %v6132_v53 = vpack.c.bf16 %v4270_v62, %v4270_v62  ;;  %v4009_v11 = vmul.f32 %v11737_v23, %v3746_v26  ;;  %v3243_v8 = vadd.f32 1e-06, %v2987_v19 }
 0x4b2   : > { %v6647_v6 = vpop.eup %6646  ;;  %5552 = vst.msk [vmem:[%s10020_s26 + $0x3c4] sm:$0xf] %vm5310_vm1, %v6133_v50  ;;  %v4273_v13 = vadd.f32 %v11746_v56, %v4010_v3  ;;  %v3749_v47 = vmul.f32 %v6645_v43, %v11066_v28  ;;  %v3242_v42 = vadd.f32 1e-06, %v2986_v44  ;;  %v2729_v20 = vpop.xlane.xlu1 %2728 }
 0x4b3   : > { %v2726_v14 = vpop.xlane.xlu0 %2725  ;;  %5551 = vst.msk [vmem:[%s10020_s26 + $0x3c0] sm:$0xf] %vm5310_vm1, %v6132_v53  ;;  %v4272_v30 = vadd.f32 %v11746_v56, %v4009_v11  ;;  %v3748_v54 = vmul.f32 %v6647_v6, %v11072_v57  ;;  %6656 = vrsqrt.f32 %v3243_v8  ;;  %v2989_v38 = vmul.f32 0.03125, %v2729_v20 }
 0x4b4   : > { %v6135_v27 = vpack.c.bf16 %v4273_v13, %v4273_v13  ;;  %v4012_v45 = vmul.f32 %v11737_v23, %v3749_v47  ;;  %6658 = vrsqrt.f32 %v3242_v42  ;;  %v2988_v1 = vmul.f32 0.03125, %v2726_v14 }
 0x4b5   : > { %v6649_v59 = vpop.eup %6648  ;;  %v6134_v28 = vpack.c.bf16 %v4272_v30, %v4272_v30  ;;  %v4011_v5 = vmul.f32 %v11737_v23, %v3748_v54  ;;  %v3245_v10 = vadd.f32 1e-06, %v2989_v38 }
 0x4b6   : > { %v6651_v15 = vpop.eup %6650  ;;  %5554 = vst.msk [vmem:[%s10020_s26 + $0x3cc] sm:$0xf] %vm5310_vm1, %v6135_v27  ;;  %v4275_v25 = vadd.f32 %v11746_v56, %v4012_v45  ;;  %v3751_v57 = vmul.f32 %v6649_v59, %v11142_v33  ;;  %v3244_v46 = vadd.f32 1e-06, %v2988_v1  ;;  %v2735_v24 = vpop.xlane.xlu1 %2734 }
 0x4b7   : > { %v2732_v7 = vpop.xlane.xlu0 %2731  ;;  %5553 = vst.msk [vmem:[%s10020_s26 + $0x3c8] sm:$0xf] %vm5310_vm1, %v6134_v28  ;;  %v4274_v21 = vadd.f32 %v11746_v56, %v4011_v5  ;;  %v3750_v35 = vmul.f32 %v6651_v15, %v11148_v0  ;;  %6660 = vrsqrt.f32 %v3245_v10  ;;  %v2991_v34 = vmul.f32 0.03125, %v2735_v24 }
 0x4b8   : > { %v6137_v22 = vpack.c.bf16 %v4275_v25, %v4275_v25  ;;  %v4014_v17 = vmul.f32 %v11737_v23, %v3751_v57  ;;  %6662 = vrsqrt.f32 %v3244_v46  ;;  %v2990_v58 = vmul.f32 0.03125, %v2732_v7 }
 0x4b9   : > { %v6653_v31 = vpop.eup %6652  ;;  %v6136_v33 = vpack.c.bf16 %v4274_v21, %v4274_v21  ;;  %v4013_v2 = vmul.f32 %v11737_v23, %v3750_v35  ;;  %v3247_v63 = vadd.f32 1e-06, %v2991_v34 }
 0x4ba   : > { %v6655_v52 = vpop.eup %6654  ;;  %5556 = vst.msk [vmem:[%s10020_s26 + $0x3d4] sm:$0xf] %vm5310_vm1, %v6137_v22  ;;  %v4277_v41 = vadd.f32 %v11746_v56, %v4014_v17  ;;  %v3753_v0 = vmul.f32 %v6653_v31, %v11208_v39  ;;  %v3246_v29 = vadd.f32 1e-06, %v2990_v58 }
 0x4bb   : > { %5555 = vst.msk [vmem:[%s10020_s26 + $0x3d0] sm:$0xf] %vm5310_vm1, %v6136_v33  ;;  %v4276_v51 = vadd.f32 %v11746_v56, %v4013_v2  ;;  %v3752_v18 = vmul.f32 %v6655_v52, %v11214_v49  ;;  %6664 = vrsqrt.f32 %v3247_v63 }
 0x4bc   : > { %v6139_v32 = vpack.c.bf16 %v4277_v41, %v4277_v41  ;;  %v4016_v48 = vmul.f32 %v11737_v23, %v3753_v0  ;;  %6666 = vrsqrt.f32 %v3246_v29 }
 0x4bd   : > { %v6657_v60 = vpop.eup %6656  ;;  %v6138_v37 = vpack.c.bf16 %v4276_v51, %v4276_v51  ;;  %v4015_v12 = vmul.f32 %v11737_v23, %v3752_v18 }
 0x4be   : > { %v6659_v61 = vpop.eup %6658  ;;  %5558 = vst.msk [vmem:[%s10020_s26 + $0x3dc] sm:$0xf] %vm5310_vm1, %v6139_v32  ;;  %v4279_v39 = vadd.f32 %v11746_v56, %v4016_v48  ;;  %v3755_v62 = vmul.f32 %v6657_v60, %v11274_v16 }
 0x4bf   : > { %5557 = vst.msk [vmem:[%s10020_s26 + $0x3d8] sm:$0xf] %vm5310_vm1, %v6138_v37  ;;  %v4278_v49 = vadd.f32 %v11746_v56, %v4015_v12  ;;  %v3754_v26 = vmul.f32 %v6659_v61, %v11280_v40 }
 0x4c0   : > { %v6141_v19 = vpack.c.bf16 %v4279_v39, %v4279_v39  ;;  %v4018_v50 = vmul.f32 %v11737_v23, %v3755_v62 }
 0x4c1   : > { %v6661_v3 = vpop.eup %6660  ;;  %v6140_v44 = vpack.c.bf16 %v4278_v49, %v4278_v49  ;;  %v4017_v43 = vmul.f32 %v11737_v23, %v3754_v26 }
 0x4c2   : > { %v6663_v53 = vpop.eup %6662  ;;  %5560 = vst.msk [vmem:[%s10020_s26 + $0x3e4] sm:$0xf] %vm5310_vm1, %v6141_v19  ;;  %v4281_v16 = vadd.f32 %v11746_v56, %v4018_v50  ;;  %v3757_v11 = vmul.f32 %v6661_v3, %v11340_v36 }
 0x4c3   : > { %5559 = vst.msk [vmem:[%s10020_s26 + $0x3e0] sm:$0xf] %vm5310_vm1, %v6140_v44  ;;  %v4280_v40 = vadd.f32 %v11746_v56, %v4017_v43  ;;  %v3756_v8 = vmul.f32 %v6663_v53, %v11346_v4 }
 0x4c4   : > { %v6143_v6 = vpack.c.bf16 %v4281_v16, %v4281_v16  ;;  %v4020_v13 = vmul.f32 %v11737_v23, %v3757_v11 }
 0x4c5   : > { %v6665_v47 = vpop.eup %6664  ;;  %v6142_v42 = vpack.c.bf16 %v4280_v40, %v4280_v40  ;;  %v4019_v20 = vmul.f32 %v11737_v23, %v3756_v8 }
 0x4c6   : > { %v6667_v14 = vpop.eup %6666  ;;  %5562 = vst.msk [vmem:[%s10020_s26 + $0x3ec] sm:$0xf] %vm5310_vm1, %v6143_v6  ;;  %v4283_v36 = vadd.f32 %v11746_v56, %v4020_v13  ;;  %v3759_v30 = vmul.f32 %v6665_v47, %v11406_v55 }
 0x4c7   : > { %5561 = vst.msk [vmem:[%s10020_s26 + $0x3e8] sm:$0xf] %vm5310_vm1, %v6142_v42  ;;  %v4282_v4 = vadd.f32 %v11746_v56, %v4019_v20  ;;  %v3758_v54 = vmul.f32 %v6667_v14, %v11412_v9 }
 0x4c8   : > { %v6145_v38 = vpack.c.bf16 %v4283_v36, %v4283_v36  ;;  %v4022_v27 = vmul.f32 %v11737_v23, %v3759_v30 }
 0x4c9   : > { %v6144_v45 = vpack.c.bf16 %v4282_v4, %v4282_v4  ;;  %v4021_v1 = vmul.f32 %v11737_v23, %v3758_v54 }
 0x4ca   : > { %5564 = vst.msk [vmem:[%s10020_s26 + $0x3f4] sm:$0xf] %vm5310_vm1, %v6145_v38  ;;  %v4285_v59 = vadd.f32 %v11746_v56, %v4022_v27 }
 0x4cb   : > { %5563 = vst.msk [vmem:[%s10020_s26 + $0x3f0] sm:$0xf] %vm5310_vm1, %v6144_v45  ;;  %v4284_v55 = vadd.f32 %v11746_v56, %v4021_v1 }
 0x4cc   : > { %v6147_v28 = vpack.c.bf16 %v4285_v59, %v4285_v59 }
 0x4cd   : > { %v6146_v5 = vpack.c.bf16 %v4284_v55, %v4284_v55 }
 0x4ce   : > { %5566 = vst.msk [vmem:[%s10020_s26 + $0x3fc] sm:$0xf] %vm5310_vm1, %v6147_v28 }
 0x4cf   : > { %5565 = vst.msk [vmem:[%s10020_s26 + $0x3f8] sm:$0xf] %vm5310_vm1, %v6146_v5 }
 0x4d0 PF: > { %s13_s12 = sadd.s32 1, %s6940_s12  }
 0x4d1   : > { %p10_p4 = scmp.ge.s32.totalorder %s13_s12, 6  }
 0x4d3   :  { %12 = sbr.rel (!%p10_p4) target bundleno = 1 (0x1), region = 62 }

</bundles_post_ra>
